<compile_context>
chip_gen: v6e
topology: v6e:2x2x1
jax: 0.10.0
libtpu: 0.0.40
codegen_flags: <defaults>
</compile_context>

<pallas_src>
import functools

import jax
import jax.numpy as jnp
from jax.experimental import pallas as pl
from jax.experimental.pallas import tpu as pltpu


def _round_up(x, m):
    return (x + m - 1) // m * m


def _log_sigmoid(x):
    # logsigmoid(x) = -log(1 + exp(-x)); inputs are pre-clamped to [-10, 10]
    # so exp(-x) <= e^10 and this is numerically safe in f32.
    return -jnp.log1p(jnp.exp(-x))


def skipgram_tile_kernel(ids_ref, u_tab_ref, v_tab_t_ref, out_ref, *,
                         global_vocab_size, num_neg, batch_size):
    """Per-batch-tile partial sum of logsig(pos) + sum_k logsig(-neg_k).

    ids_ref:     (TB, 4 + 2K) int32, columns = [cg, cr, xg, xr, ng_0..ng_{K-1},
                 nr_0..nr_{K-1}]  (ids assumed in-range, like nn.Embedding).
    u_tab_ref:   (Vp, D) bf16, stacked [u_global ; u_regional ; zero pad].
    v_tab_t_ref: (D, Vp) bf16, stacked v table, pre-transposed in the wrapper
                 so no in-kernel XLU transpose is needed.
    out_ref:     (1, 8, 128) f32, tile partial sum splatted lane-dense.
    """
    tb = ids_ref.shape[0]
    vp = u_tab_ref.shape[0]
    gvs = global_vocab_size

    ids = ids_ref[...]                                     # (TB, 4 + 2K)
    cg, cr = ids[:, 0:1], ids[:, 1:2]
    xg, xr = ids[:, 2:3], ids[:, 3:4]

    # Hoisted column-index plane, reused by the center gather mask and every
    # score mask (built exactly once per tile).
    col = jax.lax.broadcasted_iota(jnp.int32, (tb, vp), 1)

    # center = u_global[cg] + u_regional[cr] via an exact two-hot bf16 MXU
    # gather: 0/1 x bf16 products are exact and only two terms accumulate.
    hot_c = jnp.logical_or(col == cg, col == cr + gvs).astype(u_tab_ref.dtype)
    center = jnp.dot(hot_c, u_tab_ref[...],
                     preferred_element_type=jnp.float32)   # (TB, D) f32, exact

    # ONE logits matmul covers the positive context and all K negatives:
    # logits[b, j] = <center_b, v_tab[j]>.
    logits = jnp.dot(center.astype(v_tab_t_ref.dtype), v_tab_t_ref[...],
                     preferred_element_type=jnp.float32)   # (TB, Vp) f32

    def pair_score(gid, rid):
        # <center, v_global[gid] + v_regional[rid]>
        #   == logits[:, gid] + logits[:, Vg + rid]
        # (global / regional column ranges are disjoint; padded columns of the
        # table are zero rows, so they contribute nothing even if selected).
        m = jnp.logical_or(col == gid, col == rid + gvs)
        return jnp.sum(jnp.where(m, logits, 0.0), axis=1, keepdims=True)

    pos = jnp.clip(pair_score(xg, xr), -10.0, 10.0)
    score = _log_sigmoid(pos)                              # (TB, 1)

    for k in range(num_neg):                               # K is small: unroll
        ng_k = ids[:, 4 + k:5 + k]
        nr_k = ids[:, 4 + num_neg + k:5 + num_neg + k]
        s_k = jnp.clip(pair_score(ng_k, nr_k), -10.0, 10.0)
        score = score + _log_sigmoid(-s_k)

    # Mask rows past the true batch size (batch is padded to whole tiles).
    row = pl.program_id(0) * tb + jax.lax.broadcasted_iota(jnp.int32, (tb, 1), 0)
    score = jnp.where(row < batch_size, score, 0.0)

    # Lane-dense per-tile partial sum: one full (8, 128) unmasked store.
    out_ref[...] = jnp.full((1, 8, 128), jnp.sum(score), dtype=jnp.float32)


def prepare_skipgram_tables(params, geo_tag="US", table_dtype=jnp.bfloat16,
                            vocab_pad=128):
    """Stack [global ; regional] u/v tables, zero-pad the vocab axis to a
    lane-aligned width, cast to bf16 and pre-transpose the v table.

    Call this ONCE per geo_tag outside the training/eval step; the stacked
    tables are what the kernel keeps resident in VMEM.
    """
    if geo_tag == "US":
        u_reg, v_reg = params["u_usa"], params["v_usa"]
    else:
        u_reg, v_reg = params["u_uk"], params["v_uk"]
    gv = params["u_global"].shape[0]

    u_tab = jnp.concatenate([params["u_global"], u_reg], axis=0)
    v_tab = jnp.concatenate([params["v_global"], v_reg], axis=0)
    v_total = u_tab.shape[0]
    vp = _round_up(v_total, vocab_pad)
    if vp != v_total:
        u_tab = jnp.pad(u_tab, ((0, vp - v_total), (0, 0)))
        v_tab = jnp.pad(v_tab, ((0, vp - v_total), (0, 0)))

    u_tab = u_tab.astype(table_dtype)                # (Vp, D)
    v_tab_t = v_tab.astype(table_dtype).T            # (D, Vp), pre-transposed
    return u_tab, v_tab_t, gv


def skipgram_loss(u_tab, v_tab_t, center_glb_ids, center_reg_ids,
                  context_glb_ids, context_reg_ids, neg_glb_ids, neg_reg_ids,
                  *, global_vocab_size, batch_tile=128):
    """-mean over the batch of the skip-gram NEG objective (Pallas kernel)."""
    B = center_glb_ids.shape[0]
    K = neg_glb_ids.shape[1]
    Vp, D = u_tab.shape
    assert v_tab_t.shape == (D, Vp)

    # ---- batch tiling: pad B up to whole tiles, prefer >= 2 tiles ----------
    tb = min(batch_tile, _round_up(B, 8))
    tb = _round_up(tb, 8)
    if _round_up(B, tb) // tb < 2 and tb >= 16:
        # Split into ~2 tiles so both TensorCores get work (v7x megacore) and
        # the BlockSpec pipeline is actually active.
        tb = _round_up((B + 1) // 2, 8)
    num_tiles = _round_up(B, tb) // tb
    b_pad = num_tiles * tb

    # ---- pack all ids into one (B_pad, 4 + 2K) int32 array (one DMA/step) --
    as_col = lambda x: x.reshape(B, 1)
    ids = jnp.concatenate(
        [as_col(center_glb_ids), as_col(center_reg_ids),
         as_col(context_glb_ids), as_col(context_reg_ids),
         neg_glb_ids.reshape(B, K), neg_reg_ids.reshape(B, K)],
        axis=1).astype(jnp.int32)
    if b_pad != B:
        ids = jnp.pad(ids, ((0, b_pad - B), (0, 0)))   # id 0 is in-range; rows masked in-kernel

    kernel = functools.partial(skipgram_tile_kernel,
                               global_vocab_size=global_vocab_size,
                               num_neg=K, batch_size=B)

    # ---- explicit VMEM budget from the real footprint (v7x: 64 MiB phys) ---
    itemsize = jnp.dtype(u_tab.dtype).itemsize
    table_bytes = 2 * Vp * D * itemsize                       # u_tab + v_tab_t
    io_tile_bytes = tb * (4 + 2 * K) * 4 + 8 * 128 * 4        # ids block + out block
    work_bytes = tb * Vp * 4 * 4 + tb * D * 4 * 2             # col/hot/logits/mask + center (rough)
    vmem_limit = int(2 * (table_bytes + io_tile_bytes) + work_bytes + (8 << 20))
    vmem_limit = max(16 << 20, min(vmem_limit, 64 << 20))

    # NOTE: the table index_maps are constant, so the tables are DMA'd once and
    # stay resident (no per-step re-DMA).  On v7x, pipeline_mode=pl.Buffered(1)
    # would additionally halve their buffer footprint; we keep the default
    # buffering for portability and size vmem_limit_bytes explicitly instead.
    tab_u_spec = pl.BlockSpec((Vp, D), lambda i: (0, 0))
    tab_v_spec = pl.BlockSpec((D, Vp), lambda i: (0, 0))
    ids_spec = pl.BlockSpec((tb, 4 + 2 * K), lambda i: (i, 0))

    partial_sums = pl.pallas_call(
        kernel,
        out_shape=jax.ShapeDtypeStruct((num_tiles, 8, 128), jnp.float32),
        grid_spec=pltpu.PrefetchScalarGridSpec(
            num_scalar_prefetch=0,
            grid=(num_tiles,),
            in_specs=[ids_spec, tab_u_spec, tab_v_spec],
            out_specs=pl.BlockSpec((1, 8, 128), lambda i: (i, 0, 0)),
        ),
        compiler_params=pltpu.CompilerParams(
            dimension_semantics=("parallel",),
            vmem_limit_bytes=vmem_limit),
    )(ids, u_tab, v_tab_t)

    # Final reduction (mirrors -torch.mean(score)); padded rows were zeroed.
    return -jnp.sum(partial_sums[:, 0, 0]) / B


def skipgram_forward(params, center_reg_ids, context_reg_ids,
                     center_glb_ids, context_glb_ids,
                     neg_reg_ids, neg_glb_ids, geo_tag="US",
                     table_dtype=jnp.bfloat16, batch_tile=128):
    """Convenience mirror of SkipGram.forward (geo_tag selects regional tables).

    The word2id_* string->id dicts of the PyTorch module are pure-Python glue;
    the caller supplies integer ids directly.  Training loops should call
    prepare_skipgram_tables() once and skipgram_loss() directly so the table
    stack/cast/pad is not redone every step.
    """
    u_tab, v_tab_t, gv = prepare_skipgram_tables(params, geo_tag, table_dtype)
    return skipgram_loss(u_tab, v_tab_t, center_glb_ids, center_reg_ids,
                         context_glb_ids, context_reg_ids,
                         neg_glb_ids, neg_reg_ids,
                         global_vocab_size=gv, batch_tile=batch_tile)


def _reference_loss(center, context, neg):
    pos = jnp.clip(jnp.sum(center * context, axis=1), -10.0, 10.0)
    pos = _log_sigmoid(pos)
    ns = jnp.clip(jnp.einsum("bkd,bd->bk", neg, center), -10.0, 10.0)
    ns = jnp.sum(_log_sigmoid(-ns), axis=1)
    return -jnp.mean(pos + ns)


if __name__ == "__main__":
    B, K, D = 256, 8, 128           # batch, #negatives, emb_dim
    GLOBAL_V, US_V, UK_V = 64, 48, 48

    key = jax.random.PRNGKey(0)
    keys = jax.random.split(key, 12)

    # Deterministic synthetic init.  The PyTorch module zero-fills every table
    # except u_global (normal(0, 0.02)); we use small normals for all tables
    # so the kernel math is actually exercised (shapes match __init__).
    params = {
        "u_global": 0.02 * jax.random.normal(keys[0], (GLOBAL_V, D), jnp.float32),
        "v_global": 0.02 * jax.random.normal(keys[1], (GLOBAL_V, D), jnp.float32),
        "u_usa":    0.02 * jax.random.normal(keys[2], (US_V, D), jnp.float32),
        "v_usa":    0.02 * jax.random.normal(keys[3], (US_V, D), jnp.float32),
        "u_uk":     0.02 * jax.random.normal(keys[4], (UK_V, D), jnp.float32),
        "v_uk":     0.02 * jax.random.normal(keys[5], (UK_V, D), jnp.float32),
    }

    # Integer ids stand in for the word2id_* string lookups (host-side glue in
    # the original module).  No range validation, same as nn.Embedding.
    center_reg_ids = jax.random.randint(keys[6], (B,), 0, US_V)
    context_reg_ids = jax.random.randint(keys[7], (B,), 0, US_V)
    center_glb_ids = jax.random.randint(keys[8], (B,), 0, GLOBAL_V)
    context_glb_ids = jax.random.randint(keys[9], (B,), 0, GLOBAL_V)
    neg_reg_ids = jax.random.randint(keys[10], (B, K), 0, US_V)
    neg_glb_ids = jax.random.randint(keys[11], (B, K), 0, GLOBAL_V)

    # Hoisted table preparation (done once), then the Pallas loss.
    u_tab, v_tab_t, gv = prepare_skipgram_tables(params, geo_tag="US")
    loss = skipgram_loss(u_tab, v_tab_t, center_glb_ids, center_reg_ids,
                         context_glb_ids, context_reg_ids,
                         neg_glb_ids, neg_reg_ids,
                         global_vocab_size=gv, batch_tile=128)  # 2 batch tiles
    loss = jax.block_until_ready(loss)

    # Pure-JAX reference built from the exact bf16 tables the kernel consumes;
    # `center` is rounded to bf16 before the dot products to mirror the bf16
    # MXU logits matmul (accumulation stays f32 in both).
    u_ref = jnp.concatenate([params["u_global"], params["u_usa"]], axis=0)
    v_ref = jnp.concatenate([params["v_global"], params["v_usa"]], axis=0)
    u_ref = u_ref.astype(jnp.bfloat16).astype(jnp.float32)
    v_ref = v_ref.astype(jnp.bfloat16).astype(jnp.float32)
    center = u_ref[center_glb_ids] + u_ref[GLOBAL_V + center_reg_ids]
    center = center.astype(jnp.bfloat16).astype(jnp.float32)
    context = v_ref[context_glb_ids] + v_ref[GLOBAL_V + context_reg_ids]
    neg = v_ref[neg_glb_ids] + v_ref[GLOBAL_V + neg_reg_ids]
    ref = _reference_loss(center, context, neg)

    assert jnp.allclose(loss, ref, rtol=1e-4, atol=1e-5), (loss, ref)
    print("KERNEL_OK")
</pallas_src>

<mosaic_0001>
module attributes {stable_mosaic.version = 11 : i64} {
  func.func @skipgram_tile_kernel(%arg0: i32, %arg1: memref<128x20xi32, #tpu.memory_space<vmem>>, %arg2: memref<128x128xbf16, #tpu.memory_space<vmem>>, %arg3: memref<128x128xbf16, #tpu.memory_space<vmem>>, %arg4: memref<1x8x128xf32, #tpu.memory_space<vmem>>) attributes {dimension_semantics = [#tpu.dimension_semantics<parallel>], iteration_bounds = array<i64: 2>, scalar_prefetch = 0 : i64, scratch_operands = 0 : i64, tpu.core_type = #tpu.core_type<tc>, window_params = [{transform_indices = @transform_0, window_bounds = array<i64: 128, 20>}, {pipeline_mode = #tpu.pipeline_mode<synchronous>, transform_indices = @transform_1, window_bounds = array<i64: 128, 128>}, {pipeline_mode = #tpu.pipeline_mode<synchronous>, transform_indices = @transform_2, window_bounds = array<i64: 128, 128>}, {transform_indices = @transform_3, window_bounds = array<i64: 1, 8, 128>}]} {
    %c0 = arith.constant 0 : index
    %c0_0 = arith.constant 0 : index
    %0 = vector.load %arg1[%c0, %c0_0] : memref<128x20xi32, #tpu.memory_space<vmem>>, vector<128x20xi32>
    %1 = vector.extract_strided_slice %0 {offsets = [0, 0], sizes = [128, 1], strides = [1, 1]} : vector<128x20xi32> to vector<128x1xi32>
    %2 = vector.extract_strided_slice %0 {offsets = [0, 1], sizes = [128, 1], strides = [1, 1]} : vector<128x20xi32> to vector<128x1xi32>
    %3 = vector.extract_strided_slice %0 {offsets = [0, 2], sizes = [128, 1], strides = [1, 1]} : vector<128x20xi32> to vector<128x1xi32>
    %4 = vector.extract_strided_slice %0 {offsets = [0, 3], sizes = [128, 1], strides = [1, 1]} : vector<128x20xi32> to vector<128x1xi32>
    %5 = tpu.iota {dimensions = array<i32: 1>} : vector<128x128xi32>
    %6 = vector.broadcast %1 : vector<128x1xi32> to vector<128x128xi32>
    %7 = arith.cmpi eq, %5, %6 : vector<128x128xi32>
    %c64_i32 = arith.constant 64 : i32
    %8 = vector.broadcast %c64_i32 : i32 to vector<128x1xi32>
    %9 = arith.addi %2, %8 : vector<128x1xi32>
    %10 = vector.broadcast %9 : vector<128x1xi32> to vector<128x128xi32>
    %11 = arith.cmpi eq, %5, %10 : vector<128x128xi32>
    %12 = arith.ori %7, %11 : vector<128x128xi1>
    %13 = arith.extui %12 : vector<128x128xi1> to vector<128x128xi32>
    %14 = arith.sitofp %13 : vector<128x128xi32> to vector<128x128xf32>
    %15 = arith.truncf %14 : vector<128x128xf32> to vector<128x128xbf16>
    %c0_1 = arith.constant 0 : index
    %c0_2 = arith.constant 0 : index
    %16 = vector.load %arg2[%c0_1, %c0_2] : memref<128x128xbf16, #tpu.memory_space<vmem>>, vector<128x128xbf16>
    %cst = arith.constant dense<0.000000e+00> : vector<128x128xf32>
    %17 = tpu.matmul %15, %16, %cst {dimension_numbers = #tpu.dot_dimension_numbers<[1], [0], [0], [1], [0, 0, 1, 1], [], []>} : vector<128x128xbf16>, vector<128x128xbf16>, vector<128x128xf32> -> vector<128x128xf32>
    %18 = arith.truncf %17 : vector<128x128xf32> to vector<128x128xbf16>
    %c0_3 = arith.constant 0 : index
    %c0_4 = arith.constant 0 : index
    %19 = vector.load %arg3[%c0_3, %c0_4] : memref<128x128xbf16, #tpu.memory_space<vmem>>, vector<128x128xbf16>
    %cst_5 = arith.constant dense<0.000000e+00> : vector<128x128xf32>
    %20 = tpu.matmul %18, %19, %cst_5 {dimension_numbers = #tpu.dot_dimension_numbers<[1], [0], [0], [1], [0, 0, 1, 1], [], []>} : vector<128x128xbf16>, vector<128x128xbf16>, vector<128x128xf32> -> vector<128x128xf32>
    %21 = vector.broadcast %3 : vector<128x1xi32> to vector<128x128xi32>
    %22 = arith.cmpi eq, %5, %21 : vector<128x128xi32>
    %c64_i32_6 = arith.constant 64 : i32
    %23 = vector.broadcast %c64_i32_6 : i32 to vector<128x1xi32>
    %24 = arith.addi %4, %23 : vector<128x1xi32>
    %25 = vector.broadcast %24 : vector<128x1xi32> to vector<128x128xi32>
    %26 = arith.cmpi eq, %5, %25 : vector<128x128xi32>
    %27 = arith.ori %22, %26 : vector<128x128xi1>
    %cst_7 = arith.constant 0.000000e+00 : f32
    %28 = vector.broadcast %cst_7 : f32 to vector<128x128xf32>
    %29 = arith.select %27, %20, %28 : vector<128x128xi1>, vector<128x128xf32>
    %cst_8 = arith.constant dense<0.000000e+00> : vector<128xf32>
    %30 = vector.multi_reduction <add>, %29, %cst_8 [1] : vector<128x128xf32> to vector<128xf32>
    %31 = vector.shape_cast %30 : vector<128xf32> to vector<128x1xf32>
    %cst_9 = arith.constant -1.000000e+01 : f32
    %cst_10 = arith.constant 1.000000e+01 : f32
    %32 = vector.broadcast %cst_9 : f32 to vector<128x1xf32>
    %33 = arith.maximumf %32, %31 : vector<128x1xf32>
    %34 = vector.broadcast %cst_10 : f32 to vector<128x1xf32>
    %35 = arith.minimumf %34, %33 : vector<128x1xf32>
    %cst_11 = arith.constant 0.000000e+00 : f32
    %36 = vector.broadcast %cst_11 : f32 to vector<128x1xf32>
    %37 = arith.subf %36, %35 : vector<128x1xf32>
    %38 = math.exp %37 : vector<128x1xf32>
    %39 = math.log1p %38 : vector<128x1xf32>
    %cst_12 = arith.constant 0.000000e+00 : f32
    %40 = vector.broadcast %cst_12 : f32 to vector<128x1xf32>
    %41 = arith.subf %40, %39 : vector<128x1xf32>
    %42 = vector.extract_strided_slice %0 {offsets = [0, 4], sizes = [128, 1], strides = [1, 1]} : vector<128x20xi32> to vector<128x1xi32>
    %43 = vector.extract_strided_slice %0 {offsets = [0, 12], sizes = [128, 1], strides = [1, 1]} : vector<128x20xi32> to vector<128x1xi32>
    %44 = vector.broadcast %42 : vector<128x1xi32> to vector<128x128xi32>
    %45 = arith.cmpi eq, %5, %44 : vector<128x128xi32>
    %c64_i32_13 = arith.constant 64 : i32
    %46 = vector.broadcast %c64_i32_13 : i32 to vector<128x1xi32>
    %47 = arith.addi %43, %46 : vector<128x1xi32>
    %48 = vector.broadcast %47 : vector<128x1xi32> to vector<128x128xi32>
    %49 = arith.cmpi eq, %5, %48 : vector<128x128xi32>
    %50 = arith.ori %45, %49 : vector<128x128xi1>
    %cst_14 = arith.constant 0.000000e+00 : f32
    %51 = vector.broadcast %cst_14 : f32 to vector<128x128xf32>
    %52 = arith.select %50, %20, %51 : vector<128x128xi1>, vector<128x128xf32>
    %cst_15 = arith.constant dense<0.000000e+00> : vector<128xf32>
    %53 = vector.multi_reduction <add>, %52, %cst_15 [1] : vector<128x128xf32> to vector<128xf32>
    %54 = vector.shape_cast %53 : vector<128xf32> to vector<128x1xf32>
    %cst_16 = arith.constant -1.000000e+01 : f32
    %cst_17 = arith.constant 1.000000e+01 : f32
    %55 = vector.broadcast %cst_16 : f32 to vector<128x1xf32>
    %56 = arith.maximumf %55, %54 : vector<128x1xf32>
    %57 = vector.broadcast %cst_17 : f32 to vector<128x1xf32>
    %58 = arith.minimumf %57, %56 : vector<128x1xf32>
    %cst_18 = arith.constant 0.000000e+00 : f32
    %59 = vector.broadcast %cst_18 : f32 to vector<128x1xf32>
    %60 = arith.subf %59, %58 : vector<128x1xf32>
    %cst_19 = arith.constant 0.000000e+00 : f32
    %61 = vector.broadcast %cst_19 : f32 to vector<128x1xf32>
    %62 = arith.subf %61, %60 : vector<128x1xf32>
    %63 = math.exp %62 : vector<128x1xf32>
    %64 = math.log1p %63 : vector<128x1xf32>
    %cst_20 = arith.constant 0.000000e+00 : f32
    %65 = vector.broadcast %cst_20 : f32 to vector<128x1xf32>
    %66 = arith.subf %65, %64 : vector<128x1xf32>
    %67 = arith.addf %41, %66 : vector<128x1xf32>
    %68 = vector.extract_strided_slice %0 {offsets = [0, 5], sizes = [128, 1], strides = [1, 1]} : vector<128x20xi32> to vector<128x1xi32>
    %69 = vector.extract_strided_slice %0 {offsets = [0, 13], sizes = [128, 1], strides = [1, 1]} : vector<128x20xi32> to vector<128x1xi32>
    %70 = vector.broadcast %68 : vector<128x1xi32> to vector<128x128xi32>
    %71 = arith.cmpi eq, %5, %70 : vector<128x128xi32>
    %c64_i32_21 = arith.constant 64 : i32
    %72 = vector.broadcast %c64_i32_21 : i32 to vector<128x1xi32>
    %73 = arith.addi %69, %72 : vector<128x1xi32>
    %74 = vector.broadcast %73 : vector<128x1xi32> to vector<128x128xi32>
    %75 = arith.cmpi eq, %5, %74 : vector<128x128xi32>
    %76 = arith.ori %71, %75 : vector<128x128xi1>
    %cst_22 = arith.constant 0.000000e+00 : f32
    %77 = vector.broadcast %cst_22 : f32 to vector<128x128xf32>
    %78 = arith.select %76, %20, %77 : vector<128x128xi1>, vector<128x128xf32>
    %cst_23 = arith.constant dense<0.000000e+00> : vector<128xf32>
    %79 = vector.multi_reduction <add>, %78, %cst_23 [1] : vector<128x128xf32> to vector<128xf32>
    %80 = vector.shape_cast %79 : vector<128xf32> to vector<128x1xf32>
    %cst_24 = arith.constant -1.000000e+01 : f32
    %cst_25 = arith.constant 1.000000e+01 : f32
    %81 = vector.broadcast %cst_24 : f32 to vector<128x1xf32>
    %82 = arith.maximumf %81, %80 : vector<128x1xf32>
    %83 = vector.broadcast %cst_25 : f32 to vector<128x1xf32>
    %84 = arith.minimumf %83, %82 : vector<128x1xf32>
    %cst_26 = arith.constant 0.000000e+00 : f32
    %85 = vector.broadcast %cst_26 : f32 to vector<128x1xf32>
    %86 = arith.subf %85, %84 : vector<128x1xf32>
    %cst_27 = arith.constant 0.000000e+00 : f32
    %87 = vector.broadcast %cst_27 : f32 to vector<128x1xf32>
    %88 = arith.subf %87, %86 : vector<128x1xf32>
    %89 = math.exp %88 : vector<128x1xf32>
    %90 = math.log1p %89 : vector<128x1xf32>
    %cst_28 = arith.constant 0.000000e+00 : f32
    %91 = vector.broadcast %cst_28 : f32 to vector<128x1xf32>
    %92 = arith.subf %91, %90 : vector<128x1xf32>
    %93 = arith.addf %67, %92 : vector<128x1xf32>
    %94 = vector.extract_strided_slice %0 {offsets = [0, 6], sizes = [128, 1], strides = [1, 1]} : vector<128x20xi32> to vector<128x1xi32>
    %95 = vector.extract_strided_slice %0 {offsets = [0, 14], sizes = [128, 1], strides = [1, 1]} : vector<128x20xi32> to vector<128x1xi32>
    %96 = vector.broadcast %94 : vector<128x1xi32> to vector<128x128xi32>
    %97 = arith.cmpi eq, %5, %96 : vector<128x128xi32>
    %c64_i32_29 = arith.constant 64 : i32
    %98 = vector.broadcast %c64_i32_29 : i32 to vector<128x1xi32>
    %99 = arith.addi %95, %98 : vector<128x1xi32>
    %100 = vector.broadcast %99 : vector<128x1xi32> to vector<128x128xi32>
    %101 = arith.cmpi eq, %5, %100 : vector<128x128xi32>
    %102 = arith.ori %97, %101 : vector<128x128xi1>
    %cst_30 = arith.constant 0.000000e+00 : f32
    %103 = vector.broadcast %cst_30 : f32 to vector<128x128xf32>
    %104 = arith.select %102, %20, %103 : vector<128x128xi1>, vector<128x128xf32>
    %cst_31 = arith.constant dense<0.000000e+00> : vector<128xf32>
    %105 = vector.multi_reduction <add>, %104, %cst_31 [1] : vector<128x128xf32> to vector<128xf32>
    %106 = vector.shape_cast %105 : vector<128xf32> to vector<128x1xf32>
    %cst_32 = arith.constant -1.000000e+01 : f32
    %cst_33 = arith.constant 1.000000e+01 : f32
    %107 = vector.broadcast %cst_32 : f32 to vector<128x1xf32>
    %108 = arith.maximumf %107, %106 : vector<128x1xf32>
    %109 = vector.broadcast %cst_33 : f32 to vector<128x1xf32>
    %110 = arith.minimumf %109, %108 : vector<128x1xf32>
    %cst_34 = arith.constant 0.000000e+00 : f32
    %111 = vector.broadcast %cst_34 : f32 to vector<128x1xf32>
    %112 = arith.subf %111, %110 : vector<128x1xf32>
    %cst_35 = arith.constant 0.000000e+00 : f32
    %113 = vector.broadcast %cst_35 : f32 to vector<128x1xf32>
    %114 = arith.subf %113, %112 : vector<128x1xf32>
    %115 = math.exp %114 : vector<128x1xf32>
    %116 = math.log1p %115 : vector<128x1xf32>
    %cst_36 = arith.constant 0.000000e+00 : f32
    %117 = vector.broadcast %cst_36 : f32 to vector<128x1xf32>
    %118 = arith.subf %117, %116 : vector<128x1xf32>
    %119 = arith.addf %93, %118 : vector<128x1xf32>
    %120 = vector.extract_strided_slice %0 {offsets = [0, 7], sizes = [128, 1], strides = [1, 1]} : vector<128x20xi32> to vector<128x1xi32>
    %121 = vector.extract_strided_slice %0 {offsets = [0, 15], sizes = [128, 1], strides = [1, 1]} : vector<128x20xi32> to vector<128x1xi32>
    %122 = vector.broadcast %120 : vector<128x1xi32> to vector<128x128xi32>
    %123 = arith.cmpi eq, %5, %122 : vector<128x128xi32>
    %c64_i32_37 = arith.constant 64 : i32
    %124 = vector.broadcast %c64_i32_37 : i32 to vector<128x1xi32>
    %125 = arith.addi %121, %124 : vector<128x1xi32>
    %126 = vector.broadcast %125 : vector<128x1xi32> to vector<128x128xi32>
    %127 = arith.cmpi eq, %5, %126 : vector<128x128xi32>
    %128 = arith.ori %123, %127 : vector<128x128xi1>
    %cst_38 = arith.constant 0.000000e+00 : f32
    %129 = vector.broadcast %cst_38 : f32 to vector<128x128xf32>
    %130 = arith.select %128, %20, %129 : vector<128x128xi1>, vector<128x128xf32>
    %cst_39 = arith.constant dense<0.000000e+00> : vector<128xf32>
    %131 = vector.multi_reduction <add>, %130, %cst_39 [1] : vector<128x128xf32> to vector<128xf32>
    %132 = vector.shape_cast %131 : vector<128xf32> to vector<128x1xf32>
    %cst_40 = arith.constant -1.000000e+01 : f32
    %cst_41 = arith.constant 1.000000e+01 : f32
    %133 = vector.broadcast %cst_40 : f32 to vector<128x1xf32>
    %134 = arith.maximumf %133, %132 : vector<128x1xf32>
    %135 = vector.broadcast %cst_41 : f32 to vector<128x1xf32>
    %136 = arith.minimumf %135, %134 : vector<128x1xf32>
    %cst_42 = arith.constant 0.000000e+00 : f32
    %137 = vector.broadcast %cst_42 : f32 to vector<128x1xf32>
    %138 = arith.subf %137, %136 : vector<128x1xf32>
    %cst_43 = arith.constant 0.000000e+00 : f32
    %139 = vector.broadcast %cst_43 : f32 to vector<128x1xf32>
    %140 = arith.subf %139, %138 : vector<128x1xf32>
    %141 = math.exp %140 : vector<128x1xf32>
    %142 = math.log1p %141 : vector<128x1xf32>
    %cst_44 = arith.constant 0.000000e+00 : f32
    %143 = vector.broadcast %cst_44 : f32 to vector<128x1xf32>
    %144 = arith.subf %143, %142 : vector<128x1xf32>
    %145 = arith.addf %119, %144 : vector<128x1xf32>
    %146 = vector.extract_strided_slice %0 {offsets = [0, 8], sizes = [128, 1], strides = [1, 1]} : vector<128x20xi32> to vector<128x1xi32>
    %147 = vector.extract_strided_slice %0 {offsets = [0, 16], sizes = [128, 1], strides = [1, 1]} : vector<128x20xi32> to vector<128x1xi32>
    %148 = vector.broadcast %146 : vector<128x1xi32> to vector<128x128xi32>
    %149 = arith.cmpi eq, %5, %148 : vector<128x128xi32>
    %c64_i32_45 = arith.constant 64 : i32
    %150 = vector.broadcast %c64_i32_45 : i32 to vector<128x1xi32>
    %151 = arith.addi %147, %150 : vector<128x1xi32>
    %152 = vector.broadcast %151 : vector<128x1xi32> to vector<128x128xi32>
    %153 = arith.cmpi eq, %5, %152 : vector<128x128xi32>
    %154 = arith.ori %149, %153 : vector<128x128xi1>
    %cst_46 = arith.constant 0.000000e+00 : f32
    %155 = vector.broadcast %cst_46 : f32 to vector<128x128xf32>
    %156 = arith.select %154, %20, %155 : vector<128x128xi1>, vector<128x128xf32>
    %cst_47 = arith.constant dense<0.000000e+00> : vector<128xf32>
    %157 = vector.multi_reduction <add>, %156, %cst_47 [1] : vector<128x128xf32> to vector<128xf32>
    %158 = vector.shape_cast %157 : vector<128xf32> to vector<128x1xf32>
    %cst_48 = arith.constant -1.000000e+01 : f32
    %cst_49 = arith.constant 1.000000e+01 : f32
    %159 = vector.broadcast %cst_48 : f32 to vector<128x1xf32>
    %160 = arith.maximumf %159, %158 : vector<128x1xf32>
    %161 = vector.broadcast %cst_49 : f32 to vector<128x1xf32>
    %162 = arith.minimumf %161, %160 : vector<128x1xf32>
    %cst_50 = arith.constant 0.000000e+00 : f32
    %163 = vector.broadcast %cst_50 : f32 to vector<128x1xf32>
    %164 = arith.subf %163, %162 : vector<128x1xf32>
    %cst_51 = arith.constant 0.000000e+00 : f32
    %165 = vector.broadcast %cst_51 : f32 to vector<128x1xf32>
    %166 = arith.subf %165, %164 : vector<128x1xf32>
    %167 = math.exp %166 : vector<128x1xf32>
    %168 = math.log1p %167 : vector<128x1xf32>
    %cst_52 = arith.constant 0.000000e+00 : f32
    %169 = vector.broadcast %cst_52 : f32 to vector<128x1xf32>
    %170 = arith.subf %169, %168 : vector<128x1xf32>
    %171 = arith.addf %145, %170 : vector<128x1xf32>
    %172 = vector.extract_strided_slice %0 {offsets = [0, 9], sizes = [128, 1], strides = [1, 1]} : vector<128x20xi32> to vector<128x1xi32>
    %173 = vector.extract_strided_slice %0 {offsets = [0, 17], sizes = [128, 1], strides = [1, 1]} : vector<128x20xi32> to vector<128x1xi32>
    %174 = vector.broadcast %172 : vector<128x1xi32> to vector<128x128xi32>
    %175 = arith.cmpi eq, %5, %174 : vector<128x128xi32>
    %c64_i32_53 = arith.constant 64 : i32
    %176 = vector.broadcast %c64_i32_53 : i32 to vector<128x1xi32>
    %177 = arith.addi %173, %176 : vector<128x1xi32>
    %178 = vector.broadcast %177 : vector<128x1xi32> to vector<128x128xi32>
    %179 = arith.cmpi eq, %5, %178 : vector<128x128xi32>
    %180 = arith.ori %175, %179 : vector<128x128xi1>
    %cst_54 = arith.constant 0.000000e+00 : f32
    %181 = vector.broadcast %cst_54 : f32 to vector<128x128xf32>
    %182 = arith.select %180, %20, %181 : vector<128x128xi1>, vector<128x128xf32>
    %cst_55 = arith.constant dense<0.000000e+00> : vector<128xf32>
    %183 = vector.multi_reduction <add>, %182, %cst_55 [1] : vector<128x128xf32> to vector<128xf32>
    %184 = vector.shape_cast %183 : vector<128xf32> to vector<128x1xf32>
    %cst_56 = arith.constant -1.000000e+01 : f32
    %cst_57 = arith.constant 1.000000e+01 : f32
    %185 = vector.broadcast %cst_56 : f32 to vector<128x1xf32>
    %186 = arith.maximumf %185, %184 : vector<128x1xf32>
    %187 = vector.broadcast %cst_57 : f32 to vector<128x1xf32>
    %188 = arith.minimumf %187, %186 : vector<128x1xf32>
    %cst_58 = arith.constant 0.000000e+00 : f32
    %189 = vector.broadcast %cst_58 : f32 to vector<128x1xf32>
    %190 = arith.subf %189, %188 : vector<128x1xf32>
    %cst_59 = arith.constant 0.000000e+00 : f32
    %191 = vector.broadcast %cst_59 : f32 to vector<128x1xf32>
    %192 = arith.subf %191, %190 : vector<128x1xf32>
    %193 = math.exp %192 : vector<128x1xf32>
    %194 = math.log1p %193 : vector<128x1xf32>
    %cst_60 = arith.constant 0.000000e+00 : f32
    %195 = vector.broadcast %cst_60 : f32 to vector<128x1xf32>
    %196 = arith.subf %195, %194 : vector<128x1xf32>
    %197 = arith.addf %171, %196 : vector<128x1xf32>
    %198 = vector.extract_strided_slice %0 {offsets = [0, 10], sizes = [128, 1], strides = [1, 1]} : vector<128x20xi32> to vector<128x1xi32>
    %199 = vector.extract_strided_slice %0 {offsets = [0, 18], sizes = [128, 1], strides = [1, 1]} : vector<128x20xi32> to vector<128x1xi32>
    %200 = vector.broadcast %198 : vector<128x1xi32> to vector<128x128xi32>
    %201 = arith.cmpi eq, %5, %200 : vector<128x128xi32>
    %c64_i32_61 = arith.constant 64 : i32
    %202 = vector.broadcast %c64_i32_61 : i32 to vector<128x1xi32>
    %203 = arith.addi %199, %202 : vector<128x1xi32>
    %204 = vector.broadcast %203 : vector<128x1xi32> to vector<128x128xi32>
    %205 = arith.cmpi eq, %5, %204 : vector<128x128xi32>
    %206 = arith.ori %201, %205 : vector<128x128xi1>
    %cst_62 = arith.constant 0.000000e+00 : f32
    %207 = vector.broadcast %cst_62 : f32 to vector<128x128xf32>
    %208 = arith.select %206, %20, %207 : vector<128x128xi1>, vector<128x128xf32>
    %cst_63 = arith.constant dense<0.000000e+00> : vector<128xf32>
    %209 = vector.multi_reduction <add>, %208, %cst_63 [1] : vector<128x128xf32> to vector<128xf32>
    %210 = vector.shape_cast %209 : vector<128xf32> to vector<128x1xf32>
    %cst_64 = arith.constant -1.000000e+01 : f32
    %cst_65 = arith.constant 1.000000e+01 : f32
    %211 = vector.broadcast %cst_64 : f32 to vector<128x1xf32>
    %212 = arith.maximumf %211, %210 : vector<128x1xf32>
    %213 = vector.broadcast %cst_65 : f32 to vector<128x1xf32>
    %214 = arith.minimumf %213, %212 : vector<128x1xf32>
    %cst_66 = arith.constant 0.000000e+00 : f32
    %215 = vector.broadcast %cst_66 : f32 to vector<128x1xf32>
    %216 = arith.subf %215, %214 : vector<128x1xf32>
    %cst_67 = arith.constant 0.000000e+00 : f32
    %217 = vector.broadcast %cst_67 : f32 to vector<128x1xf32>
    %218 = arith.subf %217, %216 : vector<128x1xf32>
    %219 = math.exp %218 : vector<128x1xf32>
    %220 = math.log1p %219 : vector<128x1xf32>
    %cst_68 = arith.constant 0.000000e+00 : f32
    %221 = vector.broadcast %cst_68 : f32 to vector<128x1xf32>
    %222 = arith.subf %221, %220 : vector<128x1xf32>
    %223 = arith.addf %197, %222 : vector<128x1xf32>
    %224 = vector.extract_strided_slice %0 {offsets = [0, 11], sizes = [128, 1], strides = [1, 1]} : vector<128x20xi32> to vector<128x1xi32>
    %225 = vector.extract_strided_slice %0 {offsets = [0, 19], sizes = [128, 1], strides = [1, 1]} : vector<128x20xi32> to vector<128x1xi32>
    %226 = vector.broadcast %224 : vector<128x1xi32> to vector<128x128xi32>
    %227 = arith.cmpi eq, %5, %226 : vector<128x128xi32>
    %c64_i32_69 = arith.constant 64 : i32
    %228 = vector.broadcast %c64_i32_69 : i32 to vector<128x1xi32>
    %229 = arith.addi %225, %228 : vector<128x1xi32>
    %230 = vector.broadcast %229 : vector<128x1xi32> to vector<128x128xi32>
    %231 = arith.cmpi eq, %5, %230 : vector<128x128xi32>
    %232 = arith.ori %227, %231 : vector<128x128xi1>
    %cst_70 = arith.constant 0.000000e+00 : f32
    %233 = vector.broadcast %cst_70 : f32 to vector<128x128xf32>
    %234 = arith.select %232, %20, %233 : vector<128x128xi1>, vector<128x128xf32>
    %cst_71 = arith.constant dense<0.000000e+00> : vector<128xf32>
    %235 = vector.multi_reduction <add>, %234, %cst_71 [1] : vector<128x128xf32> to vector<128xf32>
    %236 = vector.shape_cast %235 : vector<128xf32> to vector<128x1xf32>
    %cst_72 = arith.constant -1.000000e+01 : f32
    %cst_73 = arith.constant 1.000000e+01 : f32
    %237 = vector.broadcast %cst_72 : f32 to vector<128x1xf32>
    %238 = arith.maximumf %237, %236 : vector<128x1xf32>
    %239 = vector.broadcast %cst_73 : f32 to vector<128x1xf32>
    %240 = arith.minimumf %239, %238 : vector<128x1xf32>
    %cst_74 = arith.constant 0.000000e+00 : f32
    %241 = vector.broadcast %cst_74 : f32 to vector<128x1xf32>
    %242 = arith.subf %241, %240 : vector<128x1xf32>
    %cst_75 = arith.constant 0.000000e+00 : f32
    %243 = vector.broadcast %cst_75 : f32 to vector<128x1xf32>
    %244 = arith.subf %243, %242 : vector<128x1xf32>
    %245 = math.exp %244 : vector<128x1xf32>
    %246 = math.log1p %245 : vector<128x1xf32>
    %cst_76 = arith.constant 0.000000e+00 : f32
    %247 = vector.broadcast %cst_76 : f32 to vector<128x1xf32>
    %248 = arith.subf %247, %246 : vector<128x1xf32>
    %249 = arith.addf %223, %248 : vector<128x1xf32>
    %c128_i32 = arith.constant 128 : i32
    %250 = arith.muli %arg0, %c128_i32 : i32
    %251 = tpu.iota {dimensions = array<i32: 0>} : vector<128x1xi32>
    %252 = vector.broadcast %250 : i32 to vector<128x1xi32>
    %253 = arith.addi %252, %251 : vector<128x1xi32>
    %c256_i32 = arith.constant 256 : i32
    %254 = vector.broadcast %c256_i32 : i32 to vector<128x1xi32>
    %255 = arith.cmpi slt, %253, %254 : vector<128x1xi32>
    %cst_77 = arith.constant 0.000000e+00 : f32
    %256 = vector.broadcast %cst_77 : f32 to vector<128x1xf32>
    %257 = arith.select %255, %249, %256 : vector<128x1xi1>, vector<128x1xf32>
    %258 = vector.shape_cast %257 : vector<128x1xf32> to vector<1x128x1xf32>
    %cst_78 = arith.constant dense<0.000000e+00> : vector<1xf32>
    %259 = vector.multi_reduction <add>, %258, %cst_78 [1, 2] : vector<1x128x1xf32> to vector<1xf32>
    %260 = vector.shape_cast %259 : vector<1xf32> to vector<1x1x1xf32>
    %261 = vector.extract %260[0, 0, 0] : f32 from vector<1x1x1xf32>
    %262 = vector.broadcast %261 : f32 to vector<1x8x128xf32>
    %c0_79 = arith.constant 0 : index
    %c0_80 = arith.constant 0 : index
    %c0_81 = arith.constant 0 : index
    %263 = vector.load %arg4[%c0_79, %c0_80, %c0_81] : memref<1x8x128xf32, #tpu.memory_space<vmem>>, vector<1x8x128xf32>
    tpu.vector_store %arg4[%c0_79, %c0_80, %c0_81], %262 {strides = array<i32>} : memref<1x8x128xf32, #tpu.memory_space<vmem>>, vector<1x8x128xf32>,
    return
  }
  func.func @transform_0(%arg0: i32) -> (i32, i32) {
    %c0_i32 = arith.constant 0 : i32
    %c0_i32_0 = arith.constant 0 : i32
    return %arg0, %c0_i32 : i32, i32
  }
  func.func @transform_1(%arg0: i32) -> (i32, i32) {
    %c0_i32 = arith.constant 0 : i32
    %c0_i32_0 = arith.constant 0 : i32
    %c0_i32_1 = arith.constant 0 : i32
    return %c0_i32, %c0_i32_0 : i32, i32
  }
  func.func @transform_2(%arg0: i32) -> (i32, i32) {
    %c0_i32 = arith.constant 0 : i32
    %c0_i32_0 = arith.constant 0 : i32
    %c0_i32_1 = arith.constant 0 : i32
    return %c0_i32, %c0_i32_0 : i32, i32
  }
  func.func @transform_3(%arg0: i32) -> (i32, i32, i32) {
    %c0_i32 = arith.constant 0 : i32
    %c0_i32_0 = arith.constant 0 : i32
    %c0_i32_1 = arith.constant 0 : i32
    return %arg0, %c0_i32, %c0_i32_0 : i32, i32, i32
  }
}

</mosaic_0001>

<bundles_post_ra>
// kernel: tpu_custom_call.1
= control target key start
LH: loop header
LB: loop body
LE: loop exit
PB: predicated region body
PF: predicated region fallthrough
CT: control target
= control target key end

     0   :  { %8 = vsyncpa [#allocation3], 0  ;;  %s11428_s0 = inlined_call_operand.vmem [shape: s32[256,20], index: 0, kind: input, shape index: {}]   ;;  %s11429_s1 = inlined_call_operand.vmem [shape: bf16[128,128], index: 1, kind: input, shape index: {}]   ;;  %s11430_s2 = inlined_call_operand.vmem [shape: bf16[128,128], index: 2, kind: input, shape index: {}]   ;;  %s11431_s3 = inlined_call_operand.hbm [shape: f32[2,8,128], index: 3, kind: output, shape index: {}]  }
   0x1   :  { %10 = vsyncpa [#allocation3 + $0x1], 0  ;;  %s6211_s12 = smov 0   ;;  %s6213_s13 = smov 0  }
   0x2   :  { %s6215_s14 = smov 0   ;;  %s6217_s15 = smov 0  }
   0x3 LB: > { %s6232_s16 = sadd.s32 4294967295, %s6167_s15   ;;  %s5047_s17 = sadd.s32 4294967294, %s6167_s15   ;;  %s6167_s15 = sphi %s6217_s15, %s12545_s15   ;;  %s6163_s14 = sphi %s6215_s14, %s12544_s14   ;;  %s6159_s13 = sphi %s6213_s13, %s12543_s13   ;;  %s6155_s12 = sphi %s6211_s12, %s12542_s12  }
   0x4   : > { %s6236_s18 = sadd.s32 1, %s6167_s15   ;;  %s91_s19 = sadd.s32 1, %s6163_s14 }
   0x5   : > { %s88_s20 = ssub.s32 %s6167_s15, %s6236_s18  ;;  %p101_p0 = scmp.ne.s32.totalorder %s6163_s14, %s6159_s13 }
   0x6   : > { %p89_p1 = scmp.eq.s32.totalorder %s88_s20, 0  ;;  %p102_p2 = scmp.eq.s32.totalorder %s6232_s16, 1 }
   0x7   : > { %p107_p3 = scmp.ne.s32.totalorder %s6159_s13, %s6155_s12  ;;  %p108_p4 = scmp.eq.s32.totalorder %s5047_s17, 1 }
   0x8   : > { %s6247_s21 = scalar_select %p89_p1, %s6163_s14, %s91_s19  }
   0x9   : > { %p6249_p5 = por %p102_p2, %p101_p0  ;;  %p6253_p6 = por %p108_p4, %p107_p3 }
   0xa   : > { %p5050_p7 = scmp.ge.s32.totalorder %s6167_s15, 1  ;;  %p141_p8 = scmp.lt.s32.totalorder %s6167_s15, 3 }
   0xc   : > { %p142_p9 = pnand %p5050_p7, %p141_p8 }
   0xe   : > { %145 = sbr.rel (%p142_p9) target bundleno = 2268 (0x8dc), region = 32 }
  0x13   : > { %s5052_s24 = sshll.u32 %s6232_s16, 4  ;;  %v6169_v0 = vmov 0   ;;  %v5483_v6 = vld [vmem:[%s11429_s1 + $0x38] sm:$0xff]   ;;  %v5484_v8 = vld [vmem:[%s11429_s1 + $0x30] sm:$0xff]   ;;  %v5485_v11 = vld [vmem:[%s11429_s1 + $0x28] sm:$0xff]   ;;  %v6170_v27 = vmov 1  }
  0x14   : > { %5410 = vset.pattern.permute.xlu1 %v6169_v0  ;;  %5409 = vset.pattern.permute.xlu0 %v6169_v0  ;;  %p166_p10 = scmp.lt.s32.totalorder %s5052_s24, 31  ;;  %v5486_v14 = vld [vmem:[%s11429_s1 + $0x20] sm:$0xff]   ;;  %v5487_v17 = vld [vmem:[%s11429_s1 + $0x18] sm:$0xff]   ;;  %v5488_v20 = vld [vmem:[%s11429_s1 + $0x10] sm:$0xff]   ;;  %v6171_v42 = vmov 2   ;;  %v6172_v44 = vmov 3  }
  0x15   : > { %5283 = vmatprep.subr.bf16.mxu0 %v5483_v6  ;;  %v5489_v23 = vld [vmem:[%s11429_s1 + $0x8] sm:$0xff]   ;;  %v5490_v26 = vld [vmem:[%s11429_s1] sm:$0xff]   ;;  %v5491_v43 = vld [vmem:[%s11430_s2 + $0x38] sm:$0xff]   ;;  %v6173_v54 = vmov 4   ;;  %s162_s26 = sand.u32 1, %s6159_s13   ;;  %s6190_s10 = smov [#allocation2]  }
  0x16   : > { %s12547_s24 = smov (!%p166_p10, %s5052_s24), 31  ;;  %5284 = vmatpush3.bf16.msra.mxu0 %v5483_v6  ;;  %5315 = vmatprep.subr.bf16.mxu1 %v5491_v43  ;;  %v5492_v45 = vld [vmem:[%s11430_s2 + $0x30] sm:$0xff]   ;;  %v5493_v46 = vld [vmem:[%s11430_s2 + $0x28] sm:$0xff]   ;;  %v5494_v47 = vld [vmem:[%s11430_s2 + $0x20] sm:$0xff]   ;;  %v6174_v6 = vmov 12   ;;  %s5051_s27 = sshll.u32 %s162_s26, 3 }
  0x17   : > { %s5053_s25 = sshll.u32 %s12547_s24, 3  ;;  %5285 = vmatprep.subr.bf16.mxu0 %v5484_v8  ;;  %5316 = vmatpush3.bf16.msra.mxu1 %v5491_v43  ;;  %v5495_v48 = vld [vmem:[%s11430_s2 + $0x18] sm:$0xff]   ;;  %v5496_v49 = vld [vmem:[%s11430_s2 + $0x10] sm:$0xff]   ;;  %s164_s29 = scalar_lea.vmem [#allocation2], %s5051_s27 }
  0x18   : > { %s6263_s28 = scalar_lea.vmem %s11428_s0, %s5053_s25  ;;  %5317 = vmatprep.subr.bf16.mxu1 %v5492_v45  ;;  %s4988_s30 = sshll.u32 %s164_s29, 4  ;;  %s11388_s30 = int_to_ptr.vmem [resolvable:$true] %s4988_s30 }
  0x19   : > { %v6266_v1 = vld [vmem:[%s6263_s28 + $0x10] sm:$0xff]  ;;  %v6269_v2 = vld [vmem:[%s6263_s28] sm:$0xff]  ;;  %v6274_v3 = vld [vmem:[%s6263_s28 + $0x18] sm:$0xff]  ;;  %s4975_s8 = scalar_lea.sflag [#allocation3], %s162_s26  ;;  %s6107_s9 = scalar_lea.vmem %s11388_s30, 128 }
  0x1a   : > { %197 = vperm.xlu1 %5410, %v6266_v1   ;;  %191 = vperm.xlu0 %5409, %v6269_v2   ;;  %v6277_v4 = vld [vmem:[%s6263_s28 + $0x8] sm:$0xff]  ;;  %v6288_v7 = vld [vmem:[%s6263_s28 + $0x20] sm:$0xff]  ;;  %v6294_v9 = vld [vmem:[%s6263_s28 + $0x38] sm:$0xff]  ;;  %v6354_v25 = vadd.s32 64, %v6269_v2  ;;  %v6362_v28 = vadd.s32 64, %v6266_v1  ;;  %v6365_v29 = vadd.s32 64, %v6274_v3  ;;  %p6108_p11 = scmp.ne.s32.totalorder %s11388_s30, %s6107_s9 }
  0x1b   : > { %v6282_v5 = vld [vmem:[%s6263_s28 + $0x28] sm:$0xff]  ;;  %v6297_v10 = vld [vmem:[%s6263_s28 + $0x30] sm:$0xff]  ;;  %5286 = vmatpush3.bf16.msra.mxu0 %v5484_v8  ;;  %v6310_v13 = vld [vmem:[%s6263_s28 + $0x40] sm:$0xff]  ;;  %v6351_v24 = vadd.s32 64, %v6277_v4  ;;  %v6370_v30 = vadd.s32 64, %v6288_v7  ;;  %v6381_v33 = vadd.s32 64, %v6294_v9  ;;  %5318 = vmatpush3.bf16.msra.mxu1 %v5492_v45  ;;  %v11432_v8 = vlaneseq }
  0x1c   : > { %v6307_v12 = vld [vmem:[%s6263_s28 + $0x48] sm:$0xff]  ;;  %5287 = vmatprep.subr.bf16.mxu0 %v5485_v11  ;;  %v6318_v15 = vld [vmem:[%s6263_s28 + $0x58] sm:$0xff]  ;;  %v6321_v16 = vld [vmem:[%s6263_s28 + $0x50] sm:$0xff]  ;;  %11564 = vst [vmem:[#allocation6_spill] sm:$0xff] %v6354_v25  ;;  %v6373_v31 = vadd.s32 64, %v6282_v5  ;;  %v6378_v32 = vadd.s32 64, %v6297_v10  ;;  %5319 = vmatprep.subr.bf16.mxu1 %v5493_v46  ;;  %p6109_p12 = pnand %p6108_p11, %p6249_p5 }
  0x1d   : > { %v6329_v18 = vld [vmem:[%s6263_s28 + $0x68] sm:$0xff]  ;;  %v6332_v19 = vld [vmem:[%s6263_s28 + $0x60] sm:$0xff]  ;;  %v6340_v21 = vld [vmem:[%s6263_s28 + $0x78] sm:$0xff]  ;;  %11563 = vst [vmem:[#allocation5_spill] sm:$0xff] %v6351_v24  ;;  %v6386_v34 = vadd.s32 64, %v6310_v13  ;;  %v6389_v35 = vadd.s32 64, %v6307_v12 }
  0x1e   : > { %200 = vperm.xlu1 %5410, %v6274_v3   ;;  %194 = vperm.xlu0 %5409, %v6277_v4   ;;  %v6343_v22 = vld [vmem:[%s6263_s28 + $0x70] sm:$0xff]  ;;  %11565 = vst [vmem:[#allocation7_spill] sm:$0xff] %v6362_v28  ;;  %11566 = vst [vmem:[#allocation8_spill] sm:$0xff] %v6365_v29  ;;  %v6394_v36 = vadd.s32 64, %v6321_v16  ;;  %v6397_v37 = vadd.s32 64, %v6318_v15  ;;  %v6402_v38 = vadd.s32 64, %v6332_v19  ;;  %p6110_p13 = pneg %p6109_p12 }
  0x1f   : > { %5288 = vmatpush3.bf16.msra.mxu0 %v5485_v11  ;;  %11567 = vst [vmem:[#allocation9_spill] sm:$0xff] %v6370_v30  ;;  %11568 = vst [vmem:[#allocation10_spill] sm:$0xff] %v6373_v31  ;;  %v6405_v39 = vadd.s32 64, %v6329_v18  ;;  %v6410_v40 = vadd.s32 64, %v6343_v22  ;;  %v6413_v41 = vadd.s32 64, %v6340_v21  ;;  %5320 = vmatpush3.bf16.msra.mxu1 %v5493_v46  ;;  %s6111_s11 = sshll.u32 %s6190_s10, 4  ;;  %s6112_s11 = int_to_ptr.vmem [resolvable:$false] %s6111_s11 }
  0x20   : > { %5289 = vmatprep.subr.bf16.mxu0 %v5486_v14  ;;  %11569 = vst [vmem:[#allocation11_spill] sm:$0xff] %v6378_v32  ;;  %11570 = vst [vmem:[#allocation12_spill] sm:$0xff] %v6381_v33  ;;  %5321 = vmatprep.subr.bf16.mxu1 %v5494_v47  ;;  %s6113_s17 = scalar_lea.vmem %s6112_s11, 256  ;;  %p6114_p0 = scmp.lt.s32.totalorder %s11388_s30, %s6112_s11 }
  0x21   : > { %11571 = vst [vmem:[#allocation13_spill] sm:$0xff] %v6386_v34  ;;  %11572 = vst [vmem:[#allocation14_spill] sm:$0xff] %v6389_v35  ;;  %p6115_p1 = scmp.lt.s32.totalorder %s6113_s17, %s6107_s9 }
  0x22   : > { %206 = vperm.xlu1 %5410, %v6282_v5   ;;  %203 = vperm.xlu0 %5409, %v6288_v7   ;;  %11573 = vst [vmem:[#allocation15_spill] sm:$0xff] %v6394_v36  ;;  %11574 = vst [vmem:[#allocation16_spill] sm:$0xff] %v6397_v37 }
  0x23   : > { %5290 = vmatpush3.bf16.msra.mxu0 %v5486_v14  ;;  %11575 = vst [vmem:[#allocation17_spill] sm:$0xff] %v6402_v38  ;;  %11576 = vst [vmem:[#allocation18_spill] sm:$0xff] %v6405_v39  ;;  %5322 = vmatpush3.bf16.msra.mxu1 %v5494_v47  ;;  %p6116_p2 = por %p6115_p1, %p6114_p0 }
  0x24   : > { %5291 = vmatprep.subr.bf16.mxu0 %v5487_v17  ;;  %11577 = vst [vmem:[#allocation19_spill] sm:$0xff] %v6410_v40  ;;  %11578 = vst [vmem:[#allocation20_spill] sm:$0xff] %v6413_v41  ;;  %5323 = vmatprep.subr.bf16.mxu1 %v5495_v48 }
  0x25   : > { %p6117_p3 = pnand %p6116_p2, %p6110_p13 }
  0x26   : > { %212 = vperm.xlu1 %5410, %v6294_v9   ;;  %209 = vperm.xlu0 %5409, %v6297_v10  }
  0x27   : > { %5292 = vmatpush3.bf16.msra.mxu0 %v5487_v17  ;;  %5324 = vmatpush3.bf16.msra.mxu1 %v5495_v48  ;;  %v6502_v17 = vand.u32 127, %v11432_v8 }
  0x28   : > { %5293 = vmatprep.subr.bf16.mxu0 %v5488_v20  ;;  %5325 = vmatprep.subr.bf16.mxu1 %v5496_v49 }
  0x29   : > { %11579 = vst [vmem:[#allocation21_spill] sm:$0xff] %v6502_v17 }
  0x2a   : > { %218 = vperm.xlu1 %5410, %v6307_v12   ;;  %215 = vperm.xlu0 %5409, %v6310_v13  }
  0x2b   : > { %5294 = vmatpush3.bf16.msra.mxu0 %v5488_v20  ;;  %5326 = vmatpush3.bf16.msra.mxu1 %v5496_v49 }
  0x2c   : > { %5295 = vmatprep.subr.bf16.mxu0 %v5489_v23 }
  0x2e   : > { %224 = vperm.xlu1 %5410, %v6318_v15   ;;  %221 = vperm.xlu0 %5409, %v6321_v16  }
  0x2f   : > { %5296 = vmatpush3.bf16.msra.mxu0 %v5489_v23 }
  0x30   : > { %5297 = vmatprep.subr.bf16.mxu0 %v5490_v26 }
  0x32   : > { %230 = vperm.xlu1 %5410, %v6329_v18   ;;  %227 = vperm.xlu0 %5409, %v6332_v19  }
  0x33   : > { %5298 = vmatpush3.bf16.msra.mxu0 %v5490_v26 }
  0x36   : > { %236 = vperm.xlu1 %5410, %v6340_v21   ;;  %233 = vperm.xlu0 %5409, %v6343_v22  }
  0x3a   : > { %5412 = vset.pattern.permute.xlu1 %v6170_v27  ;;  %5411 = vset.pattern.permute.xlu0 %v6170_v27 }
  0x3b   : > { %274 = vperm.xlu1 %5412, %v6351_v24   ;;  %271 = vperm.xlu0 %5411, %v6354_v25  }
  0x3f   : > { %277 = vperm.xlu1 %5412, %v6362_v28   ;;  %280 = vperm.xlu0 %5411, %v6365_v29  }
  0x43   : > { %283 = vperm.xlu1 %5412, %v6370_v30   ;;  %286 = vperm.xlu0 %5411, %v6373_v31  }
  0x47   : > { %289 = vperm.xlu1 %5412, %v6378_v32   ;;  %292 = vperm.xlu0 %5411, %v6381_v33  }
  0x4b   : > { %295 = vperm.xlu1 %5412, %v6386_v34   ;;  %298 = vperm.xlu0 %5411, %v6389_v35  }
  0x4f   : > { %301 = vperm.xlu1 %5412, %v6394_v36   ;;  %304 = vperm.xlu0 %5411, %v6397_v37  }
  0x53   : > { %307 = vperm.xlu1 %5412, %v6402_v38   ;;  %310 = vperm.xlu0 %5411, %v6405_v39  }
  0x57   : > { %313 = vperm.xlu1 %5412, %v6410_v40   ;;  %316 = vperm.xlu0 %5411, %v6413_v41  }
  0x5b   : > { %5413 = vset.pattern.permute.xlu1 %v6171_v42  ;;  %5414 = vset.pattern.permute.xlu0 %v6171_v42  ;;  %v6175_v42 = vmov 1.0|1.0  }
  0x5c   : > { %721 = vperm.xlu1 %5413, %v6269_v2   ;;  %724 = vperm.xlu0 %5414, %v6277_v4  }
  0x60   : > { %727 = vperm.xlu1 %5413, %v6266_v1   ;;  %733 = vperm.xlu0 %5414, %v6288_v7  }
  0x64   : > { %730 = vperm.xlu1 %5413, %v6274_v3   ;;  %739 = vperm.xlu0 %5414, %v6297_v10  }
  0x68   : > { %736 = vperm.xlu1 %5413, %v6282_v5   ;;  %745 = vperm.xlu0 %5414, %v6310_v13  }
  0x6c   : > { %742 = vperm.xlu1 %5413, %v6294_v9   ;;  %751 = vperm.xlu0 %5414, %v6321_v16  }
  0x70   : > { %748 = vperm.xlu1 %5413, %v6307_v12   ;;  %757 = vperm.xlu0 %5414, %v6332_v19  }
  0x74   : > { %754 = vperm.xlu1 %5413, %v6318_v15   ;;  %763 = vperm.xlu0 %5414, %v6343_v22  }
  0x78   : > { %760 = vperm.xlu1 %5413, %v6329_v18   ;;  %5415 = vset.pattern.permute.xlu0 %v6172_v44 }
  0x79   : > { %785 = vperm.xlu0 %5415, %v6354_v25  }
  0x7c   : > { %766 = vperm.xlu1 %5413, %v6340_v21  }
  0x7d   : > { %794 = vperm.xlu0 %5415, %v6365_v29  }
  0x80   : > { %5416 = vset.pattern.permute.xlu1 %v6172_v44 }
  0x81   : > { %788 = vperm.xlu1 %5416, %v6351_v24   ;;  %800 = vperm.xlu0 %5415, %v6373_v31  }
  0x85   : > { %791 = vperm.xlu1 %5416, %v6362_v28   ;;  %806 = vperm.xlu0 %5415, %v6381_v33  }
  0x89   : > { %797 = vperm.xlu1 %5416, %v6370_v30   ;;  %812 = vperm.xlu0 %5415, %v6389_v35  }
  0x8d   : > { %803 = vperm.xlu1 %5416, %v6378_v32   ;;  %818 = vperm.xlu0 %5415, %v6397_v37  }
  0x91   : > { %809 = vperm.xlu1 %5416, %v6386_v34   ;;  %824 = vperm.xlu0 %5415, %v6405_v39  }
  0x95   : > { %v198_v50 = vpop.permute.xlu1 %197  ;;  %v192_v51 = vpop.permute.xlu0 %191  ;;  %815 = vperm.xlu1 %5416, %v6394_v36   ;;  %830 = vperm.xlu0 %5415, %v6413_v41  }
  0x96   : > { %vm238_vm0 = vcmp.eq.s32.totalorder %v6502_v17, %v192_v51  ;;  %vm240_vm7 = vcmp.eq.s32.totalorder %v6502_v17, %v198_v50  ;;  %v6176_v51 = vmov 5  }
  0x99   : > { %v201_v52 = vpop.permute.xlu1 %200  ;;  %v195_v53 = vpop.permute.xlu0 %194  ;;  %821 = vperm.xlu1 %5416, %v6402_v38   ;;  %5417 = vset.pattern.permute.xlu0 %v6173_v54 }
  0x9a   : > { %1153 = vperm.xlu0 %5417, %v6269_v2   ;;  %vm239_vm3 = vcmp.eq.s32.totalorder %v6502_v17, %v195_v53  ;;  %vm241_vm10 = vcmp.eq.s32.totalorder %v6502_v17, %v201_v52 }
  0x9d   : > { %v6467_v55 = vpop.permute.xlu1 %206  ;;  %v204_v56 = vpop.permute.xlu0 %203  ;;  %827 = vperm.xlu1 %5416, %v6410_v40  }
  0x9e   : > { %1180 = vperm.xlu0 %5417, %v6307_v12   ;;  %vm242_vm14 = vcmp.eq.s32.totalorder %v6502_v17, %v204_v56  ;;  %v5497_v56 = vld [vmem:[%s11430_s2 + $0x8] sm:$0xff]  }
  0x9f   : > { %5327 = vmatprep.subr.bf16.mxu1 %v5497_v56 }
  0xa0   : > { %5328 = vmatpush3.bf16.msra.mxu1 %v5497_v56 }
  0xa1   : > { %v6471_v57 = vpop.permute.xlu1 %212  ;;  %v6473_v58 = vpop.permute.xlu0 %209  ;;  %5418 = vset.pattern.permute.xlu1 %v6173_v54 }
  0xa2   : > { %1156 = vperm.xlu1 %5418, %v6277_v4   ;;  %1186 = vperm.xlu0 %5417, %v6318_v15  }
  0xa5   : > { %v6477_v59 = vpop.permute.xlu1 %218  ;;  %v6479_v60 = vpop.permute.xlu0 %215 }
  0xa6   : > { %1159 = vperm.xlu1 %5418, %v6266_v1   ;;  %1192 = vperm.xlu0 %5417, %v6329_v18  }
  0xa9   : > { %v6483_v61 = vpop.permute.xlu1 %224  ;;  %v6485_v62 = vpop.permute.xlu0 %221 }
  0xaa   : > { %1162 = vperm.xlu1 %5418, %v6274_v3   ;;  %1198 = vperm.xlu0 %5417, %v6340_v21  }
  0xad   : > { %v6489_v63 = vpop.permute.xlu1 %230  ;;  %v6491_v0 = vpop.permute.xlu0 %227 }
  0xae   : > { %1165 = vperm.xlu1 %5418, %v6288_v7   ;;  %5420 = vset.pattern.permute.xlu0 %v6174_v6 }
  0xaf   : > { %1220 = vperm.xlu0 %5420, %v6351_v24  }
  0xb1   : > { %v6496_v11 = vpop.permute.xlu1 %236  ;;  %v6498_v14 = vpop.permute.xlu0 %233 }
  0xb2   : > { %1168 = vperm.xlu1 %5418, %v6282_v5  }
  0xb3   : > { %1229 = vperm.xlu0 %5420, %v6370_v30  }
  0xb6   : > { %v275_v20 = vpop.permute.xlu1 %274  ;;  %v272_v23 = vpop.permute.xlu0 %271  ;;  %1171 = vperm.xlu1 %5418, %v6297_v10  }
  0xb7   : > { %vm319_vm1 = vcmp.eq.s32.totalorder %v6502_v17, %v275_v20  ;;  %vm318_vm2 = vcmp.eq.s32.totalorder %v6502_v17, %v272_v23  ;;  %1235 = vperm.xlu0 %5420, %v6378_v32  }
  0xb8   : > { %vm334_vm4 = vmor %vm238_vm0, %vm318_vm2 }
  0xb9   : > { %vm335_vm5 = vmor %vm239_vm3, %vm319_vm1  ;;  %vm243_vm1 = vcmp.eq.s32.totalorder %v6502_v17, %v6467_v55 }
  0xba   : > { %v278_v26 = vpop.permute.xlu1 %277  ;;  %vm5078_vm6 = vmpackc.low %vm335_vm5, %vm334_vm4  ;;  %v281_v27 = vpop.permute.xlu0 %280  ;;  %1174 = vperm.xlu1 %5418, %v6294_v9   ;;  %vm244_vm5 = vcmp.eq.s32.totalorder %v6502_v17, %v6473_v58  ;;  %v5498_v58 = vld [vmem:[%s11430_s2] sm:$0xff]  }
  0xbb   : > { %vm320_vm8 = vcmp.eq.s32.totalorder %v6502_v17, %v278_v26  ;;  %5299 = vmatprep.mubr.msk.bf16.mxu0 %vm5078_vm6, %v6175_v42  ;;  %vm321_vm9 = vcmp.eq.s32.totalorder %v6502_v17, %v281_v27  ;;  %1241 = vperm.xlu0 %5420, %v6386_v34  }
  0xbc   : > { %vm336_vm11 = vmor %vm240_vm7, %vm320_vm8  ;;  %vm245_vm8 = vcmp.eq.s32.totalorder %v6502_v17, %v6471_v57  ;;  %5329 = vmatprep.subr.bf16.mxu1 %v5498_v58 }
  0xbd   : > { %vm337_vm12 = vmor %vm241_vm10, %vm321_vm9  ;;  %5330 = vmatpush3.bf16.msra.mxu1 %v5498_v58 }
  0xbe   : > { %v284_v43 = vpop.permute.xlu1 %283  ;;  %vm5080_vm13 = vmpackc.low %vm337_vm12, %vm336_vm11  ;;  %v287_v44 = vpop.permute.xlu0 %286  ;;  %1177 = vperm.xlu1 %5418, %v6310_v13   ;;  %vm246_vm12 = vcmp.eq.s32.totalorder %v6502_v17, %v6479_v60  ;;  %v6177_v60 = vmov 13  }
  0xbf   : > { %vm322_vm15 = vcmp.eq.s32.totalorder %v6502_v17, %v284_v43  ;;  %5300 = vmatmul.mubr.msk.bf16.vlgmr.msra.gmra.mxu0 %vm5080_vm13, %v6175_v42  ;;  %vm323_vm0 = vcmp.eq.s32.totalorder %v6502_v17, %v287_v44  ;;  %1247 = vperm.xlu0 %5420, %v6394_v36  }
  0xc0   : > { %vm338_vm2 = vmor %vm242_vm14, %vm322_vm15  ;;  %vm247_vm15 = vcmp.eq.s32.totalorder %v6502_v17, %v6477_v59 }
  0xc1   : > { %vm339_vm3 = vmor %vm243_vm1, %vm323_vm0 }
  0xc2   : > { %v290_v45 = vpop.permute.xlu1 %289  ;;  %vm5082_vm4 = vmpackc.low %vm339_vm3, %vm338_vm2  ;;  %v293_v46 = vpop.permute.xlu0 %292  ;;  %1183 = vperm.xlu1 %5418, %v6321_v16   ;;  %vm248_vm3 = vcmp.eq.s32.totalorder %v6502_v17, %v6485_v62 }
  0xc3   : > { %vm324_vm6 = vcmp.eq.s32.totalorder %v6502_v17, %v290_v45  ;;  %5303 = vmatprep.mubr.msk.bf16.mxu0 %vm5082_vm4, %v6175_v42  ;;  %vm325_vm7 = vcmp.eq.s32.totalorder %v6502_v17, %v293_v46  ;;  %1253 = vperm.xlu0 %5420, %v6402_v38  }
  0xc4   : > { %vm340_vm9 = vmor %vm244_vm5, %vm324_vm6  ;;  %vm249_vm6 = vcmp.eq.s32.totalorder %v6502_v17, %v6483_v61 }
  0xc5   : > { %vm341_vm10 = vmor %vm245_vm8, %vm325_vm7 }
  0xc6   : > { %v296_v47 = vpop.permute.xlu1 %295  ;;  %vm5084_vm11 = vmpackc.low %vm341_vm10, %vm340_vm9  ;;  %v299_v48 = vpop.permute.xlu0 %298  ;;  %1189 = vperm.xlu1 %5418, %v6332_v19   ;;  %vm250_vm10 = vcmp.eq.s32.totalorder %v6502_v17, %v6491_v0 }
  0xc7   : > { %vm326_vm13 = vcmp.eq.s32.totalorder %v6502_v17, %v296_v47  ;;  %5304 = vmatmul.mubr.msk.bf16.gmra.mxu0 %vm5084_vm11, %v6175_v42  ;;  %vm327_vm14 = vcmp.eq.s32.totalorder %v6502_v17, %v299_v48  ;;  %1259 = vperm.xlu0 %5420, %v6410_v40  }
  0xc8   : > { %vm342_vm0 = vmor %vm246_vm12, %vm326_vm13  ;;  %vm251_vm13 = vcmp.eq.s32.totalorder %v6502_v17, %v6489_v63 }
  0xc9   : > { %vm343_vm1 = vmor %vm247_vm15, %vm327_vm14 }
  0xca   : > { %v302_v49 = vpop.permute.xlu1 %301  ;;  %vm5086_vm2 = vmpackc.low %vm343_vm1, %vm342_vm0  ;;  %v305_v50 = vpop.permute.xlu0 %304  ;;  %1195 = vperm.xlu1 %5418, %v6343_v22   ;;  %vm252_vm1 = vcmp.eq.s32.totalorder %v6502_v17, %v6498_v14 }
  0xcb   : > { %vm328_vm4 = vcmp.eq.s32.totalorder %v6502_v17, %v302_v49  ;;  %5307 = vmatprep.mubr.msk.bf16.mxu0 %vm5086_vm2, %v6175_v42  ;;  %vm329_vm5 = vcmp.eq.s32.totalorder %v6502_v17, %v305_v50  ;;  %5422 = vset.pattern.permute.xlu0 %v6176_v51 }
  0xcc   : > { %vm344_vm7 = vmor %vm248_vm3, %vm328_vm4  ;;  %1620 = vperm.xlu0 %5422, %v6277_v4   ;;  %vm253_vm4 = vcmp.eq.s32.totalorder %v6502_v17, %v6496_v11  ;;  %v6178_v11 = vmov 6  }
  0xcd   : > { %vm345_vm8 = vmor %vm249_vm6, %vm329_vm5 }
  0xce   : > { %v308_v52 = vpop.permute.xlu1 %307  ;;  %vm5088_vm9 = vmpackc.low %vm345_vm8, %vm344_vm7  ;;  %v311_v53 = vpop.permute.xlu0 %310  ;;  %5419 = vset.pattern.permute.xlu1 %v6174_v6 }
  0xcf   : > { %vm330_vm11 = vcmp.eq.s32.totalorder %v6502_v17, %v308_v52  ;;  %5308 = vmatmul.mubr.msk.bf16.gmra.mxu0 %vm5088_vm9, %v6175_v42  ;;  %vm331_vm12 = vcmp.eq.s32.totalorder %v6502_v17, %v311_v53  ;;  %1217 = vperm.xlu1 %5419, %v6354_v25  }
  0xd0   : > { %vm346_vm14 = vmor %vm250_vm10, %vm330_vm11  ;;  %1644 = vperm.xlu0 %5422, %v6307_v12  }
  0xd1   : > { %vm347_vm15 = vmor %vm251_vm13, %vm331_vm12 }
  0xd2   : > { %v314_v54 = vpop.permute.xlu1 %313  ;;  %vm5090_vm0 = vmpackc.low %vm347_vm15, %vm346_vm14  ;;  %v317_v55 = vpop.permute.xlu0 %316 }
  0xd3   : > { %vm332_vm2 = vcmp.eq.s32.totalorder %v6502_v17, %v314_v54  ;;  %5311 = vmatprep.mubr.msk.bf16.mxu0 %vm5090_vm0, %v6175_v42  ;;  %vm333_vm3 = vcmp.eq.s32.totalorder %v6502_v17, %v317_v55  ;;  %1223 = vperm.xlu1 %5419, %v6362_v28  }
  0xd4   : > { %vm348_vm5 = vmor %vm252_vm1, %vm332_vm2  ;;  %1650 = vperm.xlu0 %5422, %v6318_v15  }
  0xd5   : > { %vm349_vm6 = vmor %vm253_vm4, %vm333_vm3 }
  0xd6   : > { %vm5092_vm7 = vmpackc.low %vm349_vm6, %vm348_vm5 }
  0xd7   : > { %5312 = vmatmul.mubr.msk.bf16.gmra.mxu0 %vm5092_vm7, %v6175_v42  ;;  %1226 = vperm.xlu1 %5419, %v6365_v29   ;;  %v6588_v57 = vpop.permute.xlu1 %721  ;;  %v6671_v49 = vpop.permute.xlu0 %724 }
  0xd8   : > { %1656 = vperm.xlu0 %5422, %v6329_v18   ;;  %vm768_vm10 = vcmp.eq.s32.totalorder %v6502_v17, %v6588_v57 }
  0xdb   : > { %1232 = vperm.xlu1 %5419, %v6373_v31   ;;  %v6595_v59 = vpop.permute.xlu1 %727  ;;  %v6673_v54 = vpop.permute.xlu0 %733 }
  0xdc   : > { %1662 = vperm.xlu0 %5422, %v6340_v21   ;;  %vm770_vm8 = vcmp.eq.s32.totalorder %v6502_v17, %v6595_v59 }
  0xdf   : > { %1238 = vperm.xlu1 %5419, %v6381_v33   ;;  %v6599_v61 = vpop.permute.xlu1 %730 }
  0xe0   : > { %5424 = vset.pattern.permute.xlu0 %v6177_v60  ;;  %vm771_vm0 = vcmp.eq.s32.totalorder %v6502_v17, %v6599_v61 }
  0xe1   : > { %1684 = vperm.xlu0 %5424, %v6351_v24  }
  0xe3   : > { %1244 = vperm.xlu1 %5419, %v6389_v35   ;;  %v6604_v62 = vpop.permute.xlu1 %736 }
  0xe5   : > { %1693 = vperm.xlu0 %5424, %v6370_v30  }
  0xe7   : > { %1250 = vperm.xlu1 %5419, %v6397_v37   ;;  %v6609_v63 = vpop.permute.xlu1 %742 }
  0xe9   : > { %1699 = vperm.xlu0 %5424, %v6378_v32  }
  0xeb   : > { %1256 = vperm.xlu1 %5419, %v6405_v39   ;;  %v6614_v0 = vpop.permute.xlu1 %748 }
  0xed   : > { %1705 = vperm.xlu0 %5424, %v6386_v34  }
  0xef   : > { %1262 = vperm.xlu1 %5419, %v6413_v41   ;;  %v6619_v6 = vpop.permute.xlu1 %754 }
  0xf1   : > { %1711 = vperm.xlu0 %5424, %v6394_v36  }
  0xf3   : > { %5421 = vset.pattern.permute.xlu1 %v6176_v51  ;;  %v6624_v14 = vpop.permute.xlu1 %760 }
  0xf4   : > { %1617 = vperm.xlu1 %5421, %v6269_v2   ;;  %11580 = vst [vmem:[#allocation22_spill] sm:$0xff] %v6624_v14 }
  0xf5   : > { %1717 = vperm.xlu0 %5424, %v6402_v38  }
  0xf7   : > { %v6628_v20 = vpop.permute.xlu1 %766 }
  0xf8   : > { %1623 = vperm.xlu1 %5421, %v6266_v1   ;;  %11581 = vst [vmem:[#allocation23_spill] sm:$0xff] %v6628_v20  ;;  %v6179_v20 = vmov 14  }
  0xf9   : > { %1723 = vperm.xlu0 %5424, %v6410_v40  }
  0xfc   : > { %1626 = vperm.xlu1 %5421, %v6274_v3   ;;  %v6634_v23 = vpop.permute.xlu1 %788 }
  0xfd   : > { %5426 = vset.pattern.permute.xlu0 %v6178_v11 }
  0xfe   : > { %2084 = vperm.xlu0 %5426, %v6277_v4  }
 0x100   : > { %1629 = vperm.xlu1 %5421, %v6288_v7   ;;  %v6637_v4 = vpop.permute.xlu1 %791 }
 0x101   : > { %vm834_vm9 = vcmp.eq.s32.totalorder %v6502_v17, %v6637_v4 }
 0x102   : > { %2111 = vperm.xlu0 %5426, %v6321_v16   ;;  %vm850_vm12 = vmor %vm770_vm8, %vm834_vm9 }
 0x104   : > { %1632 = vperm.xlu1 %5421, %v6282_v5  }
 0x106   : > { %2117 = vperm.xlu0 %5426, %v6332_v19  }
 0x108   : > { %1635 = vperm.xlu1 %5421, %v6297_v10  }
 0x10a   : > { %2123 = vperm.xlu0 %5426, %v6343_v22  }
 0x10c   : > { %1638 = vperm.xlu1 %5421, %v6294_v9  }
 0x10e   : > { %5427 = vset.pattern.permute.xlu0 %v6179_v20 }
 0x110   : > { %1641 = vperm.xlu1 %5421, %v6310_v13  }
 0x114   : > { %1647 = vperm.xlu1 %5421, %v6321_v16   ;;  %v6641_v16 = vpop.permute.xlu1 %797 }
 0x118   : > { %1653 = vperm.xlu1 %5421, %v6332_v19   ;;  %v6644_v19 = vpop.permute.xlu1 %803 }
 0x11c   : > { %1659 = vperm.xlu1 %5421, %v6343_v22   ;;  %v6647_v22 = vpop.permute.xlu1 %809 }
 0x120   : > { %5423 = vset.pattern.permute.xlu1 %v6177_v60  ;;  %v6651_v26 = vpop.permute.xlu1 %815 }
 0x121   : > { %1681 = vperm.xlu1 %5423, %v6354_v25  }
 0x124   : > { %v6654_v27 = vpop.permute.xlu1 %821 }
 0x125   : > { %1687 = vperm.xlu1 %5423, %v6362_v28   ;;  %11582 = vst [vmem:[#allocation24_spill] sm:$0xff] %v6654_v27 }
 0x129   : > { %1690 = vperm.xlu1 %5423, %v6365_v29  }
 0x12d   : > { %1696 = vperm.xlu1 %5423, %v6373_v31  }
 0x131   : > { %1702 = vperm.xlu1 %5423, %v6381_v33  }
 0x135   : > { %1708 = vperm.xlu1 %5423, %v6389_v35  }
 0x139   : > { %1714 = vperm.xlu1 %5423, %v6397_v37  }
 0x13d   : > { %1720 = vperm.xlu1 %5423, %v6405_v39  }
 0x141   : > { %1726 = vperm.xlu1 %5423, %v6413_v41  }
 0x145   : > { %5425 = vset.pattern.permute.xlu1 %v6178_v11  ;;  %v6675_v11 = vpop.permute.xlu0 %739 }
 0x146   : > { %2081 = vperm.xlu1 %5425, %v6269_v2   ;;  %v6658_v2 = vpop.permute.xlu1 %827 }
 0x147   : > { %11583 = vst [vmem:[#allocation25_spill] sm:$0xff] %v6658_v2 }
 0x14a   : > { %2087 = vperm.xlu1 %5425, %v6266_v1   ;;  %v6661_v1 = vpop.permute.xlu1 %1156 }
 0x14b   : > { %vm1201_vm6 = vcmp.eq.s32.totalorder %v6502_v17, %v6661_v1 }
 0x14e   : > { %2090 = vperm.xlu1 %5425, %v6274_v3   ;;  %v6665_v3 = vpop.permute.xlu1 %1159 }
 0x14f   : > { %vm1202_vm13 = vcmp.eq.s32.totalorder %v6502_v17, %v6665_v3 }
 0x152   : > { %2093 = vperm.xlu1 %5425, %v6288_v7  }
 0x156   : > { %2096 = vperm.xlu1 %5425, %v6282_v5   ;;  %v6668_v5 = vpop.permute.xlu1 %1162 }
 0x15a   : > { %2099 = vperm.xlu1 %5425, %v6297_v10  }
 0x15e   : > { %2102 = vperm.xlu1 %5425, %v6294_v9  }
 0x162   : > { %2105 = vperm.xlu1 %5425, %v6310_v13  }
 0x166   : > { %2108 = vperm.xlu1 %5425, %v6307_v12  }
 0x16a   : > { %2114 = vperm.xlu1 %5425, %v6318_v15  }
 0x16e   : > { %2120 = vperm.xlu1 %5425, %v6329_v18  }
 0x172   : > { %2126 = vperm.xlu1 %5425, %v6340_v21  }
 0x176   : > { %5428 = vset.pattern.permute.xlu1 %v6179_v20 }
 0x17f   : > { %v5301_v7 = vpop.f32.mrf.mxu0 }
 0x181   : > { %v488_v9 = vpop.f32.mrf.mxu0 }
 0x183   : > { %v5302_v10 = vpop.f32.mrf.mxu0 }
 0x184   : > { %v552_v13 = vpack.c.bf16 %v5302_v10, %v5301_v7  ;;  %v6679_v10 = vpop.permute.xlu0 %745 }
 0x185   : > { %v491_v42 = vpop.f32.mrf.mxu0 }
 0x186   : > { %v551_v43 = vpack.c.bf16 %v491_v42, %v488_v9  ;;  %v6677_v9 = vpop.permute.xlu1 %1165 }
 0x187   : > { %v5305_v44 = vpop.f32.mrf.mxu0 }
 0x188   : > { %5331 = vmatprep.mubr.bf16.mxu1 %v551_v43  ;;  %v6683_v43 = vpop.permute.xlu0 %751 }
 0x189   : > { %v504_v45 = vpop.f32.mrf.mxu0  ;;  %5332 = vmatmul.mubr.bf16.vlgmr.msra.gmra.mxu1 %v552_v13 }
 0x18a   : > { %v6681_v42 = vpop.permute.xlu1 %1168 }
 0x18b   : > { %v5306_v12 = vpop.f32.mrf.mxu0 }
 0x18c   : > { %v554_v47 = vpack.c.bf16 %v5306_v12, %v5305_v44  ;;  %v6687_v44 = vpop.permute.xlu0 %757 }
 0x18d   : > { %v507_v15 = vpop.f32.mrf.mxu0  ;;  %11584 = vst [vmem:[#allocation26_spill] sm:$0xff] %v6687_v44 }
 0x18e   : > { %v553_v46 = vpack.c.bf16 %v507_v15, %v504_v45  ;;  %v6685_v13 = vpop.permute.xlu1 %1171 }
 0x18f   : > { %v5309_v48 = vpop.f32.mrf.mxu0 }
 0x190   : > { %5335 = vmatprep.mubr.bf16.mxu1 %v553_v46  ;;  %v6691_v12 = vpop.permute.xlu0 %763 }
 0x191   : > { %v520_v18 = vpop.f32.mrf.mxu0  ;;  %5336 = vmatmul.mubr.bf16.gmra.mxu1 %v554_v47  ;;  %11585 = vst [vmem:[#allocation27_spill] sm:$0xff] %v6691_v12 }
 0x192   : > { %v6689_v45 = vpop.permute.xlu1 %1174 }
 0x193   : > { %v5310_v21 = vpop.f32.mrf.mxu0 }
 0x194   : > { %v556_v52 = vpack.c.bf16 %v5310_v21, %v5309_v48  ;;  %v6695_v46 = vpop.permute.xlu0 %785 }
 0x195   : > { %v523_v50 = vpop.f32.mrf.mxu0  ;;  %vm832_vm11 = vcmp.eq.s32.totalorder %v6502_v17, %v6695_v46 }
 0x196   : > { %v555_v51 = vpack.c.bf16 %v523_v50, %v520_v18  ;;  %v6693_v15 = vpop.permute.xlu1 %1177  ;;  %vm848_vm15 = vmor %vm768_vm10, %vm832_vm11 }
 0x197   : > { %v5313_v53 = vpop.f32.mrf.mxu0 }
 0x198   : > { %5339 = vmatprep.mubr.bf16.mxu1 %v555_v51  ;;  %v6699_v48 = vpop.permute.xlu0 %794 }
 0x199   : > { %v536_v55 = vpop.f32.mrf.mxu0  ;;  %5340 = vmatmul.mubr.bf16.gmra.mxu1 %v556_v52  ;;  %vm835_vm1 = vcmp.eq.s32.totalorder %v6502_v17, %v6699_v48 }
 0x19a   : > { %v6697_v47 = vpop.permute.xlu1 %1183  ;;  %vm851_vm5 = vmor %vm771_vm0, %vm835_vm1 }
 0x19b   : > { %v5314_v56 = vpop.f32.mrf.mxu0 }
 0x19c   : > { %v558_v7 = vpack.c.bf16 %v5314_v56, %v5313_v53  ;;  %v6703_v21 = vpop.permute.xlu0 %800 }
 0x19d   : > { %v539_v58 = vpop.f32.mrf.mxu0 }
 0x19e   : > { %v557_v60 = vpack.c.bf16 %v539_v58, %v536_v55  ;;  %v6701_v18 = vpop.permute.xlu1 %1189 }
 0x19f   : > { %11586 = vst [vmem:[#allocation28_spill] sm:$0xff] %v6701_v18 }
 0x1a0   : > { %5343 = vmatprep.mubr.bf16.mxu1 %v557_v60  ;;  %v6707_v51 = vpop.permute.xlu0 %806 }
 0x1a1   : > { %5344 = vmatmul.mubr.bf16.gmra.mxu1 %v558_v7 }
 0x1a2   : > { %v6705_v50 = vpop.permute.xlu1 %1195 }
 0x1a3   : > { %11587 = vst [vmem:[#allocation29_spill] sm:$0xff] %v6705_v50 }
 0x1a4   : > { %v6711_v53 = vpop.permute.xlu0 %812 }
 0x1a6   : > { %v6709_v52 = vpop.permute.xlu1 %1217 }
 0x1a7   : > { %vm1264_vm10 = vcmp.eq.s32.totalorder %v6502_v17, %v6709_v52 }
 0x1a8   : > { %v6713_v56 = vpop.permute.xlu0 %818 }
 0x1aa   : > { %v1224_v55 = vpop.permute.xlu1 %1223 }
 0x1ab   : > { %vm1266_vm14 = vcmp.eq.s32.totalorder %v6502_v17, %v1224_v55 }
 0x1ac   : > { %v6717_v60 = vpop.permute.xlu0 %824  ;;  %vm1282_vm2 = vmor %vm1202_vm13, %vm1266_vm14 }
 0x1ad   : > { %11588 = vst [vmem:[#allocation30_spill] sm:$0xff] %v6717_v60 }
 0x1ae   : > { %v6715_v58 = vpop.permute.xlu1 %1226 }
 0x1b0   : > { %v6721_v8 = vpop.permute.xlu0 %830 }
 0x1b1   : > { %11589 = vst [vmem:[#allocation31_spill] sm:$0xff] %v6721_v8 }
 0x1b2   : > { %v6719_v7 = vpop.permute.xlu1 %1232 }
 0x1b4   : > { %v6725_v39 = vpop.permute.xlu0 %1153 }
 0x1b5   : > { %vm1200_vm9 = vcmp.eq.s32.totalorder %v6502_v17, %v6725_v39 }
 0x1b6   : > { %v6723_v41 = vpop.permute.xlu1 %1238  ;;  %vm1280_vm14 = vmor %vm1200_vm9, %vm1264_vm10 }
 0x1b8   : > { %v6729_v35 = vpop.permute.xlu0 %1180 }
 0x1b9   : > { %11591 = vst [vmem:[#allocation33_spill] sm:$0xff] %v6729_v35 }
 0x1ba   : > { %v6727_v37 = vpop.permute.xlu1 %1244 }
 0x1bb   : > { %11590 = vst [vmem:[#allocation32_spill] sm:$0xff] %v6727_v37 }
 0x1bc   : > { %v6733_v40 = vpop.permute.xlu0 %1186 }
 0x1be   : > { %v6731_v33 = vpop.permute.xlu1 %1250 }
 0x1c0   : > { %v6737_v38 = vpop.permute.xlu0 %1192 }
 0x1c1   : > { %11593 = vst [vmem:[#allocation35_spill] sm:$0xff] %v6737_v38 }
 0x1c2   : > { %v6735_v31 = vpop.permute.xlu1 %1256 }
 0x1c3   : > { %11592 = vst [vmem:[#allocation34_spill] sm:$0xff] %v6735_v31 }
 0x1c4   : > { %v6741_v36 = vpop.permute.xlu0 %1198 }
 0x1c5   : > { %11595 = vst [vmem:[#allocation37_spill] sm:$0xff] %v6741_v36 }
 0x1c6   : > { %v6739_v29 = vpop.permute.xlu1 %1262 }
 0x1c7   : > { %11594 = vst [vmem:[#allocation36_spill] sm:$0xff] %v6739_v29 }
 0x1c8   : > { %v1221_v34 = vpop.permute.xlu0 %1220 }
 0x1c9   : > { %vm1265_vm7 = vcmp.eq.s32.totalorder %v6502_v17, %v1221_v34 }
 0x1ca   : > { %v6743_v25 = vpop.permute.xlu1 %1617  ;;  %vm1281_vm11 = vmor %vm1201_vm6, %vm1265_vm7  ;;  %vm1267_vm6 = vcmp.eq.s32.totalorder %v6502_v17, %v6715_v58 }
 0x1cc   : > { %v6745_v30 = vpop.permute.xlu0 %1229 }
 0x1ce   : > { %v1624_v32 = vpop.permute.xlu1 %1623 }
 0x1cf   : > { %vm1666_vm3 = vcmp.eq.s32.totalorder %v6502_v17, %v1624_v32 }
 0x1d0   : > { %v6749_v24 = vpop.permute.xlu0 %1235 }
 0x1d2   : > { %v6747_v28 = vpop.permute.xlu1 %1626 }
 0x1d4   : > { %v6753_v14 = vpop.permute.xlu0 %1241 }
 0x1d6   : > { %v6751_v60 = vpop.permute.xlu1 %1629 }
 0x1d8   : > { %v6757_v38 = vpop.permute.xlu0 %1247 }
 0x1da   : > { %v6755_v31 = vpop.permute.xlu1 %1632 }
 0x1dc   : > { %v6761_v36 = vpop.permute.xlu0 %1253 }
 0x1dd   : > { %11596 = vst [vmem:[#allocation38_spill] sm:$0xff] %v6761_v36 }
 0x1de   : > { %v6759_v29 = vpop.permute.xlu1 %1635 }
 0x1e0   : > { %v6765_v44 = vpop.permute.xlu0 %1259 }
 0x1e2   : > { %v6763_v27 = vpop.permute.xlu1 %1638 }
 0x1e4   : > { %v1621_v2 = vpop.permute.xlu0 %1620 }
 0x1e6   : > { %v6767_v8 = vpop.permute.xlu1 %1641 }
 0x1e8   : > { %v6771_v18 = vpop.permute.xlu0 %1644 }
 0x1e9   : > { %11597 = vst [vmem:[#allocation39_spill] sm:$0xff] %v6771_v18 }
 0x1ea   : > { %v6769_v12 = vpop.permute.xlu1 %1647 }
 0x1ec   : > { %v6775_v35 = vpop.permute.xlu0 %1650 }
 0x1ee   : > { %v6773_v37 = vpop.permute.xlu1 %1653 }
 0x1ef   : > { %11598 = vst [vmem:[#allocation40_spill] sm:$0xff] %v6773_v37 }
 0x1f0   : > { %v6779_v36 = vpop.permute.xlu0 %1656 }
 0x1f1   : > { %11599 = vst [vmem:[#allocation41_spill] sm:$0xff] %v6779_v36 }
 0x1f2   : > { %v6777_v50 = vpop.permute.xlu1 %1659 }
 0x1f4   : > { %v6789_v37 = vpop.permute.xlu0 %1662 }
 0x1f6   : > { %v1682_v20 = vpop.permute.xlu1 %1681 }
 0x1f7   : > { %vm1728_vm0 = vcmp.eq.s32.totalorder %v6502_v17, %v1682_v20 }
 0x1f8   : > { %v1685_v55 = vpop.permute.xlu0 %1684 }
 0x1f9   : > { %vm1729_vm13 = vcmp.eq.s32.totalorder %v6502_v17, %v1685_v55 }
 0x1fa   : > { %v1688_v46 = vpop.permute.xlu1 %1687 }
 0x1fb   : > { %vm1730_vm4 = vcmp.eq.s32.totalorder %v6502_v17, %v1688_v46 }
 0x1fc   : > { %vm1746_vm8 = vmor %vm1666_vm3, %vm1730_vm4  ;;  %v1694_v1 = vpop.permute.xlu0 %1693  ;;  %vm1270_vm3 = vcmp.eq.s32.totalorder %v6502_v17, %v6749_v24 }
 0x200   : > { %v1700_v20 = vpop.permute.xlu0 %1699 }
 0x201   : > { %vm1734_vm9 = vcmp.eq.s32.totalorder %v6502_v17, %v1700_v20 }
 0x249   : > { %v6791_v18 = vpop.f32.mrf.mxu1 }
 0x24a   : > { %11600 = vst [vmem:[#allocation42_spill] sm:$0xff] %v6791_v18  ;;  %v866_v59 = vsel %vm850_vm12, %v6791_v18, 0.0  ;;  %v1298_v3 = vsel %vm1282_vm2, %v6791_v18, 0.0  ;;  %v1762_v32 = vsel %vm1746_vm8, %v6791_v18, 0.0  ;;  %vm1665_vm12 = vcmp.eq.s32.totalorder %v6502_v17, %v1621_v2 }
 0x24b   : > { %v6797_v4 = vpop.f32.mrf.mxu1  ;;  %884 = vadd.xlane.f32.xlu0 %v866_v59  ;;  %vm1745_vm1 = vmor %vm1665_vm12, %vm1729_vm13  ;;  %vm1206_vm2 = vcmp.eq.s32.totalorder %v6502_v17, %v6685_v13  ;;  %vm1670_vm8 = vcmp.eq.s32.totalorder %v6502_v17, %v6759_v29  ;;  %v1691_v13 = vpop.permute.xlu1 %1690 }
 0x24c   : > { %11601 = vst [vmem:[#allocation43_spill] sm:$0xff] %v6797_v4  ;;  %v864_v57 = vsel %vm848_vm15, %v6797_v4, 0.0  ;;  %vm1664_vm15 = vcmp.eq.s32.totalorder %v6502_v17, %v6743_v25  ;;  %v1296_v39 = vsel %vm1280_vm14, %v6797_v4, 0.0  ;;  %vm1286_vm7 = vmor %vm1206_vm2, %vm1270_vm3  ;;  %vm1731_vm12 = vcmp.eq.s32.totalorder %v6502_v17, %v1691_v13  ;;  %v11622_v13 = vld [vmem:[#allocation25_spill] sm:$0xff] }
 0x24d   : > { %v6804_v36 = vpop.f32.mrf.mxu1  ;;  %880 = vadd.xlane.f32.xlu1 %v864_v57  ;;  %vm1744_vm4 = vmor %vm1664_vm15, %vm1728_vm0  ;;  %vm1204_vm14 = vcmp.eq.s32.totalorder %v6502_v17, %v6677_v9  ;;  %vm1268_vm15 = vcmp.eq.s32.totalorder %v6502_v17, %v6745_v30  ;;  %vm833_vm2 = vcmp.eq.s32.totalorder %v6502_v17, %v6634_v23 }
 0x24e   : > { %11602 = vst [vmem:[#allocation44_spill] sm:$0xff] %v6804_v36  ;;  %v867_v61 = vsel %vm851_vm5, %v6804_v36, 0.0  ;;  %vm1203_vm5 = vcmp.eq.s32.totalorder %v6502_v17, %v6668_v5  ;;  %v1760_v25 = vsel %vm1744_vm4, %v6797_v4, 0.0  ;;  %vm1750_vm13 = vmor %vm1670_vm8, %vm1734_vm9  ;;  %vm1668_vm4 = vcmp.eq.s32.totalorder %v6502_v17, %v6751_v60 }
 0x24f   : > { %1316 = vadd.xlane.f32.xlu0 %v1298_v3  ;;  %v6813_v48 = vpop.f32.mrf.mxu1  ;;  %vm1283_vm10 = vmor %vm1203_vm5, %vm1267_vm6  ;;  %vm1732_vm5 = vcmp.eq.s32.totalorder %v6502_v17, %v1694_v1  ;;  %vm838_vm8 = vcmp.eq.s32.totalorder %v6502_v17, %v6644_v19  ;;  %v1697_v9 = vpop.permute.xlu1 %1696  ;;  %v11614_v3 = vld [vmem:[#allocation33_spill] sm:$0xff] }
 0x250   : > { %11603 = vst [vmem:[#allocation45_spill] sm:$0xff] %v6813_v48  ;;  %v1297_v34 = vsel %vm1281_vm11, %v6813_v48, 0.0  ;;  %v1761_v2 = vsel %vm1745_vm1, %v6813_v48, 0.0  ;;  %vm1667_vm11 = vcmp.eq.s32.totalorder %v6502_v17, %v6747_v28  ;;  %v1299_v5 = vsel %vm1283_vm10, %v6804_v36, 0.0  ;;  %vm1284_vm3 = vmor %vm1204_vm14, %vm1268_vm15 }
 0x251   : > { %886 = vadd.xlane.f32.xlu1 %v867_v61  ;;  %v6832_v52 = vpop.f32.mrf.mxu1  ;;  %vm1747_vm0 = vmor %vm1667_vm11, %vm1731_vm12  ;;  %vm769_vm1 = vcmp.eq.s32.totalorder %v6502_v17, %v6671_v49  ;;  %vm775_vm10 = vcmp.eq.s32.totalorder %v6502_v17, %v6609_v63  ;;  %vm839_vm11 = vcmp.eq.s32.totalorder %v6502_v17, %v6707_v51  ;;  %vm836_vm14 = vcmp.eq.s32.totalorder %v6502_v17, %v6641_v16  ;;  %v11616_v61 = vld [vmem:[#allocation28_spill] sm:$0xff] }
 0x252   : > { %11604 = vst [vmem:[#allocation46_spill] sm:$0xff] %v6832_v52  ;;  %v1302_v24 = vsel %vm1286_vm7, %v6832_v52, 0.0  ;;  %v1766_v29 = vsel %vm1750_vm13, %v6832_v52, 0.0  ;;  %v1763_v28 = vsel %vm1747_vm0, %v6804_v36, 0.0  ;;  %vm849_vm6 = vmor %vm769_vm1, %vm833_vm2  ;;  %vm774_vm7 = vcmp.eq.s32.totalorder %v6502_v17, %v6675_v11  ;;  %v1706_v11 = vpop.permute.xlu0 %1705 }
 0x253   : > { %1780 = vadd.xlane.f32.xlu0 %v1762_v32  ;;  %v6852_v58 = vpop.f32.mrf.mxu1  ;;  %v865_v23 = vsel %vm849_vm6, %v6813_v48, 0.0  ;;  %vm1748_vm9 = vmor %vm1668_vm4, %vm1732_vm5  ;;  %vm772_vm13 = vcmp.eq.s32.totalorder %v6502_v17, %v6673_v54  ;;  %vm773_vm0 = vcmp.eq.s32.totalorder %v6502_v17, %v6604_v62  ;;  %vm837_vm1 = vcmp.eq.s32.totalorder %v6502_v17, %v6703_v21  ;;  %v1703_v54 = vpop.permute.xlu1 %1702 }
 0x254   : > { %11605 = vst [vmem:[#allocation47_spill] sm:$0xff] %v6852_v58  ;;  %v1300_v30 = vsel %vm1284_vm3, %v6852_v58, 0.0  ;;  %v1764_v49 = vsel %vm1748_vm9, %v6852_v58, 0.0  ;;  %vm854_vm12 = vmor %vm774_vm7, %vm838_vm8  ;;  %vm1207_vm3 = vcmp.eq.s32.totalorder %v6502_v17, %v6689_v45  ;;  %vm1271_vm4 = vcmp.eq.s32.totalorder %v6502_v17, %v6723_v41 }
 0x255   : > { %1314 = vadd.xlane.f32.xlu1 %v1297_v34  ;;  %v6873_v60 = vpop.f32.mrf.mxu1  ;;  %v870_v19 = vsel %vm854_vm12, %v6832_v52, 0.0  ;;  %vm855_vm15 = vmor %vm775_vm10, %vm839_vm11  ;;  %vm1210_vm6 = vcmp.eq.s32.totalorder %v6502_v17, %v6697_v47  ;;  %vm1274_vm7 = vcmp.eq.s32.totalorder %v6502_v17, %v6757_v38  ;;  %vm1671_vm9 = vcmp.eq.s32.totalorder %v6502_v17, %v6763_v27 }
 0x256   : > { %11606 = vst [vmem:[#allocation48_spill] sm:$0xff] %v6873_v60  ;;  %v871_v63 = vsel %vm855_vm15, %v6873_v60, 0.0  ;;  %vm852_vm2 = vmor %vm772_vm13, %vm836_vm14  ;;  %vm1735_vm10 = vcmp.eq.s32.totalorder %v6502_v17, %v1703_v54  ;;  %v1712_v45 = vpop.permute.xlu0 %1711  ;;  %vm1674_vm12 = vcmp.eq.s32.totalorder %v6502_v17, %v6769_v12  ;;  %vm1205_vm15 = vcmp.eq.s32.totalorder %v6502_v17, %v6681_v42 }
 0x257   : > { %1312 = vadd.xlane.f32.xlu0 %v1296_v39  ;;  %v6885_v51 = vpop.f32.mrf.mxu1  ;;  %v868_v16 = vsel %vm852_vm2, %v6852_v58, 0.0  ;;  %vm853_vm5 = vmor %vm773_vm0, %vm837_vm1  ;;  %vm1738_vm13 = vcmp.eq.s32.totalorder %v6502_v17, %v1712_v45  ;;  %vm1269_vm0 = vcmp.eq.s32.totalorder %v6502_v17, %v6719_v7  ;;  %vm1208_vm2 = vcmp.eq.s32.totalorder %v6502_v17, %v6693_v15  ;;  %v6922_v42 = vpop.permute.xlu1 %1708  ;;  %v11619_v39 = vld [vmem:[#allocation39_spill] sm:$0xff]  ;;  %v11631_v45 = vld [vmem:[#allocation37_spill] sm:$0xff] }
 0x258   : > { %11607 = vst [vmem:[#allocation49_spill] sm:$0xff] %v6885_v51  ;;  %v869_v62 = vsel %vm853_vm5, %v6885_v51, 0.0  ;;  %vm1287_vm8 = vmor %vm1207_vm3, %vm1271_vm4  ;;  %vm1272_vm3 = vcmp.eq.s32.totalorder %v6502_v17, %v6753_v14  ;;  %vm1669_vm5 = vcmp.eq.s32.totalorder %v6502_v17, %v6755_v31 }
 0x259   : > { %1778 = vadd.xlane.f32.xlu1 %v1761_v2  ;;  %v6897_v21 = vpop.f32.mrf.mxu1  ;;  %v1303_v41 = vsel %vm1287_vm8, %v6873_v60, 0.0  ;;  %vm1290_vm11 = vmor %vm1210_vm6, %vm1274_vm7  ;;  %vm1733_vm6 = vcmp.eq.s32.totalorder %v6502_v17, %v1697_v9  ;;  %vm1672_vm8 = vcmp.eq.s32.totalorder %v6502_v17, %v6767_v8  ;;  %v11626_v9 = vld [vmem:[#allocation26_spill] sm:$0xff] }
 0x25a   : > { %11608 = vst [vmem:[#allocation50_spill] sm:$0xff] %v6897_v21  ;;  %v1306_v38 = vsel %vm1290_vm11, %v6897_v21, 0.0  ;;  %vm1751_vm14 = vmor %vm1671_vm9, %vm1735_vm10  ;;  %vm1736_vm9 = vcmp.eq.s32.totalorder %v6502_v17, %v1706_v11  ;;  %vm778_vm11 = vcmp.eq.s32.totalorder %v6502_v17, %v6683_v43  ;;  %v1718_v43 = vpop.permute.xlu0 %1717  ;;  %v11628_v11 = vld [vmem:[#allocation22_spill] sm:$0xff] }
 0x25b   : > { %1776 = vadd.xlane.f32.xlu0 %v1760_v25  ;;  %v1767_v27 = vsel %vm1751_vm14, %v6873_v60, 0.0  ;;  %vm1754_vm1 = vmor %vm1674_vm12, %vm1738_vm13  ;;  %v6917_v47 = vpop.f32.mrf.mxu1  ;;  %vm842_vm12 = vcmp.eq.s32.totalorder %v6502_v17, %v6651_v26  ;;  %vm779_vm14 = vcmp.eq.s32.totalorder %v6502_v17, %v6619_v6  ;;  %v1715_v8 = vpop.permute.xlu1 %1714  ;;  %v11620_v25 = vld [vmem:[#allocation40_spill] sm:$0xff] }
 0x25c   : > { %v1770_v12 = vsel %vm1754_vm1, %v6897_v21, 0.0  ;;  %11609 = vst [vmem:[#allocation51_spill] sm:$0xff] %v6917_v47  ;;  %vm1285_vm4 = vmor %vm1205_vm15, %vm1269_vm0  ;;  %vm843_vm15 = vcmp.eq.s32.totalorder %v6502_v17, %v6713_v56  ;;  %vm776_vm1 = vcmp.eq.s32.totalorder %v6502_v17, %v6679_v10 }
 0x25d   : > { %1324 = vadd.xlane.f32.xlu1 %v1302_v24  ;;  %v1301_v7 = vsel %vm1285_vm4, %v6885_v51, 0.0  ;;  %vm1288_vm7 = vmor %vm1208_vm2, %vm1272_vm3  ;;  %v6939_v59 = vpop.f32.mrf.mxu1  ;;  %vm840_vm2 = vcmp.eq.s32.totalorder %v6502_v17, %v6647_v22  ;;  %vm777_vm4 = vcmp.eq.s32.totalorder %v6502_v17, %v6614_v0  ;;  %v11612_v0 = vld [vmem:[#allocation29_spill] sm:$0xff]  ;;  %v11621_v24 = vld [vmem:[#allocation27_spill] sm:$0xff] }
 0x25e   : > { %v1304_v14 = vsel %vm1288_vm7, %v6917_v47, 0.0  ;;  %vm1749_vm10 = vmor %vm1669_vm5, %vm1733_vm6  ;;  %11610 = vst [vmem:[#allocation52_spill] sm:$0xff] %v6939_v59  ;;  %vm841_vm5 = vcmp.eq.s32.totalorder %v6502_v17, %v6711_v53  ;;  %vm1211_vm7 = vcmp.eq.s32.totalorder %v6502_v17, %v6733_v40  ;;  %v1724_v57 = vpop.permute.xlu0 %1723 }
 0x25f   : > { %1318 = vadd.xlane.f32.xlu0 %v1299_v5  ;;  %v1765_v31 = vsel %vm1749_vm10, %v6885_v51, 0.0  ;;  %vm1752_vm13 = vmor %vm1672_vm8, %vm1736_vm9  ;;  %v6951_v56 = vpop.f32.mrf.mxu1  ;;  %vm1275_vm8 = vcmp.eq.s32.totalorder %v6502_v17, %v6731_v33  ;;  %v6957_v22 = vpop.permute.xlu1 %1720  ;;  %vm1214_vm10 = vcmp.eq.s32.totalorder %v6502_v17, %v11612_v0 }
 0x260   : > { %v1768_v15 = vsel %vm1752_vm13, %v6917_v47, 0.0  ;;  %vm858_vm0 = vmor %vm778_vm11, %vm842_vm12  ;;  %11611 = vst [vmem:[#allocation53_spill] sm:$0xff] %v6951_v56  ;;  %vm1278_vm11 = vcmp.eq.s32.totalorder %v6502_v17, %v6765_v44  ;;  %vm1675_vm13 = vcmp.eq.s32.totalorder %v6502_v17, %v6775_v35  ;;  %v11615_v35 = vld [vmem:[#allocation32_spill] sm:$0xff] }
 0x261   : > { %1788 = vadd.xlane.f32.xlu1 %v1766_v29  ;;  %v874_v26 = vsel %vm858_vm0, %v6897_v21, 0.0  ;;  %vm859_vm3 = vmor %vm779_vm14, %vm843_vm15  ;;  %v6965_v46 = vpop.f32.mrf.mxu1  ;;  %vm1739_vm14 = vcmp.eq.s32.totalorder %v6502_v17, %v1715_v8  ;;  %vm1678_vm0 = vcmp.eq.s32.totalorder %v6502_v17, %v6777_v50  ;;  %v11617_v50 = vld [vmem:[#allocation38_spill] sm:$0xff] }
 0x262   : > { %v875_v6 = vsel %vm859_vm3, %v6939_v59, 0.0  ;;  %vm856_vm6 = vmor %vm776_vm1, %vm840_vm2  ;;  %11613 = vst [vmem:[#allocation29_spill] sm:$0xff] %v6965_v46  ;;  %vm1742_vm1 = vcmp.eq.s32.totalorder %v6502_v17, %v1724_v57  ;;  %vm1209_vm3 = vcmp.eq.s32.totalorder %v6502_v17, %v11614_v3  ;;  %v11640_v3 = vld [vmem:[#allocation13_spill] sm:$0xff] }
 0x263   : > { %1782 = vadd.xlane.f32.xlu0 %v1763_v28  ;;  %v872_v10 = vsel %vm856_vm6, %v6917_v47, 0.0  ;;  %vm857_vm9 = vmor %vm777_vm4, %vm841_vm5  ;;  %v6974_v40 = vpop.permute.xlu1 %1726  ;;  %vm1273_vm4 = vcmp.eq.s32.totalorder %v6502_v17, %v11615_v35  ;;  %vm1212_vm6 = vcmp.eq.s32.totalorder %v6502_v17, %v11616_v61  ;;  %v6989_v1 = vpop.f32.mrf.mxu1  ;;  %v11623_v28 = vld [vmem:[#allocation23_spill] sm:$0xff] }
 0x264   : > { %v873_v53 = vsel %vm857_vm9, %v6951_v56, 0.0  ;;  %vm1291_vm12 = vmor %vm1211_vm7, %vm1275_vm8  ;;  %vm1276_vm7 = vcmp.eq.s32.totalorder %v6502_v17, %v11617_v50  ;;  %11618 = vst [vmem:[#allocation33_spill] sm:$0xff] %v6989_v1  ;;  %vm1673_vm9 = vcmp.eq.s32.totalorder %v6502_v17, %v11619_v39  ;;  %v11642_v50 = vld [vmem:[#allocation15_spill] sm:$0xff] }
 0x265   : > { %1320 = vadd.xlane.f32.xlu1 %v1300_v30  ;;  %v1307_v33 = vsel %vm1291_vm12, %v6939_v59, 0.0  ;;  %vm1294_vm15 = vmor %vm1214_vm10, %vm1278_vm11  ;;  %vm1737_vm10 = vcmp.eq.s32.totalorder %v6502_v17, %v6922_v42  ;;  %vm1676_vm12 = vcmp.eq.s32.totalorder %v6502_v17, %v11620_v25  ;;  %v11624_v30 = vld [vmem:[#allocation31_spill] sm:$0xff] }
 0x266   : > { %v1310_v44 = vsel %vm1294_vm15, %v6965_v46, 0.0  ;;  %vm1755_vm2 = vmor %vm1675_vm13, %vm1739_vm14  ;;  %vm1740_vm13 = vcmp.eq.s32.totalorder %v6502_v17, %v1718_v43  ;;  %vm782_vm15 = vcmp.eq.s32.totalorder %v6502_v17, %v11621_v24  ;;  %v11646_v24 = vld [vmem:[#allocation19_spill] sm:$0xff] }
 0x267   : > { %882 = vadd.xlane.f32.xlu0 %v865_v23  ;;  %v1771_v55 = vsel %vm1755_vm2, %v6939_v59, 0.0  ;;  %vm1758_vm5 = vmor %vm1678_vm0, %vm1742_vm1  ;;  %v6986_v32 = vpop.permute.xlu1 %2081  ;;  %vm846_vm0 = vcmp.eq.s32.totalorder %v6502_v17, %v11622_v13  ;;  %vm783_vm2 = vcmp.eq.s32.totalorder %v6502_v17, %v11623_v28 }
 0x268   : > { %v1774_v34 = vsel %vm1758_vm5, %v6965_v46, 0.0  ;;  %vm1289_vm8 = vmor %vm1209_vm3, %vm1273_vm4  ;;  %vm847_vm3 = vcmp.eq.s32.totalorder %v6502_v17, %v11624_v30  ;;  %vm780_vm5 = vcmp.eq.s32.totalorder %v6502_v17, %v11626_v9 }
 0x269   : > { %1784 = vadd.xlane.f32.xlu1 %v1764_v49  ;;  %v1305_v2 = vsel %vm1289_vm8, %v6951_v56, 0.0  ;;  %vm1292_vm11 = vmor %vm1212_vm6, %vm1276_vm7  ;;  %v7012_v49 = vpop.f32.mrf.mxu1  ;;  %vm781_vm8 = vcmp.eq.s32.totalorder %v6502_v17, %v11628_v11 }
 0x26a   : > { %v1308_v20 = vsel %vm1292_vm11, %v6989_v1, 0.0  ;;  %vm1753_vm14 = vmor %vm1673_vm9, %vm1737_vm10  ;;  %11625 = vst [vmem:[#allocation32_spill] sm:$0xff] %v7012_v49  ;;  %vm1215_vm11 = vcmp.eq.s32.totalorder %v6502_v17, %v11631_v45 }
 0x26b   : > { %892 = vadd.xlane.f32.xlu0 %v870_v19  ;;  %v7004_v5 = vpop.permute.xlu1 %2087  ;;  %v1769_v29 = vsel %vm1753_vm14, %v6951_v56, 0.0  ;;  %vm1756_vm1 = vmor %vm1676_vm12, %vm1740_vm13  ;;  %v11627_v19 = vld [vmem:[#allocation24_spill] sm:$0xff] }
 0x26c   : > { %v1772_v23 = vsel %vm1756_vm1, %v6989_v1, 0.0  ;;  %vm862_vm4 = vmor %vm782_vm15, %vm846_vm0  ;;  %vm844_vm6 = vcmp.eq.s32.totalorder %v6502_v17, %v11627_v19  ;;  %vm1679_vm15 = vcmp.eq.s32.totalorder %v6502_v17, %v6789_v37  ;;  %vm1743_vm0 = vcmp.eq.s32.totalorder %v6502_v17, %v6974_v40  ;;  %v11635_v37 = vld [vmem:[#allocation41_spill] sm:$0xff]  ;;  %v11639_v40 = vld [vmem:[#allocation11_spill] sm:$0xff] }
 0x26d   : > { %894 = vadd.xlane.f32.xlu1 %v871_v63  ;;  %v878_v63 = vsel %vm862_vm4, %v6965_v46, 0.0  ;;  %vm863_vm7 = vmor %vm783_vm2, %vm847_vm3 }
 0x26e   : > { %vm860_vm10 = vmor %vm780_vm5, %vm844_vm6  ;;  %vm1677_vm5 = vcmp.eq.s32.totalorder %v6502_v17, %v11635_v37  ;;  %vm1741_vm6 = vcmp.eq.s32.totalorder %v6502_v17, %v6957_v22  ;;  %v7063_v22 = vpop.permute.xlu0 %2084 }
 0x26f   : > { %888 = vadd.xlane.f32.xlu0 %v868_v16  ;;  %v11629_v16 = vld [vmem:[#allocation30_spill] sm:$0xff]  ;;  %v7023_v54 = vpop.permute.xlu1 %2090  ;;  %vm1759_vm1 = vmor %vm1679_vm15, %vm1743_vm0 }
 0x270   : > { %vm845_vm9 = vcmp.eq.s32.totalorder %v6502_v17, %v11629_v16  ;;  %v1775_v8 = vsel %vm1759_vm1, %v7012_v49, 0.0 }
 0x271   : > { %890 = vadd.xlane.f32.xlu1 %v869_v62  ;;  %v879_v62 = vsel %vm863_vm7, %v7012_v49, 0.0  ;;  %vm861_vm13 = vmor %vm781_vm8, %vm845_vm9  ;;  %vm2129_vm8 = vcmp.eq.s32.totalorder %v6502_v17, %v7063_v22 }
 0x272   : > { %vm1757_vm7 = vmor %vm1677_vm5, %vm1741_vm6  ;;  %v7069_v35 = vpop.permute.xlu0 %2111 }
 0x273   : > { %1326 = vadd.xlane.f32.xlu0 %v1303_v41  ;;  %v7026_v41 = vpop.f32.mrf.mxu1  ;;  %v7038_v42 = vpop.permute.xlu1 %2093 }
 0x274   : > { %11630 = vst [vmem:[#allocation28_spill] sm:$0xff] %v7026_v41 }
 0x275   : > { %1332 = vadd.xlane.f32.xlu1 %v1306_v38  ;;  %v11632_v38 = vld [vmem:[#allocation36_spill] sm:$0xff] }
 0x276   : > { %vm1279_vm12 = vcmp.eq.s32.totalorder %v6502_v17, %v11632_v38  ;;  %v7076_v39 = vpop.permute.xlu0 %2117 }
 0x277   : > { %1790 = vadd.xlane.f32.xlu0 %v1767_v27  ;;  %v876_v27 = vsel %vm860_vm10, %v6989_v1, 0.0  ;;  %vm1295_vm14 = vmor %vm1215_vm11, %vm1279_vm12  ;;  %vm2130_vm11 = vcmp.eq.s32.totalorder %v6502_v17, %v7004_v5 }
 0x279   : > { %1796 = vadd.xlane.f32.xlu1 %v1770_v12  ;;  %v877_v12 = vsel %vm861_vm13, %v7026_v41, 0.0 }
 0x27a   : > { %v7083_v13 = vpop.permute.xlu0 %2123 }
 0x27b   : > { %1322 = vadd.xlane.f32.xlu0 %v1301_v7  ;;  %v1311_v7 = vsel %vm1295_vm14, %v7012_v49, 0.0  ;;  %vm2132_vm14 = vcmp.eq.s32.totalorder %v6502_v17, %v7038_v42 }
 0x27d   : > { %1328 = vadd.xlane.f32.xlu1 %v1304_v14  ;;  %v11633_v14 = vld [vmem:[#allocation35_spill] sm:$0xff] }
 0x27e   : > { %vm1213_vm2 = vcmp.eq.s32.totalorder %v6502_v17, %v11633_v14 }
 0x27f   : > { %1786 = vadd.xlane.f32.xlu0 %v1765_v31  ;;  %v11634_v31 = vld [vmem:[#allocation34_spill] sm:$0xff] }
 0x280   : > { %vm1277_vm3 = vcmp.eq.s32.totalorder %v6502_v17, %v11634_v31 }
 0x281   : > { %1792 = vadd.xlane.f32.xlu1 %v1768_v15  ;;  %v7046_v15 = vpop.permute.xlu1 %2096  ;;  %vm1293_vm4 = vmor %vm1213_vm2, %vm1277_vm3 }
 0x283   : > { %900 = vadd.xlane.f32.xlu0 %v874_v26  ;;  %v1309_v26 = vsel %vm1293_vm4, %v7026_v41, 0.0 }
 0x285   : > { %902 = vadd.xlane.f32.xlu1 %v875_v6  ;;  %v7053_v43 = vpop.permute.xlu1 %2099  ;;  %v1773_v6 = vsel %vm1757_vm7, %v7026_v41, 0.0  ;;  %vm2128_vm7 = vcmp.eq.s32.totalorder %v6502_v17, %v6986_v32 }
 0x286   : > { %vm2134_vm1 = vcmp.eq.s32.totalorder %v6502_v17, %v7053_v43 }
 0x287   : > { %896 = vadd.xlane.f32.xlu0 %v872_v10  ;;  %v11636_v10 = vld [vmem:[#allocation5_spill] sm:$0xff] }
 0x289   : > { %898 = vadd.xlane.f32.xlu1 %v873_v53  ;;  %v7057_v0 = vpop.permute.xlu1 %2102  ;;  %v11637_v53 = vld [vmem:[#allocation7_spill] sm:$0xff] }
 0x28b   : > { %1334 = vadd.xlane.f32.xlu0 %v1307_v33  ;;  %v11638_v33 = vld [vmem:[#allocation9_spill] sm:$0xff] }
 0x28d   : > { %1340 = vadd.xlane.f32.xlu1 %v1310_v44  ;;  %v7060_v57 = vpop.permute.xlu1 %2105 }
 0x28e   : > { %vm2136_vm4 = vcmp.eq.s32.totalorder %v6502_v17, %v7060_v57 }
 0x28f   : > { %1798 = vadd.xlane.f32.xlu0 %v1771_v55  ;;  %v11641_v55 = vld [vmem:[#allocation6_spill] sm:$0xff] }
 0x291   : > { %1804 = vadd.xlane.f32.xlu1 %v1774_v34  ;;  %v7066_v44 = vpop.permute.xlu1 %2108  ;;  %v11643_v34 = vld [vmem:[#allocation8_spill] sm:$0xff] }
 0x293   : > { %1330 = vadd.xlane.f32.xlu0 %v1305_v2  ;;  %v11644_v2 = vld [vmem:[#allocation17_spill] sm:$0xff] }
 0x295   : > { %1336 = vadd.xlane.f32.xlu1 %v1308_v20  ;;  %v7072_v61 = vpop.permute.xlu1 %2114  ;;  %v11645_v20 = vld [vmem:[#allocation10_spill] sm:$0xff] }
 0x297   : > { %1794 = vadd.xlane.f32.xlu0 %v1769_v29  ;;  %v11647_v29 = vld [vmem:[#allocation12_spill] sm:$0xff] }
 0x299   : > { %1800 = vadd.xlane.f32.xlu1 %v1772_v23  ;;  %v7079_v25 = vpop.permute.xlu1 %2120  ;;  %v11649_v23 = vld [vmem:[#allocation14_spill] sm:$0xff] }
 0x29b   : > { %908 = vadd.xlane.f32.xlu0 %v878_v63  ;;  %v11652_v63 = vld [vmem:[#allocation16_spill] sm:$0xff] }
 0x29d   : > { %910 = vadd.xlane.f32.xlu1 %v879_v62  ;;  %v7086_v28 = vpop.permute.xlu1 %2126  ;;  %v11655_v62 = vld [vmem:[#allocation18_spill] sm:$0xff] }
 0x29f   : > { %904 = vadd.xlane.f32.xlu0 %v876_v27  ;;  %v11658_v27 = vld [vmem:[#allocation20_spill] sm:$0xff] }
 0x2a1   : > { %906 = vadd.xlane.f32.xlu1 %v877_v12  ;;  %v6180_v12 = vmov 7  }
 0x2a3   : > { %1342 = vadd.xlane.f32.xlu0 %v1311_v7 }
 0x2a7   : > { %1806 = vadd.xlane.f32.xlu0 %v1775_v8 }
 0x2ab   : > { %1338 = vadd.xlane.f32.xlu0 %v1309_v26 }
 0x2af   : > { %1802 = vadd.xlane.f32.xlu0 %v1773_v6 }
 0x2b2   : > { %2148 = vperm.xlu1 %5428, %v11636_v10  }
 0x2b6   : > { %2151 = vperm.xlu1 %5428, %v11637_v53  }
 0x2ba   : > { %2157 = vperm.xlu1 %5428, %v11638_v33  }
 0x2be   : > { %2163 = vperm.xlu1 %5428, %v11639_v40  }
 0x2c2   : > { %2169 = vperm.xlu1 %5428, %v11640_v3  }
 0x2c5   : > { %2145 = vperm.xlu0 %5427, %v11641_v55  }
 0x2c6   : > { %2175 = vperm.xlu1 %5428, %v11642_v50  }
 0x2c9   : > { %2154 = vperm.xlu0 %5427, %v11643_v34  }
 0x2ca   : > { %2181 = vperm.xlu1 %5428, %v11644_v2  }
 0x2cd   : > { %2160 = vperm.xlu0 %5427, %v11645_v20  }
 0x2ce   : > { %2187 = vperm.xlu1 %5428, %v11646_v24  }
 0x2d1   : > { %2166 = vperm.xlu0 %5427, %v11647_v29  }
 0x2d2   : > { %5430 = vset.pattern.permute.xlu1 %v6180_v12 }
 0x2d4   : > { %v7088_v30 = vpop.xlane.xlu0 %884 }
 0x2d5   : > { %11648 = vst [vmem:[#allocation38_spill] sm:$0xff] %v7088_v30  ;;  %2172 = vperm.xlu0 %5427, %v11649_v23  }
 0x2d6   : > { %v7091_v9 = vpop.xlane.xlu1 %880 }
 0x2d7   : > { %11650 = vst [vmem:[#allocation39_spill] sm:$0xff] %v7091_v9 }
 0x2d8   : > { %v7093_v19 = vpop.xlane.xlu0 %1316 }
 0x2d9   : > { %11651 = vst [vmem:[#allocation40_spill] sm:$0xff] %v7093_v19  ;;  %2178 = vperm.xlu0 %5427, %v11652_v63  }
 0x2da   : > { %v7096_v11 = vpop.xlane.xlu1 %886 }
 0x2db   : > { %11653 = vst [vmem:[#allocation27_spill] sm:$0xff] %v7096_v11 }
 0x2dc   : > { %v7098_v16 = vpop.xlane.xlu0 %1780 }
 0x2dd   : > { %11654 = vst [vmem:[#allocation25_spill] sm:$0xff] %v7098_v16  ;;  %2184 = vperm.xlu0 %5427, %v11655_v62  }
 0x2de   : > { %v7101_v45 = vpop.xlane.xlu1 %1314 }
 0x2df   : > { %11656 = vst [vmem:[#allocation23_spill] sm:$0xff] %v7101_v45 }
 0x2e0   : > { %v7103_v38 = vpop.xlane.xlu0 %1312 }
 0x2e1   : > { %11657 = vst [vmem:[#allocation31_spill] sm:$0xff] %v7103_v38  ;;  %2190 = vperm.xlu0 %5427, %v11658_v27  }
 0x2e2   : > { %v7106_v7 = vpop.xlane.xlu1 %1778 }
 0x2e3   : > { %11659 = vst [vmem:[#allocation26_spill] sm:$0xff] %v7106_v7 }
 0x2e4   : > { %v7108_v14 = vpop.xlane.xlu0 %1776 }
 0x2e5   : > { %11660 = vst [vmem:[#allocation24_spill] sm:$0xff] %v7108_v14  ;;  %5429 = vset.pattern.permute.xlu0 %v6180_v12 }
 0x2e6   : > { %v7110_v31 = vpop.xlane.xlu1 %1324 }
 0x2e7   : > { %11661 = vst [vmem:[#allocation22_spill] sm:$0xff] %v7110_v31 }
 0x2e8   : > { %v7112_v8 = vpop.xlane.xlu0 %1318 }
 0x2e9   : > { %11662 = vst [vmem:[#allocation30_spill] sm:$0xff] %v7112_v8 }
 0x2ea   : > { %v7114_v37 = vpop.xlane.xlu1 %1788 }
 0x2eb   : > { %11663 = vst [vmem:[#allocation37_spill] sm:$0xff] %v7114_v37 }
 0x2ec   : > { %v7116_v26 = vpop.xlane.xlu0 %1782 }
 0x2ed   : > { %11664 = vst [vmem:[#allocation36_spill] sm:$0xff] %v7116_v26 }
 0x2ee   : > { %v7118_v6 = vpop.xlane.xlu1 %1320 }
 0x2ef   : > { %11665 = vst [vmem:[#allocation35_spill] sm:$0xff] %v7118_v6 }
 0x2f0   : > { %v7120_v16 = vpop.xlane.xlu0 %882 }
 0x2f1   : > { %11666 = vst [vmem:[#allocation34_spill] sm:$0xff] %v7120_v16 }
 0x2f2   : > { %v7122_v45 = vpop.xlane.xlu1 %1784 }
 0x2f3   : > { %11667 = vst [vmem:[#allocation41_spill] sm:$0xff] %v7122_v45 }
 0x2f4   : > { %v7124_v19 = vpop.xlane.xlu0 %892 }
 0x2f5   : > { %11668 = vst [vmem:[#allocation5_spill] sm:$0xff] %v7124_v19 }
 0x2f6   : > { %v7126_v7 = vpop.xlane.xlu1 %894 }
 0x2f7   : > { %11669 = vst [vmem:[#allocation7_spill] sm:$0xff] %v7126_v7 }
 0x2f8   : > { %v7128_v14 = vpop.xlane.xlu0 %888 }
 0x2f9   : > { %11670 = vst [vmem:[#allocation54_spill] sm:$0xff] %v7128_v14 }
 0x2fa   : > { %v7130_v12 = vpop.xlane.xlu1 %890 }
 0x2fb   : > { %11671 = vst [vmem:[#allocation55_spill] sm:$0xff] %v7130_v12 }
 0x2fc   : > { %v7132_v31 = vpop.xlane.xlu0 %1326 }
 0x2fd   : > { %11672 = vst [vmem:[#allocation56_spill] sm:$0xff] %v7132_v31 }
 0x2fe   : > { %v7134_v8 = vpop.xlane.xlu1 %1332 }
 0x2ff   : > { %11673 = vst [vmem:[#allocation57_spill] sm:$0xff] %v7134_v8 }
 0x300   : > { %v7136_v37 = vpop.xlane.xlu0 %1790 }
 0x301   : > { %11674 = vst [vmem:[#allocation58_spill] sm:$0xff] %v7136_v37 }
 0x302   : > { %v7138_v26 = vpop.xlane.xlu1 %1796 }
 0x303   : > { %11675 = vst [vmem:[#allocation59_spill] sm:$0xff] %v7138_v26 }
 0x304   : > { %v7140_v6 = vpop.xlane.xlu0 %1322 }
 0x305   : > { %11676 = vst [vmem:[#allocation60_spill] sm:$0xff] %v7140_v6 }
 0x306   : > { %v7142_v16 = vpop.xlane.xlu1 %1328 }
 0x307   : > { %11677 = vst [vmem:[#allocation61_spill] sm:$0xff] %v7142_v16 }
 0x308   : > { %v7144_v45 = vpop.xlane.xlu0 %1786 }
 0x309   : > { %11678 = vst [vmem:[#allocation62_spill] sm:$0xff] %v7144_v45 }
 0x30a   : > { %v7146_v19 = vpop.xlane.xlu1 %1792 }
 0x30b   : > { %11679 = vst [vmem:[#allocation63_spill] sm:$0xff] %v7146_v19 }
 0x30c   : > { %v7148_v7 = vpop.xlane.xlu0 %900 }
 0x30d   : > { %11680 = vst [vmem:[#allocation64_spill] sm:$0xff] %v7148_v7 }
 0x30e   : > { %v7150_v14 = vpop.xlane.xlu1 %902 }
 0x30f   : > { %11681 = vst [vmem:[#allocation65_spill] sm:$0xff] %v7150_v14 }
 0x310   : > { %v7152_v12 = vpop.xlane.xlu0 %896 }
 0x311   : > { %11682 = vst [vmem:[#allocation66_spill] sm:$0xff] %v7152_v12 }
 0x312   : > { %v7154_v31 = vpop.xlane.xlu1 %898 }
 0x313   : > { %11683 = vst [vmem:[#allocation67_spill] sm:$0xff] %v7154_v31 }
 0x314   : > { %v7156_v8 = vpop.xlane.xlu0 %1334 }
 0x315   : > { %11684 = vst [vmem:[#allocation68_spill] sm:$0xff] %v7156_v8 }
 0x316   : > { %v7158_v37 = vpop.xlane.xlu1 %1340 }
 0x317   : > { %11685 = vst [vmem:[#allocation69_spill] sm:$0xff] %v7158_v37 }
 0x318   : > { %v7160_v26 = vpop.xlane.xlu0 %1798 }
 0x319   : > { %11686 = vst [vmem:[#allocation70_spill] sm:$0xff] %v7160_v26 }
 0x31a   : > { %v7162_v6 = vpop.xlane.xlu1 %1804 }
 0x31b   : > { %11687 = vst [vmem:[#allocation71_spill] sm:$0xff] %v7162_v6 }
 0x31c   : > { %v7164_v16 = vpop.xlane.xlu0 %1330 }
 0x31d   : > { %11688 = vst [vmem:[#allocation72_spill] sm:$0xff] %v7164_v16 }
 0x31e   : > { %v7166_v45 = vpop.xlane.xlu1 %1336 }
 0x31f   : > { %11689 = vst [vmem:[#allocation73_spill] sm:$0xff] %v7166_v45 }
 0x320   : > { %v7168_v19 = vpop.xlane.xlu0 %1794 }
 0x321   : > { %11690 = vst [vmem:[#allocation74_spill] sm:$0xff] %v7168_v19 }
 0x322   : > { %v7170_v7 = vpop.xlane.xlu1 %1800 }
 0x323   : > { %11691 = vst [vmem:[#allocation75_spill] sm:$0xff] %v7170_v7 }
 0x324   : > { %v7172_v14 = vpop.xlane.xlu0 %908 }
 0x325   : > { %11692 = vst [vmem:[#allocation76_spill] sm:$0xff] %v7172_v14 }
 0x326   : > { %v7174_v12 = vpop.xlane.xlu1 %910 }
 0x327   : > { %11693 = vst [vmem:[#allocation77_spill] sm:$0xff] %v7174_v12 }
 0x328   : > { %v7176_v31 = vpop.xlane.xlu0 %904 }
 0x329   : > { %11694 = vst [vmem:[#allocation78_spill] sm:$0xff] %v7176_v31 }
 0x32a   : > { %v7178_v8 = vpop.xlane.xlu1 %906 }
 0x32b   : > { %11695 = vst [vmem:[#allocation79_spill] sm:$0xff] %v7178_v8 }
 0x32c   : > { %v7180_v37 = vpop.xlane.xlu0 %1342 }
 0x32d   : > { %11696 = vst [vmem:[#allocation80_spill] sm:$0xff] %v7180_v37 }
 0x32e   : > { %v2149_v26 = vpop.permute.xlu1 %2148 }
 0x32f   : > { %vm2193_vm9 = vcmp.eq.s32.totalorder %v6502_v17, %v2149_v26 }
 0x330   : > { %v7185_v45 = vpop.xlane.xlu0 %1806  ;;  %vm2209_vm10 = vmor %vm2129_vm8, %vm2193_vm9 }
 0x331   : > { %11697 = vst [vmem:[#allocation81_spill] sm:$0xff] %v7185_v45  ;;  %v2225_v7 = vsel %vm2209_vm10, %v6813_v48, 0.0  ;;  %vm2138_vm10 = vcmp.eq.s32.totalorder %v6502_v17, %v7069_v35 }
 0x332   : > { %v2152_v19 = vpop.permute.xlu1 %2151  ;;  %2242 = vadd.xlane.f32.xlu0 %v2225_v7 }
 0x333   : > { %vm2194_vm12 = vcmp.eq.s32.totalorder %v6502_v17, %v2152_v19 }
 0x334   : > { %vm2210_vm13 = vmor %vm2130_vm11, %vm2194_vm12  ;;  %v7192_v16 = vpop.xlane.xlu0 %1338 }
 0x335   : > { %v2226_v37 = vsel %vm2210_vm13, %v6791_v18, 0.0  ;;  %11698 = vst [vmem:[#allocation82_spill] sm:$0xff] %v7192_v16  ;;  %vm2131_vm13 = vcmp.eq.s32.totalorder %v6502_v17, %v7023_v54 }
 0x336   : > { %v2158_v22 = vpop.permute.xlu1 %2157  ;;  %2244 = vadd.xlane.f32.xlu0 %v2226_v37 }
 0x337   : > { %vm2196_vm15 = vcmp.eq.s32.totalorder %v6502_v17, %v2158_v22 }
 0x338   : > { %vm2212_vm0 = vmor %vm2132_vm14, %vm2196_vm15  ;;  %v7201_v5 = vpop.xlane.xlu0 %1802 }
 0x339   : > { %v2228_v7 = vsel %vm2212_vm0, %v6852_v58, 0.0  ;;  %11699 = vst [vmem:[#allocation83_spill] sm:$0xff] %v7201_v5  ;;  %vm2140_vm0 = vcmp.eq.s32.totalorder %v6502_v17, %v7076_v39 }
 0x33a   : > { %v2164_v26 = vpop.permute.xlu1 %2163  ;;  %2248 = vadd.xlane.f32.xlu0 %v2228_v7 }
 0x33b   : > { %vm2198_vm2 = vcmp.eq.s32.totalorder %v6502_v17, %v2164_v26 }
 0x33c   : > { %vm2214_vm3 = vmor %vm2134_vm1, %vm2198_vm2 }
 0x33d   : > { %v2230_v19 = vsel %vm2214_vm3, %v6832_v52, 0.0  ;;  %vm2133_vm3 = vcmp.eq.s32.totalorder %v6502_v17, %v7046_v15 }
 0x33e   : > { %v2170_v37 = vpop.permute.xlu1 %2169  ;;  %2252 = vadd.xlane.f32.xlu0 %v2230_v19 }
 0x33f   : > { %vm2200_vm5 = vcmp.eq.s32.totalorder %v6502_v17, %v2170_v37 }
 0x340   : > { %v2146_v42 = vpop.permute.xlu0 %2145  ;;  %vm2216_vm6 = vmor %vm2136_vm4, %vm2200_vm5 }
 0x341   : > { %vm2192_vm8 = vcmp.eq.s32.totalorder %v6502_v17, %v2146_v42  ;;  %v2232_v43 = vsel %vm2216_vm6, %v6917_v47, 0.0  ;;  %vm2142_vm6 = vcmp.eq.s32.totalorder %v6502_v17, %v7083_v13 }
 0x342   : > { %v2176_v22 = vpop.permute.xlu1 %2175  ;;  %2256 = vadd.xlane.f32.xlu0 %v2232_v43  ;;  %vm2208_vm9 = vmor %vm2128_vm7, %vm2192_vm8 }
 0x343   : > { %vm2202_vm11 = vcmp.eq.s32.totalorder %v6502_v17, %v2176_v22  ;;  %v2224_v57 = vsel %vm2208_vm9, %v6797_v4, 0.0  ;;  %vm2135_vm9 = vcmp.eq.s32.totalorder %v6502_v17, %v7057_v0 }
 0x344   : > { %2240 = vadd.xlane.f32.xlu1 %v2224_v57  ;;  %v2155_v7 = vpop.permute.xlu0 %2154  ;;  %vm2218_vm12 = vmor %vm2138_vm10, %vm2202_vm11 }
 0x345   : > { %vm2195_vm14 = vcmp.eq.s32.totalorder %v6502_v17, %v2155_v7  ;;  %v2234_v32 = vsel %vm2218_vm12, %v6897_v21, 0.0  ;;  %vm2137_vm12 = vcmp.eq.s32.totalorder %v6502_v17, %v7066_v44 }
 0x346   : > { %v2182_v26 = vpop.permute.xlu1 %2181  ;;  %2260 = vadd.xlane.f32.xlu0 %v2234_v32  ;;  %vm2211_vm15 = vmor %vm2131_vm13, %vm2195_vm14 }
 0x347   : > { %vm2204_vm1 = vcmp.eq.s32.totalorder %v6502_v17, %v2182_v26  ;;  %v2227_v35 = vsel %vm2211_vm15, %v6804_v36, 0.0  ;;  %vm2139_vm15 = vcmp.eq.s32.totalorder %v6502_v17, %v7072_v61  ;;  %v7257_v26 = vld [vmem:[%s6263_s28 + $0x40] sm:$0xff] }
 0x348   : > { %2246 = vadd.xlane.f32.xlu1 %v2227_v35  ;;  %v2161_v19 = vpop.permute.xlu0 %2160  ;;  %vm2220_vm2 = vmor %vm2140_vm0, %vm2204_vm1  ;;  %v7261_v35 = vld [vmem:[%s6263_s28 + $0x50] sm:$0xff] }
 0x349   : > { %vm2197_vm4 = vcmp.eq.s32.totalorder %v6502_v17, %v2161_v19  ;;  %v2236_v54 = vsel %vm2220_vm2, %v6989_v1, 0.0  ;;  %vm2141_vm2 = vcmp.eq.s32.totalorder %v6502_v17, %v7079_v25  ;;  %v7253_v25 = vld [vmem:[%s6263_s28] sm:$0xff]  ;;  %v7269_v19 = vld [vmem:[%s6263_s28 + $0x8] sm:$0xff] }
 0x34a   : > { %v2188_v37 = vpop.permute.xlu1 %2187  ;;  %2264 = vadd.xlane.f32.xlu0 %v2236_v54  ;;  %vm2213_vm5 = vmor %vm2133_vm3, %vm2197_vm4  ;;  %v7273_v54 = vld [vmem:[%s6263_s28 + $0x70] sm:$0xff] }
 0x34b   : > { %vm2206_vm7 = vcmp.eq.s32.totalorder %v6502_v17, %v2188_v37  ;;  %v2229_v39 = vsel %vm2213_vm5, %v6885_v51, 0.0  ;;  %vm2143_vm5 = vcmp.eq.s32.totalorder %v6502_v17, %v7086_v28  ;;  %v7265_v28 = vld [vmem:[%s6263_s28 + $0x60] sm:$0xff]  ;;  %v7277_v37 = vld [vmem:[%s6263_s28 + $0x10] sm:$0xff] }
 0x34c   : > { %2250 = vadd.xlane.f32.xlu1 %v2229_v39  ;;  %v2167_v42 = vpop.permute.xlu0 %2166  ;;  %vm2222_vm8 = vmor %vm2142_vm6, %vm2206_vm7  ;;  %v6181_v39 = vmov 15  }
 0x34d   : > { %vm2199_vm10 = vcmp.eq.s32.totalorder %v6502_v17, %v2167_v42  ;;  %v2238_v15 = vsel %vm2222_vm8, %v6965_v46, 0.0  ;;  %v7282_v42 = vld [vmem:[%s6263_s28 + $0x18] sm:$0xff] }
 0x34e   : > { %2268 = vadd.xlane.f32.xlu0 %v2238_v15  ;;  %vm2215_vm11 = vmor %vm2135_vm9, %vm2199_vm10  ;;  %v7287_v15 = vld [vmem:[%s6263_s28 + $0x20] sm:$0xff] }
 0x34f   : > { %v2231_v43 = vsel %vm2215_vm11, %v6873_v60, 0.0 }
 0x350   : > { %2254 = vadd.xlane.f32.xlu1 %v2231_v43  ;;  %v2173_v13 = vpop.permute.xlu0 %2172  ;;  %v7292_v43 = vld [vmem:[%s6263_s28 + $0x28] sm:$0xff] }
 0x351   : > { %vm2201_vm13 = vcmp.eq.s32.totalorder %v6502_v17, %v2173_v13  ;;  %v7297_v13 = vld [vmem:[%s6263_s28 + $0x30] sm:$0xff] }
 0x352   : > { %vm2217_vm14 = vmor %vm2137_vm12, %vm2201_vm13 }
 0x353   : > { %v2233_v22 = vsel %vm2217_vm14, %v6951_v56, 0.0 }
 0x354   : > { %2258 = vadd.xlane.f32.xlu1 %v2233_v22  ;;  %v2179_v0 = vpop.permute.xlu0 %2178  ;;  %v7302_v22 = vld [vmem:[%s6263_s28 + $0x38] sm:$0xff] }
 0x355   : > { %vm2203_vm0 = vcmp.eq.s32.totalorder %v6502_v17, %v2179_v0  ;;  %v7307_v0 = vld [vmem:[%s6263_s28 + $0x48] sm:$0xff] }
 0x356   : > { %vm2219_vm1 = vmor %vm2139_vm15, %vm2203_vm0 }
 0x357   : > { %v2235_v57 = vsel %vm2219_vm1, %v6939_v59, 0.0 }
 0x358   : > { %2262 = vadd.xlane.f32.xlu1 %v2235_v57  ;;  %v2185_v7 = vpop.permute.xlu0 %2184  ;;  %v7312_v57 = vld [vmem:[%s6263_s28 + $0x58] sm:$0xff] }
 0x359   : > { %vm2205_vm3 = vcmp.eq.s32.totalorder %v6502_v17, %v2185_v7  ;;  %v7317_v7 = vld [vmem:[%s6263_s28 + $0x68] sm:$0xff] }
 0x35a   : > { %vm2221_vm4 = vmor %vm2141_vm2, %vm2205_vm3 }
 0x35b   : > { %v2237_v44 = vsel %vm2221_vm4, %v7026_v41, 0.0 }
 0x35c   : > { %2266 = vadd.xlane.f32.xlu1 %v2237_v44  ;;  %v2191_v61 = vpop.permute.xlu0 %2190  ;;  %v7321_v44 = vld [vmem:[%s6263_s28 + $0x78] sm:$0xff] }
 0x35d   : > { %vm2207_vm6 = vcmp.eq.s32.totalorder %v6502_v17, %v2191_v61  ;;  %v6182_v61 = vmov 8  }
 0x35e   : > { %vm2223_vm7 = vmor %vm2143_vm5, %vm2207_vm6 }
 0x35f   : > { %v2239_v32 = vsel %vm2223_vm7, %v7012_v49, 0.0 }
 0x360   : > { %2270 = vadd.xlane.f32.xlu1 %v2239_v32 }
 0x364   : > { %2545 = vperm.xlu0 %5429, %v7253_v25  }
 0x368   : > { %2569 = vperm.xlu0 %5429, %v7257_v26  }
 0x36c   : > { %2575 = vperm.xlu0 %5429, %v7261_v35  }
 0x370   : > { %2581 = vperm.xlu0 %5429, %v7265_v28  }
 0x371   : > { %2548 = vperm.xlu1 %5430, %v7269_v19  }
 0x374   : > { %2587 = vperm.xlu0 %5429, %v7273_v54  }
 0x375   : > { %2551 = vperm.xlu1 %5430, %v7277_v37  }
 0x378   : > { %5431 = vset.pattern.permute.xlu0 %v6181_v39 }
 0x379   : > { %2609 = vperm.xlu0 %5431, %v11641_v55   ;;  %2554 = vperm.xlu1 %5430, %v7282_v42  }
 0x37d   : > { %2618 = vperm.xlu0 %5431, %v11643_v34   ;;  %2557 = vperm.xlu1 %5430, %v7287_v15  }
 0x381   : > { %2624 = vperm.xlu0 %5431, %v11645_v20   ;;  %2560 = vperm.xlu1 %5430, %v7292_v43  }
 0x385   : > { %2630 = vperm.xlu0 %5431, %v11647_v29   ;;  %2563 = vperm.xlu1 %5430, %v7297_v13  }
 0x389   : > { %2636 = vperm.xlu0 %5431, %v11649_v23   ;;  %2566 = vperm.xlu1 %5430, %v7302_v22  }
 0x38d   : > { %2642 = vperm.xlu0 %5431, %v11652_v63   ;;  %2572 = vperm.xlu1 %5430, %v7307_v0  }
 0x391   : > { %2648 = vperm.xlu0 %5431, %v11655_v62   ;;  %2578 = vperm.xlu1 %5430, %v7312_v57  }
 0x395   : > { %2654 = vperm.xlu0 %5431, %v11658_v27   ;;  %2584 = vperm.xlu1 %5430, %v7317_v7  }
 0x399   : > { %2590 = vperm.xlu1 %5430, %v7321_v44   ;;  %5433 = vset.pattern.permute.xlu0 %v6182_v61 }
 0x39d   : > { %5432 = vset.pattern.permute.xlu1 %v6181_v39 }
 0x39e   : > { %2612 = vperm.xlu1 %5432, %v11636_v10  }
 0x3a2   : > { %2615 = vperm.xlu1 %5432, %v11637_v53  }
 0x3a6   : > { %2621 = vperm.xlu1 %5432, %v11638_v33  }
 0x3aa   : > { %2627 = vperm.xlu1 %5432, %v11639_v40  }
 0x3ae   : > { %2633 = vperm.xlu1 %5432, %v11640_v3  }
 0x3b2   : > { %2639 = vperm.xlu1 %5432, %v11642_v50  }
 0x3b6   : > { %2645 = vperm.xlu1 %5432, %v11644_v2  }
 0x3ba   : > { %2651 = vperm.xlu1 %5432, %v11646_v24  }
 0x3bb   : > { %v7332_v32 = vpop.xlane.xlu0 %2242 }
 0x3bc   : > { %11700 = vst [vmem:[#allocation84_spill] sm:$0xff] %v7332_v32 }
 0x3be   : > { %5434 = vset.pattern.permute.xlu1 %v6182_v61 }
 0x3bf   : > { %v7334_v39 = vpop.xlane.xlu0 %2244 }
 0x3c0   : > { %11701 = vst [vmem:[#allocation85_spill] sm:$0xff] %v7334_v39 }
 0x3c3   : > { %v7336_v5 = vpop.xlane.xlu0 %2248 }
 0x3c4   : > { %11702 = vst [vmem:[#allocation86_spill] sm:$0xff] %v7336_v5 }
 0x3c7   : > { %v7338_v16 = vpop.xlane.xlu0 %2252 }
 0x3c8   : > { %11703 = vst [vmem:[#allocation87_spill] sm:$0xff] %v7338_v16 }
 0x3cb   : > { %v7340_v45 = vpop.xlane.xlu0 %2256 }
 0x3cc   : > { %11704 = vst [vmem:[#allocation88_spill] sm:$0xff] %v7340_v45 }
 0x3cd   : > { %v7342_v12 = vpop.xlane.xlu1 %2240 }
 0x3ce   : > { %11705 = vst [vmem:[#allocation89_spill] sm:$0xff] %v7342_v12 }
 0x3cf   : > { %v7344_v6 = vpop.xlane.xlu0 %2260 }
 0x3d0   : > { %11706 = vst [vmem:[#allocation90_spill] sm:$0xff] %v7344_v6 }
 0x3d1   : > { %v7346_v8 = vpop.xlane.xlu1 %2246 }
 0x3d2   : > { %11707 = vst [vmem:[#allocation91_spill] sm:$0xff] %v7346_v8 }
 0x3d3   : > { %v7348_v31 = vpop.xlane.xlu0 %2264 }
 0x3d4   : > { %11708 = vst [vmem:[#allocation92_spill] sm:$0xff] %v7348_v31 }
 0x3d5   : > { %v7350_v14 = vpop.xlane.xlu1 %2250 }
 0x3d6   : > { %11709 = vst [vmem:[#allocation93_spill] sm:$0xff] %v7350_v14 }
 0x3d7   : > { %v7354_v61 = vpop.xlane.xlu0 %2268 }
 0x3d8   : > { %11711 = vst [vmem:[#allocation95_spill] sm:$0xff] %v7354_v61 }
 0x3d9   : > { %v7352_v32 = vpop.xlane.xlu1 %2254 }
 0x3da   : > { %11710 = vst [vmem:[#allocation94_spill] sm:$0xff] %v7352_v32 }
 0x3dd   : > { %v7356_v39 = vpop.xlane.xlu1 %2258 }
 0x3de   : > { %11712 = vst [vmem:[#allocation96_spill] sm:$0xff] %v7356_v39 }
 0x3df   : > { %v2546_v5 = vpop.permute.xlu0 %2545 }
 0x3e0   : > { %vm2592_vm8 = vcmp.eq.s32.totalorder %v6502_v17, %v2546_v5 }
 0x3e1   : > { %v7358_v16 = vpop.xlane.xlu1 %2262 }
 0x3e2   : > { %11713 = vst [vmem:[#allocation97_spill] sm:$0xff] %v7358_v16 }
 0x3e3   : > { %v7360_v45 = vpop.permute.xlu0 %2569 }
 0x3e5   : > { %v7362_v12 = vpop.xlane.xlu1 %2266 }
 0x3e6   : > { %11714 = vst [vmem:[#allocation98_spill] sm:$0xff] %v7362_v12 }
 0x3e7   : > { %v7364_v6 = vpop.permute.xlu0 %2575 }
 0x3e9   : > { %v7366_v8 = vpop.xlane.xlu1 %2270 }
 0x3ea   : > { %11715 = vst [vmem:[#allocation99_spill] sm:$0xff] %v7366_v8 }
 0x3eb   : > { %v7368_v31 = vpop.permute.xlu0 %2581 }
 0x3ed   : > { %v7370_v14 = vpop.permute.xlu1 %2548 }
 0x3ef   : > { %v7372_v32 = vpop.permute.xlu0 %2587 }
 0x3f1   : > { %v7374_v61 = vpop.permute.xlu1 %2551 }
 0x3f4   : > { %v2610_v39 = vpop.permute.xlu0 %2609 }
 0x3f5   : > { %vm2656_vm9 = vcmp.eq.s32.totalorder %v6502_v17, %v2610_v39  ;;  %v2555_v16 = vpop.permute.xlu1 %2554 }
 0x3f6   : > { %vm2672_vm10 = vmor %vm2592_vm8, %vm2656_vm9  ;;  %vm2595_vm11 = vcmp.eq.s32.totalorder %v6502_v17, %v2555_v16 }
 0x3f7   : > { %v2688_v12 = vsel %vm2672_vm10, %v6797_v4, 0.0 }
 0x3f8   : > { %2704 = vadd.xlane.f32.xlu1 %v2688_v12  ;;  %v2619_v11 = vpop.permute.xlu0 %2618 }
 0x3f9   : > { %vm2659_vm12 = vcmp.eq.s32.totalorder %v6502_v17, %v2619_v11  ;;  %v2558_v8 = vpop.permute.xlu1 %2557 }
 0x3fa   : > { %vm2675_vm13 = vmor %vm2595_vm11, %vm2659_vm12 }
 0x3fb   : > { %v2691_v38 = vsel %vm2675_vm13, %v6804_v36, 0.0 }
 0x3fc   : > { %2710 = vadd.xlane.f32.xlu1 %v2691_v38  ;;  %v2625_v30 = vpop.permute.xlu0 %2624 }
 0x3fd   : > { %vm2661_vm14 = vcmp.eq.s32.totalorder %v6502_v17, %v2625_v30  ;;  %v2561_v5 = vpop.permute.xlu1 %2560 }
 0x3fe   : > { %vm2597_vm15 = vcmp.eq.s32.totalorder %v6502_v17, %v2561_v5 }
 0x3ff   : > { %vm2677_vm0 = vmor %vm2597_vm15, %vm2661_vm14 }
 0x400   : > { %v2631_v39 = vpop.permute.xlu0 %2630  ;;  %v2693_v12 = vsel %vm2677_vm0, %v6885_v51, 0.0  ;;  %vm2593_vm0 = vcmp.eq.s32.totalorder %v6502_v17, %v7370_v14 }
 0x401   : > { %v2564_v9 = vpop.permute.xlu1 %2563  ;;  %2714 = vadd.xlane.f32.xlu1 %v2693_v12  ;;  %vm2663_vm1 = vcmp.eq.s32.totalorder %v6502_v17, %v2631_v39 }
 0x404   : > { %v2637_v16 = vpop.permute.xlu0 %2636 }
 0x405   : > { %v2567_v4 = vpop.permute.xlu1 %2566  ;;  %vm2665_vm4 = vcmp.eq.s32.totalorder %v6502_v17, %v2637_v16 }
 0x406   : > { %vm2599_vm2 = vcmp.eq.s32.totalorder %v6502_v17, %v2567_v4 }
 0x407   : > { %vm2679_vm3 = vmor %vm2599_vm2, %vm2663_vm1 }
 0x408   : > { %v2643_v11 = vpop.permute.xlu0 %2642  ;;  %v2695_v38 = vsel %vm2679_vm3, %v6873_v60, 0.0  ;;  %vm2594_vm3 = vcmp.eq.s32.totalorder %v6502_v17, %v7374_v61 }
 0x409   : > { %v2573_v30 = vpop.permute.xlu1 %2572  ;;  %2718 = vadd.xlane.f32.xlu1 %v2695_v38  ;;  %vm2667_vm7 = vcmp.eq.s32.totalorder %v6502_v17, %v2643_v11 }
 0x40a   : > { %vm2601_vm5 = vcmp.eq.s32.totalorder %v6502_v17, %v2573_v30 }
 0x40b   : > { %vm2681_vm6 = vmor %vm2601_vm5, %vm2665_vm4 }
 0x40c   : > { %v2697_v5 = vsel %vm2681_vm6, %v6951_v56, 0.0  ;;  %v2649_v12 = vpop.permute.xlu0 %2648  ;;  %vm2596_vm6 = vcmp.eq.s32.totalorder %v6502_v17, %v2558_v8 }
 0x40d   : > { %v2579_v51 = vpop.permute.xlu1 %2578  ;;  %2722 = vadd.xlane.f32.xlu1 %v2697_v5  ;;  %vm2669_vm10 = vcmp.eq.s32.totalorder %v6502_v17, %v2649_v12 }
 0x40e   : > { %vm2603_vm8 = vcmp.eq.s32.totalorder %v6502_v17, %v2579_v51 }
 0x40f   : > { %vm2683_vm9 = vmor %vm2603_vm8, %vm2667_vm7 }
 0x410   : > { %v2699_v4 = vsel %vm2683_vm9, %v6939_v59, 0.0  ;;  %v2655_v16 = vpop.permute.xlu0 %2654  ;;  %vm2598_vm9 = vcmp.eq.s32.totalorder %v6502_v17, %v2564_v9 }
 0x411   : > { %v2585_v39 = vpop.permute.xlu1 %2584  ;;  %2726 = vadd.xlane.f32.xlu1 %v2699_v4  ;;  %vm2671_vm13 = vcmp.eq.s32.totalorder %v6502_v17, %v2655_v16 }
 0x412   : > { %vm2605_vm11 = vcmp.eq.s32.totalorder %v6502_v17, %v2585_v39 }
 0x413   : > { %vm2685_vm12 = vmor %vm2605_vm11, %vm2669_vm10 }
 0x414   : > { %v2701_v38 = vsel %vm2685_vm12, %v7026_v41, 0.0  ;;  %vm2600_vm12 = vcmp.eq.s32.totalorder %v6502_v17, %v7360_v45 }
 0x415   : > { %v2591_v30 = vpop.permute.xlu1 %2590  ;;  %2730 = vadd.xlane.f32.xlu1 %v2701_v38 }
 0x416   : > { %vm2607_vm14 = vcmp.eq.s32.totalorder %v6502_v17, %v2591_v30 }
 0x417   : > { %vm2687_vm15 = vmor %vm2607_vm14, %vm2671_vm13 }
 0x418   : > { %v2703_v51 = vsel %vm2687_vm15, %v7012_v49, 0.0  ;;  %vm2602_vm15 = vcmp.eq.s32.totalorder %v6502_v17, %v7364_v6 }
 0x419   : > { %v2613_v11 = vpop.permute.xlu1 %2612  ;;  %2734 = vadd.xlane.f32.xlu1 %v2703_v51 }
 0x41a   : > { %vm2657_vm1 = vcmp.eq.s32.totalorder %v6502_v17, %v2613_v11 }
 0x41b   : > { %vm2673_vm2 = vmor %vm2593_vm0, %vm2657_vm1 }
 0x41c   : > { %v2689_v5 = vsel %vm2673_vm2, %v6813_v48, 0.0  ;;  %vm2604_vm2 = vcmp.eq.s32.totalorder %v6502_v17, %v7368_v31  ;;  %v6183_v31 = vmov 16  }
 0x41d   : > { %2706 = vadd.xlane.f32.xlu0 %v2689_v5  ;;  %v2616_v12 = vpop.permute.xlu1 %2615 }
 0x41e   : > { %vm2658_vm4 = vcmp.eq.s32.totalorder %v6502_v17, %v2616_v12 }
 0x41f   : > { %vm2674_vm5 = vmor %vm2594_vm3, %vm2658_vm4 }
 0x420   : > { %v2690_v4 = vsel %vm2674_vm5, %v6791_v18, 0.0  ;;  %vm2606_vm5 = vcmp.eq.s32.totalorder %v6502_v17, %v7372_v32  ;;  %v6184_v32 = vmov 9  }
 0x421   : > { %2708 = vadd.xlane.f32.xlu0 %v2690_v4  ;;  %v2622_v39 = vpop.permute.xlu1 %2621 }
 0x422   : > { %vm2660_vm7 = vcmp.eq.s32.totalorder %v6502_v17, %v2622_v39 }
 0x423   : > { %vm2676_vm8 = vmor %vm2596_vm6, %vm2660_vm7 }
 0x424   : > { %v2692_v14 = vsel %vm2676_vm8, %v6852_v58, 0.0 }
 0x425   : > { %2712 = vadd.xlane.f32.xlu0 %v2692_v14  ;;  %v2628_v16 = vpop.permute.xlu1 %2627 }
 0x426   : > { %vm2662_vm10 = vcmp.eq.s32.totalorder %v6502_v17, %v2628_v16 }
 0x427   : > { %vm2678_vm11 = vmor %vm2598_vm9, %vm2662_vm10 }
 0x428   : > { %v2694_v61 = vsel %vm2678_vm11, %v6832_v52, 0.0 }
 0x429   : > { %2716 = vadd.xlane.f32.xlu0 %v2694_v61  ;;  %v2634_v38 = vpop.permute.xlu1 %2633 }
 0x42a   : > { %vm2664_vm13 = vcmp.eq.s32.totalorder %v6502_v17, %v2634_v38  ;;  %3012 = vperm.xlu1 %5434, %v7269_v19  }
 0x42b   : > { %vm2680_vm14 = vmor %vm2600_vm12, %vm2664_vm13 }
 0x42c   : > { %v2696_v8 = vsel %vm2680_vm14, %v6917_v47, 0.0 }
 0x42d   : > { %v2640_v30 = vpop.permute.xlu1 %2639  ;;  %2720 = vadd.xlane.f32.xlu0 %v2696_v8 }
 0x42e   : > { %vm2666_vm0 = vcmp.eq.s32.totalorder %v6502_v17, %v2640_v30  ;;  %3015 = vperm.xlu1 %5434, %v7277_v37  }
 0x42f   : > { %vm2682_vm1 = vmor %vm2602_vm15, %vm2666_vm0 }
 0x430   : > { %v2698_v9 = vsel %vm2682_vm1, %v6897_v21, 0.0 }
 0x431   : > { %v2646_v45 = vpop.permute.xlu1 %2645  ;;  %2724 = vadd.xlane.f32.xlu0 %v2698_v9 }
 0x432   : > { %vm2668_vm3 = vcmp.eq.s32.totalorder %v6502_v17, %v2646_v45  ;;  %3018 = vperm.xlu1 %5434, %v7282_v42  }
 0x433   : > { %vm2684_vm4 = vmor %vm2604_vm2, %vm2668_vm3 }
 0x434   : > { %v2700_v51 = vsel %vm2684_vm4, %v6989_v1, 0.0 }
 0x435   : > { %v2652_v6 = vpop.permute.xlu1 %2651  ;;  %2728 = vadd.xlane.f32.xlu0 %v2700_v51 }
 0x436   : > { %vm2670_vm6 = vcmp.eq.s32.totalorder %v6502_v17, %v2652_v6  ;;  %3021 = vperm.xlu1 %5434, %v7287_v15  }
 0x437   : > { %vm2686_vm7 = vmor %vm2606_vm5, %vm2670_vm6 }
 0x438   : > { %v2702_v11 = vsel %vm2686_vm7, %v6965_v46, 0.0 }
 0x439   : > { %2732 = vadd.xlane.f32.xlu0 %v2702_v11 }
 0x43a   : > { %3024 = vperm.xlu1 %5434, %v7292_v43  }
 0x43e   : > { %3027 = vperm.xlu1 %5434, %v7297_v13  }
 0x442   : > { %3030 = vperm.xlu1 %5434, %v7302_v22  }
 0x446   : > { %3033 = vperm.xlu1 %5434, %v7257_v26  }
 0x44a   : > { %3039 = vperm.xlu1 %5434, %v7261_v35  }
 0x44e   : > { %3045 = vperm.xlu1 %5434, %v7265_v28  }
 0x44f   : > { %3009 = vperm.xlu0 %5433, %v7253_v25  }
 0x452   : > { %3051 = vperm.xlu1 %5434, %v7273_v54  }
 0x453   : > { %3036 = vperm.xlu0 %5433, %v7307_v0  }
 0x456   : > { %5435 = vset.pattern.permute.xlu1 %v6183_v31 }
 0x457   : > { %3042 = vperm.xlu0 %5433, %v7312_v57   ;;  %3073 = vperm.xlu1 %5435, %v11641_v55  }
 0x45b   : > { %3048 = vperm.xlu0 %5433, %v7317_v7   ;;  %3079 = vperm.xlu1 %5435, %v11637_v53  }
 0x45f   : > { %3054 = vperm.xlu0 %5433, %v7321_v44   ;;  %3082 = vperm.xlu1 %5435, %v11643_v34  }
 0x463   : > { %5436 = vset.pattern.permute.xlu0 %v6183_v31  ;;  %3088 = vperm.xlu1 %5435, %v11645_v20  }
 0x464   : > { %3076 = vperm.xlu0 %5436, %v11636_v10  }
 0x467   : > { %3094 = vperm.xlu1 %5435, %v11647_v29  }
 0x468   : > { %3085 = vperm.xlu0 %5436, %v11638_v33  }
 0x46b   : > { %3100 = vperm.xlu1 %5435, %v11649_v23  }
 0x46c   : > { %3091 = vperm.xlu0 %5436, %v11639_v40  }
 0x46f   : > { %3106 = vperm.xlu1 %5435, %v11652_v63  }
 0x470   : > { %3097 = vperm.xlu0 %5436, %v11640_v3  }
 0x473   : > { %3112 = vperm.xlu1 %5435, %v11655_v62  }
 0x474   : > { %3103 = vperm.xlu0 %5436, %v11642_v50  }
 0x477   : > { %3118 = vperm.xlu1 %5435, %v11658_v27  }
 0x478   : > { %3109 = vperm.xlu0 %5436, %v11644_v2  }
 0x47b   : > { %5437 = vset.pattern.permute.xlu1 %v6184_v32 }
 0x47c   : > { %3115 = vperm.xlu0 %5436, %v11646_v24  }
 0x480   : > { %5438 = vset.pattern.permute.xlu0 %v6184_v32 }
 0x481   : > { %v7462_v5 = vpop.xlane.xlu1 %2704 }
 0x482   : > { %11716 = vst [vmem:[#allocation100_spill] sm:$0xff] %v7462_v5 }
 0x485   : > { %v7464_v12 = vpop.xlane.xlu1 %2710 }
 0x486   : > { %11717 = vst [vmem:[#allocation101_spill] sm:$0xff] %v7464_v12 }
 0x48a   : > { %v7466_v4 = vpop.xlane.xlu1 %2714 }
 0x48b   : > { %11718 = vst [vmem:[#allocation102_spill] sm:$0xff] %v7466_v4 }
 0x492   : > { %v7468_v39 = vpop.xlane.xlu1 %2718 }
 0x493   : > { %11719 = vst [vmem:[#allocation103_spill] sm:$0xff] %v7468_v39 }
 0x496   : > { %v7470_v14 = vpop.xlane.xlu1 %2722 }
 0x497   : > { %11720 = vst [vmem:[#allocation104_spill] sm:$0xff] %v7470_v14 }
 0x49a   : > { %v7472_v16 = vpop.xlane.xlu1 %2726 }
 0x49b   : > { %11721 = vst [vmem:[#allocation105_spill] sm:$0xff] %v7472_v16 }
 0x49e   : > { %v7474_v61 = vpop.xlane.xlu1 %2730 }
 0x49f   : > { %11722 = vst [vmem:[#allocation106_spill] sm:$0xff] %v7474_v61 }
 0x4a2   : > { %v7476_v38 = vpop.xlane.xlu1 %2734 }
 0x4a3   : > { %11723 = vst [vmem:[#allocation107_spill] sm:$0xff] %v7476_v38 }
 0x4a6   : > { %v3013_v8 = vpop.permute.xlu1 %3012  ;;  %v7478_v30 = vpop.xlane.xlu0 %2706 }
 0x4a7   : > { %11724 = vst [vmem:[#allocation108_spill] sm:$0xff] %v7478_v30  ;;  %vm3057_vm3 = vcmp.eq.s32.totalorder %v6502_v17, %v3013_v8 }
 0x4aa   : > { %v3016_v9 = vpop.permute.xlu1 %3015  ;;  %v7480_v45 = vpop.xlane.xlu0 %2708 }
 0x4ab   : > { %11725 = vst [vmem:[#allocation109_spill] sm:$0xff] %v7480_v45  ;;  %vm3058_vm11 = vcmp.eq.s32.totalorder %v6502_v17, %v3016_v9 }
 0x4ae   : > { %v3019_v51 = vpop.permute.xlu1 %3018  ;;  %v7482_v6 = vpop.xlane.xlu0 %2712 }
 0x4af   : > { %11726 = vst [vmem:[#allocation110_spill] sm:$0xff] %v7482_v6  ;;  %vm3059_vm14 = vcmp.eq.s32.totalorder %v6502_v17, %v3019_v51 }
 0x4b2   : > { %v3022_v11 = vpop.permute.xlu1 %3021  ;;  %v7484_v31 = vpop.xlane.xlu0 %2716 }
 0x4b3   : > { %11727 = vst [vmem:[#allocation111_spill] sm:$0xff] %v7484_v31 }
 0x4b6   : > { %v3025_v32 = vpop.permute.xlu1 %3024  ;;  %v7486_v14 = vpop.xlane.xlu0 %2720 }
 0x4b7   : > { %11728 = vst [vmem:[#allocation112_spill] sm:$0xff] %v7486_v14  ;;  %vm3061_vm1 = vcmp.eq.s32.totalorder %v6502_v17, %v3025_v32 }
 0x4ba   : > { %v7488_v16 = vpop.permute.xlu1 %3027  ;;  %v7490_v61 = vpop.xlane.xlu0 %2724 }
 0x4bb   : > { %11729 = vst [vmem:[#allocation113_spill] sm:$0xff] %v7490_v61 }
 0x4be   : > { %v3031_v38 = vpop.permute.xlu1 %3030  ;;  %v7492_v39 = vpop.xlane.xlu0 %2728 }
 0x4bf   : > { %11730 = vst [vmem:[#allocation114_spill] sm:$0xff] %v7492_v39  ;;  %v11732_v39 = vld [vmem:[#allocation43_spill] sm:$0xff]  ;;  %vm3063_vm7 = vcmp.eq.s32.totalorder %v6502_v17, %v3031_v38 }
 0x4c2   : > { %v7494_v30 = vpop.permute.xlu1 %3033  ;;  %v7496_v4 = vpop.xlane.xlu0 %2732 }
 0x4c3   : > { %11731 = vst [vmem:[#allocation115_spill] sm:$0xff] %v7496_v4 }
 0x4c6   : > { %v7498_v45 = vpop.permute.xlu1 %3039 }
 0x4ca   : > { %v7500_v6 = vpop.permute.xlu1 %3045  ;;  %v3010_v12 = vpop.permute.xlu0 %3009 }
 0x4cb   : > { %vm3056_vm8 = vcmp.eq.s32.totalorder %v6502_v17, %v3010_v12 }
 0x4ce   : > { %v7502_v31 = vpop.permute.xlu1 %3051  ;;  %v3037_v5 = vpop.permute.xlu0 %3036 }
 0x4d2   : > { %v3074_v14 = vpop.permute.xlu1 %3073  ;;  %v3043_v27 = vpop.permute.xlu0 %3042 }
 0x4d3   : > { %vm3120_vm9 = vcmp.eq.s32.totalorder %v6502_v17, %v3074_v14 }
 0x4d4   : > { %vm3136_vm10 = vmor %vm3056_vm8, %vm3120_vm9  ;;  %vm3060_vm9 = vcmp.eq.s32.totalorder %v6502_v17, %v3022_v11 }
 0x4d5   : > { %v3152_v61 = vsel %vm3136_vm10, %v11732_v39, 0.0 }
 0x4d6   : > { %v3080_v62 = vpop.permute.xlu1 %3079  ;;  %3168 = vadd.xlane.f32.xlu0 %v3152_v61  ;;  %v7507_v4 = vpop.permute.xlu0 %3048 }
 0x4d7   : > { %vm3122_vm12 = vcmp.eq.s32.totalorder %v6502_v17, %v3080_v62 }
 0x4d8   : > { %vm3138_vm13 = vmor %vm3058_vm11, %vm3122_vm12 }
 0x4d9   : > { %v3154_v63 = vsel %vm3138_vm13, %v6791_v18, 0.0  ;;  %vm3065_vm13 = vcmp.eq.s32.totalorder %v6502_v17, %v3037_v5 }
 0x4da   : > { %v3083_v23 = vpop.permute.xlu1 %3082  ;;  %3172 = vadd.xlane.f32.xlu0 %v3154_v63  ;;  %v7512_v29 = vpop.permute.xlu0 %3054  ;;  %v11733_v63 = vld [vmem:[#allocation49_spill] sm:$0xff] }
 0x4db   : > { %vm3123_vm15 = vcmp.eq.s32.totalorder %v6502_v17, %v3083_v23 }
 0x4dc   : > { %vm3139_vm0 = vmor %vm3059_vm14, %vm3123_vm15  ;;  %vm3062_vm15 = vcmp.eq.s32.totalorder %v6502_v17, %v7488_v16 }
 0x4dd   : > { %v3155_v12 = vsel %vm3139_vm0, %v6804_v36, 0.0 }
 0x4de   : > { %v3089_v14 = vpop.permute.xlu1 %3088  ;;  %3174 = vadd.xlane.f32.xlu0 %v3155_v12 }
 0x4df   : > { %vm3125_vm2 = vcmp.eq.s32.totalorder %v6502_v17, %v3089_v14  ;;  %v3077_v62 = vpop.permute.xlu0 %3076 }
 0x4e0   : > { %vm3121_vm4 = vcmp.eq.s32.totalorder %v6502_v17, %v3077_v62  ;;  %vm3141_vm5 = vmor %vm3061_vm1, %vm3125_vm2 }
 0x4e1   : > { %v3157_v61 = vsel %vm3141_vm5, %v11733_v63, 0.0  ;;  %vm3137_vm6 = vmor %vm3057_vm3, %vm3121_vm4  ;;  %vm3067_vm3 = vcmp.eq.s32.totalorder %v6502_v17, %v3043_v27  ;;  %vm3064_vm5 = vcmp.eq.s32.totalorder %v6502_v17, %v7494_v30 }
 0x4e2   : > { %v3095_v9 = vpop.permute.xlu1 %3094  ;;  %3178 = vadd.xlane.f32.xlu0 %v3157_v61  ;;  %v3153_v23 = vsel %vm3137_vm6, %v6813_v48, 0.0 }
 0x4e3   : > { %vm3127_vm8 = vcmp.eq.s32.totalorder %v6502_v17, %v3095_v9  ;;  %3170 = vadd.xlane.f32.xlu1 %v3153_v23  ;;  %v3086_v51 = vpop.permute.xlu0 %3085 }
 0x4e4   : > { %vm3124_vm10 = vcmp.eq.s32.totalorder %v6502_v17, %v3086_v51  ;;  %vm3143_vm11 = vmor %vm3063_vm7, %vm3127_vm8 }
 0x4e5   : > { %v3159_v8 = vsel %vm3143_vm11, %v6873_v60, 0.0  ;;  %vm3140_vm12 = vmor %vm3060_vm9, %vm3124_vm10  ;;  %vm3069_vm9 = vcmp.eq.s32.totalorder %v6502_v17, %v7507_v4  ;;  %vm3066_vm11 = vcmp.eq.s32.totalorder %v6502_v17, %v7498_v45 }
 0x4e6   : > { %v3101_v32 = vpop.permute.xlu1 %3100  ;;  %3182 = vadd.xlane.f32.xlu0 %v3159_v8  ;;  %v3156_v12 = vsel %vm3140_vm12, %v6852_v58, 0.0 }
 0x4e7   : > { %vm3129_vm14 = vcmp.eq.s32.totalorder %v6502_v17, %v3101_v32  ;;  %3176 = vadd.xlane.f32.xlu1 %v3156_v12  ;;  %v3092_v38 = vpop.permute.xlu0 %3091 }
 0x4e8   : > { %vm3126_vm0 = vcmp.eq.s32.totalorder %v6502_v17, %v3092_v38  ;;  %vm3145_vm1 = vmor %vm3065_vm13, %vm3129_vm14  ;;  %v11749_v38 = vld [vmem:[#allocation38_spill] sm:$0xff] }
 0x4e9   : > { %v3161_v11 = vsel %vm3145_vm1, %v6951_v56, 0.0  ;;  %vm3142_vm2 = vmor %vm3062_vm15, %vm3126_vm0  ;;  %vm3071_vm15 = vcmp.eq.s32.totalorder %v6502_v17, %v7512_v29  ;;  %vm3068_vm1 = vcmp.eq.s32.totalorder %v6502_v17, %v7500_v6  ;;  %v6185_v6 = vmov 17  }
 0x4ea   : > { %v3107_v14 = vpop.permute.xlu1 %3106  ;;  %3186 = vadd.xlane.f32.xlu0 %v3161_v11  ;;  %v3158_v62 = vsel %vm3142_vm2, %v6832_v52, 0.0  ;;  %v5104_v11 = vclamps-f32 %v11749_v38, 10.0 }
 0x4eb   : > { %vm3131_vm4 = vcmp.eq.s32.totalorder %v6502_v17, %v3107_v14  ;;  %3180 = vadd.xlane.f32.xlu1 %v3158_v62  ;;  %v3098_v5 = vpop.permute.xlu0 %3097 }
 0x4ec   : > { %vm3128_vm6 = vcmp.eq.s32.totalorder %v6502_v17, %v3098_v5  ;;  %vm3147_vm7 = vmor %vm3067_vm3, %vm3131_vm4 }
 0x4ed   : > { %v3163_v16 = vsel %vm3147_vm7, %v6939_v59, 0.0  ;;  %vm3144_vm8 = vmor %vm3064_vm5, %vm3128_vm6  ;;  %vm3070_vm5 = vcmp.eq.s32.totalorder %v6502_v17, %v7502_v31  ;;  %v11748_v31 = vld [vmem:[#allocation39_spill] sm:$0xff] }
 0x4ee   : > { %v3113_v61 = vpop.permute.xlu1 %3112  ;;  %3190 = vadd.xlane.f32.xlu0 %v3163_v16  ;;  %v3160_v9 = vsel %vm3144_vm8, %v6917_v47, 0.0  ;;  %v5102_v12 = vclamps-f32 %v11748_v31, 10.0  ;;  %v946_v16 = vsub.f32 0.0, %v5104_v11 }
 0x4ef   : > { %vm3133_vm10 = vcmp.eq.s32.totalorder %v6502_v17, %v3113_v61  ;;  %3184 = vadd.xlane.f32.xlu1 %v3160_v9  ;;  %v3104_v27 = vpop.permute.xlu0 %3103 }
 0x4f0   : > { %vm3130_vm12 = vcmp.eq.s32.totalorder %v6502_v17, %v3104_v27  ;;  %vm3149_vm13 = vmor %vm3069_vm9, %vm3133_vm10  ;;  %v944_v5 = vsub.f32 0.0, %v5102_v12 }
 0x4f1   : > { %v3165_v30 = vsel %vm3149_vm13, %v7026_v41, 0.0  ;;  %vm3146_vm14 = vmor %vm3066_vm11, %vm3130_vm12 }
 0x4f2   : > { %v3119_v23 = vpop.permute.xlu1 %3118  ;;  %3194 = vadd.xlane.f32.xlu0 %v3165_v30  ;;  %v3162_v51 = vsel %vm3146_vm14, %v6897_v21, 0.0  ;;  %v960_v27 = vmul.f32 1.442695, %v944_v5  ;;  %v964_v30 = vmul.f32 1.442695, %v946_v16 }
 0x4f3   : > { %vm3135_vm0 = vcmp.eq.s32.totalorder %v6502_v17, %v3119_v23  ;;  %3188 = vadd.xlane.f32.xlu1 %v3162_v51  ;;  %v3110_v4 = vpop.permute.xlu0 %3109  ;;  %v11754_v23 = vld [vmem:[#allocation31_spill] sm:$0xff] }
 0x4f4   : > { %vm3132_vm2 = vcmp.eq.s32.totalorder %v6502_v17, %v3110_v4  ;;  %vm3151_vm3 = vmor %vm3071_vm15, %vm3135_vm0  ;;  %v5118_v51 = vclamps-f32 %v11754_v23, 10.0  ;;  %v11755_v4 = vld [vmem:[#allocation27_spill] sm:$0xff]  ;;  %5499 = vpow2.f32 %v960_v27 }
 0x4f5   : > { %v3167_v45 = vsel %vm3151_vm3, %v7012_v49, 0.0  ;;  %vm3148_vm4 = vmor %vm3068_vm1, %vm3132_vm2  ;;  %5501 = vpow2.f32 %v964_v30  ;;  %v11762_v30 = vld [vmem:[#allocation26_spill] sm:$0xff] }
 0x4f6   : > { %3198 = vadd.xlane.f32.xlu0 %v3167_v45  ;;  %v3164_v8 = vsel %vm3148_vm4, %v6989_v1, 0.0  ;;  %v5105_v45 = vclamps-f32 %v11755_v4, 10.0  ;;  %v1376_v12 = vsub.f32 0.0, %v5118_v51 }
 0x4f7   : > { %3192 = vadd.xlane.f32.xlu1 %v3164_v8  ;;  %v3116_v32 = vpop.permute.xlu0 %3115 }
 0x4f8   : > { %vm3134_vm6 = vcmp.eq.s32.totalorder %v6502_v17, %v3116_v32  ;;  %v11757_v32 = vld [vmem:[#allocation40_spill] sm:$0xff]  ;;  %v947_v11 = vsub.f32 0.0, %v5105_v45  ;;  %v11764_v45 = vld [vmem:[#allocation22_spill] sm:$0xff] }
 0x4f9   : > { %vm3150_vm7 = vmor %vm3070_vm5, %vm3134_vm6 }
 0x4fa   : > { %v3166_v29 = vsel %vm3150_vm7, %v6965_v46, 0.0  ;;  %v966_v4 = vmul.f32 1.442695, %v947_v11 }
 0x4fb   : > { %3196 = vadd.xlane.f32.xlu1 %v3166_v29  ;;  %v5120_v29 = vclamps-f32 %v11757_v32, 10.0  ;;  %v5135_v32 = vclamps-f32 %v11762_v30, 10.0 }
 0x4fc   : > { %5503 = vpow2.f32 %v966_v4 }
 0x4fd   : > { %v1378_v5 = vsub.f32 0.0, %v5120_v29  ;;  %v1841_v11 = vsub.f32 0.0, %v5135_v32 }
 0x4ff   : > { %v1394_v27 = vsub.f32 0.0, %v1378_v5  ;;  %v11766_v5 = vld [vmem:[#allocation37_spill] sm:$0xff] }
 0x501   : > { %v7649_v30 = vpop.eup %5499 }
 0x50c   : > { %3476 = vperm.xlu0 %5438, %v7269_v19   ;;  %3473 = vperm.xlu1 %5437, %v7253_v25   ;;  %v11734_v25 = vld [vmem:[#allocation12_spill] sm:$0xff] }
 0x50d   : > { %v11738_v19 = vld [vmem:[#allocation20_spill] sm:$0xff] }
 0x510   : > { %3500 = vperm.xlu0 %5438, %v7307_v0   ;;  %3479 = vperm.xlu1 %5437, %v7277_v37   ;;  %v11474_v37 = vmov 10  }
 0x514   : > { %3506 = vperm.xlu0 %5438, %v7312_v57   ;;  %3482 = vperm.xlu1 %5437, %v7282_v42  }
 0x518   : > { %3512 = vperm.xlu0 %5438, %v7317_v7   ;;  %3485 = vperm.xlu1 %5437, %v7287_v15  }
 0x51c   : > { %3518 = vperm.xlu0 %5438, %v7321_v44   ;;  %3488 = vperm.xlu1 %5437, %v7292_v43  }
 0x520   : > { %5440 = vset.pattern.permute.xlu0 %v6185_v6  ;;  %3491 = vperm.xlu1 %5437, %v7297_v13  }
 0x521   : > { %3540 = vperm.xlu0 %5440, %v11636_v10  }
 0x524   : > { %3494 = vperm.xlu1 %5437, %v7302_v22  }
 0x525   : > { %3549 = vperm.xlu0 %5440, %v11638_v33  }
 0x528   : > { %3497 = vperm.xlu1 %5437, %v7257_v26   ;;  %v11735_v26 = vld [vmem:[#allocation14_spill] sm:$0xff] }
 0x529   : > { %3555 = vperm.xlu0 %5440, %v11639_v40  }
 0x52c   : > { %3503 = vperm.xlu1 %5437, %v7261_v35   ;;  %v11736_v35 = vld [vmem:[#allocation16_spill] sm:$0xff] }
 0x52d   : > { %3561 = vperm.xlu0 %5440, %v11640_v3  }
 0x530   : > { %3509 = vperm.xlu1 %5437, %v7265_v28   ;;  %v11737_v28 = vld [vmem:[#allocation18_spill] sm:$0xff] }
 0x531   : > { %3567 = vperm.xlu0 %5440, %v11642_v50  }
 0x534   : > { %3515 = vperm.xlu1 %5437, %v7273_v54   ;;  %v11476_v54 = vmov 18  }
 0x535   : > { %3573 = vperm.xlu0 %5440, %v11644_v2  }
 0x538   : > { %5439 = vset.pattern.permute.xlu1 %v6185_v6  ;;  %v11758_v6 = vld [vmem:[#allocation23_spill] sm:$0xff] }
 0x539   : > { %3579 = vperm.xlu0 %5440, %v11646_v24   ;;  %3537 = vperm.xlu1 %5439, %v11641_v55   ;;  %v5119_v31 = vclamps-f32 %v11758_v6, 10.0  ;;  %v11763_v6 = vld [vmem:[#allocation24_spill] sm:$0xff] }
 0x53a   : > { %v5134_v51 = vclamps-f32 %v11763_v6, 10.0 }
 0x53b   : > { %v1377_v16 = vsub.f32 0.0, %v5119_v31 }
 0x53d   : > { %3543 = vperm.xlu1 %5439, %v11637_v53   ;;  %5455 = vset.pattern.permute.xlu0 %v11476_v54  ;;  %v1392_v54 = vsub.f32 0.0, %v1376_v12  ;;  %v1412_v12 = vmul.f32 1.442695, %v1394_v27  ;;  %v1857_v27 = vsub.f32 0.0, %v1841_v11 }
 0x53f   : > { %v1874_v11 = vmul.f32 1.442695, %v1857_v27 }
 0x541   : > { %3546 = vperm.xlu1 %5439, %v11643_v34  }
 0x545   : > { %3552 = vperm.xlu1 %5439, %v11645_v20  }
 0x549   : > { %3558 = vperm.xlu1 %5439, %v11734_v25  }
 0x54d   : > { %3564 = vperm.xlu1 %5439, %v11735_v26  }
 0x551   : > { %3570 = vperm.xlu1 %5439, %v11736_v35  }
 0x555   : > { %3576 = vperm.xlu1 %5439, %v11737_v28   ;;  %v11784_v28 = vld [vmem:[#allocation58_spill] sm:$0xff] }
 0x556   : > { %v5141_v34 = vclamps-f32 %v11784_v28, 10.0 }
 0x559   : > { %3582 = vperm.xlu1 %5439, %v11738_v19  }
 0x55d   : > { %5441 = vset.pattern.permute.xlu1 %v11474_v37 }
 0x55f   : > { %v7597_v42 = vpop.xlane.xlu0 %3168 }
 0x560   : > { %11739 = vst [vmem:[#allocation116_spill] sm:$0xff] %v7597_v42 }
 0x563   : > { %v7599_v15 = vpop.xlane.xlu0 %3172 }
 0x564   : > { %11740 = vst [vmem:[#allocation117_spill] sm:$0xff] %v7599_v15  ;;  %v11769_v15 = vld [vmem:[#allocation34_spill] sm:$0xff] }
 0x565   : > { %v5103_v42 = vclamps-f32 %v11769_v15, 10.0  ;;  %v11770_v15 = vld [vmem:[#allocation41_spill] sm:$0xff] }
 0x566   : > { %v5138_v35 = vclamps-f32 %v11770_v15, 10.0 }
 0x567   : > { %v7601_v43 = vpop.xlane.xlu0 %3174 }
 0x568   : > { %11741 = vst [vmem:[#allocation118_spill] sm:$0xff] %v7601_v43 }
 0x56b   : > { %v7603_v13 = vpop.xlane.xlu0 %3178 }
 0x56c   : > { %11742 = vst [vmem:[#allocation119_spill] sm:$0xff] %v7603_v13  ;;  %v7605_v22 = vpop.xlane.xlu1 %3170 }
 0x56d   : > { %11743 = vst [vmem:[#allocation120_spill] sm:$0xff] %v7605_v22 }
 0x56f   : > { %v7607_v0 = vpop.xlane.xlu0 %3182 }
 0x570   : > { %11744 = vst [vmem:[#allocation121_spill] sm:$0xff] %v7607_v0  ;;  %v7609_v57 = vpop.xlane.xlu1 %3176 }
 0x571   : > { %11745 = vst [vmem:[#allocation122_spill] sm:$0xff] %v7609_v57  ;;  %v5140_v57 = vclamps-f32 %v11766_v5, 10.0  ;;  %v11767_v5 = vld [vmem:[#allocation36_spill] sm:$0xff] }
 0x572   : > { %v5137_v22 = vclamps-f32 %v11767_v5, 10.0 }
 0x573   : > { %v7611_v7 = vpop.xlane.xlu0 %3186  ;;  %v1846_v0 = vsub.f32 0.0, %v5140_v57 }
 0x574   : > { %11746 = vst [vmem:[#allocation123_spill] sm:$0xff] %v7611_v7  ;;  %v7613_v44 = vpop.xlane.xlu1 %3180  ;;  %v1840_v7 = vsub.f32 0.0, %v5134_v51  ;;  %v1843_v5 = vsub.f32 0.0, %v5137_v22 }
 0x575   : > { %11747 = vst [vmem:[#allocation124_spill] sm:$0xff] %v7613_v44 }
 0x576   : > { %v1856_v51 = vsub.f32 0.0, %v1840_v7 }
 0x577   : > { %v7617_v14 = vpop.xlane.xlu0 %3190 }
 0x578   : > { %11750 = vst [vmem:[#allocation39_spill] sm:$0xff] %v7617_v14  ;;  %v7619_v62 = vpop.xlane.xlu1 %3184  ;;  %v5124_v14 = vclamps-f32 %v11764_v45, 10.0  ;;  %v7653_v45 = vpop.eup %5501 }
 0x579   : > { %11751 = vst [vmem:[#allocation38_spill] sm:$0xff] %v7619_v62  ;;  %v1393_v62 = vsub.f32 0.0, %v1377_v16  ;;  %v1010_v43 = vadd.f32 1.0, %v7653_v45  ;;  %v1013_v57 = vmul.f32 -0.5, %v7653_v45  ;;  %v7673_v27 = vpop.eup %5503 }
 0x57b   : > { %v7623_v9 = vpop.xlane.xlu0 %3194  ;;  %v1410_v6 = vmul.f32 1.442695, %v1393_v62  ;;  %v1014_v22 = vadd.f32 1.0, %v1013_v57 }
 0x57c   : > { %v7621_v61 = vpop.xlane.xlu1 %3188  ;;  %11753 = vst [vmem:[#allocation126_spill] sm:$0xff] %v7623_v9 }
 0x57d   : > { %11752 = vst [vmem:[#allocation125_spill] sm:$0xff] %v7621_v61  ;;  %v11761_v61 = vld [vmem:[#allocation25_spill] sm:$0xff] }
 0x57f   : > { %v7631_v38 = vpop.xlane.xlu0 %3198 }
 0x580   : > { %v7627_v8 = vpop.xlane.xlu1 %3192  ;;  %11759 = vst [vmem:[#allocation27_spill] sm:$0xff] %v7631_v38  ;;  %v1408_v38 = vmul.f32 1.442695, %v1392_v54  ;;  %v1382_v54 = vsub.f32 0.0, %v5124_v14 }
 0x581   : > { %11756 = vst [vmem:[#allocation31_spill] sm:$0xff] %v7627_v8  ;;  %v5136_v8 = vclamps-f32 %v11761_v61, 10.0  ;;  %v11765_v61 = vld [vmem:[#allocation30_spill] sm:$0xff] }
 0x582   : > { %v5121_v44 = vclamps-f32 %v11765_v61, 10.0  ;;  %5505 = vpow2.f32 %v1408_v38  ;;  %v992_v61 = vadd.f32 1.0, %v7649_v30  ;;  %v1398_v62 = vsub.f32 0.0, %v1382_v54  ;;  %v11768_v38 = vld [vmem:[#allocation35_spill] sm:$0xff] }
 0x583   : > { %v1842_v29 = vsub.f32 0.0, %v5136_v8  ;;  %5507 = vpow2.f32 %v1412_v12  ;;  %v5122_v14 = vclamps-f32 %v11768_v38, 10.0  ;;  %v1862_v54 = vsub.f32 0.0, %v1846_v0 }
 0x584   : > { %v7633_v37 = vpop.xlane.xlu1 %3196  ;;  %v1379_v32 = vsub.f32 0.0, %v5121_v44  ;;  %5509 = vpow2.f32 %v1410_v6  ;;  %v995_v44 = vmul.f32 -0.5, %v7649_v30  ;;  %v1872_v6 = vmul.f32 1.442695, %v1856_v51 }
 0x585   : > { %11760 = vst [vmem:[#allocation40_spill] sm:$0xff] %v7633_v37  ;;  %v1858_v4 = vsub.f32 0.0, %v1842_v29  ;;  %5511 = vlog2.f32 %v992_v61  ;;  %v1420_v38 = vmul.f32 1.442695, %v1398_v62  ;;  %v1380_v24 = vsub.f32 0.0, %v5122_v14 }
 0x586   : > { %v1395_v7 = vsub.f32 0.0, %v1379_v32  ;;  %5513 = vlog2.f32 %v1010_v43  ;;  %v996_v19 = vadd.f32 1.0, %v995_v44  ;;  %v1884_v61 = vmul.f32 1.442695, %v1862_v54 }
 0x587   : > { %v7635_v23 = vpop.permute.xlu0 %3476  ;;  %v1876_v29 = vmul.f32 1.442695, %v1858_v4  ;;  %v945_v4 = vsub.f32 0.0, %v5103_v42  ;;  %v1859_v0 = vsub.f32 0.0, %v1843_v5  ;;  %v1396_v51 = vsub.f32 0.0, %v1380_v24 }
 0x588   : > { %v7638_v9 = vpop.permute.xlu1 %3473  ;;  %v1414_v32 = vmul.f32 1.442695, %v1395_v7  ;;  %v998_v62 = vand.u32 2147483647, %v7649_v30  ;;  %v1016_v43 = vand.u32 2147483647, %v7653_v45  ;;  %v7680_v3 = vmul.f32 %v7649_v30, %v996_v19 }
 0x589   : > { %5515 = vpow2.f32 %v1876_v29  ;;  %v962_v14 = vmul.f32 1.442695, %v945_v4  ;;  %v1844_v29 = vsub.f32 0.0, %v5138_v35  ;;  %vm3521_vm8 = vcmp.eq.s32.totalorder %v6502_v17, %v7635_v23  ;;  %v11771_v35 = vld [vmem:[#allocation5_spill] sm:$0xff]  ;;  %v11777_v23 = vld [vmem:[#allocation56_spill] sm:$0xff] }
 0x58a   : > { %5517 = vpow2.f32 %v1874_v11  ;;  %v1022_v11 = vmul.f32 -0.5, %v7673_v27  ;;  %v1019_v24 = vadd.f32 1.0, %v7673_v27  ;;  %v1878_v57 = vmul.f32 1.442695, %v1859_v0 }
 0x58b   : > { %v7643_v37 = vpop.permute.xlu0 %3500  ;;  %5519 = vpow2.f32 %v1872_v6  ;;  %v5108_v6 = vclamps-f32 %v11771_v35, 10.0  ;;  %v7691_v19 = vmul.f32 %v7653_v45, %v1014_v22  ;;  %v1416_v54 = vmul.f32 1.442695, %v1396_v51  ;;  %v11773_v45 = vld [vmem:[#allocation54_spill] sm:$0xff] }
 0x58c   : > { %v7645_v31 = vpop.permute.xlu1 %3479  ;;  %5521 = vpow2.f32 %v1420_v38  ;;  %v1860_v4 = vsub.f32 0.0, %v1844_v29  ;;  %v1023_v35 = vadd.f32 1.0, %v1022_v11  ;;  %v5106_v22 = vclamps-f32 %v11773_v45, 10.0  ;;  %v11776_v29 = vld [vmem:[#allocation55_spill] sm:$0xff] }
 0x58d   : > { %5523 = vpow2.f32 %v1414_v32  ;;  %v11772_v32 = vld [vmem:[#allocation7_spill] sm:$0xff]  ;;  %vm7705_vm13 = vcmp.lt.f32.partialorder %v998_v62, 0.0004427343  ;;  %vm7711_vm15 = vcmp.lt.f32.partialorder %v1016_v43, 0.0004427343 }
 0x58e   : > { %5525 = vpow2.f32 %v1884_v61  ;;  %v5109_v61 = vclamps-f32 %v11772_v32, 10.0  ;;  %v5107_v32 = vclamps-f32 %v11776_v29, 10.0  ;;  %v7721_v43 = vmul.f32 %v7673_v27, %v1023_v35  ;;  %v11783_v35 = vld [vmem:[#allocation57_spill] sm:$0xff] }
 0x58f   : > { %v7651_v16 = vpop.permute.xlu0 %3506  ;;  %v7677_v42 = vpop.eup %5505  ;;  %5527 = vpow2.f32 %v962_v14  ;;  %v950_v14 = vsub.f32 0.0, %v5108_v6  ;;  %v948_v40 = vsub.f32 0.0, %v5106_v22 }
 0x590   : > { %v7655_v8 = vpop.permute.xlu1 %3482  ;;  %v7687_v7 = vpop.eup %5507  ;;  %v1440_v30 = vadd.f32 1.0, %v7677_v42  ;;  %5529 = vlog2.f32 %v1019_v24  ;;  %v951_v6 = vsub.f32 0.0, %v5109_v61  ;;  %v949_v61 = vsub.f32 0.0, %v5107_v32 }
 0x591   : > { %v7696_v38 = vpop.eup %5509  ;;  %5531 = vpow2.f32 %v1878_v57  ;;  %v1880_v57 = vmul.f32 1.442695, %v1860_v4  ;;  %v972_v4 = vmul.f32 1.442695, %v950_v14 }
 0x592   : > { %v5512_v45 = vpop.eup %5511  ;;  %5533 = vpow2.f32 %v1416_v54  ;;  %v1443_v54 = vmul.f32 -0.5, %v7677_v42  ;;  %v1452_v32 = vmul.f32 -0.5, %v7696_v38 }
 0x593   : > { %v7660_v13 = vpop.permute.xlu0 %3512  ;;  %v5514_v24 = vpop.eup %5513  ;;  %5535 = vlog2.f32 %v1440_v30  ;;  %v5128_v30 = vclamps-f32 %v11783_v35, 10.0 }
 0x594   : > { %v7664_v12 = vpop.permute.xlu1 %3485  ;;  %v1012_v22 = vmul.f32 0.6931472, %v5514_v24  ;;  %v1453_v51 = vadd.f32 1.0, %v1452_v32 }
 0x595   : > { %vm3524_vm11 = vcmp.eq.s32.totalorder %v6502_v17, %v7664_v12  ;;  %v1449_v12 = vadd.f32 1.0, %v7696_v38 }
 0x597   : > { %v7668_v2 = vpop.permute.xlu0 %3518  ;;  %5537 = vlog2.f32 %v1449_v12  ;;  %v970_v12 = vmul.f32 1.442695, %v949_v61 }
 0x598   : > { %v7671_v26 = vpop.permute.xlu1 %3488  ;;  %5539 = vpow2.f32 %v1880_v57  ;;  %v1386_v57 = vsub.f32 0.0, %v5128_v30 }
 0x599   : > { %5541 = vpow2.f32 %v972_v4  ;;  %v1847_v4 = vsub.f32 0.0, %v5141_v34 }
 0x59c   : > { %v3492_v15 = vpop.permute.xlu1 %3491  ;;  %v3541_v44 = vpop.permute.xlu0 %3540 }
 0x59d   : > { %vm3585_vm9 = vcmp.eq.s32.totalorder %v6502_v17, %v3541_v44  ;;  %vm3526_vm0 = vcmp.eq.s32.totalorder %v6502_v17, %v3492_v15 }
 0x59e   : > { %vm3601_vm10 = vmor %vm3521_vm8, %vm3585_vm9 }
 0x59f   : > { %v3617_v5 = vsel %vm3601_vm10, %v6813_v48, 0.0  ;;  %v7723_v48 = vpop.eup %5515 }
 0x5a0   : > { %v7699_v0 = vpop.permute.xlu1 %3494  ;;  %3634 = vadd.xlane.f32.xlu1 %v3617_v5  ;;  %v3550_v44 = vpop.permute.xlu0 %3549  ;;  %v5125_v5 = vclamps-f32 %v11777_v23, 10.0  ;;  %11780 = vst [vmem:[#allocation23_spill] sm:$0xff] %v7723_v48 }
 0x5a1   : > { %vm3588_vm12 = vcmp.eq.s32.totalorder %v6502_v17, %v3550_v44  ;;  %v7718_v44 = vadd.f32 1.0, %v7687_v7 }
 0x5a2   : > { %vm3604_vm14 = vmor %vm3524_vm11, %vm3588_vm12  ;;  %v1383_v20 = vsub.f32 0.0, %v5125_v5  ;;  %v968_v5 = vmul.f32 1.442695, %v948_v40 }
 0x5a3   : > { %v3620_v62 = vsel %vm3604_vm14, %v6852_v58, 0.0  ;;  %v7728_v58 = vpop.eup %5517 }
 0x5a4   : > { %v3498_v29 = vpop.permute.xlu1 %3497  ;;  %3640 = vadd.xlane.f32.xlu1 %v3620_v62  ;;  %v3556_v23 = vpop.permute.xlu0 %3555  ;;  %11781 = vst [vmem:[#allocation25_spill] sm:$0xff] %v7728_v58  ;;  %v994_v62 = vmul.f32 0.6931472, %v5512_v45  ;;  %v1444_v45 = vadd.f32 1.0, %v1443_v54  ;;  %v1399_v24 = vsub.f32 0.0, %v1383_v20  ;;  %v1018_v54 = vsel %vm7711_vm15, %v7691_v19, %v1012_v22 }
 0x5a5   : > { %vm3590_vm1 = vcmp.eq.s32.totalorder %v6502_v17, %v3556_v23  ;;  %v7730_v33 = vpop.eup %5519  ;;  %v974_v23 = vmul.f32 1.442695, %v951_v6  ;;  %vm3528_vm3 = vcmp.eq.s32.totalorder %v6502_v17, %v3498_v29  ;;  %v11786_v6 = vld [vmem:[#allocation59_spill] sm:$0xff]  ;;  %v7762_v30 = vsub.f32 0.0, %v1018_v54 }
 0x5a6   : > { %vm3606_vm2 = vmor %vm3526_vm0, %vm3590_vm1  ;;  %11782 = vst [vmem:[#allocation26_spill] sm:$0xff] %v7730_v33  ;;  %v7734_v15 = vpop.eup %5521  ;;  %v1000_v28 = vsel %vm7705_vm13, %v7680_v3, %v994_v62  ;;  %v5144_v40 = vclamps-f32 %v11786_v6, 10.0  ;;  %v7758_v62 = vmul.f32 %v7677_v42, %v1444_v45  ;;  %v1422_v19 = vmul.f32 1.442695, %v1399_v24 }
 0x5a7   : > { %v3622_v48 = vsel %vm3606_vm2, %v6832_v52, 0.0  ;;  %v7740_v35 = vpop.eup %5523  ;;  %5543 = vpow2.f32 %v974_v23  ;;  %v7760_v34 = vsub.f32 0.0, %v1000_v28  ;;  %11788 = vst [vmem:[#allocation30_spill] sm:$0xff] %v7762_v30  ;;  %v1402_v23 = vsub.f32 0.0, %v1386_v57 }
 0x5a8   : > { %v3504_v58 = vpop.permute.xlu1 %3503  ;;  %3644 = vadd.xlane.f32.xlu1 %v3622_v48  ;;  %v3562_v14 = vpop.permute.xlu0 %3561  ;;  %5545 = vpow2.f32 %v968_v5  ;;  %v1850_v32 = vsub.f32 0.0, %v5144_v40  ;;  %v11790_v5 = vld [vmem:[#allocation60_spill] sm:$0xff]  ;;  %v7772_v28 = vmul.f32 %v7696_v38, %v1453_v51  ;;  %v11791_v40 = vand.u32 2147483647, %v7673_v27 }
 0x5a9   : > { %vm3592_vm4 = vcmp.eq.s32.totalorder %v6502_v17, %v3562_v14  ;;  %v7745_v48 = vpop.eup %5525  ;;  %vm3530_vm6 = vcmp.eq.s32.totalorder %v6502_v17, %v3504_v58  ;;  %5547 = vpow2.f32 %v970_v12  ;;  %11787 = vst [vmem:[#allocation22_spill] sm:$0xff] %v7760_v34  ;;  %v5123_v6 = vclamps-f32 %v11790_v5, 10.0 }
 0x5aa   : > { %vm3608_vm5 = vmor %vm3528_vm3, %vm3592_vm4  ;;  %11785 = vst [vmem:[#allocation24_spill] sm:$0xff] %v7745_v48  ;;  %v7753_v3 = vpop.eup %5527  ;;  %vm7781_vm11 = vcmp.lt.f32.partialorder %v11791_v40, 0.0004427343  ;;  %5549 = vlog2.f32 %v7718_v44  ;;  %v7796_v52 = vadd.f32 1.0, %v7740_v35  ;;  %vm3520_vm0 = vcmp.eq.s32.totalorder %v6502_v17, %v7638_v9 }
 0x5ab   : > { %v3624_v29 = vsel %vm3608_vm5, %v6917_v47, 0.0  ;;  %v5530_v11 = vpop.eup %5529  ;;  %v1001_v45 = vadd.f32 1.0, %v7753_v3  ;;  %5551 = vpow2.f32 %v1422_v19  ;;  %v1381_v54 = vsub.f32 0.0, %v5123_v6  ;;  %v11795_v47 = vld [vmem:[#allocation62_spill] sm:$0xff]  ;;  %v11798_v6 = vld [vmem:[#allocation63_spill] sm:$0xff] }
 0x5ac   : > { %v3510_v61 = vpop.permute.xlu1 %3509  ;;  %3648 = vadd.xlane.f32.xlu1 %v3624_v29  ;;  %v3568_v20 = vpop.permute.xlu0 %3567  ;;  %v7777_v57 = vmul.f32 0.6931472, %v5530_v11  ;;  %v1866_v11 = vsub.f32 0.0, %v1850_v32  ;;  %v5139_v44 = vclamps-f32 %v11795_v47, 10.0  ;;  %vm3522_vm3 = vcmp.eq.s32.totalorder %v6502_v17, %v7645_v31 }
 0x5ad   : > { %vm3594_vm7 = vcmp.eq.s32.totalorder %v6502_v17, %v3568_v20  ;;  %v7764_v22 = vpop.eup %5531  ;;  %v1863_v20 = vsub.f32 0.0, %v1847_v4  ;;  %vm3532_vm9 = vcmp.eq.s32.totalorder %v6502_v17, %v3510_v61  ;;  %v11794_v4 = vld [vmem:[#allocation61_spill] sm:$0xff]  ;;  %v7789_v61 = vmul.f32 -0.5, %v7687_v7 }
 0x5ae   : > { %vm3610_vm8 = vmor %vm3530_vm6, %vm3594_vm7  ;;  %11789 = vst [vmem:[#allocation37_spill] sm:$0xff] %v7764_v22  ;;  %v7768_v29 = vpop.eup %5533  ;;  %v5126_v51 = vclamps-f32 %v11794_v4, 10.0  ;;  %5553 = vlog2.f32 %v1001_v45  ;;  %v11797_v22 = vld [vmem:[#allocation64_spill] sm:$0xff]  ;;  %v5142_v45 = vclamps-f32 %v11798_v6, 10.0  ;;  %vm3523_vm6 = vcmp.eq.s32.totalorder %v6502_v17, %v7655_v8 }
 0x5af   : > { %v3626_v58 = vsel %vm3610_vm8, %v6897_v21, 0.0  ;;  %v5536_v14 = vpop.eup %5535  ;;  %v1886_v21 = vmul.f32 1.442695, %v1863_v20 }
 0x5b0   : > { %v3516_v12 = vpop.permute.xlu1 %3515  ;;  %3652 = vadd.xlane.f32.xlu1 %v3626_v58  ;;  %v3574_v24 = vpop.permute.xlu0 %3573  ;;  %v1004_v58 = vmul.f32 -0.5, %v7753_v3  ;;  %v1384_v32 = vsub.f32 0.0, %v5126_v51 }
 0x5b1   : > { %vm3596_vm10 = vcmp.eq.s32.totalorder %v6502_v17, %v3574_v24  ;;  %v1428_v24 = vmul.f32 1.442695, %v1402_v23  ;;  %v7792_v40 = vpop.eup %5537  ;;  %v5112_v23 = vclamps-f32 %v11797_v22, 10.0  ;;  %vm3534_vm13 = vcmp.eq.s32.totalorder %v6502_v17, %v3516_v12 }
 0x5b2   : > { %vm3612_vm12 = vmor %vm3532_vm9, %vm3596_vm10  ;;  %v7798_v48 = vpop.eup %5539  ;;  %v1005_v47 = vadd.f32 1.0, %v1004_v58  ;;  %v1845_v12 = vsub.f32 0.0, %v5139_v44  ;;  %v11799_v58 = vld [vmem:[#allocation66_spill] sm:$0xff]  ;;  %vm3525_vm10 = vcmp.eq.s32.totalorder %v6502_v17, %v7671_v26 }
 0x5b3   : > { %v3628_v27 = vsel %vm3612_vm12, %v6989_v1, 0.0  ;;  %11796 = vst [vmem:[#allocation36_spill] sm:$0xff] %v7798_v48  ;;  %v7807_v20 = vpop.eup %5541  ;;  %5555 = vpow2.f32 %v1428_v24  ;;  %v1397_v1 = vsub.f32 0.0, %v1381_v54  ;;  %v954_v9 = vsub.f32 0.0, %v5112_v23 }
 0x5b4   : > { %v3538_v19 = vpop.permute.xlu1 %3537  ;;  %3656 = vadd.xlane.f32.xlu1 %v3628_v27  ;;  %v3580_v4 = vpop.permute.xlu0 %3579  ;;  %v1892_v27 = vmul.f32 1.442695, %v1866_v11  ;;  %5557 = vpow2.f32 %v1886_v21  ;;  %v5110_v48 = vclamps-f32 %v11799_v58, 10.0  ;;  %v1400_v21 = vsub.f32 0.0, %v1384_v32 }
 0x5b5   : > { %vm3584_vm14 = vcmp.eq.s32.totalorder %v6502_v17, %v3538_v19  ;;  %vm3598_vm15 = vcmp.eq.s32.totalorder %v6502_v17, %v3580_v4  ;;  %v1007_v4 = vand.u32 2147483647, %v7753_v3  ;;  %v7812_v6 = vpop.eup %5543  ;;  %v1848_v24 = vsub.f32 0.0, %v5142_v45 }
 0x5b6   : > { %vm3614_vm1 = vmor %vm3534_vm13, %vm3598_vm15  ;;  %v7818_v54 = vpop.eup %5545  ;;  %v7825_v44 = vmul.f32 %v7753_v3, %v1005_v47  ;;  %5559 = vpow2.f32 %v1892_v27  ;;  %v7836_v45 = vmul.f32 0.6931472, %v5536_v14  ;;  %v7840_v47 = vadd.f32 1.0, %v7807_v20 }
 0x5b7   : > { %vm3600_vm2 = vmor %vm3520_vm0, %vm3584_vm14  ;;  %v3630_v22 = vsel %vm3614_vm1, %v6965_v46, 0.0  ;;  %v7831_v31 = vpop.eup %5547  ;;  %v1049_v46 = vmul.f32 -0.5, %v7807_v20  ;;  %v980_v23 = vmul.f32 1.442695, %v954_v9  ;;  %v1424_v14 = vmul.f32 1.442695, %v1400_v21 }
 0x5b8   : > { %v3616_v19 = vsel %vm3600_vm2, %v11732_v39, 0.0  ;;  %v3544_v51 = vpop.permute.xlu1 %3543  ;;  %3660 = vadd.xlane.f32.xlu1 %v3630_v22  ;;  %v1418_v22 = vmul.f32 1.442695, %v1397_v1  ;;  %v952_v39 = vsub.f32 0.0, %v5110_v48  ;;  %v7846_v1 = vpop.eup %5549  ;;  %v1864_v27 = vsub.f32 0.0, %v1848_v24 }
 0x5b9   : > { %3632 = vadd.xlane.f32.xlu0 %v3616_v19  ;;  %vm3586_vm4 = vcmp.eq.s32.totalorder %v6502_v17, %v3544_v51  ;;  %v1861_v19 = vsub.f32 0.0, %v1845_v12  ;;  %v11802_v51 = vld [vmem:[#allocation65_spill] sm:$0xff]  ;;  %v11803_v12 = vld [vmem:[#allocation67_spill] sm:$0xff]  ;;  %v7854_v9 = vpop.eup %5551  ;;  %vm7859_vm9 = vcmp.lt.f32.partialorder %v1007_v4, 0.0004427343  ;;  %v1028_v21 = vadd.f32 1.0, %v7818_v54 }
 0x5ba   : > { %vm7820_vm5 = vmor %vm3522_vm3, %vm3586_vm4  ;;  %v5113_v58 = vclamps-f32 %v11802_v51, 10.0  ;;  %v5111_v11 = vclamps-f32 %v11803_v12, 10.0  ;;  %11806 = vst [vmem:[#allocation35_spill] sm:$0xff] %v7854_v9  ;;  %5561 = vpow2.f32 %v1418_v22  ;;  %v1031_v24 = vmul.f32 -0.5, %v7818_v54 }
 0x5bb   : > { %v3618_v32 = vsel %vm7820_vm5, %v6791_v18, 0.0  ;;  %v1040_v30 = vmul.f32 -0.5, %v7831_v31  ;;  %v5554_v22 = vpop.eup %5553  ;;  %5563 = vpow2.f32 %v980_v23  ;;  %v976_v34 = vmul.f32 1.442695, %v952_v39 }
 0x5bc   : > { %v3547_v3 = vpop.permute.xlu1 %3546  ;;  %5565 = vpow2.f32 %v1424_v14  ;;  %v1888_v4 = vmul.f32 1.442695, %v1864_v27  ;;  %v953_v51 = vsub.f32 0.0, %v5111_v11  ;;  %v1032_v18 = vadd.f32 1.0, %v1031_v24  ;;  %v11812_v14 = vld [vmem:[#allocation76_spill] sm:$0xff]  ;;  %v11813_v24 = vld [vmem:[#allocation69_spill] sm:$0xff] }
 0x5bd   : > { %3636 = vadd.xlane.f32.xlu0 %v3618_v32  ;;  %vm3587_vm7 = vcmp.eq.s32.totalorder %v6502_v17, %v3547_v3  ;;  %v1882_v32 = vmul.f32 1.442695, %v1861_v19  ;;  %v955_v3 = vsub.f32 0.0, %v5113_v58  ;;  %5567 = vlog2.f32 %v1028_v21 }
 0x5be   : > { %vm7849_vm8 = vmor %vm3523_vm6, %vm3587_vm7  ;;  %v1037_v33 = vadd.f32 1.0, %v7831_v31  ;;  %v1041_v9 = vadd.f32 1.0, %v1040_v30  ;;  %v5116_v27 = vclamps-f32 %v11812_v14, 10.0  ;;  %vm3527_vm14 = vcmp.eq.s32.totalorder %v6502_v17, %v7699_v0 }
 0x5bf   : > { %v3619_v8 = vsel %vm7849_vm8, %v6804_v36, 0.0  ;;  %v11809_v36 = vld [vmem:[#allocation68_spill] sm:$0xff]  ;;  %5569 = vpow2.f32 %v1882_v32  ;;  %v982_v39 = vmul.f32 1.442695, %v955_v3  ;;  %v1050_v21 = vadd.f32 1.0, %v1049_v46 }
 0x5c0   : > { %v3553_v12 = vpop.permute.xlu1 %3552  ;;  %v5129_v19 = vclamps-f32 %v11809_v36, 10.0  ;;  %v7873_v23 = vpop.eup %5555  ;;  %5571 = vpow2.f32 %v976_v34  ;;  %v978_v36 = vmul.f32 1.442695, %v953_v51  ;;  %v5132_v32 = vclamps-f32 %v11813_v24, 10.0 }
 0x5c1   : > { %3638 = vadd.xlane.f32.xlu0 %v3619_v8  ;;  %vm3589_vm12 = vcmp.eq.s32.totalorder %v6502_v17, %v3553_v12  ;;  %11810 = vst [vmem:[#allocation34_spill] sm:$0xff] %v7873_v23  ;;  %v1003_v8 = vmul.f32 0.6931472, %v5554_v22  ;;  %v7875_v12 = vpop.eup %5557  ;;  %5573 = vpow2.f32 %v1888_v4  ;;  %v7884_v34 = vmul.f32 %v7818_v54, %v1032_v18  ;;  %v7899_v18 = vld [vmem:[%s6263_s28] sm:$0xff] }
 0x5c2   : > { %vm3605_vm13 = vmor %vm3525_vm10, %vm3589_vm12  ;;  %11811 = vst [vmem:[#allocation41_spill] sm:$0xff] %v7875_v12  ;;  %v1387_v11 = vsub.f32 0.0, %v5129_v19  ;;  %5575 = vlog2.f32 %v1037_v33  ;;  %v7892_v4 = vmul.f32 %v7831_v31, %v1041_v9  ;;  %v958_v51 = vsub.f32 0.0, %v5116_v27  ;;  %v11818_v27 = vld [vmem:[#allocation71_spill] sm:$0xff] }
 0x5c3   : > { %v3621_v58 = vsel %vm3605_vm13, %v11733_v63, 0.0  ;;  %v7886_v3 = vpop.eup %5559  ;;  %5577 = vpow2.f32 %v982_v39  ;;  %v1009_v22 = vsel %vm7859_vm9, %v7825_v44, %v1003_v8  ;;  %vm3529_vm1 = vcmp.eq.s32.totalorder %v6502_v17, %v7643_v37  ;;  %v11815_v44 = vld [vmem:[#allocation78_spill] sm:$0xff]  ;;  %v11817_v39 = vld [vmem:[#allocation79_spill] sm:$0xff] }
 0x5c4   : > { %v3559_v26 = vpop.permute.xlu1 %3558  ;;  %11814 = vst [vmem:[#allocation5_spill] sm:$0xff] %v7886_v3  ;;  %5579 = vlog2.f32 %v7840_v47  ;;  %v1403_v33 = vsub.f32 0.0, %v1387_v11  ;;  %v5114_v9 = vclamps-f32 %v11815_v44, 10.0  ;;  %v7905_v48 = vmul.f32 %v7807_v20, %v1050_v21  ;;  %v11816_v37 = vld [vmem:[#allocation70_spill] sm:$0xff] }
 0x5c5   : > { %3642 = vadd.xlane.f32.xlu0 %v3621_v58  ;;  %vm3591_vm15 = vcmp.eq.s32.totalorder %v6502_v17, %v3559_v26  ;;  %5581 = vpow2.f32 %v978_v36  ;;  %v1390_v19 = vsub.f32 0.0, %v5132_v32  ;;  %v5145_v58 = vclamps-f32 %v11816_v37, 10.0  ;;  %v11819_v36 = vld [vmem:[#allocation77_spill] sm:$0xff] }
 0x5c6   : > { %vm3607_vm0 = vmor %vm3527_vm14, %vm3591_vm15  ;;  %v5115_v26 = vclamps-f32 %v11817_v39, 10.0  ;;  %v5148_v47 = vclamps-f32 %v11818_v27, 10.0  ;;  %v5117_v11 = vclamps-f32 %v11819_v36, 10.0  ;;  %v988_v21 = vmul.f32 1.442695, %v958_v51  ;;  %v7920_v32 = vld [vmem:[%s6263_s28 + $0x10] sm:$0xff] }
 0x5c7   : > { %v3623_v30 = vsel %vm3607_vm0, %v6873_v60, 0.0  ;;  %v7910_v14 = vpop.eup %5561  ;;  %vm3531_vm4 = vcmp.eq.s32.totalorder %v6502_v17, %v7651_v16  ;;  %11820 = vst [vmem:[#allocation7_spill] sm:$0xff] %v7920_v32  ;;  %v1430_v39 = vmul.f32 1.442695, %v1403_v33  ;;  %v11821_v27 = vld [vmem:[#allocation72_spill] sm:$0xff]  ;;  %v956_v46 = vsub.f32 0.0, %v5114_v9 }
 0x5c8   : > { %v3565_v0 = vpop.permute.xlu1 %3564  ;;  %v7924_v37 = vpop.eup %5563  ;;  %v5127_v36 = vclamps-f32 %v11821_v27, 10.0  ;;  %v7931_v16 = vsub.f32 0.0, %v1009_v22  ;;  %v957_v60 = vsub.f32 0.0, %v5115_v26  ;;  %v1854_v63 = vsub.f32 0.0, %v5148_v47  ;;  %v11835_v51 = vld [vmem:[#allocation74_spill] sm:$0xff] }
 0x5c9   : > { %3646 = vadd.xlane.f32.xlu0 %v3623_v30  ;;  %vm3593_vm2 = vcmp.eq.s32.totalorder %v6502_v17, %v3565_v0  ;;  %3937 = vperm.xlu1 %5441, %v7899_v18   ;;  %v1055_v30 = vadd.f32 1.0, %v7812_v6  ;;  %v1058_v0 = vmul.f32 -0.5, %v7812_v6  ;;  %v959_v27 = vsub.f32 0.0, %v5117_v11 }
 0x5ca   : > { %vm3609_vm3 = vmor %vm3529_vm1, %vm3593_vm2  ;;  %11824 = vst [vmem:[#allocation54_spill] sm:$0xff] %v7931_v16  ;;  %v11825_v12 = vand.u32 2147483647, %v7677_v42  ;;  %vm3533_vm8 = vcmp.eq.s32.totalorder %v6502_v17, %v7660_v13  ;;  %v11830_v26 = vand.u32 2147483647, %v7818_v54  ;;  %v1385_v11 = vsub.f32 0.0, %v5127_v36 }
 0x5cb   : > { %v3625_v8 = vsel %vm3609_vm3, %v6951_v56, 0.0  ;;  %v1851_v56 = vsub.f32 0.0, %v5145_v58  ;;  %5583 = vlog2.f32 %v1055_v30  ;;  %v1059_v3 = vadd.f32 1.0, %v1058_v0  ;;  %v7950_v58 = vld [vmem:[%s6263_s28 + $0x18] sm:$0xff]  ;;  %v11833_v13 = vld [vmem:[#allocation73_spill] sm:$0xff] }
 0x5cc   : > { %v3571_v24 = vpop.permute.xlu1 %3570  ;;  %vm7940_vm7 = vcmp.lt.f32.partialorder %v11825_v12, 0.0004427343  ;;  %5585 = vpow2.f32 %v988_v21  ;;  %11829 = vst [vmem:[#allocation56_spill] sm:$0xff] %v7950_v58  ;;  %vm7955_vm10 = vcmp.lt.f32.partialorder %v11830_v26, 0.0004427343  ;;  %v1082_v12 = vadd.f32 1.0, %v7924_v37 }
 0x5cd   : > { %vm3595_vm5 = vcmp.eq.s32.totalorder %v6502_v17, %v3571_v24  ;;  %3650 = vadd.xlane.f32.xlu0 %v3625_v8  ;;  %3943 = vperm.xlu1 %5441, %v7920_v32   ;;  %v7933_v24 = vpop.eup %5565  ;;  %v1406_v8 = vsub.f32 0.0, %v1390_v19  ;;  %5587 = vpow2.f32 %v1430_v39  ;;  %v5130_v30 = vclamps-f32 %v11833_v13, 10.0 }
 0x5ce   : > { %vm7927_vm6 = vmor %vm3531_vm4, %vm3595_vm5  ;;  %v5568_v33 = vpop.eup %5567  ;;  %v984_v0 = vmul.f32 1.442695, %v956_v46  ;;  %v5143_v54 = vclamps-f32 %v11835_v51, 10.0  ;;  %v1870_v16 = vsub.f32 0.0, %v1854_v63  ;;  %v990_v39 = vmul.f32 1.442695, %v959_v27 }
 0x5cf   : > { %v3627_v44 = vsel %vm7927_vm6, %v6939_v59, 0.0  ;;  %v7944_v19 = vpop.eup %5569  ;;  %vm3535_vm13 = vcmp.eq.s32.totalorder %v6502_v17, %v7668_v2  ;;  %v7974_v46 = vld [vmem:[%s6263_s28 + $0x20] sm:$0xff]  ;;  %5589 = vlog2.f32 %v1082_v12  ;;  %v1401_v63 = vsub.f32 0.0, %v1385_v11 }
 0x5d0   : > { %v3577_v9 = vpop.permute.xlu1 %3576  ;;  %11828 = vst [vmem:[#allocation55_spill] sm:$0xff] %v7944_v19  ;;  %v7960_v47 = vpop.eup %5571  ;;  %v1867_v19 = vsub.f32 0.0, %v1851_v56  ;;  %5591 = vpow2.f32 %v984_v0  ;;  %v7978_v27 = vmul.f32 0.6931472, %v5568_v33  ;;  %v1849_v2 = vsub.f32 0.0, %v5143_v54 }
 0x5d1   : > { %vm3597_vm9 = vcmp.eq.s32.totalorder %v6502_v17, %v3577_v9  ;;  %3654 = vadd.xlane.f32.xlu0 %v3627_v44  ;;  %3946 = vperm.xlu1 %5441, %v7950_v58   ;;  %v7963_v21 = vpop.eup %5573  ;;  %v1436_v44 = vmul.f32 1.442695, %v1406_v8  ;;  %v986_v9 = vmul.f32 1.442695, %v957_v60  ;;  %v11836_v58 = vld [vmem:[#allocation75_spill] sm:$0xff]  ;;  %v1064_v60 = vadd.f32 1.0, %v7960_v47 }
 0x5d2   : > { %vm3613_vm12 = vmor %vm3533_vm8, %vm3597_vm9  ;;  %11834 = vst [vmem:[#allocation57_spill] sm:$0xff] %v7963_v21  ;;  %v5576_v59 = vpop.eup %5575  ;;  %v5146_v32 = vclamps-f32 %v11836_v58, 10.0  ;;  %v1388_v8 = vsub.f32 0.0, %v5130_v30  ;;  %v11837_v51 = vsel %vm7781_vm11, %v7721_v43, %v7777_v57  ;;  %v1894_v12 = vmul.f32 1.442695, %v1867_v19  ;;  %v8335_v21 = vld [vmem:[%s6263_s28 + $0x58] sm:$0xff] }
 0x5d3   : > { %v3629_v26 = vsel %vm3613_vm12, %v7026_v41, 0.0  ;;  %v7968_v23 = vpop.eup %5577  ;;  %5593 = vpow2.f32 %v986_v9  ;;  %v11838_v30 = vand.u32 2147483647, %v7831_v31  ;;  %v7997_v0 = vmul.f32 %v7812_v6, %v1059_v3  ;;  %v11841_v9 = vld [vmem:[#allocation80_spill] sm:$0xff]  ;;  %11907 = vst [vmem:[#allocation71_spill] sm:$0xff] %v8335_v21 }
 0x5d4   : > { %v3583_v36 = vpop.permute.xlu1 %3582  ;;  %v5580_v56 = vpop.eup %5579  ;;  %v1852_v11 = vsub.f32 0.0, %v5146_v32  ;;  %5595 = vpow2.f32 %v990_v39  ;;  %v1900_v54 = vmul.f32 1.442695, %v1870_v16  ;;  %v5133_v5 = vclamps-f32 %v11841_v9, 10.0 }
 0x5d5   : > { %vm3599_vm14 = vcmp.eq.s32.totalorder %v6502_v17, %v3583_v36  ;;  %3658 = vadd.xlane.f32.xlu0 %v3629_v26  ;;  %3949 = vperm.xlu1 %5441, %v7974_v46   ;;  %v7980_v58 = vpop.eup %5581  ;;  %v7988_v26 = vsub.f32 0.0, %v11837_v51  ;;  %vm7992_vm0 = vcmp.lt.f32.partialorder %v11838_v30, 0.0004427343  ;;  %v11842_v36 = vmov 18  }
 0x5d6   : > { %vm3615_vm15 = vmor %vm3535_vm13, %vm3599_vm14  ;;  %v11843_v43 = vand.u32 2147483647, %v7807_v20  ;;  %5597 = vlog2.f32 %v1064_v60  ;;  %v1426_v3 = vmul.f32 1.442695, %v1401_v63  ;;  %v1404_v32 = vsub.f32 0.0, %v1388_v8 }
 0x5d7   : > { %v3631_v13 = vsel %vm3615_vm15, %v7012_v49, 0.0  ;;  %5599 = vpow2.f32 %v1436_v44  ;;  %v1865_v16 = vsub.f32 0.0, %v1849_v2  ;;  %v11846_v19 = vand.u32 2147483647, %v7812_v6 }
 0x5d8   : > { %vm8003_vm11 = vcmp.lt.f32.partialorder %v11843_v43, 0.0004427343  ;;  %v1073_v60 = vadd.f32 1.0, %v7980_v58  ;;  %v1085_v44 = vmul.f32 -0.5, %v7924_v37  ;;  %v8025_v63 = vmul.f32 0.6931472, %v7792_v40  ;;  %v5584_v2 = vpop.eup %5583 }
 0x5d9   : > { %3662 = vadd.xlane.f32.xlu0 %v3631_v13  ;;  %5442 = vset.pattern.permute.xlu1 %v11842_v36  ;;  %vm8018_vm1 = vcmp.lt.f32.partialorder %v11846_v19, 0.0004427343  ;;  %5601 = vpow2.f32 %v1894_v12  ;;  %v1868_v8 = vsub.f32 0.0, %v1852_v11  ;;  %v1067_v13 = vmul.f32 -0.5, %v7960_v47  ;;  %v8034_v43 = vpop.eup %5585 }
 0x5da   : > { %4001 = vperm.xlu1 %5442, %v11641_v55   ;;  %v1091_v51 = vadd.f32 1.0, %v7968_v23  ;;  %5603 = vpow2.f32 %v1900_v54  ;;  %v1391_v6 = vsub.f32 0.0, %v5133_v5  ;;  %v8029_v30 = vmul.f32 0.6931472, %v5576_v59  ;;  %v8040_v11 = vpop.eup %5587  ;;  %v11849_v54 = vld [vmem:[#allocation81_spill] sm:$0xff] }
 0x5db   : > { %v8032_v9 = vmul.f32 0.6931472, %v7846_v1  ;;  %5605 = vpow2.f32 %v1426_v3  ;;  %v1432_v19 = vmul.f32 1.442695, %v1404_v32  ;;  %v8037_v40 = vmul.f32 0.6931472, %v5580_v56 }
 0x5dc   : > { %v1088_v12 = vand.u32 2147483647, %v7924_v37  ;;  %v1890_v31 = vmul.f32 1.442695, %v1865_v16  ;;  %v5149_v5 = vclamps-f32 %v11849_v54, 10.0  ;;  %5607 = vlog2.f32 %v1073_v60  ;;  %v5590_v16 = vpop.eup %5589  ;;  %v11850_v54 = vld [vmem:[#allocation82_spill] sm:$0xff] }
 0x5dd   : > { %v1086_v59 = vadd.f32 1.0, %v1085_v44  ;;  %v1896_v20 = vmul.f32 1.442695, %v1868_v8  ;;  %v8043_v1 = vmul.f32 0.6931472, %v5584_v2  ;;  %v1068_v49 = vadd.f32 1.0, %v1067_v13  ;;  %v8058_v13 = vpop.eup %5591 }
 0x5de   : > { %4004 = vperm.xlu1 %5442, %v11636_v10   ;;  %5609 = vlog2.f32 %v1091_v51  ;;  %v1407_v3 = vsub.f32 0.0, %v1391_v6  ;;  %v1045_v56 = vsel %vm7992_vm0, %v7892_v4, %v8029_v30  ;;  %v1076_v32 = vmul.f32 -0.5, %v7980_v58  ;;  %v11851_v2 = vld [vmem:[#allocation83_spill] sm:$0xff] }
 0x5df   : > { %v1118_v41 = vadd.f32 1.0, %v8034_v43  ;;  %5611 = vpow2.f32 %v1432_v19  ;;  %v5131_v60 = vclamps-f32 %v11850_v54, 10.0  ;;  %v1054_v44 = vsel %vm8003_vm11, %v7905_v48, %v8037_v40 }
 0x5e0   : > { %v1094_v8 = vmul.f32 -0.5, %v7968_v23  ;;  %5613 = vpow2.f32 %v1890_v31  ;;  %v1855_v4 = vsub.f32 0.0, %v5149_v5  ;;  %v1070_v33 = vand.u32 2147483647, %v7960_v47  ;;  %v8061_v51 = vpop.eup %5593 }
 0x5e1   : > { %5615 = vpow2.f32 %v1896_v20  ;;  %v5147_v6 = vclamps-f32 %v11851_v2, 10.0  ;;  %v1063_v30 = vsel %vm8018_vm1, %v7997_v0, %v8043_v1  ;;  %v8069_v48 = vmul.f32 %v7960_v47, %v1068_v49  ;;  %v8071_v57 = vpop.eup %5595 }
 0x5e2   : > { %4007 = vperm.xlu1 %5442, %v11637_v53   ;;  %v1438_v19 = vmul.f32 1.442695, %v1407_v3  ;;  %v1077_v31 = vadd.f32 1.0, %v1076_v32  ;;  %v1084_v40 = vmul.f32 0.6931472, %v5590_v16  ;;  %5617 = vlog2.f32 %v1118_v41 }
 0x5e3   : > { %v11852_v5 = vand.u32 2147483647, %v7696_v38  ;;  %v5598_v54 = vpop.eup %5597  ;;  %v1389_v2 = vsub.f32 0.0, %v5131_v60  ;;  %v11530_v17 = vmov 11   ;;  %v1079_v49 = vand.u32 2147483647, %v7980_v58 }
 0x5e4   : > { %v1095_v47 = vadd.f32 1.0, %v1094_v8  ;;  %v1100_v0 = vadd.f32 1.0, %v8058_v13  ;;  %v8082_v39 = vpop.eup %5599  ;;  %v1871_v1 = vsub.f32 0.0, %v1855_v4  ;;  %v1087_v41 = vmul.f32 %v7924_v37, %v1086_v59 }
 0x5e5   : > { %vm8075_vm2 = vcmp.lt.f32.partialorder %v11852_v5, 0.0004427343  ;;  %v1097_v38 = vand.u32 2147483647, %v7968_v23  ;;  %v1109_v3 = vadd.f32 1.0, %v8061_v51  ;;  %v1853_v32 = vsub.f32 0.0, %v5147_v6 }
 0x5e6   : > { %5443 = vset.pattern.permute.xlu1 %v11530_v17  ;;  %vm8088_vm3 = vcmp.lt.f32.partialorder %v1070_v33, 0.0004427343  ;;  %vm8092_vm4 = vcmp.lt.f32.partialorder %v1088_v12, 0.0004427343  ;;  %v1127_v8 = vadd.f32 1.0, %v8071_v57  ;;  %v8097_v4 = vpop.eup %5601  ;;  %5619 = vpow2.f32 %v1438_v19 }
 0x5e7   : > { %4401 = vperm.xlu1 %5443, %v7899_v18   ;;  %11859 = vst [vmem:[#allocation58_spill] sm:$0xff] %v8097_v4  ;;  %v1066_v18 = vmul.f32 0.6931472, %v5598_v54  ;;  %v8100_v37 = vmul.f32 %v7980_v58, %v1077_v31  ;;  %v1090_v59 = vsel %vm8092_vm4, %v1087_v41, %v1084_v40  ;;  %v8104_v33 = vpop.eup %5603  ;;  %v1405_v6 = vsub.f32 0.0, %v1389_v2  ;;  %v8123_v54 = vld [vmem:[%s6263_s28 + $0x8] sm:$0xff] }
 0x5e8   : > { %11860 = vst [vmem:[#allocation59_spill] sm:$0xff] %v8104_v33  ;;  %vm8106_vm5 = vcmp.lt.f32.partialorder %v1079_v49, 0.0004427343  ;;  %v8111_v5 = vmul.f32 %v7968_v23, %v1095_v47  ;;  %5621 = vlog2.f32 %v1100_v0  ;;  %v11863_v58 = vsel %vm7955_vm10, %v7884_v34, %v7978_v27  ;;  %v8120_v31 = vpop.eup %5605 }
 0x5e9   : > { %v8118_v19 = vsub.f32 0.0, %v11863_v58  ;;  %v1902_v40 = vmul.f32 1.442695, %v1871_v1  ;;  %vm8126_vm6 = vcmp.lt.f32.partialorder %v1097_v38, 0.0004427343  ;;  %5623 = vlog2.f32 %v1109_v3  ;;  %v5608_v49 = vpop.eup %5607 }
 0x5ea   : > { %v1121_v23 = vmul.f32 -0.5, %v8034_v43  ;;  %v8131_v42 = vsub.f32 0.0, %v1045_v56  ;;  %v1869_v34 = vsub.f32 0.0, %v1853_v32  ;;  %5625 = vlog2.f32 %v1127_v8 }
 0x5eb   : > { %4404 = vperm.xlu1 %5443, %v8123_v54   ;;  %v8133_v27 = vsub.f32 0.0, %v1054_v44  ;;  %v5610_v47 = vpop.eup %5609  ;;  %v1072_v0 = vsel %vm8088_vm3, %v8069_v48, %v1066_v18  ;;  %v1103_v1 = vmul.f32 -0.5, %v8058_v13  ;;  %v1124_v41 = vand.u32 2147483647, %v8034_v43 }
 0x5ec   : > { %v8140_v38 = vsub.f32 0.0, %v1063_v30  ;;  %v1434_v3 = vmul.f32 1.442695, %v1405_v6  ;;  %v1112_v56 = vmul.f32 -0.5, %v8061_v51  ;;  %v8143_v60 = vsub.f32 0.0, %v1090_v59  ;;  %v8149_v32 = vpop.eup %5611 }
 0x5ed   : > { %5627 = vpow2.f32 %v1902_v40  ;;  %v11533_v48 = vmov 19   ;;  %v1075_v30 = vmul.f32 0.6931472, %v5608_v49  ;;  %v1122_v16 = vadd.f32 1.0, %v1121_v23  ;;  %v8154_v18 = vpop.eup %5613 }
 0x5ee   : > { %11866 = vst [vmem:[#allocation60_spill] sm:$0xff] %v8140_v38  ;;  %11867 = vst [vmem:[#allocation61_spill] sm:$0xff] %v8143_v60  ;;  %v1476_v8 = vadd.f32 1.0, %v7768_v29  ;;  %v1898_v59 = vmul.f32 1.442695, %v1869_v34  ;;  %v1130_v58 = vmul.f32 -0.5, %v8071_v57  ;;  %v8160_v40 = vpop.eup %5615  ;;  %5629 = vlog2.f32 %v7796_v52 }
 0x5ef   : > { %4022 = vperm.xlu0 %5455, %v11734_v25   ;;  %5444 = vset.pattern.permute.xlu1 %v11533_v48  ;;  %11868 = vst [vmem:[#allocation62_spill] sm:$0xff] %v8154_v18  ;;  %v1093_v6 = vmul.f32 0.6931472, %v5610_v47  ;;  %v8158_v44 = vsub.f32 0.0, %v1072_v0  ;;  %11870 = vst [vmem:[#allocation63_spill] sm:$0xff] %v8160_v40  ;;  %v1104_v17 = vadd.f32 1.0, %v1103_v1  ;;  %v5618_v49 = vpop.eup %5617  ;;  %5631 = vpow2.f32 %v1434_v3 }
 0x5f0   : > { %4468 = vperm.xlu1 %5444, %v11636_v10   ;;  %vm8162_vm8 = vcmp.lt.f32.partialorder %v1124_v41, 0.0004427343  ;;  %v1462_v23 = vadd.f32 1.0, %v7789_v61  ;;  %v1106_v10 = vand.u32 2147483647, %v8058_v13  ;;  %v1113_v34 = vadd.f32 1.0, %v1112_v56 }
 0x5f1   : > { %11869 = vst [vmem:[#allocation64_spill] sm:$0xff] %v8158_v44  ;;  %v1115_v47 = vand.u32 2147483647, %v8061_v51  ;;  %v1081_v0 = vsel %vm8106_vm5, %v8100_v37, %v1075_v30  ;;  %v1123_v1 = vmul.f32 %v8034_v43, %v1122_v16  ;;  %v1464_v41 = vand.u32 2147483647, %v7687_v7  ;;  %v11873_v56 = vld [vmem:[#allocation8_spill] sm:$0xff] }
 0x5f2   : > { %5633 = vlog2.f32 %v1476_v8  ;;  %v1099_v52 = vsel %vm8126_vm6, %v8111_v5, %v1093_v6  ;;  %v1131_v61 = vadd.f32 1.0, %v1130_v58  ;;  %v1133_v3 = vand.u32 2147483647, %v8071_v57  ;;  %v11878_v58 = vld [vmem:[#allocation18_spill] sm:$0xff] }
 0x5f3   : > { %4031 = vperm.xlu0 %5455, %v11642_v50   ;;  %5635 = vpow2.f32 %v1898_v59  ;;  %v8183_v12 = vmul.f32 %v8058_v13, %v1104_v17  ;;  %v1120_v37 = vmul.f32 0.6931472, %v5618_v49  ;;  %v1470_v43 = vmul.f32 -0.5, %v7740_v35  ;;  %v8187_v16 = vpop.eup %5619 }
 0x5f4   : > { %5445 = vset.pattern.permute.xlu1 %v11842_v36  ;;  %v1485_v30 = vadd.f32 1.0, %v7910_v14  ;;  %vm8189_vm9 = vcmp.lt.f32.partialorder %v1106_v10, 0.0004427343  ;;  %v8194_v5 = vmul.f32 %v8061_v51, %v1113_v34  ;;  %vm8196_vm10 = vcmp.lt.f32.partialorder %v1115_v47, 0.0004427343  ;;  %v11883_v34 = vld [vmem:[#allocation35_spill] sm:$0xff] }
 0x5f5   : > { %4010 = vperm.xlu1 %5445, %v11873_v56   ;;  %v8201_v17 = vmul.f32 %v7687_v7, %v1462_v23  ;;  %v1479_v13 = vmul.f32 -0.5, %v7768_v29  ;;  %v1494_v59 = vadd.f32 1.0, %v7734_v15  ;;  %v5622_v6 = vpop.eup %5621  ;;  %v8206_v49 = vsub.f32 0.0, %v1081_v0 }
 0x5f6   : > { %v8208_v10 = vsub.f32 0.0, %v1099_v52  ;;  %vm8210_vm12 = vcmp.lt.f32.partialorder %v1464_v41, 0.0004427343  ;;  %v1503_v47 = vadd.f32 1.0, %v11883_v34  ;;  %v5624_v48 = vpop.eup %5623  ;;  %v1132_v7 = vmul.f32 %v8071_v57, %v1131_v61 }
 0x5f7   : > { %4040 = vperm.xlu0 %5455, %v11878_v58   ;;  %11879 = vst [vmem:[#allocation66_spill] sm:$0xff] %v8206_v49  ;;  %vm8216_vm13 = vcmp.lt.f32.partialorder %v1133_v3, 0.0004427343  ;;  %v1473_v52 = vand.u32 2147483647, %v7740_v35  ;;  %v5626_v41 = vpop.eup %5625  ;;  %v11886_v58 = vmov 19   ;;  %v1126_v50 = vsel %vm8162_vm8, %v1123_v1, %v1120_v37 }
 0x5f8   : > { %11880 = vst [vmem:[#allocation65_spill] sm:$0xff] %v8208_v10  ;;  %v1471_v25 = vadd.f32 1.0, %v1470_v43  ;;  %5637 = vlog2.f32 %v1485_v30  ;;  %v1512_v57 = vadd.f32 1.0, %v7933_v24  ;;  %v1480_v61 = vadd.f32 1.0, %v1479_v13  ;;  %v11891_v43 = vld [vmem:[#allocation34_spill] sm:$0xff] }
 0x5f9   : > { %5446 = vset.pattern.permute.xlu1 %v11886_v58  ;;  %v1488_v3 = vmul.f32 -0.5, %v7910_v14  ;;  %5639 = vlog2.f32 %v1494_v59  ;;  %v1521_v0 = vadd.f32 1.0, %v8120_v31  ;;  %v11887_v40 = vmov 10  }
 0x5fa   : > { %4471 = vperm.xlu1 %5446, %v11637_v53   ;;  %v1102_v4 = vmul.f32 0.6931472, %v5622_v6  ;;  %v1111_v55 = vmul.f32 0.6931472, %v5624_v48  ;;  %v1482_v18 = vand.u32 2147483647, %v7768_v29  ;;  %5641 = vlog2.f32 %v1503_v47  ;;  %v8234_v33 = vpop.eup %5627 }
 0x5fb   : > { %5472 = vset.pattern.permute.xlu0 %v11887_v40  ;;  %11888 = vst [vmem:[#allocation67_spill] sm:$0xff] %v8234_v33  ;;  %v1129_v1 = vmul.f32 0.6931472, %v5626_v41  ;;  %vm8237_vm14 = vcmp.lt.f32.partialorder %v1473_v52, 0.0004427343  ;;  %v1497_v37 = vmul.f32 -0.5, %v7734_v15  ;;  %v8246_v48 = vmul.f32 %v7740_v35, %v1471_v25  ;;  %v5630_v6 = vpop.eup %5629 }
 0x5fc   : > { %3940 = vperm.xlu0 %5472, %v8123_v54   ;;  %v1530_v30 = vadd.f32 1.0, %v11891_v43  ;;  %v8243_v13 = vsub.f32 0.0, %v1126_v50  ;;  %5643 = vlog2.f32 %v1512_v57  ;;  %v1539_v59 = vadd.f32 1.0, %v8040_v11  ;;  %v8254_v41 = vpop.eup %5631  ;;  %v11893_v50 = vld [vmem:[#allocation9_spill] sm:$0xff] }
 0x5fd   : > { %v8251_v54 = vmul.f32 %v7768_v29, %v1480_v61  ;;  %v1489_v47 = vadd.f32 1.0, %v1488_v3  ;;  %v1506_v52 = vmul.f32 -0.5, %v11883_v34  ;;  %5645 = vlog2.f32 %v1521_v0  ;;  %v8269_v0 = vld [vmem:[%s6263_s28 + $0x28] sm:$0xff] }
 0x5fe   : > { %11892 = vst [vmem:[#allocation68_spill] sm:$0xff] %v8243_v13  ;;  %5447 = vset.pattern.permute.xlu1 %v11842_v36  ;;  %v1108_v25 = vsel %vm8189_vm9, %v8183_v12, %v1102_v4  ;;  %v1117_v35 = vsel %vm8196_vm10, %v8194_v5, %v1111_v55  ;;  %vm8263_vm15 = vcmp.lt.f32.partialorder %v1482_v18, 0.0004427343  ;;  %v1491_v29 = vand.u32 2147483647, %v7910_v14 }
 0x5ff   : > { %4013 = vperm.xlu1 %5447, %v11893_v50   ;;  %v5634_v61 = vpop.eup %5633  ;;  %v1135_v3 = vsel %vm8216_vm13, %v1132_v7, %v1129_v1  ;;  %v1498_v8 = vadd.f32 1.0, %v1497_v37  ;;  %v1515_v4 = vmul.f32 -0.5, %v7933_v24  ;;  %5647 = vlog2.f32 %v1530_v30 }
 0x600   : > { %3952 = vperm.xlu0 %5472, %v8269_v0   ;;  %v8275_v55 = vpop.eup %5635  ;;  %v8277_v18 = vmul.f32 0.6931472, %v5630_v6  ;;  %v1500_v12 = vand.u32 2147483647, %v7734_v15  ;;  %5649 = vlog2.f32 %v1539_v59  ;;  %v1548_v5 = vadd.f32 1.0, %v8149_v32  ;;  %v8296_v6 = vld [vmem:[%s6263_s28 + $0x40] sm:$0xff] }
 0x601   : > { %11896 = vst [vmem:[#allocation76_spill] sm:$0xff] %v8275_v55  ;;  %v8281_v2 = vsub.f32 0.0, %v1108_v25  ;;  %v8284_v33 = vmul.f32 %v7910_v14, %v1489_v47  ;;  %v1507_v7 = vadd.f32 1.0, %v1506_v52  ;;  %v1557_v23 = vadd.f32 1.0, %v8254_v41  ;;  %11900 = vst [vmem:[#allocation79_spill] sm:$0xff] %v8296_v6 }
 0x602   : > { %v8288_v1 = vsub.f32 0.0, %v1117_v35  ;;  %v8290_v37 = vsub.f32 0.0, %v1135_v3  ;;  %v8292_v30 = vmul.f32 0.6931472, %v5634_v61  ;;  %v1509_v59 = vand.u32 2147483647, %v11883_v34 }
 0x603   : > { %11897 = vst [vmem:[#allocation69_spill] sm:$0xff] %v8281_v2  ;;  %5448 = vset.pattern.permute.xlu1 %v11886_v58  ;;  %vm8300_vm0 = vcmp.lt.f32.partialorder %v1491_v29, 0.0004427343  ;;  %v8305_v47 = vmul.f32 %v7734_v15, %v1498_v8  ;;  %v1516_v52 = vadd.f32 1.0, %v1515_v4  ;;  %v1518_v25 = vand.u32 2147483647, %v7933_v24 }
 0x604   : > { %11898 = vst [vmem:[#allocation78_spill] sm:$0xff] %v8288_v1  ;;  %11899 = vst [vmem:[#allocation70_spill] sm:$0xff] %v8290_v37  ;;  %3961 = vperm.xlu0 %5472, %v8296_v6   ;;  %4474 = vperm.xlu1 %5448, %v11873_v56   ;;  %v1524_v35 = vmul.f32 -0.5, %v8120_v31  ;;  %vm8313_vm11 = vcmp.lt.f32.partialorder %v1500_v12, 0.0004427343  ;;  %5651 = vlog2.f32 %v1548_v5  ;;  %v1575_v15 = vadd.f32 1.0, %v8187_v16 }
 0x605   : > { %v1527_v29 = vand.u32 2147483647, %v8120_v31  ;;  %v5638_v3 = vpop.eup %5637  ;;  %v8320_v8 = vmul.f32 %v11883_v34, %v1507_v7  ;;  %v1533_v4 = vmul.f32 -0.5, %v11891_v43  ;;  %v1542_v55 = vmul.f32 -0.5, %v8040_v11  ;;  %v11910_v1 = vld [vmem:[#allocation10_spill] sm:$0xff] }
 0x606   : > { %5653 = vlog2.f32 %v1557_v23  ;;  %v5640_v61 = vpop.eup %5639  ;;  %vm8328_vm1 = vcmp.lt.f32.partialorder %v1509_v59, 0.0004427343  ;;  %v1551_v5 = vmul.f32 -0.5, %v8149_v32  ;;  %v1566_v34 = vadd.f32 1.0, %v8082_v39 }
 0x607   : > { %v5642_v7 = vpop.eup %5641  ;;  %v8340_v23 = vmul.f32 %v7933_v24, %v1516_v52  ;;  %vm8342_vm3 = vcmp.lt.f32.partialorder %v1518_v25, 0.0004427343  ;;  %v1525_v59 = vadd.f32 1.0, %v1524_v35  ;;  %v1536_v37 = vand.u32 2147483647, %v11891_v43 }
 0x608   : > { %3970 = vperm.xlu0 %5472, %v8335_v21   ;;  %5449 = vset.pattern.permute.xlu1 %v11842_v36  ;;  %v1560_v13 = vmul.f32 -0.5, %v8254_v41  ;;  %v1487_v2 = vmul.f32 0.6931472, %v5638_v3  ;;  %vm8349_vm4 = vcmp.lt.f32.partialorder %v1527_v29, 0.0004427343  ;;  %v1569_v24 = vmul.f32 -0.5, %v8082_v39 }
 0x609   : > { %4016 = vperm.xlu1 %5449, %v11910_v1   ;;  %5655 = vlog2.f32 %v1575_v15  ;;  %v5644_v52 = vpop.eup %5643  ;;  %v1496_v25 = vmul.f32 0.6931472, %v5640_v61  ;;  %v1534_v6 = vadd.f32 1.0, %v1533_v4  ;;  %v1543_v10 = vadd.f32 1.0, %v1542_v55  ;;  %v8357_v3 = vld [vmem:[%s6263_s28 + $0x70] sm:$0xff] }
 0x60a   : > { %v1545_v35 = vand.u32 2147483647, %v8040_v11  ;;  %v5646_v60 = vpop.eup %5645  ;;  %v1505_v49 = vmul.f32 0.6931472, %v5642_v7  ;;  %v1552_v58 = vadd.f32 1.0, %v1551_v5  ;;  %5657 = vlog2.f32 %v1566_v34  ;;  %11913 = vst [vmem:[#allocation77_spill] sm:$0xff] %v8357_v3 }
 0x60b   : > { %v1578_v1 = vmul.f32 -0.5, %v8187_v16  ;;  %v1526_v29 = vmul.f32 %v8120_v31, %v1525_v59  ;;  %vm8361_vm5 = vcmp.lt.f32.partialorder %v1536_v37, 0.0004427343  ;;  %v1554_v55 = vand.u32 2147483647, %v8149_v32 }
 0x60c   : > { %3979 = vperm.xlu0 %5472, %v8357_v3   ;;  %v1561_v61 = vadd.f32 1.0, %v1560_v13  ;;  %v5648_v4 = vpop.eup %5647  ;;  %v11916_v44 = vmov 11   ;;  %v1493_v5 = vsel %vm8300_vm0, %v8284_v33, %v1487_v2  ;;  %v1514_v34 = vmul.f32 0.6931472, %v5644_v52  ;;  %v11932_v52 = vld [vmem:[#allocation56_spill] sm:$0xff] }
 0x60d   : > { %5450 = vset.pattern.permute.xlu1 %v11916_v44  ;;  %v1563_v7 = vand.u32 2147483647, %v8254_v41  ;;  %v1570_v3 = vadd.f32 1.0, %v1569_v24  ;;  %v5650_v38 = vpop.eup %5649  ;;  %v1502_v31 = vsel %vm8313_vm11, %v8305_v47, %v1496_v25  ;;  %v1523_v37 = vmul.f32 0.6931472, %v5646_v60  ;;  %v11931_v24 = vld [vmem:[#allocation26_spill] sm:$0xff] }
 0x60e   : > { %4413 = vperm.xlu1 %5450, %v7974_v46   ;;  %v1535_v13 = vmul.f32 %v11891_v43, %v1534_v6  ;;  %vm8376_vm6 = vcmp.lt.f32.partialorder %v1545_v35, 0.0004427343  ;;  %v1511_v33 = vsel %vm8328_vm1, %v8320_v8, %v1505_v49  ;;  %v1544_v2 = vmul.f32 %v8040_v11, %v1543_v10  ;;  %v11921_v11 = vld [vmem:[#allocation7_spill] sm:$0xff]  ;;  %v11933_v25 = vld [vmem:[#allocation25_spill] sm:$0xff] }
 0x60f   : > { %v8385_v14 = vmul.f32 %v8149_v32, %v1552_v58  ;;  %v1579_v46 = vadd.f32 1.0, %v1578_v1  ;;  %v1532_v47 = vmul.f32 0.6931472, %v5648_v4  ;;  %vm8388_vm8 = vcmp.lt.f32.partialorder %v1554_v55, 0.0004427343  ;;  %v11936_v55 = vld [vmem:[#allocation22_spill] sm:$0xff] }
 0x610   : > { %5475 = vset.pattern.permute.xlu0 %v11916_v44  ;;  %v8393_v43 = vmul.f32 %v8254_v41, %v1561_v61  ;;  %v1572_v50 = vand.u32 2147483647, %v8082_v39  ;;  %v1581_v49 = vand.u32 2147483647, %v8187_v16  ;;  %v1520_v32 = vsel %vm8342_vm3, %v8340_v23, %v1514_v34  ;;  %v8432_v23 = vld [vmem:[%s6263_s28 + $0x30] sm:$0xff]  ;;  %v11937_v4 = vld [vmem:[#allocation54_spill] sm:$0xff] }
 0x611   : > { %4407 = vperm.xlu0 %5475, %v11921_v11   ;;  %v1541_v58 = vmul.f32 0.6931472, %v5650_v38  ;;  %vm8401_vm9 = vcmp.lt.f32.partialorder %v1563_v7, 0.0004427343  ;;  %v8406_v1 = vmul.f32 %v8082_v39, %v1570_v3  ;;  %v11924_v41 = vsel %vm7940_vm7, %v7758_v62, %v7836_v45  ;;  %v5652_v56 = vpop.eup %5651  ;;  %v11938_v34 = vld [vmem:[#allocation23_spill] sm:$0xff] }
 0x612   : > { %v1584_v6 = vsub.f32 0.0, %v11924_v41  ;;  %5451 = vset.pattern.permute.xlu1 %v11887_v40  ;;  %v1529_v8 = vsel %vm8349_vm4, %v1526_v29, %v1523_v37  ;;  %v11925_v38 = vsel %vm8075_vm2, %v7772_v28, %v8025_v63  ;;  %v11926_v22 = vsel %vm8210_vm12, %v8201_v17, %v8032_v9  ;;  %v11939_v37 = vld [vmem:[#allocation30_spill] sm:$0xff] }
 0x613   : > { %v1585_v12 = vsub.f32 0.0, %v11925_v38  ;;  %v1586_v39 = vsub.f32 0.0, %v11926_v22  ;;  %v11927_v62 = vsel %vm8237_vm14, %v8246_v48, %v8277_v18  ;;  %v5654_v21 = vpop.eup %5653  ;;  %3955 = vperm.xlu1 %5451, %v8432_v23   ;;  %v8436_v28 = vmul.f32 %v8187_v16, %v1579_v46  ;;  %v11943_v46 = vld [vmem:[#allocation11_spill] sm:$0xff] }
 0x614   : > { %v1587_v45 = vsub.f32 0.0, %v11927_v62  ;;  %v11928_v63 = vsel %vm8263_vm15, %v8251_v54, %v8292_v30  ;;  %v1589_v20 = vsub.f32 0.0, %v1493_v5  ;;  %v1590_v17 = vsub.f32 0.0, %v1502_v31 }
 0x615   : > { %v1588_v9 = vsub.f32 0.0, %v11928_v63  ;;  %v1538_v51 = vsel %vm8361_vm5, %v1535_v13, %v1532_v47  ;;  %vm8445_vm7 = vcmp.lt.f32.partialorder %v1581_v49, 0.0004427343  ;;  %v1591_v48 = vsub.f32 0.0, %v1511_v33  ;;  %4410 = vperm.xlu0 %5475, %v11932_v52   ;;  %v11960_v63 = vld [vmem:[#allocation10_spill] sm:$0xff] }
 0x616   : > { %v1592_v18 = vsub.f32 0.0, %v1520_v32  ;;  %v1904_v16 = vadd.f32 1.0, %v11931_v24  ;;  %v1547_v57 = vsel %vm8376_vm6, %v1544_v2, %v1541_v58  ;;  %v1550_v54 = vmul.f32 0.6931472, %v5652_v56  ;;  %v5656_v3 = vpop.eup %5655  ;;  %v11949_v56 = vld [vmem:[#allocation64_spill] sm:$0xff] }
 0x617   : > { %v1593_v30 = vsub.f32 0.0, %v1529_v8  ;;  %v1913_v35 = vadd.f32 1.0, %v11933_v25  ;;  %v1559_v29 = vmul.f32 0.6931472, %v5654_v21  ;;  %vm8454_vm2 = vcmp.lt.f32.partialorder %v1572_v50, 0.0004427343  ;;  %5452 = vset.pattern.permute.xlu1 %v11842_v36  ;;  %v5658_v2 = vpop.eup %5657 }
 0x618   : > { %v8459_v61 = vadd.f32 %v1584_v6, %v11936_v55  ;;  %v8462_v5 = vadd.f32 %v1585_v12, %v11937_v4  ;;  %v1922_v7 = vadd.f32 1.0, %v11938_v34  ;;  %v1594_v31 = vsub.f32 0.0, %v1538_v51  ;;  %4019 = vperm.xlu1 %5452, %v11943_v46   ;;  %v11947_v6 = vld [vmem:[#allocation60_spill] sm:$0xff]  ;;  %v11953_v12 = vld [vmem:[#allocation66_spill] sm:$0xff]  ;;  %v11959_v21 = vld [vmem:[#allocation79_spill] sm:$0xff] }
 0x619   : > { %v8467_v13 = vadd.f32 %v1586_v39, %v11939_v37  ;;  %v8470_v59 = vadd.f32 %v1587_v45, %v7988_v26  ;;  %v8473_v33 = vadd.f32 %v1588_v9, %v8118_v19  ;;  %v1595_v47 = vsub.f32 0.0, %v1547_v57  ;;  %4416 = vperm.xlu0 %5475, %v8269_v0   ;;  %v11957_v39 = vld [vmem:[#allocation65_spill] sm:$0xff]  ;;  %v11965_v4 = vld [vmem:[#allocation71_spill] sm:$0xff] }
 0x61a   : > { %v8477_v50 = vadd.f32 %v1589_v20, %v8131_v42  ;;  %v8480_v49 = vadd.f32 %v1590_v17, %v8133_v27  ;;  %5659 = vlog2.f32 %v1904_v16  ;;  %v1556_v26 = vsel %vm8388_vm8, %v8385_v14, %v1550_v54  ;;  %v11946_v27 = vld [vmem:[#allocation37_spill] sm:$0xff]  ;;  %v11951_v14 = vld [vmem:[#allocation36_spill] sm:$0xff]  ;;  %v11961_v16 = vld [vmem:[#allocation55_spill] sm:$0xff] }
 0x61b   : > { %11940 = vst [vmem:[#allocation72_spill] sm:$0xff] %v8467_v13  ;;  %11941 = vst [vmem:[#allocation73_spill] sm:$0xff] %v8470_v59  ;;  %v1577_v11 = vmul.f32 0.6931472, %v5656_v3  ;;  %v1907_v19 = vmul.f32 -0.5, %v11931_v24  ;;  %5661 = vlog2.f32 %v1913_v35  ;;  %v1565_v32 = vsel %vm8401_vm9, %v8393_v43, %v1559_v29  ;;  %v11955_v43 = vld [vmem:[#allocation61_spill] sm:$0xff] }
 0x61c   : > { %11942 = vst [vmem:[#allocation74_spill] sm:$0xff] %v8473_v33  ;;  %11944 = vst [vmem:[#allocation75_spill] sm:$0xff] %v8477_v50  ;;  %v1916_v42 = vmul.f32 -0.5, %v11933_v25  ;;  %5663 = vlog2.f32 %v1922_v7  ;;  %v1931_v58 = vadd.f32 1.0, %v11946_v27  ;;  %v1568_v41 = vmul.f32 0.6931472, %v5658_v2 }
 0x61d   : > { %11945 = vst [vmem:[#allocation80_spill] sm:$0xff] %v8480_v49  ;;  %v8493_v0 = vadd.f32 %v1591_v48, %v11947_v6  ;;  %v8496_v60 = vadd.f32 %v1592_v18, %v11949_v56  ;;  %v1940_v8 = vadd.f32 1.0, %v11951_v14  ;;  %v11952_v38 = vmov 19   ;;  %4425 = vperm.xlu0 %5475, %v11959_v21   ;;  %v11963_v35 = vld [vmem:[#allocation69_spill] sm:$0xff]  ;;  %v11966_v7 = vld [vmem:[#allocation78_spill] sm:$0xff] }
 0x61e   : > { %5453 = vset.pattern.permute.xlu1 %v11952_v38  ;;  %v8501_v22 = vadd.f32 %v1593_v30, %v11953_v12  ;;  %v8504_v10 = vadd.f32 %v1594_v31, %v11955_v43  ;;  %v8507_v62 = vadd.f32 %v1595_v47, %v11957_v39  ;;  %v1910_v45 = vand.u32 2147483647, %v11931_v24  ;;  %v11962_v30 = vld [vmem:[#allocation24_spill] sm:$0xff]  ;;  %v8538_v2 = vld [vmem:[%s6263_s28 + $0x38] sm:$0xff]  ;;  %v11977_v39 = vld [vmem:[#allocation77_spill] sm:$0xff] }
 0x61f   : > { %11948 = vst [vmem:[#allocation81_spill] sm:$0xff] %v8493_v0  ;;  %11950 = vst [vmem:[#allocation82_spill] sm:$0xff] %v8496_v60  ;;  %4480 = vperm.xlu1 %5453, %v11960_v63   ;;  %v1583_v9 = vsel %vm8445_vm7, %v8436_v28, %v1577_v11  ;;  %v1596_v20 = vsub.f32 0.0, %v1556_v26  ;;  %v1597_v17 = vsub.f32 0.0, %v1565_v32  ;;  %v1908_v51 = vadd.f32 1.0, %v1907_v19  ;;  %v11973_v56 = vld [vmem:[#allocation70_spill] sm:$0xff] }
 0x620   : > { %11954 = vst [vmem:[#allocation83_spill] sm:$0xff] %v8501_v22  ;;  %11956 = vst [vmem:[#allocation8_spill] sm:$0xff] %v8504_v10  ;;  %v1917_v48 = vadd.f32 1.0, %v1916_v42  ;;  %v1925_v18 = vmul.f32 -0.5, %v11938_v34  ;;  %5665 = vlog2.f32 %v1931_v58  ;;  %v1949_v52 = vadd.f32 1.0, %v11961_v16  ;;  %v11970_v42 = vld [vmem:[#allocation41_spill] sm:$0xff] }
 0x621   : > { %11958 = vst [vmem:[#allocation35_spill] sm:$0xff] %v8507_v62  ;;  %v1574_v57 = vsel %vm8454_vm2, %v8406_v1, %v1568_v41  ;;  %v1934_v54 = vmul.f32 -0.5, %v11946_v27  ;;  %5667 = vlog2.f32 %v1940_v8  ;;  %v1958_v53 = vadd.f32 1.0, %v11962_v30  ;;  %4434 = vperm.xlu0 %5475, %v11965_v4   ;;  %v11971_v41 = vld [vmem:[#allocation68_spill] sm:$0xff] }
 0x622   : > { %v1599_v28 = vsub.f32 0.0, %v1583_v9  ;;  %v8523_v3 = vadd.f32 %v1596_v20, %v11963_v35  ;;  %v1919_v29 = vand.u32 2147483647, %v11933_v25  ;;  %v1943_v55 = vmul.f32 -0.5, %v11951_v14  ;;  %v12002_v62 = vld [vmem:[#allocation12_spill] sm:$0xff] }
 0x623   : > { %5454 = vset.pattern.permute.xlu1 %v11887_v40  ;;  %v8530_v15 = vadd.f32 %v1597_v17, %v11966_v7  ;;  %v8533_v1 = vmul.f32 %v11931_v24, %v1908_v51  ;;  %v1928_v31 = vand.u32 2147483647, %v11938_v34  ;;  %v1952_v37 = vmul.f32 -0.5, %v11961_v16 }
 0x624   : > { %11964 = vst [vmem:[#allocation34_spill] sm:$0xff] %v8523_v3  ;;  %3958 = vperm.xlu1 %5454, %v8538_v2   ;;  %v1598_v47 = vsub.f32 0.0, %v1574_v57  ;;  %v8542_v26 = vmul.f32 %v11933_v25, %v1917_v48  ;;  %v1926_v11 = vadd.f32 1.0, %v1925_v18  ;;  %5669 = vlog2.f32 %v1949_v52  ;;  %v11980_v48 = vld [vmem:[#allocation57_spill] sm:$0xff] }
 0x625   : > { %11967 = vst [vmem:[#allocation7_spill] sm:$0xff] %v8530_v15  ;;  %vm8544_vm10 = vcmp.lt.f32.partialorder %v1910_v45, 0.0004427343  ;;  %v1935_v24 = vadd.f32 1.0, %v1934_v54  ;;  %5671 = vlog2.f32 %v1958_v53  ;;  %v1961_v32 = vmul.f32 -0.5, %v11962_v30  ;;  %4443 = vperm.xlu0 %5475, %v11977_v39  }
 0x626   : > { %v1967_v58 = vadd.f32 1.0, %v11970_v42  ;;  %v8551_v6 = vadd.f32 %v1598_v47, %v11971_v41  ;;  %v8554_v8 = vadd.f32 %v1599_v28, %v11973_v56  ;;  %vm8556_vm12 = vcmp.lt.f32.partialorder %v1919_v29, 0.0004427343  ;;  %v11981_v28 = vld [vmem:[#allocation62_spill] sm:$0xff]  ;;  %v11988_v56 = vld [vmem:[#allocation5_spill] sm:$0xff] }
 0x627   : > { %v1944_v12 = vadd.f32 1.0, %v1943_v55  ;;  %v5660_v43 = vpop.eup %5659  ;;  %vm8561_vm13 = vcmp.lt.f32.partialorder %v1928_v31, 0.0004427343  ;;  %v1937_v21 = vand.u32 2147483647, %v11946_v27  ;;  %v1953_v63 = vadd.f32 1.0, %v1952_v37 }
 0x628   : > { %11972 = vst [vmem:[#allocation26_spill] sm:$0xff] %v8551_v6  ;;  %11974 = vst [vmem:[#allocation56_spill] sm:$0xff] %v8554_v8  ;;  %v1970_v9 = vmul.f32 -0.5, %v11970_v42  ;;  %v5662_v20 = vpop.eup %5661  ;;  %5456 = vset.pattern.permute.xlu1 %v11916_v44  ;;  %v8569_v17 = vmul.f32 %v11938_v34, %v1926_v11  ;;  %v1946_v51 = vand.u32 2147483647, %v11951_v14  ;;  %v1976_v18 = vadd.f32 1.0, %v11980_v48 }
 0x629   : > { %v1979_v52 = vmul.f32 -0.5, %v11980_v48  ;;  %v5664_v57 = vpop.eup %5663  ;;  %4419 = vperm.xlu1 %5456, %v8432_v23   ;;  %v8576_v54 = vmul.f32 %v11946_v27, %v1935_v24  ;;  %v1962_v53 = vadd.f32 1.0, %v1961_v32  ;;  %5673 = vlog2.f32 %v1967_v58  ;;  %5480 = vset.pattern.permute.xlu0 %v11952_v38  ;;  %v8587_v7 = vpop.xlane.xlu1 %3634  ;;  %v11985_v47 = vld [vmem:[#allocation6_spill] sm:$0xff]  ;;  %v11997_v8 = vld [vmem:[#allocation63_spill] sm:$0xff] }
 0x62a   : > { %v1985_v35 = vadd.f32 1.0, %v11981_v28  ;;  %v8579_v29 = vmul.f32 0.6931472, %v5660_v43  ;;  %v8582_v34 = vmul.f32 %v11951_v14, %v1944_v12  ;;  %v1955_v55 = vand.u32 2147483647, %v11961_v16  ;;  %11982 = vst [vmem:[#allocation25_spill] sm:$0xff] %v8587_v7  ;;  %4465 = vperm.xlu0 %5480, %v11985_v47  }
 0x62b   : > { %v1988_v4 = vmul.f32 -0.5, %v11981_v28  ;;  %v8589_v23 = vmul.f32 0.6931472, %v5662_v20  ;;  %vm8591_vm14 = vcmp.lt.f32.partialorder %v1937_v21, 0.0004427343  ;;  %v8596_v31 = vmul.f32 %v11961_v16, %v1953_v63  ;;  %v11989_v21 = vld [vmem:[#allocation84_spill] sm:$0xff] }
 0x62c   : > { %v1964_v14 = vand.u32 2147483647, %v11962_v30  ;;  %v1971_v37 = vadd.f32 1.0, %v1970_v9  ;;  %v8600_v11 = vmul.f32 0.6931472, %v5664_v57  ;;  %5675 = vlog2.f32 %v1976_v18  ;;  %v12041_v57 = vld [vmem:[#allocation93_spill] sm:$0xff] }
 0x62d   : > { %vm8602_vm15 = vcmp.lt.f32.partialorder %v1946_v51, 0.0004427343  ;;  %v1973_v32 = vand.u32 2147483647, %v11970_v42  ;;  %v1980_v58 = vadd.f32 1.0, %v1979_v52  ;;  %v5666_v41 = vpop.eup %5665  ;;  %5457 = vset.pattern.permute.xlu1 %v11952_v38  ;;  %v8609_v16 = vmul.f32 %v11962_v30, %v1962_v53  ;;  %v11990_v51 = vld [vmem:[#allocation58_spill] sm:$0xff]  ;;  %v8620_v30 = vpop.xlane.xlu1 %3640 }
 0x62e   : > { %5677 = vlog2.f32 %v1985_v35  ;;  %v1994_v12 = vadd.f32 1.0, %v11988_v56  ;;  %v1997_v43 = vmul.f32 -0.5, %v11988_v56  ;;  %v5668_v39 = vpop.eup %5667  ;;  %v5151_v63 = vclamps-f32 %v11989_v21, 10.0  ;;  %4483 = vperm.xlu1 %5457, %v11943_v46   ;;  %11991 = vst [vmem:[#allocation22_spill] sm:$0xff] %v8620_v30 }
 0x62f   : > { %v1989_v20 = vadd.f32 1.0, %v1988_v4  ;;  %v2006_v18 = vmul.f32 -0.5, %v11990_v51  ;;  %vm8626_vm0 = vcmp.lt.f32.partialorder %v1955_v55, 0.0004427343  ;;  %v8631_v46 = vmul.f32 %v11970_v42, %v1971_v37  ;;  %v11994_v4 = vld [vmem:[#allocation9_spill] sm:$0xff] }
 0x630   : > { %v1982_v53 = vand.u32 2147483647, %v11980_v48  ;;  %v2003_v35 = vadd.f32 1.0, %v11990_v51  ;;  %4477 = vperm.xlu0 %5480, %v11994_v4   ;;  %v8640_v21 = vmul.f32 0.6931472, %v5666_v41  ;;  %v8647_v42 = vmul.f32 %v11980_v48, %v1980_v58  ;;  %v11998_v58 = vld [vmem:[#allocation85_spill] sm:$0xff] }
 0x631   : > { %vm8642_vm11 = vcmp.lt.f32.partialorder %v1964_v14, 0.0004427343  ;;  %v1991_v37 = vand.u32 2147483647, %v11981_v28  ;;  %v5670_v52 = vpop.eup %5669  ;;  %v8650_v9 = vmul.f32 0.6931472, %v5668_v39  ;;  %5679 = vlog2.f32 %v1994_v12  ;;  %v8659_v15 = vpop.xlane.xlu1 %3644 }
 0x632   : > { %v1998_v4 = vadd.f32 1.0, %v1997_v43  ;;  %v2000_v30 = vand.u32 2147483647, %v11988_v56  ;;  %v5672_v7 = vpop.eup %5671  ;;  %v2305_v47 = vsub.f32 0.0, %v5151_v63  ;;  %5458 = vset.pattern.permute.xlu1 %v11842_v36  ;;  %v8655_v14 = vmul.f32 %v11981_v28, %v1989_v20  ;;  %11999 = vst [vmem:[#allocation54_spill] sm:$0xff] %v8659_v15  ;;  %v12000_v39 = vld [vmem:[#allocation13_spill] sm:$0xff] }
 0x633   : > { %v2007_v41 = vadd.f32 1.0, %v2006_v18  ;;  %v2015_v48 = vmul.f32 -0.5, %v11997_v8  ;;  %v5152_v6 = vclamps-f32 %v11998_v58, 10.0  ;;  %4025 = vperm.xlu1 %5458, %v12000_v39   ;;  %5681 = vlog2.f32 %v2003_v35  ;;  %v12001_v63 = vld [vmem:[#allocation86_spill] sm:$0xff]  ;;  %v12005_v35 = vld [vmem:[#allocation76_spill] sm:$0xff] }
 0x634   : > { %v2012_v43 = vadd.f32 1.0, %v11997_v8  ;;  %v5154_v3 = vclamps-f32 %v12001_v63, 10.0  ;;  %4486 = vperm.xlu0 %5480, %v12002_v62   ;;  %v8670_v20 = vmul.f32 0.6931472, %v5670_v52  ;;  %vm8672_vm1 = vcmp.lt.f32.partialorder %v1973_v32, 0.0004427343 }
 0x635   : > { %v2021_v58 = vadd.f32 1.0, %v12005_v35  ;;  %v8681_v12 = vmul.f32 0.6931472, %v5672_v7  ;;  %v8684_v62 = vmul.f32 %v11988_v56, %v1998_v4  ;;  %v2024_v28 = vmul.f32 -0.5, %v12005_v35  ;;  %v12006_v32 = vld [vmem:[#allocation87_spill] sm:$0xff]  ;;  %v8691_v49 = vpop.xlane.xlu1 %3648  ;;  %v12024_v18 = vld [vmem:[#allocation90_spill] sm:$0xff] }
 0x636   : > { %v5674_v52 = vpop.eup %5673  ;;  %v2321_v15 = vsub.f32 0.0, %v2305_v47  ;;  %v5156_v10 = vclamps-f32 %v12006_v32, 10.0  ;;  %v8689_v22 = vmul.f32 %v11990_v51, %v2007_v41  ;;  %v2016_v60 = vadd.f32 1.0, %v2015_v48  ;;  %12007 = vst [vmem:[#allocation23_spill] sm:$0xff] %v8691_v49  ;;  %v12010_v4 = vld [vmem:[#allocation59_spill] sm:$0xff] }
 0x637   : > { %v2306_v0 = vsub.f32 0.0, %v5152_v6  ;;  %5459 = vset.pattern.permute.xlu1 %v11916_v44  ;;  %vm8694_vm3 = vcmp.lt.f32.partialorder %v1982_v53, 0.0004427343  ;;  %5683 = vlog2.f32 %v2012_v43  ;;  %v2030_v47 = vadd.f32 1.0, %v12010_v4  ;;  %v12011_v41 = vld [vmem:[#allocation15_spill] sm:$0xff]  ;;  %v12016_v43 = vld [vmem:[#allocation88_spill] sm:$0xff] }
 0x638   : > { %v2308_v63 = vsub.f32 0.0, %v5154_v3  ;;  %4422 = vperm.xlu1 %5459, %v8538_v2   ;;  %4495 = vperm.xlu0 %5480, %v12011_v41   ;;  %5685 = vlog2.f32 %v2021_v58  ;;  %v2033_v53 = vmul.f32 -0.5, %v12010_v4  ;;  %v8711_v32 = vmul.f32 0.6931472, %v5674_v52  ;;  %v12015_v44 = vld [vmem:[#allocation67_spill] sm:$0xff]  ;;  %v12018_v41 = vld [vmem:[#allocation18_spill] sm:$0xff] }
 0x639   : > { %v5676_v48 = vpop.eup %5675  ;;  %vm8713_vm4 = vcmp.lt.f32.partialorder %v1991_v37, 0.0004427343  ;;  %v2025_v2 = vadd.f32 1.0, %v2024_v28  ;;  %v2338_v6 = vmul.f32 1.442695, %v2321_v15  ;;  %v2310_v58 = vsub.f32 0.0, %v5156_v10  ;;  %v8723_v59 = vpop.xlane.xlu1 %3652 }
 0x63a   : > { %v8719_v49 = vmul.f32 %v11997_v8, %v2016_v60  ;;  %v2042_v50 = vmul.f32 -0.5, %v12015_v44  ;;  %v2322_v33 = vsub.f32 0.0, %v2306_v0  ;;  %v5158_v52 = vclamps-f32 %v12016_v43, 10.0  ;;  %12017 = vst [vmem:[#allocation11_spill] sm:$0xff] %v8723_v59  ;;  %v12023_v0 = vld [vmem:[#allocation89_spill] sm:$0xff] }
 0x63b   : > { %v5678_v56 = vpop.eup %5677  ;;  %5687 = vlog2.f32 %v2030_v47  ;;  %v2039_v37 = vadd.f32 1.0, %v12015_v44  ;;  %v2324_v28 = vsub.f32 0.0, %v2308_v63  ;;  %v1978_v15 = vmul.f32 0.6931472, %v5676_v48 }
 0x63c   : > { %12014 = vst [vmem:[#allocation30_spill] sm:$0xff] %v8719_v49  ;;  %5460 = vset.pattern.permute.xlu1 %v11887_v40  ;;  %4504 = vperm.xlu0 %5480, %v12018_v41   ;;  %vm8728_vm5 = vcmp.lt.f32.partialorder %v2000_v30, 0.0004427343  ;;  %v2034_v60 = vadd.f32 1.0, %v2033_v53  ;;  %v8734_v49 = vld [vmem:[%s6263_s28 + $0x48] sm:$0xff]  ;;  %v1975_v63 = vsel %vm8672_vm1, %v8631_v46, %v8711_v32  ;;  %v8742_v43 = vmul.f32 %v12005_v35, %v2025_v2 }
 0x63d   : > { %12021 = vst [vmem:[#allocation37_spill] sm:$0xff] %v8734_v49  ;;  %3964 = vperm.xlu1 %5460, %v8734_v49   ;;  %v1987_v47 = vmul.f32 0.6931472, %v5678_v56  ;;  %v12022_v30 = vsel %vm8544_vm10, %v8533_v1, %v8579_v29  ;;  %5689 = vpow2.f32 %v2338_v6  ;;  %v2326_v41 = vsub.f32 0.0, %v2310_v58  ;;  %v8751_v56 = vpop.xlane.xlu1 %3656  ;;  %v12029_v6 = vld [vmem:[#allocation20_spill] sm:$0xff]  ;;  %v12030_v58 = vld [vmem:[#allocation91_spill] sm:$0xff] }
 0x63e   : > { %v2048_v53 = vsub.f32 0.0, %v12022_v30  ;;  %v5680_v48 = vpop.eup %5679  ;;  %v5150_v59 = vclamps-f32 %v12023_v0, 10.0  ;;  %v2043_v49 = vadd.f32 1.0, %v2042_v50  ;;  %v2340_v40 = vmul.f32 1.442695, %v2322_v33  ;;  %12025 = vst [vmem:[#allocation60_spill] sm:$0xff] %v8751_v56 }
 0x63f   : > { %v2312_v13 = vsub.f32 0.0, %v5158_v52  ;;  %v5160_v46 = vclamps-f32 %v12024_v18, 10.0  ;;  %v12026_v32 = vand.u32 2147483647, %v11990_v51  ;;  %5691 = vlog2.f32 %v2039_v37  ;;  %v12033_v0 = vld [vmem:[#allocation14_spill] sm:$0xff] }
 0x640   : > { %v5682_v1 = vpop.eup %5681  ;;  %v2344_v29 = vmul.f32 1.442695, %v2324_v28  ;;  %4510 = vperm.xlu0 %5480, %v12029_v6   ;;  %v1984_v33 = vsel %vm8694_vm3, %v8647_v42, %v1978_v15  ;;  %v8764_v50 = vmul.f32 %v12010_v4, %v2034_v60  ;;  %v2045_v2 = vand.u32 2147483647, %v12015_v44 }
 0x641   : > { %vm8755_vm6 = vcmp.lt.f32.partialorder %v12026_v32, 0.0004427343  ;;  %v5153_v51 = vclamps-f32 %v12030_v58, 10.0  ;;  %5461 = vset.pattern.permute.xlu1 %v11842_v36  ;;  %v1996_v52 = vmul.f32 0.6931472, %v5680_v48  ;;  %v12031_v37 = vsel %vm8556_vm12, %v8542_v26, %v8589_v23  ;;  %v8786_v48 = vpop.xlane.xlu1 %3660  ;;  %v12044_v58 = vld [vmem:[#allocation94_spill] sm:$0xff] }
 0x642   : > { %v2049_v28 = vsub.f32 0.0, %v12031_v37  ;;  %v12032_v42 = vsel %vm8561_vm13, %v8569_v17, %v8600_v11  ;;  %v2348_v15 = vmul.f32 1.442695, %v2326_v41  ;;  %v2304_v60 = vsub.f32 0.0, %v5150_v59  ;;  %4028 = vperm.xlu1 %5461, %v12033_v0   ;;  %12034 = vst [vmem:[#allocation64_spill] sm:$0xff] %v8786_v48  ;;  %v8793_v11 = vpop.xlane.xlu0 %3632  ;;  %v12048_v37 = vld [vmem:[#allocation72_spill] sm:$0xff] }
 0x643   : > { %v2050_v7 = vsub.f32 0.0, %v12032_v42  ;;  %v1993_v30 = vsel %vm8713_vm4, %v8655_v14, %v1987_v47  ;;  %v8784_v25 = vmul.f32 %v12015_v44, %v2043_v49  ;;  %5693 = vpow2.f32 %v2340_v40  ;;  %12036 = vst [vmem:[#allocation36_spill] sm:$0xff] %v8793_v11 }
 0x644   : > { %v2328_v26 = vsub.f32 0.0, %v2312_v13  ;;  %v2314_v23 = vsub.f32 0.0, %v5160_v46  ;;  %v12035_v45 = vsel %vm8591_vm14, %v8576_v54, %v8640_v21  ;;  %v5684_v17 = vpop.eup %5683  ;;  %5695 = vpow2.f32 %v2344_v29  ;;  %v12039_v21 = vld [vmem:[#allocation92_spill] sm:$0xff] }
 0x645   : > { %v2051_v59 = vsub.f32 0.0, %v12035_v45  ;;  %v2005_v3 = vmul.f32 0.6931472, %v5682_v1  ;;  %v12037_v44 = vsel %vm8602_vm15, %v8582_v34, %v8650_v9  ;;  %v12038_v13 = vsel %vm8626_vm0, %v8596_v31, %v8670_v20  ;;  %v5686_v27 = vpop.eup %5685  ;;  %v8817_v46 = vpop.permute.xlu1 %3937 }
 0x646   : > { %v2052_v40 = vsub.f32 0.0, %v12037_v44  ;;  %v2053_v49 = vsub.f32 0.0, %v12038_v13  ;;  %v2307_v54 = vsub.f32 0.0, %v5153_v51  ;;  %v5162_v14 = vclamps-f32 %v12039_v21, 10.0  ;;  %5462 = vset.pattern.permute.xlu1 %v11952_v38  ;;  %12042 = vst [vmem:[#allocation66_spill] sm:$0xff] %v8817_v46  ;;  %v8819_v32 = vpop.xlane.xlu0 %3636  ;;  %v12064_v44 = vld [vmem:[#allocation95_spill] sm:$0xff] }
 0x647   : > { %v2002_v47 = vsel %vm8728_vm5, %v8684_v62, %v1996_v52  ;;  %v12040_v34 = vsel %vm8642_vm11, %v8609_v16, %v8681_v12  ;;  %5697 = vpow2.f32 %v2348_v15  ;;  %v2320_v9 = vsub.f32 0.0, %v2304_v60  ;;  %4489 = vperm.xlu1 %5462, %v12000_v39   ;;  %12043 = vst [vmem:[#allocation61_spill] sm:$0xff] %v8819_v32  ;;  %v12060_v60 = vld [vmem:[#allocation74_spill] sm:$0xff] }
 0x648   : > { %v2054_v24 = vsub.f32 0.0, %v12040_v34  ;;  %v5155_v41 = vclamps-f32 %v12041_v57, 10.0  ;;  %v2055_v31 = vsub.f32 0.0, %v1975_v63  ;;  %v2352_v20 = vmul.f32 1.442695, %v2328_v26  ;;  %v5688_v55 = vpop.eup %5687  ;;  %v12070_v34 = vld [vmem:[#allocation81_spill] sm:$0xff] }
 0x649   : > { %v2330_v18 = vsub.f32 0.0, %v2314_v23  ;;  %v2056_v62 = vsub.f32 0.0, %v1984_v33  ;;  %v2057_v10 = vsub.f32 0.0, %v1993_v30  ;;  %v2011_v16 = vsel %vm8755_vm6, %v8689_v22, %v2005_v3 }
 0x64a   : > { %v2058_v12 = vsub.f32 0.0, %v2002_v47  ;;  %v8825_v1 = vadd.f32 %v2048_v53, %v8459_v61  ;;  %v8828_v63 = vadd.f32 %v2049_v28, %v8462_v5  ;;  %v2323_v29 = vsub.f32 0.0, %v2307_v54  ;;  %v8862_v30 = vpop.eup %5689  ;;  %v8868_v54 = vpop.xlane.xlu0 %3638 }
 0x64b   : > { %v2316_v39 = vsub.f32 0.0, %v5162_v14  ;;  %v5157_v51 = vclamps-f32 %v12044_v58, 10.0  ;;  %v12045_v33 = vand.u32 2147483647, %v11997_v8  ;;  %v8838_v19 = vadd.f32 %v2050_v7, %v12048_v37  ;;  %v12058_v7 = vld [vmem:[#allocation73_spill] sm:$0xff]  ;;  %12065 = vst [vmem:[#allocation24_spill] sm:$0xff] %v8868_v54 }
 0x64c   : > { %v2336_v22 = vmul.f32 1.442695, %v2320_v9  ;;  %v2309_v42 = vsub.f32 0.0, %v5155_v41  ;;  %v12050_v61 = vand.u32 2147483647, %v12005_v35  ;;  %v8857_v15 = vadd.f32 %v2051_v59, %v12058_v7  ;;  %v8871_v59 = vld [vmem:[%s6263_s28 + $0x50] sm:$0xff] }
 0x64d   : > { %vm8833_vm8 = vcmp.lt.f32.partialorder %v12045_v33, 0.0004427343  ;;  %12049 = vst [vmem:[#allocation65_spill] sm:$0xff] %v8838_v19  ;;  %v12053_v53 = vand.u32 2147483647, %v12010_v4  ;;  %v8860_v35 = vadd.f32 %v2052_v40, %v12060_v60  ;;  %5699 = vpow2.f32 %v2352_v20  ;;  %v8865_v4 = vpop.permute.xlu1 %3943  ;;  %v12066_v40 = vld [vmem:[#allocation75_spill] sm:$0xff] }
 0x64e   : > { %vm8842_vm9 = vcmp.lt.f32.partialorder %v12050_v61, 0.0004427343  ;;  %vm8852_vm2 = vcmp.lt.f32.partialorder %v2045_v2, 0.0004427343  ;;  %12059 = vst [vmem:[#allocation79_spill] sm:$0xff] %v8857_v15  ;;  %v12062_v23 = vmov 10   ;;  %v5692_v2 = vpop.eup %5691  ;;  %v8875_v21 = vadd.f32 %v2053_v49, %v12066_v40  ;;  %v8893_v7 = vpop.xlane.xlu0 %3642 }
 0x64f   : > { %vm8848_vm7 = vcmp.lt.f32.partialorder %v12053_v53, 0.0004427343  ;;  %12061 = vst [vmem:[#allocation10_spill] sm:$0xff] %v8860_v35  ;;  %v2356_v26 = vmul.f32 1.442695, %v2330_v18  ;;  %5463 = vset.pattern.permute.xlu1 %v12062_v23  ;;  %12063 = vst [vmem:[#allocation55_spill] sm:$0xff] %v8865_v4  ;;  %v8881_v9 = vadd.f32 %v2055_v31, %v12070_v34  ;;  %5701 = vpow2.f32 %v2336_v22 }
 0x650   : > { %v2014_v45 = vmul.f32 0.6931472, %v5684_v17  ;;  %v2059_v3 = vsub.f32 0.0, %v2011_v16  ;;  %v5164_v13 = vclamps-f32 %v12064_v44, 10.0  ;;  %3967 = vperm.xlu1 %5463, %v8871_v59   ;;  %12067 = vst [vmem:[#allocation69_spill] sm:$0xff] %v8875_v21  ;;  %v12068_v14 = vld [vmem:[#allocation80_spill] sm:$0xff]  ;;  %v8890_v31 = vpop.eup %5693 }
 0x651   : > { %v8878_v47 = vadd.f32 %v2054_v24, %v12068_v14  ;;  %12071 = vst [vmem:[#allocation78_spill] sm:$0xff] %v8881_v9  ;;  %v2342_v17 = vmul.f32 1.442695, %v2323_v29  ;;  %v2332_v57 = vsub.f32 0.0, %v2316_v39  ;;  %v2311_v41 = vsub.f32 0.0, %v5157_v51  ;;  %v12072_v20 = vld [vmem:[#allocation82_spill] sm:$0xff]  ;;  %v8888_v49 = vpop.permute.xlu1 %3946 }
 0x652   : > { %v8884_v18 = vadd.f32 %v2056_v62, %v12072_v20  ;;  %v2325_v16 = vsub.f32 0.0, %v2309_v42  ;;  %v12074_v58 = vld [vmem:[#allocation96_spill] sm:$0xff]  ;;  %v2377_v37 = vadd.f32 1.0, %v8862_v30  ;;  %5703 = vpow2.f32 %v2356_v26  ;;  %12075 = vst [vmem:[#allocation68_spill] sm:$0xff] %v8888_v49  ;;  %v12076_v39 = vld [vmem:[#allocation97_spill] sm:$0xff]  ;;  %12077 = vst [vmem:[#allocation70_spill] sm:$0xff] %v8893_v7  ;;  %v8902_v26 = vpop.eup %5695 }
 0x653   : > { %12069 = vst [vmem:[#allocation71_spill] sm:$0xff] %v8878_v47  ;;  %v5159_v33 = vclamps-f32 %v12074_v58, 10.0  ;;  %v2023_v24 = vmul.f32 0.6931472, %v5686_v27  ;;  %v2032_v61 = vmul.f32 0.6931472, %v5688_v55  ;;  %5705 = vpow2.f32 %v2342_v17 }
 0x654   : > { %12073 = vst [vmem:[#allocation41_spill] sm:$0xff] %v8884_v18  ;;  %v2041_v53 = vmul.f32 0.6931472, %v5692_v2  ;;  %v2318_v29 = vsub.f32 0.0, %v5164_v13  ;;  %v5161_v51 = vclamps-f32 %v12076_v39, 10.0  ;;  %v12078_v62 = vmov 11   ;;  %v8924_v39 = vpop.xlane.xlu0 %3646 }
 0x655   : > { %5464 = vset.pattern.permute.xlu1 %v12078_v62  ;;  %v12079_v22 = vld [vmem:[#allocation83_spill] sm:$0xff]  ;;  %v12081_v60 = vld [vmem:[#allocation8_spill] sm:$0xff]  ;;  %v2360_v27 = vmul.f32 1.442695, %v2332_v57  ;;  %v2327_v55 = vsub.f32 0.0, %v2311_v41  ;;  %v12083_v2 = vld [vmem:[#allocation98_spill] sm:$0xff]  ;;  %5707 = vlog2.f32 %v2377_v37  ;;  %v2029_v17 = vsel %vm8842_vm9, %v8742_v43, %v2023_v24 }
 0x656   : > { %v8897_v42 = vadd.f32 %v2057_v10, %v12079_v22  ;;  %v8900_v44 = vadd.f32 %v2058_v12, %v12081_v60  ;;  %v5163_v40 = vclamps-f32 %v12083_v2, 10.0  ;;  %v12084_v13 = vld [vmem:[#allocation37_spill] sm:$0xff]  ;;  %v2346_v14 = vmul.f32 1.442695, %v2325_v16  ;;  %v12085_v20 = vld [vmem:[#allocation30_spill] sm:$0xff]  ;;  %v8909_v10 = vpop.eup %5697  ;;  %v8911_v12 = vpop.permute.xlu1 %3949  ;;  %12088 = vst [vmem:[#allocation6_spill] sm:$0xff] %v8924_v39 }
 0x657   : > { %4428 = vperm.xlu1 %5464, %v12084_v13   ;;  %v2313_v34 = vsub.f32 0.0, %v5159_v33  ;;  %v2020_v58 = vsel %vm8833_vm8, %v12085_v20, %v2014_v45  ;;  %12086 = vst [vmem:[#allocation62_spill] sm:$0xff] %v8911_v12  ;;  %v2038_v57 = vsel %vm8848_vm7, %v8764_v50, %v2032_v61  ;;  %v2047_v41 = vsel %vm8852_vm2, %v8784_v25, %v2041_v53  ;;  %v12087_v33 = vld [vmem:[#allocation99_spill] sm:$0xff]  ;;  %v12118_v49 = vld [vmem:[#allocation102_spill] sm:$0xff] }
 0x658   : > { %12080 = vst [vmem:[#allocation77_spill] sm:$0xff] %v8897_v42  ;;  %12082 = vst [vmem:[#allocation57_spill] sm:$0xff] %v8900_v44  ;;  %v2386_v52 = vadd.f32 1.0, %v8890_v31  ;;  %v2334_v45 = vsub.f32 0.0, %v2318_v29  ;;  %v2315_v16 = vsub.f32 0.0, %v5161_v51  ;;  %v5165_v37 = vclamps-f32 %v12087_v33, 10.0 }
 0x659   : > { %v2404_v22 = vadd.f32 1.0, %v8902_v26  ;;  %5709 = vpow2.f32 %v2360_v27  ;;  %v2350_v43 = vmul.f32 1.442695, %v2327_v55  ;;  %v2317_v5 = vsub.f32 0.0, %v5163_v40  ;;  %v12089_v50 = vld [vmem:[#allocation35_spill] sm:$0xff] }
 0x65a   : > { %v8929_v8 = vadd.f32 %v2059_v3, %v12089_v50  ;;  %5711 = vpow2.f32 %v2346_v14  ;;  %v2329_v25 = vsub.f32 0.0, %v2313_v34  ;;  %v2060_v28 = vsub.f32 0.0, %v2020_v58  ;;  %v8933_v61 = vpop.permute.xlu1 %4001  ;;  %v8935_v60 = vpop.eup %5699  ;;  %v12093_v34 = vld [vmem:[#allocation34_spill] sm:$0xff]  ;;  %v12131_v18 = vld [vmem:[#allocation103_spill] sm:$0xff] }
 0x65b   : > { %5465 = vset.pattern.permute.xlu1 %v11952_v38  ;;  %v2422_v24 = vadd.f32 1.0, %v8909_v10  ;;  %12091 = vst [vmem:[#allocation84_spill] sm:$0xff] %v8933_v61  ;;  %v2061_v53 = vsub.f32 0.0, %v2029_v17  ;;  %v2062_v29 = vsub.f32 0.0, %v2038_v57  ;;  %v2063_v51 = vsub.f32 0.0, %v2047_v41  ;;  %v8937_v3 = vpop.xlane.xlu0 %3650  ;;  %v12095_v57 = vld [vmem:[#allocation16_spill] sm:$0xff] }
 0x65c   : > { %12090 = vst [vmem:[#allocation5_spill] sm:$0xff] %v8929_v8  ;;  %4492 = vperm.xlu1 %5465, %v12033_v0   ;;  %5713 = vlog2.f32 %v2386_v52  ;;  %v2364_v27 = vmul.f32 1.442695, %v2334_v45  ;;  %v2331_v55 = vsub.f32 0.0, %v2315_v16  ;;  %v2319_v2 = vsub.f32 0.0, %v5165_v37  ;;  %12092 = vst [vmem:[#allocation58_spill] sm:$0xff] %v8937_v3  ;;  %v8946_v17 = vpop.eup %5701 }
 0x65d   : > { %5715 = vlog2.f32 %v2404_v22  ;;  %v2333_v40 = vsub.f32 0.0, %v2317_v5  ;;  %v2380_v0 = vmul.f32 -0.5, %v8862_v30  ;;  %v2383_v13 = vand.u32 2147483647, %v8862_v30  ;;  %v12096_v52 = vld [vmem:[#allocation7_spill] sm:$0xff]  ;;  %v12098_v16 = vld [vmem:[#allocation26_spill] sm:$0xff] }
 0x65e   : > { %5717 = vpow2.f32 %v2350_v43  ;;  %v2354_v14 = vmul.f32 1.442695, %v2329_v25  ;;  %v8943_v20 = vadd.f32 %v2060_v28, %v12093_v34  ;;  %v2389_v58 = vmul.f32 -0.5, %v8890_v31  ;;  %v8949_v41 = vpop.permute.xlu1 %4004  ;;  %v12101_v28 = vld [vmem:[#allocation56_spill] sm:$0xff] }
 0x65f   : > { %5719 = vlog2.f32 %v2422_v24  ;;  %v8952_v45 = vadd.f32 %v2061_v53, %v12096_v52  ;;  %v8955_v33 = vadd.f32 %v2062_v29, %v12098_v16  ;;  %v2407_v37 = vmul.f32 -0.5, %v8902_v26  ;;  %v8959_v43 = vpop.eup %5703  ;;  %v8961_v25 = vpop.xlane.xlu0 %3654 }
 0x660   : > { %5466 = vset.pattern.permute.xlu1 %v11842_v36  ;;  %12094 = vst [vmem:[#allocation9_spill] sm:$0xff] %v8943_v20  ;;  %v2440_v22 = vadd.f32 1.0, %v8935_v60  ;;  %5721 = vpow2.f32 %v2364_v27  ;;  %v2358_v5 = vmul.f32 1.442695, %v2331_v55  ;;  %v2335_v50 = vsub.f32 0.0, %v2319_v2  ;;  %12100 = vst [vmem:[#allocation13_spill] sm:$0xff] %v8961_v25  ;;  %v8971_v16 = vpop.eup %5705 }
 0x661   : > { %4034 = vperm.xlu1 %5466, %v12095_v57   ;;  %12097 = vst [vmem:[#allocation63_spill] sm:$0xff] %v8952_v45  ;;  %12099 = vst [vmem:[#allocation85_spill] sm:$0xff] %v8955_v33  ;;  %v8964_v24 = vadd.f32 %v2063_v51, %v12101_v28  ;;  %v2362_v34 = vmul.f32 1.442695, %v2333_v40  ;;  %v2381_v53 = vadd.f32 1.0, %v2380_v0  ;;  %v2425_v29 = vmul.f32 -0.5, %v8909_v10 }
 0x662   : > { %vm8966_vm10 = vcmp.lt.f32.partialorder %v2383_v13, 0.0004427343  ;;  %5723 = vpow2.f32 %v2354_v14  ;;  %v2368_v27 = vadd.f32 1.0, %v8946_v17  ;;  %v2390_v55 = vadd.f32 1.0, %v2389_v58  ;;  %v5708_v25 = vpop.eup %5707  ;;  %v8976_v51 = vpop.permute.xlu1 %4007 }
 0x663   : > { %12102 = vst [vmem:[#allocation86_spill] sm:$0xff] %v8964_v24  ;;  %v2392_v2 = vand.u32 2147483647, %v8890_v31  ;;  %12105 = vst [vmem:[#allocation12_spill] sm:$0xff] %v8976_v51  ;;  %v2408_v40 = vadd.f32 1.0, %v2407_v37  ;;  %5725 = vlog2.f32 %v2440_v22  ;;  %v2458_v13 = vadd.f32 1.0, %v8959_v43  ;;  %v8987_v54 = vpop.xlane.xlu0 %3658 }
 0x664   : > { %v2410_v0 = vand.u32 2147483647, %v8902_v26  ;;  %5727 = vpow2.f32 %v2358_v5  ;;  %v2366_v28 = vmul.f32 1.442695, %v2335_v50  ;;  %v2371_v14 = vmul.f32 -0.5, %v8946_v17  ;;  %12106 = vst [vmem:[#allocation76_spill] sm:$0xff] %v8987_v54 }
 0x665   : > { %5467 = vset.pattern.permute.xlu1 %v12078_v62  ;;  %v2443_v58 = vmul.f32 -0.5, %v8935_v60  ;;  %5729 = vpow2.f32 %v2362_v34  ;;  %v2395_v3 = vadd.f32 1.0, %v8971_v16  ;;  %v2426_v39 = vadd.f32 1.0, %v2425_v29  ;;  %v12119_v24 = vld [vmem:[#allocation17_spill] sm:$0xff] }
 0x666   : > { %4431 = vperm.xlu1 %5467, %v8871_v59   ;;  %v2428_v7 = vand.u32 2147483647, %v8909_v10  ;;  %v8985_v37 = vpop.eup %5709  ;;  %5731 = vlog2.f32 %v2368_v27  ;;  %v8989_v22 = vmul.f32 0.6931472, %v5708_v25  ;;  %v8992_v5 = vmul.f32 %v8862_v30, %v2381_v53  ;;  %v9011_v25 = vpop.permute.xlu1 %4401 }
 0x667   : > { %vm8994_vm12 = vcmp.lt.f32.partialorder %v2392_v2, 0.0004427343  ;;  %v8998_v50 = vpop.eup %5711  ;;  %v9001_v34 = vmul.f32 %v8890_v31, %v2390_v55  ;;  %v9004_v29 = vmul.f32 %v8902_v26, %v2408_v40  ;;  %vm9006_vm13 = vcmp.lt.f32.partialorder %v2410_v0, 0.0004427343  ;;  %12111 = vst [vmem:[#allocation87_spill] sm:$0xff] %v9011_v25  ;;  %v12112_v55 = vld [vmem:[#allocation100_spill] sm:$0xff]  ;;  %v9041_v4 = vpop.xlane.xlu0 %3662 }
 0x668   : > { %5733 = vlog2.f32 %v2458_v13  ;;  %v2372_v53 = vadd.f32 1.0, %v2371_v14  ;;  %v2398_v2 = vmul.f32 -0.5, %v8971_v16  ;;  %v2444_v54 = vadd.f32 1.0, %v2443_v58  ;;  %v9016_v26 = vld [vmem:[%s6263_s28 + $0x60] sm:$0xff]  ;;  %12116 = vst [vmem:[#allocation59_spill] sm:$0xff] %v9041_v4 }
 0x669   : > { %v5714_v30 = vpop.eup %5713  ;;  %5735 = vpow2.f32 %v2366_v28  ;;  %v5166_v32 = vclamps-f32 %v12112_v55, 10.0  ;;  %v9020_v40 = vmul.f32 %v8909_v10, %v2426_v39  ;;  %vm9022_vm14 = vcmp.lt.f32.partialorder %v2428_v7, 0.0004427343  ;;  %v12115_v7 = vld [vmem:[#allocation101_spill] sm:$0xff] }
 0x66a   : > { %5468 = vset.pattern.permute.xlu1 %v12062_v23  ;;  %v5716_v31 = vpop.eup %5715  ;;  %5737 = vlog2.f32 %v2395_v3  ;;  %v2446_v13 = vand.u32 2147483647, %v8935_v60  ;;  %v2374_v14 = vand.u32 2147483647, %v8946_v17  ;;  %v2413_v3 = vadd.f32 1.0, %v8998_v50  ;;  %v9043_v51 = vpop.permute.xlu1 %4404 }
 0x66b   : > { %3973 = vperm.xlu1 %5468, %v9016_v26   ;;  %v9027_v28 = vpop.eup %5717  ;;  %v2461_v10 = vmul.f32 -0.5, %v8959_v43  ;;  %v5169_v55 = vclamps-f32 %v12115_v7, 10.0  ;;  %v9037_v48 = vmul.f32 0.6931472, %v5714_v30  ;;  %v2416_v11 = vmul.f32 -0.5, %v8998_v50  ;;  %12117 = vst [vmem:[#allocation15_spill] sm:$0xff] %v9043_v51 }
 0x66c   : > { %v5720_v39 = vpop.eup %5719  ;;  %v2476_v56 = vadd.f32 1.0, %v8985_v37  ;;  %v9046_v46 = vmul.f32 %v8946_v17, %v2372_v53  ;;  %v2399_v58 = vadd.f32 1.0, %v2398_v2  ;;  %v9048_v61 = vmul.f32 0.6931472, %v5716_v31 }
 0x66d   : > { %v9051_v12 = vmul.f32 %v8935_v60, %v2444_v54  ;;  %v9053_v7 = vpop.eup %5721  ;;  %v2768_v30 = vsub.f32 0.0, %v5166_v32  ;;  %v5171_v25 = vclamps-f32 %v12118_v49, 10.0  ;;  %v2431_v4 = vadd.f32 1.0, %v9027_v28 }
 0x66e   : > { %v2464_v51 = vand.u32 2147483647, %v8959_v43  ;;  %5739 = vlog2.f32 %v2413_v3  ;;  %v9060_v17 = vmul.f32 0.6931472, %v5720_v39  ;;  %v2434_v53 = vmul.f32 -0.5, %v9027_v28  ;;  %v9073_v39 = vpop.permute.xlu0 %4022 }
 0x66f   : > { %5469 = vset.pattern.permute.xlu1 %v11842_v36  ;;  %vm9063_vm15 = vcmp.lt.f32.partialorder %v2446_v13, 0.0004427343  ;;  %v2462_v32 = vadd.f32 1.0, %v2461_v10  ;;  %v9067_v60 = vpop.eup %5723  ;;  %v2771_v49 = vsub.f32 0.0, %v5169_v55  ;;  %v2417_v31 = vadd.f32 1.0, %v2416_v11  ;;  %12122 = vst [vmem:[#allocation67_spill] sm:$0xff] %v9073_v39 }
 0x670   : > { %4037 = vperm.xlu1 %5469, %v12119_v24   ;;  %5741 = vlog2.f32 %v2476_v56  ;;  %v5726_v3 = vpop.eup %5725  ;;  %v9076_v33 = vmul.f32 %v8971_v16, %v2399_v58  ;;  %v2401_v13 = vand.u32 2147483647, %v8971_v16  ;;  %v2479_v55 = vmul.f32 -0.5, %v8985_v37  ;;  %v9086_v56 = vpop.permute.xlu1 %4468  ;;  %v12140_v39 = vld [vmem:[#allocation105_spill] sm:$0xff] }
 0x671   : > { %v9084_v45 = vpop.eup %5727  ;;  %v2784_v2 = vsub.f32 0.0, %v2768_v30  ;;  %v2773_v11 = vsub.f32 0.0, %v5171_v25  ;;  %12123 = vst [vmem:[#allocation88_spill] sm:$0xff] %v9086_v56  ;;  %vm9088_vm0 = vcmp.lt.f32.partialorder %v2374_v14, 0.0004427343  ;;  %5743 = vlog2.f32 %v2431_v4 }
 0x672   : > { %v2419_v58 = vand.u32 2147483647, %v8998_v50  ;;  %v9093_v16 = vpop.eup %5729  ;;  %v2435_v30 = vadd.f32 1.0, %v2434_v53  ;;  %v2449_v25 = vadd.f32 1.0, %v9067_v60  ;;  %v9102_v14 = vmul.f32 %v8959_v43, %v2462_v32  ;;  %v9115_v44 = vpop.permute.xlu0 %4031 }
 0x673   : > { %vm9104_vm11 = vcmp.lt.f32.partialorder %v2464_v51, 0.0004427343  ;;  %v5732_v4 = vpop.eup %5731  ;;  %v2787_v8 = vsub.f32 0.0, %v2771_v49  ;;  %v9110_v20 = vmul.f32 %v8998_v50, %v2417_v31  ;;  %v9112_v6 = vmul.f32 0.6931472, %v5726_v3  ;;  %12128 = vst [vmem:[#allocation18_spill] sm:$0xff] %v9115_v44 }
 0x674   : > { %5470 = vset.pattern.permute.xlu1 %v11952_v38  ;;  %v2452_v53 = vmul.f32 -0.5, %v9067_v60  ;;  %vm9117_vm1 = vcmp.lt.f32.partialorder %v2401_v13, 0.0004427343  ;;  %v2437_v51 = vand.u32 2147483647, %v9027_v28  ;;  %v2467_v32 = vadd.f32 1.0, %v9084_v45  ;;  %v9129_v47 = vpop.permute.xlu1 %4010 }
 0x675   : > { %4498 = vperm.xlu1 %5470, %v12095_v57   ;;  %v5734_v10 = vpop.eup %5733  ;;  %v2480_v49 = vadd.f32 1.0, %v2479_v55  ;;  %v2482_v57 = vand.u32 2147483647, %v8985_v37  ;;  %v2800_v31 = vmul.f32 1.442695, %v2784_v2  ;;  %v2789_v3 = vsub.f32 0.0, %v2773_v11 }
 0x676   : > { %v9124_v50 = vpop.eup %5735  ;;  %v2494_v42 = vadd.f32 1.0, %v9053_v7  ;;  %v2497_v44 = vmul.f32 -0.5, %v9053_v7  ;;  %v5173_v9 = vclamps-f32 %v12131_v18, 10.0  ;;  %12132 = vst [vmem:[#allocation89_spill] sm:$0xff] %v9129_v47  ;;  %v9131_v21 = vmul.f32 0.6931472, %v5732_v4 }
 0x677   : > { %v5738_v13 = vpop.eup %5737  ;;  %v9134_v55 = vmul.f32 %v9027_v28, %v2435_v30  ;;  %5745 = vlog2.f32 %v2449_v25  ;;  %v2806_v35 = vmul.f32 1.442695, %v2787_v8  ;;  %v2453_v11 = vadd.f32 1.0, %v2452_v53  ;;  %v12133_v18 = vld [vmem:[#allocation104_spill] sm:$0xff]  ;;  %v9148_v28 = vpop.permute.xlu0 %4040 }
 0x678   : > { %v9141_v15 = vmul.f32 0.6931472, %v5734_v10  ;;  %v5175_v19 = vclamps-f32 %v12133_v18, 10.0  ;;  %v9145_v47 = vld [vmem:[%s6263_s28 + $0x68] sm:$0xff]  ;;  %12134 = vst [vmem:[#allocation90_spill] sm:$0xff] %v9148_v28  ;;  %5747 = vlog2.f32 %v2467_v32  ;;  %v2485_v30 = vadd.f32 1.0, %v9093_v16 }
 0x679   : > { %5471 = vset.pattern.permute.xlu1 %v12062_v23  ;;  %v2455_v8 = vand.u32 2147483647, %v9067_v60  ;;  %5749 = vpow2.f32 %v2800_v31  ;;  %v2810_v25 = vmul.f32 1.442695, %v2789_v3  ;;  %v9152_v4 = vmul.f32 0.6931472, %v5738_v13  ;;  %v9166_v3 = vpop.permute.xlu1 %4471 }
 0x67a   : > { %3976 = vperm.xlu1 %5471, %v9145_v47   ;;  %v2470_v10 = vmul.f32 -0.5, %v9084_v45  ;;  %v2775_v53 = vsub.f32 0.0, %v5173_v9  ;;  %v2376_v18 = vsel %vm9088_vm0, %v9046_v46, %v9131_v21  ;;  %vm9159_vm3 = vcmp.lt.f32.partialorder %v2419_v58, 0.0004427343  ;;  %12137 = vst [vmem:[#allocation91_spill] sm:$0xff] %v9166_v3  ;;  %v12143_v46 = vld [vmem:[#allocation106_spill] sm:$0xff] }
 0x67b   : > { %v9164_v32 = vmul.f32 %v8985_v37, %v2480_v49  ;;  %5751 = vlog2.f32 %v2494_v42  ;;  %v5740_v31 = vpop.eup %5739  ;;  %v9169_v13 = vmul.f32 %v9067_v60, %v2453_v11  ;;  %vm9176_vm4 = vcmp.lt.f32.partialorder %v2482_v57, 0.0004427343  ;;  %v3941_v49 = vpop.permute.xlu0 %3940  ;;  %v12146_v3 = vld [vmem:[#allocation45_spill] sm:$0xff] }
 0x67c   : > { %5753 = vpow2.f32 %v2806_v35  ;;  %v2777_v42 = vsub.f32 0.0, %v5175_v19  ;;  %v5177_v35 = vclamps-f32 %v12140_v39, 10.0  ;;  %vm9182_vm5 = vcmp.lt.f32.partialorder %v2437_v51, 0.0004427343 }
 0x67d   : > { %v5742_v37 = vpop.eup %5741  ;;  %5755 = vlog2.f32 %v2485_v30  ;;  %v2503_v58 = vadd.f32 1.0, %v9124_v50  ;;  %v2403_v19 = vsel %vm9117_vm1, %v9076_v33, %v9152_v4  ;;  %v2471_v57 = vadd.f32 1.0, %v2470_v10  ;;  %v12144_v30 = vld [vmem:[#allocation21_spill] sm:$0xff]  ;;  %v9200_v10 = vpop.permute.xlu1 %4013 }
 0x67e   : > { %5473 = vset.pattern.permute.xlu1 %v12078_v62  ;;  %5757 = vpow2.f32 %v2810_v25  ;;  %v2488_v11 = vmul.f32 -0.5, %v9093_v16  ;;  %v5744_v39 = vpop.eup %5743  ;;  %v2791_v51 = vsub.f32 0.0, %v2775_v53  ;;  %v5179_v21 = vclamps-f32 %v12143_v46, 10.0  ;;  %12145 = vst [vmem:[#allocation14_spill] sm:$0xff] %v9200_v10  ;;  %v12147_v46 = vld [vmem:[#allocation107_spill] sm:$0xff] }
 0x67f   : > { %4437 = vperm.xlu1 %5473, %v9016_v26   ;;  %vm4049_vm6 = vcmp.eq.s32.totalorder %v12144_v30, %v8949_v41  ;;  %vm3985_vm8 = vcmp.eq.s32.totalorder %v12144_v30, %v3941_v49  ;;  %v2415_v25 = vmul.f32 0.6931472, %v5740_v31  ;;  %v9197_v26 = vmul.f32 0.6931472, %v5742_v37  ;;  %v9205_v41 = vpop.permute.xlu0 %3952 }
 0x680   : > { %vm4065_vm9 = vmor %vm3985_vm8, %vm4049_vm6  ;;  %v2498_v28 = vadd.f32 1.0, %v2497_v44  ;;  %v2506_v43 = vmul.f32 -0.5, %v9124_v50  ;;  %v2793_v33 = vsub.f32 0.0, %v2777_v42  ;;  %v2779_v4 = vsub.f32 0.0, %v5177_v35  ;;  %12148 = vst [vmem:[#allocation92_spill] sm:$0xff] %v9205_v41 }
 0x681   : > { %v4081_v53 = vsel %vm4065_vm9, %v12146_v3, 0.0  ;;  %5759 = vlog2.f32 %v2503_v58  ;;  %v5181_v23 = vclamps-f32 %v12147_v46, 10.0  ;;  %v2433_v31 = vmul.f32 0.6931472, %v5744_v39 }
 0x682   : > { %4098 = vadd.xlane.f32.xlu0 %v4081_v53  ;;  %vm9207_vm7 = vcmp.lt.f32.partialorder %v2455_v8, 0.0004427343  ;;  %v2489_v44 = vadd.f32 1.0, %v2488_v11  ;;  %v2500_v42 = vand.u32 2147483647, %v9053_v7  ;;  %v2781_v49 = vsub.f32 0.0, %v5179_v21 }
 0x683   : > { %5474 = vset.pattern.permute.xlu1 %v11952_v38  ;;  %v2814_v35 = vmul.f32 1.442695, %v2791_v51  ;;  %v9214_v58 = vmul.f32 %v9084_v45, %v2471_v57  ;;  %v2491_v53 = vand.u32 2147483647, %v9093_v16  ;;  %v2421_v8 = vsel %vm9159_vm3, %v9110_v20, %v2415_v25  ;;  %v12151_v21 = vld [vmem:[#allocation108_spill] sm:$0xff]  ;;  %v9228_v38 = vpop.permute.xlu1 %4474  ;;  %v9230_v2 = vpop.permute.xlu0 %3961 }
 0x684   : > { %4501 = vperm.xlu1 %5474, %v12119_v24   ;;  %v5746_v46 = vpop.eup %5745  ;;  %v9221_v39 = vmul.f32 %v9053_v7, %v2498_v28  ;;  %v2507_v11 = vadd.f32 1.0, %v2506_v43  ;;  %v2512_v3 = vsub.f32 0.0, %v2376_v18  ;;  %v2818_v41 = vmul.f32 1.442695, %v2793_v33 }
 0x685   : > { %v2795_v51 = vsub.f32 0.0, %v2779_v4  ;;  %v5167_v10 = vclamps-f32 %v12151_v21, 10.0  ;;  %v2484_v24 = vsel %vm9176_vm4, %v9164_v32, %v9197_v26  ;;  %v5748_v57 = vpop.eup %5747  ;;  %v2783_v30 = vsub.f32 0.0, %v5181_v23 }
 0x686   : > { %v2439_v20 = vsel %vm9182_vm5, %v9134_v55, %v2433_v31  ;;  %v9236_v7 = vmul.f32 %v9093_v16, %v2489_v44  ;;  %v2509_v28 = vand.u32 2147483647, %v9124_v50  ;;  %v9239_v18 = vpop.eup %5749  ;;  %5761 = vpow2.f32 %v2814_v35  ;;  %v12153_v55 = vld [vmem:[#allocation19_spill] sm:$0xff] }
 0x687   : > { %v2797_v9 = vsub.f32 0.0, %v2781_v49  ;;  %v2451_v23 = vmul.f32 0.6931472, %v5746_v46  ;;  %v12152_v32 = vsel %vm8966_vm10, %v8992_v5, %v8989_v22  ;;  %v12154_v16 = vand.u32 2147483647, %v9084_v45  ;;  %v9278_v49 = vpop.permute.xlu0 %3970 }
 0x688   : > { %5476 = vset.pattern.permute.xlu1 %v11842_v36  ;;  %v2513_v25 = vsub.f32 0.0, %v12152_v32  ;;  %v5752_v60 = vpop.eup %5751  ;;  %vm9254_vm0 = vcmp.lt.f32.partialorder %v2500_v42, 0.0004427343  ;;  %v9259_v33 = vmul.f32 %v9124_v50, %v2507_v11  ;;  %v12159_v52 = vsel %vm8994_vm12, %v9001_v34, %v9037_v48  ;;  %v12163_v34 = vld [vmem:[#allocation109_spill] sm:$0xff]  ;;  %v12172_v32 = vld [vmem:[#allocation79_spill] sm:$0xff] }
 0x689   : > { %4043 = vperm.xlu1 %5476, %v12153_v55   ;;  %vm9250_vm2 = vcmp.lt.f32.partialorder %v12154_v16, 0.0004427343  ;;  %v2514_v22 = vsub.f32 0.0, %v12159_v52  ;;  %v2515_v5 = vsub.f32 0.0, %v2403_v19  ;;  %v12160_v45 = vsel %vm9006_vm13, %v9004_v29, %v9048_v61  ;;  %v9271_v31 = vpop.eup %5753 }
 0x68a   : > { %v2516_v4 = vsub.f32 0.0, %v12160_v45  ;;  %5763 = vpow2.f32 %v2818_v41  ;;  %v2822_v44 = vmul.f32 1.442695, %v2795_v51  ;;  %v2769_v42 = vsub.f32 0.0, %v5167_v10  ;;  %v5756_v35 = vpop.eup %5755 }
 0x68b   : > { %vm9273_vm10 = vcmp.lt.f32.partialorder %v2491_v53, 0.0004427343  ;;  %v2517_v59 = vsub.f32 0.0, %v2421_v8  ;;  %v2799_v48 = vsub.f32 0.0, %v2783_v30  ;;  %v5168_v19 = vclamps-f32 %v12163_v34, 10.0  ;;  %v9286_v10 = vpop.eup %5757  ;;  %v9288_v53 = vpop.permute.xlu1 %4016 }
 0x68c   : > { %v12164_v61 = vsel %vm9022_vm14, %v9020_v40, %v9060_v17  ;;  %v2832_v27 = vadd.f32 1.0, %v9239_v18  ;;  %v2826_v41 = vmul.f32 1.442695, %v2797_v9  ;;  %v2457_v30 = vsel %vm9207_vm7, %v9169_v13, %v2451_v23  ;;  %v9313_v56 = vpop.permute.xlu0 %3979  ;;  %v12184_v40 = vld [vmem:[#allocation9_spill] sm:$0xff] }
 0x68d   : > { %v2518_v29 = vsub.f32 0.0, %v12164_v61  ;;  %v2519_v46 = vsub.f32 0.0, %v2439_v20  ;;  %v12165_v0 = vsel %vm9063_vm15, %v9051_v12, %v9112_v6  ;;  %5477 = vset.pattern.permute.xlu1 %v12078_v62  ;;  %vm9299_vm12 = vcmp.lt.f32.partialorder %v2509_v28, 0.0004427343  ;;  %12169 = vst [vmem:[#allocation93_spill] sm:$0xff] %v9313_v56 }
 0x68e   : > { %v2520_v8 = vsub.f32 0.0, %v12165_v0  ;;  %v12168_v17 = vsel %vm9104_vm11, %v9102_v14, %v9141_v15  ;;  %v2524_v13 = vsub.f32 0.0, %v2484_v24  ;;  %v9309_v11 = vadd.f32 %v2512_v3, %v8825_v1  ;;  %4440 = vperm.xlu1 %5477, %v9145_v47   ;;  %v5760_v21 = vpop.eup %5759  ;;  %v12170_v15 = vld [vmem:[#allocation110_spill] sm:$0xff] }
 0x68f   : > { %v2522_v37 = vsub.f32 0.0, %v12168_v17  ;;  %v2859_v54 = vadd.f32 1.0, %v9271_v31  ;;  %5765 = vpow2.f32 %v2822_v44  ;;  %v2785_v6 = vsub.f32 0.0, %v2769_v42  ;;  %v9317_v24 = vpop.permute.xlu1 %4413  ;;  %v12174_v42 = vld [vmem:[#allocation10_spill] sm:$0xff] }
 0x690   : > { %v2469_v12 = vmul.f32 0.6931472, %v5748_v57  ;;  %v2496_v51 = vmul.f32 0.6931472, %v5752_v60  ;;  %v2830_v20 = vmul.f32 1.442695, %v2799_v48  ;;  %5767 = vlog2.f32 %v2832_v27 }
 0x691   : > { %v2770_v28 = vsub.f32 0.0, %v5168_v19  ;;  %v2487_v9 = vmul.f32 0.6931472, %v5756_v35  ;;  %5769 = vpow2.f32 %v2826_v41  ;;  %v5170_v1 = vclamps-f32 %v12170_v15, 10.0  ;;  %v12171_v57 = vld [vmem:[#allocation65_spill] sm:$0xff]  ;;  %v12177_v41 = vld [vmem:[#allocation78_spill] sm:$0xff] }
 0x692   : > { %v2521_v14 = vsub.f32 0.0, %v2457_v30  ;;  %v2877_v3 = vadd.f32 1.0, %v9286_v10  ;;  %v9320_v47 = vadd.f32 %v2513_v25, %v8828_v63  ;;  %v9323_v23 = vadd.f32 %v2514_v22, %v12171_v57  ;;  %v9336_v22 = vld [vmem:[%s6263_s28 + $0x78] sm:$0xff]  ;;  %v12175_v48 = vld [vmem:[#allocation69_spill] sm:$0xff]  ;;  %v12179_v30 = vld [vmem:[#allocation111_spill] sm:$0xff]  ;;  %s5246_s28 = sshll.u32 %s6232_s16, 7 }
 0x693   : > { %v9326_v60 = vadd.f32 %v2515_v5, %v12172_v32  ;;  %5771 = vlog2.f32 %v2859_v54  ;;  %v2802_v16 = vmul.f32 1.442695, %v2785_v6  ;;  %v12173_v52 = vmov 10   ;;  %v9353_v19 = vpop.eup %5761  ;;  %v9362_v17 = vpop.permute.xlu1 %3955  ;;  %s4986_s7 = scalar_lea.hbm %s11431_s3, %s5246_s28 }
 0x694   : > { %5478 = vset.pattern.permute.xlu1 %v12173_v52  ;;  %v2475_v45 = vsel %vm9250_vm2, %v9214_v58, %v2469_v12  ;;  %v2502_v44 = vsel %vm9254_vm0, %v9221_v39, %v2496_v51  ;;  %v2505_v63 = vmul.f32 0.6931472, %v5760_v21  ;;  %5773 = vpow2.f32 %v2830_v20  ;;  %v9345_v58 = vpop.permute.xlu0 %4407  ;;  %v12176_v39 = vld [vmem:[#allocation71_spill] sm:$0xff] }
 0x695   : > { %v2786_v25 = vsub.f32 0.0, %v2770_v28  ;;  %3982 = vperm.xlu1 %5478, %v9336_v22   ;;  %v2493_v5 = vsel %vm9273_vm10, %v9236_v7, %v2487_v9  ;;  %v9343_v35 = vadd.f32 %v2516_v4, %v12174_v42  ;;  %v2772_v26 = vsub.f32 0.0, %v5170_v1  ;;  %v12178_v7 = vld [vmem:[#allocation41_spill] sm:$0xff]  ;;  %v12182_v28 = vld [vmem:[#allocation112_spill] sm:$0xff]  ;;  %v12186_v52 = vld [vmem:[#allocation63_spill] sm:$0xff] }
 0x696   : > { %v9348_v43 = vadd.f32 %v2517_v59, %v12175_v48  ;;  %v9351_v34 = vadd.f32 %v2518_v29, %v12176_v39  ;;  %5775 = vlog2.f32 %v2877_v3  ;;  %v2523_v61 = vsub.f32 0.0, %v2475_v45 }
 0x697   : > { %v2526_v27 = vsub.f32 0.0, %v2502_v44  ;;  %v9356_v50 = vadd.f32 %v2519_v46, %v12177_v41  ;;  %v9359_v4 = vadd.f32 %v2520_v8, %v12178_v7  ;;  %5777 = vpow2.f32 %v2802_v16  ;;  %v9367_v54 = vpop.eup %5763  ;;  %v12180_v46 = vld [vmem:[#allocation77_spill] sm:$0xff] }
 0x698   : > { %v5172_v0 = vclamps-f32 %v12179_v30, 10.0  ;;  %v2511_v59 = vsel %vm9299_vm12, %v9259_v33, %v2505_v63  ;;  %v2525_v29 = vsub.f32 0.0, %v2493_v5  ;;  %v2804_v6 = vmul.f32 1.442695, %v2786_v25  ;;  %v12181_v8 = vld [vmem:[#allocation57_spill] sm:$0xff]  ;;  %v9378_v15 = vpop.permute.xlu0 %4410  ;;  %v12183_v33 = vld [vmem:[#allocation20_spill] sm:$0xff]  ;;  %v9399_v5 = vpop.permute.xlu1 %4019 }
 0x699   : > { %5479 = vset.pattern.permute.xlu1 %v11842_v36  ;;  %v9371_v12 = vadd.f32 %v2521_v14, %v12180_v46  ;;  %v9374_v51 = vadd.f32 %v2522_v37, %v12181_v8  ;;  %v2835_v21 = vmul.f32 -0.5, %v9239_v18  ;;  %v2788_v20 = vsub.f32 0.0, %v2772_v26  ;;  %v12185_v14 = vld [vmem:[#allocation5_spill] sm:$0xff]  ;;  %v12191_v46 = vld [vmem:[#allocation86_spill] sm:$0xff] }
 0x69a   : > { %v5174_v9 = vclamps-f32 %v12182_v28, 10.0  ;;  %4046 = vperm.xlu1 %5479, %v12183_v33   ;;  %v9382_v1 = vadd.f32 %v2524_v13, %v12184_v40  ;;  %v2895_v36 = vadd.f32 1.0, %v9353_v19  ;;  %v2527_v3 = vsub.f32 0.0, %v2511_v59  ;;  %v12187_v44 = vld [vmem:[#allocation85_spill] sm:$0xff] }
 0x69b   : > { %v9386_v57 = vadd.f32 %v2523_v61, %v12185_v14  ;;  %v2838_v37 = vand.u32 2147483647, %v9239_v18  ;;  %v2862_v32 = vmul.f32 -0.5, %v9271_v31  ;;  %v2774_v16 = vsub.f32 0.0, %v5172_v0  ;;  %v12188_v7 = vld [vmem:[#allocation113_spill] sm:$0xff] }
 0x69c   : > { %v9391_v45 = vadd.f32 %v2525_v29, %v12186_v52  ;;  %v9394_v63 = vadd.f32 %v2526_v27, %v12187_v44  ;;  %v2913_v13 = vadd.f32 1.0, %v9367_v54  ;;  %v9397_v25 = vpop.eup %5765  ;;  %5779 = vpow2.f32 %v2804_v6  ;;  %v9405_v27 = vpop.permute.xlu0 %4416  ;;  %v12190_v29 = vld [vmem:[#allocation114_spill] sm:$0xff] }
 0x69d   : > { %v2836_v42 = vadd.f32 1.0, %v2835_v21  ;;  %v2865_v26 = vand.u32 2147483647, %v9271_v31  ;;  %v2880_v48 = vmul.f32 -0.5, %v9286_v10  ;;  %v5768_v39 = vpop.eup %5767  ;;  %v2808_v61 = vmul.f32 1.442695, %v2788_v20  ;;  %v9427_v44 = vpop.permute.xlu1 %4480 }
 0x69e   : > { %v2776_v41 = vsub.f32 0.0, %v5174_v9  ;;  %v5176_v30 = vclamps-f32 %v12188_v7, 10.0  ;;  %v12189_v0 = vmov 19   ;;  %5781 = vlog2.f32 %v2895_v36  ;;  %v9407_v59 = vpop.eup %5769 }
 0x69f   : > { %5481 = vset.pattern.permute.xlu1 %v12189_v0  ;;  %v5178_v6 = vclamps-f32 %v12190_v29, 10.0  ;;  %v9412_v8 = vadd.f32 %v2527_v3, %v12191_v46  ;;  %vm9414_vm13 = vcmp.lt.f32.partialorder %v2838_v37, 0.0004427343  ;;  %v2863_v20 = vadd.f32 1.0, %v2862_v32  ;;  %v12196_v0 = vld [vmem:[#allocation115_spill] sm:$0xff] }
 0x6a0   : > { %4507 = vperm.xlu1 %5481, %v12153_v55   ;;  %v5772_v28 = vpop.eup %5771  ;;  %v2790_v9 = vsub.f32 0.0, %v2774_v16  ;;  %v2883_v33 = vand.u32 2147483647, %v9286_v10  ;;  %5783 = vlog2.f32 %v2913_v13  ;;  %v2931_v40 = vadd.f32 1.0, %v9397_v25  ;;  %v9429_v16 = vpop.permute.xlu0 %4425 }
 0x6a1   : > { %v2834_v36 = vmul.f32 0.6931472, %v5768_v39  ;;  %v2837_v14 = vmul.f32 %v9239_v18, %v2836_v42  ;;  %vm9421_vm14 = vcmp.lt.f32.partialorder %v2865_v26, 0.0004427343  ;;  %v2881_v3 = vadd.f32 1.0, %v2880_v48  ;;  %v9425_v37 = vpop.eup %5773 }
 0x6a2   : > { %5785 = vpow2.f32 %v2808_v61  ;;  %v2792_v52 = vsub.f32 0.0, %v2776_v41  ;;  %v2778_v32 = vsub.f32 0.0, %v5176_v30  ;;  %v2949_v13 = vadd.f32 1.0, %v9407_v59 }
 0x6a3   : > { %v5776_v7 = vpop.eup %5775  ;;  %v2780_v39 = vsub.f32 0.0, %v5178_v6  ;;  %v5180_v18 = vclamps-f32 %v12196_v0, 10.0  ;;  %v2861_v42 = vmul.f32 0.6931472, %v5772_v28  ;;  %v2864_v26 = vmul.f32 %v9271_v31, %v2863_v20 }
 0x6a4   : > { %5482 = vset.pattern.permute.xlu1 %v12078_v62  ;;  %v2812_v48 = vmul.f32 1.442695, %v2790_v9  ;;  %vm9436_vm15 = vcmp.lt.f32.partialorder %v2883_v33, 0.0004427343  ;;  %v2898_v41 = vmul.f32 -0.5, %v9353_v19  ;;  %5787 = vlog2.f32 %v2931_v40  ;;  %v9441_v30 = vpop.eup %5777  ;;  %v9448_v20 = vpop.permute.xlu0 %4434 }
 0x6a5   : > { %4446 = vperm.xlu1 %5482, %v9336_v22   ;;  %v2840_v29 = vsel %vm9414_vm13, %v2837_v14, %v2834_v36  ;;  %v2882_v62 = vmul.f32 %v9286_v10, %v2881_v3  ;;  %v2916_v6 = vmul.f32 -0.5, %v9367_v54  ;;  %v2967_v31 = vadd.f32 1.0, %v9425_v37  ;;  %v9450_v40 = vpop.permute.xlu1 %3958 }
 0x6a6   : > { %v2816_v46 = vmul.f32 1.442695, %v2792_v52  ;;  %v2794_v22 = vsub.f32 0.0, %v2778_v32  ;;  %v2879_v28 = vmul.f32 0.6931472, %v5776_v7  ;;  %5789 = vlog2.f32 %v2949_v13 }
 0x6a7   : > { %v2796_v9 = vsub.f32 0.0, %v2780_v39  ;;  %v2782_v33 = vsub.f32 0.0, %v5180_v18  ;;  %v2867_v21 = vsel %vm9421_vm14, %v2864_v26, %v2861_v42  ;;  %v2901_v36 = vand.u32 2147483647, %v9353_v19 }
 0x6a8   : > { %5791 = vpow2.f32 %v2812_v48  ;;  %v2841_v10 = vadd.f32 1.0, %v9441_v30  ;;  %v2899_v14 = vadd.f32 1.0, %v2898_v41  ;;  %v2976_v3 = vsub.f32 0.0, %v2840_v29  ;;  %v9460_v0 = vpop.permute.xlu0 %4443 }
 0x6a9   : > { %v2917_v52 = vadd.f32 1.0, %v2916_v6  ;;  %v2919_v32 = vand.u32 2147483647, %v9367_v54  ;;  %v2934_v7 = vmul.f32 -0.5, %v9397_v25  ;;  %5793 = vlog2.f32 %v2967_v31  ;;  %v9458_v13 = vpop.eup %5779  ;;  %12199 = vst [vmem:[#allocation94_spill] sm:$0xff] %v9460_v0  ;;  %v9466_v6 = vpop.permute.xlu1 %4419 }
 0x6aa   : > { %5795 = vpow2.f32 %v2816_v46  ;;  %v2820_v39 = vmul.f32 1.442695, %v2794_v22  ;;  %v2885_v55 = vsel %vm9436_vm15, %v2882_v62, %v2879_v28  ;;  %v2979_v18 = vsub.f32 0.0, %v2867_v21 }
 0x6ab   : > { %v5782_v42 = vpop.eup %5781  ;;  %v2824_v26 = vmul.f32 1.442695, %v2796_v9  ;;  %v2798_v48 = vsub.f32 0.0, %v2782_v33  ;;  %v2937_v41 = vand.u32 2147483647, %v9397_v25  ;;  %v2952_v29 = vmul.f32 -0.5, %v9407_v59 }
 0x6ac   : > { %5797 = vlog2.f32 %v2841_v10  ;;  %v2900_v31 = vmul.f32 %v9353_v19, %v2899_v14  ;;  %vm9469_vm11 = vcmp.lt.f32.partialorder %v2901_v36, 0.0004427343  ;;  %v9474_v61 = vadd.f32 %v2976_v3, %v9309_v11  ;;  %v4466_v14 = vpop.permute.xlu0 %4465 }
 0x6ad   : > { %v5784_v62 = vpop.eup %5783  ;;  %v2850_v22 = vadd.f32 1.0, %v9458_v13  ;;  %v2918_v28 = vmul.f32 %v9367_v54, %v2917_v52  ;;  %vm9478_vm1 = vcmp.lt.f32.partialorder %v2919_v32, 0.0004427343  ;;  %v2935_v33 = vadd.f32 1.0, %v2934_v7  ;;  %v12208_v32 = vld [vmem:[#allocation87_spill] sm:$0xff]  ;;  %v12209_v7 = vld [vmem:[#allocation21_spill] sm:$0xff] }
 0x6ae   : > { %12202 = vst [vmem:[#allocation72_spill] sm:$0xff] %v9474_v61  ;;  %5799 = vpow2.f32 %v2820_v39  ;;  %v2897_v21 = vmul.f32 0.6931472, %v5782_v42  ;;  %v2981_v19 = vsub.f32 0.0, %v2885_v55  ;;  %v9483_v36 = vadd.f32 %v2979_v18, %v9326_v60  ;;  %v12210_v39 = vld [vmem:[#allocation89_spill] sm:$0xff]  ;;  %v9497_v18 = vpop.permute.xlu1 %4483 }
 0x6af   : > { %v9485_v10 = vpop.eup %5785  ;;  %5801 = vpow2.f32 %v2824_v26  ;;  %v2828_v11 = vmul.f32 1.442695, %v2798_v48  ;;  %vm9487_vm3 = vcmp.lt.f32.partialorder %v2937_v41, 0.0004427343  ;;  %v2953_v54 = vadd.f32 1.0, %v2952_v29  ;;  %v12211_v41 = vld [vmem:[#allocation68_spill] sm:$0xff] }
 0x6b0   : > { %12205 = vst [vmem:[#allocation73_spill] sm:$0xff] %v9483_v36  ;;  %v2955_v52 = vand.u32 2147483647, %v9407_v59  ;;  %vm4448_vm4 = vcmp.eq.s32.totalorder %v12209_v7, %v12208_v32  ;;  %vm4051_vm5 = vcmp.eq.s32.totalorder %v12209_v7, %v12210_v39  ;;  %vm4512_vm6 = vcmp.eq.s32.totalorder %v12209_v7, %v4466_v14  ;;  %v12212_v29 = vld [vmem:[#allocation43_spill] sm:$0xff] }
 0x6b1   : > { %v2915_v60 = vmul.f32 0.6931472, %v5784_v62  ;;  %v5788_v55 = vpop.eup %5787  ;;  %vm4528_vm8 = vmor %vm4448_vm4, %vm4512_vm6  ;;  %5803 = vlog2.f32 %v2850_v22  ;;  %v2936_v42 = vmul.f32 %v9397_v25, %v2935_v33  ;;  %v2970_v26 = vmul.f32 -0.5, %v9425_v37  ;;  %v12225_v25 = vld [vmem:[#allocation92_spill] sm:$0xff] }
 0x6b2   : > { %v2973_v48 = vand.u32 2147483647, %v9425_v37  ;;  %vm3987_vm9 = vcmp.eq.s32.totalorder %v12209_v7, %v12211_v41  ;;  %v4544_v32 = vsel %vm4528_vm8, %v12212_v29, 0.0  ;;  %v2868_v36 = vadd.f32 1.0, %v9485_v10 }
 0x6b3   : > { %v2903_v62 = vsel %vm9469_vm11, %v2900_v31, %v2897_v21  ;;  %v5790_v14 = vpop.eup %5789  ;;  %4560 = vadd.xlane.f32.xlu0 %v4544_v32  ;;  %vm9511_vm7 = vmor %vm3987_vm9, %vm4051_vm5  ;;  %v2844_v22 = vmul.f32 -0.5, %v9441_v30  ;;  %v2954_v33 = vmul.f32 %v9407_v59, %v2953_v54  ;;  %vm9517_vm2 = vcmp.lt.f32.partialorder %v2955_v52, 0.0004427343  ;;  %v12218_v31 = vld [vmem:[#allocation14_spill] sm:$0xff] }
 0x6b4   : > { %v9522_v46 = vadd.f32 %v2981_v19, %v9348_v43  ;;  %5805 = vpow2.f32 %v2828_v11  ;;  %vm4052_vm0 = vcmp.eq.s32.totalorder %v12209_v7, %v12218_v31  ;;  %v2921_v21 = vsel %vm9478_vm1, %v2918_v28, %v2915_v60  ;;  %v12221_v19 = vld [vmem:[#allocation62_spill] sm:$0xff]  ;;  %v9537_v11 = vpop.permute.xlu1 %4025 }
 0x6b5   : > { %v2933_v39 = vmul.f32 0.6931472, %v5788_v55  ;;  %v9528_v32 = vpop.eup %5791  ;;  %v2847_v61 = vand.u32 2147483647, %v9441_v30  ;;  %v2971_v59 = vadd.f32 1.0, %v2970_v26  ;;  %v2983_v52 = vsub.f32 0.0, %v2903_v62 }
 0x6b6   : > { %12217 = vst [vmem:[#allocation74_spill] sm:$0xff] %v9522_v46  ;;  %vm9531_vm10 = vcmp.lt.f32.partialorder %v2973_v48, 0.0004427343  ;;  %v5794_v43 = vpop.eup %5793  ;;  %vm3988_vm12 = vcmp.eq.s32.totalorder %v12209_v7, %v12221_v19  ;;  %v12222_v46 = vld [vmem:[#allocation44_spill] sm:$0xff]  ;;  %5807 = vlog2.f32 %v2868_v36  ;;  %v2951_v9 = vmul.f32 0.6931472, %v5790_v14 }
 0x6b7   : > { %v4083_v28 = vsel %vm9511_vm7, %v12222_v46, 0.0  ;;  %v9542_v60 = vpop.eup %5795  ;;  %vm9547_vm13 = vmor %vm3988_vm12, %vm4052_vm0  ;;  %v2845_v26 = vadd.f32 1.0, %v2844_v22  ;;  %v2853_v48 = vmul.f32 -0.5, %v9458_v13  ;;  %v2871_v62 = vmul.f32 -0.5, %v9485_v10 }
 0x6b8   : > { %4102 = vadd.xlane.f32.xlu0 %v4083_v28  ;;  %v2985_v19 = vsub.f32 0.0, %v2921_v21  ;;  %vm3989_vm14 = vcmp.eq.s32.totalorder %v12209_v7, %v12225_v25  ;;  %vm4053_vm15 = vcmp.eq.s32.totalorder %v12209_v7, %v9288_v53  ;;  %v2856_v36 = vand.u32 2147483647, %v9458_v13  ;;  %v12227_v21 = vld [vmem:[#allocation47_spill] sm:$0xff] }
 0x6b9   : > { %v2939_v14 = vsel %vm9487_vm3, %v2936_v42, %v2933_v39  ;;  %v5798_v31 = vpop.eup %5797  ;;  %v2886_v28 = vadd.f32 1.0, %v9528_v32  ;;  %v2969_v22 = vmul.f32 0.6931472, %v5794_v43  ;;  %v2972_v0 = vmul.f32 %v9425_v37, %v2971_v59  ;;  %vm9577_vm1 = vmor %vm3989_vm14, %vm4053_vm15 }
 0x6ba   : > { %v9563_v56 = vadd.f32 %v2983_v52, %v9356_v50  ;;  %v4084_v25 = vsel %vm9547_vm13, %v12227_v21, 0.0  ;;  %vm9568_vm11 = vcmp.lt.f32.partialorder %v2847_v61, 0.0004427343  ;;  %v2889_v3 = vmul.f32 -0.5, %v9528_v32  ;;  %v9581_v50 = vpop.permute.xlu1 %4422 }
 0x6bb   : > { %v2957_v42 = vsel %vm9517_vm2, %v2954_v33, %v2951_v9  ;;  %v9575_v39 = vpop.eup %5799  ;;  %v2846_v59 = vmul.f32 %v9441_v30, %v2845_v26  ;;  %v2854_v61 = vadd.f32 1.0, %v2853_v48  ;;  %v2872_v52 = vadd.f32 1.0, %v2871_v62 }
 0x6bc   : > { %12226 = vst [vmem:[#allocation95_spill] sm:$0xff] %v9563_v56  ;;  %4104 = vadd.xlane.f32.xlu0 %v4084_v25  ;;  %v2987_v43 = vsub.f32 0.0, %v2939_v14  ;;  %v9584_v55 = vpop.eup %5801  ;;  %vm4054_vm3 = vcmp.eq.s32.totalorder %v12209_v7, %v9399_v5  ;;  %v2843_v33 = vmul.f32 0.6931472, %v5798_v31  ;;  %vm9588_vm4 = vcmp.lt.f32.partialorder %v2856_v36, 0.0004427343 }
 0x6bd   : > { %v9593_v9 = vadd.f32 %v2985_v19, %v9371_v12  ;;  %v2874_v25 = vand.u32 2147483647, %v9485_v10  ;;  %5809 = vlog2.f32 %v2886_v28  ;;  %v2975_v30 = vsel %vm9531_vm10, %v2972_v0, %v2969_v22  ;;  %v12235_v5 = vld [vmem:[#allocation49_spill] sm:$0xff]  ;;  %v12239_v31 = vld [vmem:[#allocation67_spill] sm:$0xff]  ;;  %v12252_v12 = vld [vmem:[#allocation12_spill] sm:$0xff] }
 0x6be   : > { %v2989_v26 = vsub.f32 0.0, %v2957_v42  ;;  %v5804_v48 = vpop.eup %5803  ;;  %vm3990_vm5 = vcmp.eq.s32.totalorder %v12209_v7, %v9362_v17  ;;  %v4085_v62 = vsel %vm9577_vm1, %v12235_v5, 0.0  ;;  %v2890_v36 = vadd.f32 1.0, %v2889_v3  ;;  %v3965_v28 = vpop.permute.xlu1 %3964 }
 0x6bf   : > { %12234 = vst [vmem:[#allocation75_spill] sm:$0xff] %v9593_v9  ;;  %v2907_v14 = vmul.f32 -0.5, %v9542_v60  ;;  %vm9604_vm6 = vmor %vm3990_vm5, %vm4054_vm3  ;;  %v2855_v54 = vmul.f32 %v9458_v13, %v2854_v61  ;;  %v9610_v0 = vmul.f32 %v9485_v10, %v2872_v52  ;;  %v2904_v19 = vadd.f32 1.0, %v9542_v60  ;;  %v12240_v10 = vld [vmem:[#allocation84_spill] sm:$0xff]  ;;  %v12243_v52 = vld [vmem:[#allocation46_spill] sm:$0xff] }
 0x6c0   : > { %4106 = vadd.xlane.f32.xlu0 %v4085_v62  ;;  %v9614_v17 = vadd.f32 %v2987_v43, %v9386_v57  ;;  %vm4055_vm8 = vcmp.eq.s32.totalorder %v12209_v7, %v12239_v31  ;;  %vm3991_vm9 = vcmp.eq.s32.totalorder %v12209_v7, %v9450_v40  ;;  %v2849_v22 = vsel %vm9568_vm11, %v2846_v59, %v2843_v33 }
 0x6c1   : > { %v2991_v3 = vsub.f32 0.0, %v2975_v30  ;;  %v9622_v13 = vpop.eup %5805  ;;  %vm4048_vm7 = vcmp.eq.s32.totalorder %v12209_v7, %v12240_v10  ;;  %v2852_v42 = vmul.f32 0.6931472, %v5804_v48  ;;  %vm9626_vm2 = vcmp.lt.f32.partialorder %v2874_v25, 0.0004427343  ;;  %v12245_v25 = vld [vmem:[#allocation66_spill] sm:$0xff]  ;;  %vm9649_vm10 = vmor %vm3991_vm9, %vm4055_vm8 }
 0x6c2   : > { %12238 = vst [vmem:[#allocation80_spill] sm:$0xff] %v9614_v17  ;;  %v2892_v37 = vand.u32 2147483647, %v9528_v32  ;;  %v2925_v61 = vmul.f32 -0.5, %v9575_v39  ;;  %v4086_v53 = vsel %vm9604_vm6, %v12243_v52, 0.0  ;;  %v9636_v59 = vmul.f32 %v9528_v32, %v2890_v36  ;;  %v12251_v36 = vld [vmem:[#allocation116_spill] sm:$0xff] }
 0x6c3   : > { %v2908_v43 = vadd.f32 1.0, %v2907_v14  ;;  %v9639_v33 = vadd.f32 %v2989_v26, %v9391_v45  ;;  %v5808_v30 = vpop.eup %5807  ;;  %vm3984_vm0 = vcmp.eq.s32.totalorder %v12209_v7, %v12245_v25  ;;  %5811 = vlog2.f32 %v2904_v19  ;;  %v4029_v19 = vpop.permute.xlu1 %4028 }
 0x6c4   : > { %4108 = vadd.xlane.f32.xlu0 %v4086_v53  ;;  %v2977_v45 = vsub.f32 0.0, %v2849_v22  ;;  %vm3992_vm12 = vcmp.eq.s32.totalorder %v12209_v7, %v9230_v2  ;;  %vm4056_vm13 = vcmp.eq.s32.totalorder %v12209_v7, %v9537_v11  ;;  %vm9661_vm14 = vmor %vm3984_vm0, %vm4048_vm7  ;;  %v2922_v26 = vadd.f32 1.0, %v9575_v39  ;;  %v12253_v22 = vld [vmem:[#allocation48_spill] sm:$0xff] }
 0x6c5   : > { %12244 = vst [vmem:[#allocation81_spill] sm:$0xff] %v9639_v33  ;;  %v9667_v62 = vadd.f32 %v2991_v3, %v9412_v8  ;;  %v5182_v14 = vclamps-f32 %v12251_v36, 10.0  ;;  %vm4050_vm15 = vcmp.eq.s32.totalorder %v12209_v7, %v12252_v12  ;;  %v2858_v11 = vsel %vm9588_vm4, %v2855_v54, %v2852_v42  ;;  %v12254_v3 = vld [vmem:[#allocation55_spill] sm:$0xff]  ;;  %vm9686_vm1 = vmor %vm3992_vm12, %vm4056_vm13  ;;  %v12261_v36 = vld [vmem:[#allocation88_spill] sm:$0xff] }
 0x6c6   : > { %v2926_v31 = vadd.f32 1.0, %v2925_v61  ;;  %v4087_v10 = vsel %vm9649_vm10, %v12253_v22, 0.0  ;;  %v2870_v53 = vmul.f32 0.6931472, %v5808_v30  ;;  %v9678_v25 = vmul.f32 %v9542_v60, %v2908_v43  ;;  %v12258_v43 = vld [vmem:[#allocation117_spill] sm:$0xff]  ;;  %v12265_v8 = vld [vmem:[#allocation15_spill] sm:$0xff] }
 0x6c7   : > { %12250 = vst [vmem:[#allocation82_spill] sm:$0xff] %v9667_v62  ;;  %vm3986_vm11 = vcmp.eq.s32.totalorder %v12209_v7, %v12254_v3  ;;  %v4080_v54 = vsel %vm9661_vm14, %v12212_v29, 0.0  ;;  %v2943_v42 = vmul.f32 -0.5, %v9584_v55  ;;  %v9695_v61 = vadd.f32 %v2977_v45, %v9320_v47  ;;  %v9714_v12 = vpop.permute.xlu1 %4489  ;;  %v12277_v62 = vld [vmem:[#allocation91_spill] sm:$0xff] }
 0x6c8   : > { %4110 = vadd.xlane.f32.xlu0 %v4087_v10  ;;  %v5184_v30 = vclamps-f32 %v12258_v43, 10.0  ;;  %vm4057_vm3 = vcmp.eq.s32.totalorder %v12209_v7, %v4029_v19  ;;  %vm9702_vm4 = vmor %vm3986_vm11, %vm4050_vm15  ;;  %v2940_v48 = vadd.f32 1.0, %v9584_v55  ;;  %v2978_v29 = vsub.f32 0.0, %v2858_v11  ;;  %v12262_v10 = vld [vmem:[#allocation118_spill] sm:$0xff]  ;;  %v12264_v11 = vld [vmem:[#allocation119_spill] sm:$0xff] }
 0x6c9   : > { %12257 = vst [vmem:[#allocation96_spill] sm:$0xff] %v9695_v61  ;;  %4096 = vadd.xlane.f32.xlu1 %v4080_v54  ;;  %v3232_v40 = vsub.f32 0.0, %v5182_v14  ;;  %vm4513_vm5 = vcmp.eq.s32.totalorder %v12209_v7, %v12261_v36  ;;  %5813 = vlog2.f32 %v2922_v26  ;;  %v9710_v47 = vmul.f32 %v9575_v39, %v2926_v31  ;;  %v12263_v54 = vld [vmem:[#allocation51_spill] sm:$0xff]  ;;  %v12279_v31 = vld [vmem:[#allocation18_spill] sm:$0xff] }
 0x6ca   : > { %v5810_v45 = vpop.eup %5809  ;;  %v5185_v3 = vclamps-f32 %v12262_v10, 10.0  ;;  %vm3993_vm6 = vcmp.eq.s32.totalorder %v12209_v7, %v3965_v28  ;;  %v4088_v43 = vsel %vm9686_vm1, %v12263_v54, 0.0  ;;  %v2876_v14 = vsel %vm9626_vm2, %v9610_v0, %v2870_v53  ;;  %v12268_v28 = vld [vmem:[#allocation42_spill] sm:$0xff] }
 0x6cb   : > { %v5187_v26 = vclamps-f32 %v12264_v11, 10.0  ;;  %vm4449_vm8 = vcmp.eq.s32.totalorder %v12209_v7, %v12265_v8  ;;  %vm9727_vm9 = vmor %vm3993_vm6, %vm4057_vm3  ;;  %v4082_v41 = vsel %vm9702_vm4, %v12268_v28, 0.0  ;;  %v2944_v10 = vadd.f32 1.0, %v2943_v42  ;;  %v12274_v42 = vld [vmem:[#allocation120_spill] sm:$0xff] }
 0x6cc   : > { %4112 = vadd.xlane.f32.xlu0 %v4088_v43  ;;  %v3234_v32 = vsub.f32 0.0, %v5184_v30  ;;  %vm9737_vm7 = vmor %vm4449_vm8, %vm4513_vm5  ;;  %vm9741_vm2 = vcmp.lt.f32.partialorder %v2892_v37, 0.0004427343  ;;  %5815 = vlog2.f32 %v2940_v48  ;;  %v9747_v53 = vadd.f32 %v2978_v29, %v9323_v23  ;;  %v12275_v43 = vld [vmem:[#allocation121_spill] sm:$0xff]  ;;  %v3968_v23 = vpop.permute.xlu1 %3967 }
 0x6cd   : > { %4100 = vadd.xlane.f32.xlu1 %v4082_v41  ;;  %v3248_v8 = vsub.f32 0.0, %v3232_v40  ;;  %v5183_v30 = vclamps-f32 %v12274_v42, 10.0  ;;  %vm4450_vm0 = vcmp.eq.s32.totalorder %v12209_v7, %v9345_v58  ;;  %v2980_v2 = vsub.f32 0.0, %v2876_v14  ;;  %v12276_v37 = vld [vmem:[#allocation53_spill] sm:$0xff]  ;;  %v12282_v58 = vld [vmem:[#allocation122_spill] sm:$0xff] }
 0x6ce   : > { %12273 = vst [vmem:[#allocation97_spill] sm:$0xff] %v9747_v53  ;;  %v3235_v36 = vsub.f32 0.0, %v5185_v3  ;;  %v5189_v11 = vclamps-f32 %v12275_v43, 10.0  ;;  %v4089_v41 = vsel %vm9727_vm9, %v12276_v37, 0.0  ;;  %v9756_v48 = vmul.f32 0.6931472, %v5810_v45 }
 0x6cf   : > { %v3237_v19 = vsub.f32 0.0, %v5187_v26  ;;  %vm4514_vm10 = vcmp.eq.s32.totalorder %v12209_v7, %v12277_v62  ;;  %v12278_v29 = vld [vmem:[#allocation45_spill] sm:$0xff]  ;;  %v9764_v3 = vmul.f32 %v9584_v55, %v2944_v10  ;;  %v3250_v42 = vsub.f32 0.0, %v3234_v32 }
 0x6d0   : > { %4114 = vadd.xlane.f32.xlu0 %v4089_v41  ;;  %v4545_v40 = vsel %vm9737_vm7, %v12278_v29, 0.0  ;;  %v9766_v14 = vpop.eup %5811  ;;  %vm4058_vm12 = vcmp.eq.s32.totalorder %v12209_v7, %v12279_v31  ;;  %vm9773_vm13 = vmor %vm4450_vm0, %vm4514_vm10  ;;  %vm3994_vm14 = vcmp.eq.s32.totalorder %v12209_v7, %v3968_v23  ;;  %v2958_v45 = vadd.f32 1.0, %v9622_v13  ;;  %v4478_v29 = vpop.permute.xlu0 %4477  ;;  %v12283_v31 = vld [vmem:[#allocation50_spill] sm:$0xff] }
 0x6d1   : > { %4562 = vadd.xlane.f32.xlu1 %v4545_v40  ;;  %v3264_v26 = vmul.f32 1.442695, %v3248_v8  ;;  %v3233_v10 = vsub.f32 0.0, %v5183_v30  ;;  %vm4451_vm15 = vcmp.eq.s32.totalorder %v12209_v7, %v9378_v15  ;;  %vm4074_vm11 = vmor %vm3994_vm14, %vm4058_vm12  ;;  %v2961_v32 = vmul.f32 -0.5, %v9622_v13  ;;  %v12284_v40 = vld [vmem:[#allocation123_spill] sm:$0xff] }
 0x6d2   : > { %v3251_v0 = vsub.f32 0.0, %v3235_v36  ;;  %v3239_v43 = vsub.f32 0.0, %v5189_v11  ;;  %v5186_v41 = vclamps-f32 %v12282_v58, 10.0  ;;  %v4090_v33 = vsel %vm4074_vm11, %v12283_v31, 0.0  ;;  %v12289_v30 = vld [vmem:[#allocation39_spill] sm:$0xff] }
 0x6d3   : > { %v3253_v17 = vsub.f32 0.0, %v3237_v19  ;;  %vm4515_vm1 = vcmp.eq.s32.totalorder %v12209_v7, %v9228_v38  ;;  %v4546_v8 = vsel %vm9773_vm13, %v12268_v28, 0.0  ;;  %v3268_v23 = vmul.f32 1.442695, %v3250_v42  ;;  %v9798_v19 = vpop.permute.xlu1 %4428 }
 0x6d4   : > { %4116 = vadd.xlane.f32.xlu0 %v4090_v33  ;;  %v5191_v36 = vclamps-f32 %v12284_v40, 10.0  ;;  %vm9794_vm3 = vmor %vm4451_vm15, %vm4515_vm1  ;;  %5817 = vlog2.f32 %v2958_v45  ;;  %v9801_v38 = vadd.f32 %v2980_v2, %v9343_v35  ;;  %v3249_v33 = vsub.f32 0.0, %v3233_v10  ;;  %v12288_v40 = vld [vmem:[#allocation124_spill] sm:$0xff] }
 0x6d5   : > { %4564 = vadd.xlane.f32.xlu1 %v4546_v8  ;;  %5819 = vpow2.f32 %v3264_v26  ;;  %vm4516_vm4 = vcmp.eq.s32.totalorder %v12209_v7, %v4478_v29  ;;  %v2894_v15 = vsel %vm9741_vm2, %v9636_v59, %v9756_v48  ;;  %v3270_v42 = vmul.f32 1.442695, %v3251_v0  ;;  %v12290_v59 = vld [vmem:[#allocation38_spill] sm:$0xff] }
 0x6d6   : > { %12287 = vst [vmem:[#allocation83_spill] sm:$0xff] %v9801_v38  ;;  %v9808_v28 = vpop.eup %5813  ;;  %v3255_v62 = vsub.f32 0.0, %v3239_v43  ;;  %v3236_v58 = vsub.f32 0.0, %v5186_v41  ;;  %v5188_v8 = vclamps-f32 %v12288_v40, 10.0  ;;  %v3274_v45 = vmul.f32 1.442695, %v3253_v17 }
 0x6d7   : > { %v5193_v35 = vclamps-f32 %v12289_v30, 10.0  ;;  %vm4452_vm5 = vcmp.eq.s32.totalorder %v12209_v7, %v9317_v24  ;;  %v4547_v2 = vsel %vm9794_vm3, %v12222_v46, 0.0  ;;  %5821 = vpow2.f32 %v3268_v23  ;;  %v12293_v43 = vld [vmem:[#allocation126_spill] sm:$0xff]  ;;  %v9829_v24 = vpop.permute.xlu1 %4492 }
 0x6d8   : > { %v3241_v57 = vsub.f32 0.0, %v5191_v36  ;;  %v5190_v48 = vclamps-f32 %v12290_v59, 10.0  ;;  %vm9818_vm6 = vmor %vm4452_vm5, %vm4516_vm4  ;;  %v2962_v10 = vadd.f32 1.0, %v2961_v32  ;;  %v3266_v0 = vmul.f32 1.442695, %v3249_v33 }
 0x6d9   : > { %4566 = vadd.xlane.f32.xlu1 %v4547_v2  ;;  %v9822_v17 = vpop.eup %5815  ;;  %v5195_v41 = vclamps-f32 %v12293_v43, 10.0  ;;  %vm4453_vm8 = vcmp.eq.s32.totalorder %v12209_v7, %v9405_v27  ;;  %vm4517_vm9 = vcmp.eq.s32.totalorder %v12209_v7, %v9427_v44  ;;  %5823 = vpow2.f32 %v3270_v42  ;;  %v12297_v2 = vld [vmem:[#allocation125_spill] sm:$0xff]  ;;  %v4487_v27 = vpop.permute.xlu0 %4486 }
 0x6da   : > { %v3278_v46 = vmul.f32 1.442695, %v3255_v62  ;;  %v3252_v29 = vsub.f32 0.0, %v3236_v58  ;;  %v3238_v30 = vsub.f32 0.0, %v5188_v8  ;;  %v12294_v23 = vand.u32 2147483647, %v9542_v60  ;;  %vm9844_vm2 = vmor %vm4453_vm8, %vm4517_vm9 }
 0x6db   : > { %5825 = vpow2.f32 %v3274_v45  ;;  %v3243_v36 = vsub.f32 0.0, %v5193_v35  ;;  %v4548_v11 = vsel %vm9818_vm6, %v12227_v21, 0.0  ;;  %v2982_v33 = vsub.f32 0.0, %v2894_v15 }
 0x6dc   : > { %vm9833_vm7 = vcmp.lt.f32.partialorder %v12294_v23, 0.0004427343  ;;  %v3257_v44 = vsub.f32 0.0, %v3241_v57  ;;  %v3240_v40 = vsub.f32 0.0, %v5190_v48  ;;  %v5192_v42 = vclamps-f32 %v12297_v2, 10.0  ;;  %v4035_v45 = vpop.permute.xlu1 %4034  ;;  %v12310_v23 = vld [vmem:[#allocation31_spill] sm:$0xff] }
 0x6dd   : > { %vm4518_vm0 = vcmp.eq.s32.totalorder %v12209_v7, %v9497_v18  ;;  %4568 = vadd.xlane.f32.xlu1 %v4548_v11  ;;  %5827 = vpow2.f32 %v3266_v0  ;;  %v3245_v62 = vsub.f32 0.0, %v5195_v41  ;;  %v2906_v21 = vmul.f32 0.6931472, %v9766_v14 }
 0x6de   : > { %v9852_v15 = vmul.f32 %v9622_v13, %v2962_v10  ;;  %5829 = vpow2.f32 %v3278_v46  ;;  %v3272_v58 = vmul.f32 1.442695, %v3252_v29  ;;  %v3254_v8 = vsub.f32 0.0, %v3238_v30  ;;  %v12305_v10 = vld [vmem:[#allocation27_spill] sm:$0xff] }
 0x6df   : > { %vm4454_vm10 = vcmp.eq.s32.totalorder %v12209_v7, %v9466_v6  ;;  %v12300_v35 = vand.u32 2147483647, %v9575_v39  ;;  %v3259_v59 = vsub.f32 0.0, %v3243_v36  ;;  %vm3995_vm13 = vcmp.eq.s32.totalorder %v12209_v7, %v9278_v49 }
 0x6e0   : > { %vm9867_vm14 = vmor %vm4454_vm10, %vm4518_vm0  ;;  %vm4059_vm15 = vcmp.eq.s32.totalorder %v12209_v7, %v4035_v45  ;;  %v4549_v6 = vsel %vm9844_vm2, %v12235_v5, 0.0  ;;  %v3282_v39 = vmul.f32 1.442695, %v3257_v44  ;;  %v3256_v48 = vsub.f32 0.0, %v3240_v40  ;;  %v12309_v5 = vld [vmem:[#allocation52_spill] sm:$0xff] }
 0x6e1   : > { %vm9858_vm12 = vcmp.lt.f32.partialorder %v12300_v35, 0.0004427343  ;;  %v3242_v26 = vsub.f32 0.0, %v5192_v42  ;;  %v5197_v0 = vclamps-f32 %v12305_v10, 10.0  ;;  %vm4075_vm11 = vmor %vm3995_vm13, %vm4059_vm15  ;;  %4570 = vadd.xlane.f32.xlu1 %v4549_v6  ;;  %v12306_v49 = vand.u32 2147483647, %v9584_v55  ;;  %v5818_v43 = vpop.eup %5817  ;;  %v9892_v44 = vpop.permute.xlu1 %4431 }
 0x6e2   : > { %v3261_v41 = vsub.f32 0.0, %v3245_v62  ;;  %vm4455_vm3 = vcmp.eq.s32.totalorder %v12209_v7, %v9581_v50  ;;  %vm4519_vm4 = vcmp.eq.s32.totalorder %v12209_v7, %v4487_v27  ;;  %v4091_v46 = vsel %vm4075_vm11, %v12309_v5, 0.0  ;;  %v9886_v29 = vpop.eup %5819  ;;  %v12317_v27 = vld [vmem:[#allocation40_spill] sm:$0xff] }
 0x6e3   : > { %vm9878_vm1 = vcmp.lt.f32.partialorder %v12306_v49, 0.0004427343  ;;  %5831 = vpow2.f32 %v3272_v58  ;;  %v3276_v30 = vmul.f32 1.442695, %v3254_v8  ;;  %v5194_v36 = vclamps-f32 %v12310_v23, 10.0  ;;  %4118 = vadd.xlane.f32.xlu0 %v4091_v46  ;;  %vm9912_vm6 = vmor %vm4455_vm3, %vm4519_vm4 }
 0x6e4   : > { %v9890_v55 = vadd.f32 %v2982_v33, %v9351_v34  ;;  %v3286_v11 = vmul.f32 1.442695, %v3259_v59  ;;  %v4550_v40 = vsel %vm9867_vm14, %v12243_v52, 0.0  ;;  %v2912_v2 = vsel %vm9833_vm7, %v9678_v25, %v2906_v21 }
 0x6e5   : > { %v2924_v42 = vmul.f32 0.6931472, %v9808_v28  ;;  %v12312_v60 = vand.u32 2147483647, %v9622_v13  ;;  %v3280_v34 = vmul.f32 1.442695, %v3256_v48  ;;  %4572 = vadd.xlane.f32.xlu1 %v4550_v40  ;;  %v9917_v13 = vpop.eup %5821  ;;  %5833 = vpow2.f32 %v3282_v39 }
 0x6e6   : > { %12311 = vst [vmem:[#allocation8_spill] sm:$0xff] %v9890_v55  ;;  %v3258_v33 = vsub.f32 0.0, %v3242_v26  ;;  %v3247_v58 = vsub.f32 0.0, %v5197_v0  ;;  %v2942_v25 = vmul.f32 0.6931472, %v9822_v17  ;;  %vm4456_vm8 = vcmp.eq.s32.totalorder %v12209_v7, %v9429_v16  ;;  %v9924_v8 = vpop.eup %5823  ;;  %v3974_v39 = vpop.permute.xlu1 %3973 }
 0x6e7   : > { %vm9903_vm5 = vcmp.lt.f32.partialorder %v12312_v60, 0.0004427343  ;;  %v3290_v28 = vmul.f32 1.442695, %v3261_v41  ;;  %vm4520_vm9 = vcmp.eq.s32.totalorder %v12209_v7, %v9714_v12  ;;  %5835 = vpow2.f32 %v3276_v30  ;;  %v4496_v41 = vpop.permute.xlu0 %4495 }
 0x6e8   : > { %v3244_v32 = vsub.f32 0.0, %v5194_v36  ;;  %v2984_v50 = vsub.f32 0.0, %v2912_v2  ;;  %v3296_v21 = vadd.f32 1.0, %v9886_v29  ;;  %5837 = vpow2.f32 %v3286_v11  ;;  %v9933_v59 = vpop.eup %5825  ;;  %vm9938_vm7 = vmor %vm4456_vm8, %vm4520_vm9 }
 0x6e9   : > { %v5196_v17 = vclamps-f32 %v12317_v27, 10.0  ;;  %v4551_v45 = vsel %vm9912_vm6, %v12253_v22, 0.0  ;;  %v2930_v35 = vsel %vm9858_vm12, %v9710_v47, %v2924_v42  ;;  %5839 = vpow2.f32 %v3280_v34  ;;  %v12325_v42 = vld [vmem:[#allocation33_spill] sm:$0xff] }
 0x6ea   : > { %v3284_v12 = vmul.f32 1.442695, %v3258_v33  ;;  %v3263_v14 = vsub.f32 0.0, %v3247_v58  ;;  %4574 = vadd.xlane.f32.xlu1 %v4551_v45  ;;  %v2960_v48 = vmul.f32 0.6931472, %v5818_v43  ;;  %5841 = vpow2.f32 %v3290_v28  ;;  %v9948_v57 = vpop.eup %5827 }
 0x6eb   : > { %vm4521_vm2 = vcmp.eq.s32.totalorder %v12209_v7, %v9829_v24  ;;  %v2948_v22 = vsel %vm9878_vm1, %v9764_v3, %v2942_v25  ;;  %v3314_v47 = vadd.f32 1.0, %v9917_v13  ;;  %v3260_v16 = vsub.f32 0.0, %v3244_v32  ;;  %v9953_v0 = vpop.eup %5829 }
 0x6ec   : > { %v2986_v26 = vsub.f32 0.0, %v2930_v35  ;;  %v9951_v10 = vadd.f32 %v2984_v50, %v9359_v4  ;;  %5843 = vlog2.f32 %v3296_v21  ;;  %v3246_v49 = vsub.f32 0.0, %v5196_v17 }
 0x6ed   : > { %vm4457_vm0 = vcmp.eq.s32.totalorder %v12209_v7, %v9798_v19  ;;  %v4552_v3 = vsel %vm9938_vm7, %v12263_v54, 0.0  ;;  %v3323_v18 = vadd.f32 1.0, %v9924_v8  ;;  %5845 = vpow2.f32 %v3284_v12  ;;  %v4038_v54 = vpop.permute.xlu1 %4037 }
 0x6ee   : > { %12320 = vst [vmem:[#allocation98_spill] sm:$0xff] %v9951_v10  ;;  %v3294_v43 = vmul.f32 1.442695, %v3263_v14  ;;  %vm9964_vm10 = vmor %vm4457_vm0, %vm4521_vm2  ;;  %4576 = vadd.xlane.f32.xlu1 %v4552_v3  ;;  %v2966_v19 = vsel %vm9903_vm5, %v9852_v15, %v2960_v48  ;;  %v2988_v46 = vsub.f32 0.0, %v2948_v22  ;;  %vm4522_vm12 = vcmp.eq.s32.totalorder %v12209_v7, %v4496_v41  ;;  %v12333_v3 = vld [vmem:[#allocation90_spill] sm:$0xff] }
 0x6ef   : > { %vm4458_vm13 = vcmp.eq.s32.totalorder %v12209_v7, %v9892_v44  ;;  %5847 = vlog2.f32 %v3314_v47  ;;  %v3341_v24 = vadd.f32 1.0, %v9933_v59  ;;  %v3288_v30 = vmul.f32 1.442695, %v3260_v16 }
 0x6f0   : > { %vm3996_vm14 = vcmp.eq.s32.totalorder %v12209_v7, %v3974_v39  ;;  %vm4060_vm15 = vcmp.eq.s32.totalorder %v12209_v7, %v4038_v54  ;;  %v3299_v23 = vmul.f32 -0.5, %v9886_v29  ;;  %v9978_v36 = vpop.eup %5831  ;;  %v3262_v15 = vsub.f32 0.0, %v3246_v49  ;;  %vm9988_vm1 = vmor %vm4458_vm13, %vm4522_vm12 }
 0x6f1   : > { %vm4076_vm11 = vmor %vm3996_vm14, %vm4060_vm15  ;;  %v4553_v11 = vsel %vm9964_vm10, %v12276_v37, 0.0  ;;  %v2990_v40 = vsub.f32 0.0, %v2966_v19  ;;  %5849 = vlog2.f32 %v3323_v18  ;;  %v3302_v62 = vand.u32 2147483647, %v9886_v29  ;;  %v4499_v52 = vpop.permute.xlu1 %4498 }
 0x6f2   : > { %5851 = vpow2.f32 %v3294_v43  ;;  %4578 = vadd.xlane.f32.xlu1 %v4553_v11  ;;  %v4092_v60 = vsel %vm4076_vm11, %v12325_v42, 0.0  ;;  %v3305_v34 = vadd.f32 1.0, %v9948_v57  ;;  %v3317_v37 = vmul.f32 -0.5, %v9917_v13  ;;  %v9998_v44 = vpop.eup %5833 }
 0x6f3   : > { %4120 = vadd.xlane.f32.xlu0 %v4092_v60  ;;  %v3326_v33 = vmul.f32 -0.5, %v9924_v8  ;;  %5853 = vlog2.f32 %v3341_v24  ;;  %v3359_v58 = vadd.f32 1.0, %v9953_v0  ;;  %v10001_v25 = vadd.f32 %v2986_v26, %v9374_v51  ;;  %v12336_v24 = vld [vmem:[#allocation28_spill] sm:$0xff] }
 0x6f4   : > { %5855 = vpow2.f32 %v3288_v30  ;;  %v3300_v28 = vadd.f32 1.0, %v3299_v23  ;;  %v3332_v32 = vadd.f32 1.0, %v9978_v36  ;;  %v10004_v50 = vpop.eup %5835  ;;  %v3292_v21 = vmul.f32 1.442695, %v3262_v15 }
 0x6f5   : > { %12326 = vst [vmem:[#allocation37_spill] sm:$0xff] %v10001_v25  ;;  %vm4459_vm3 = vcmp.eq.s32.totalorder %v12209_v7, %v9448_v20  ;;  %vm4523_vm4 = vcmp.eq.s32.totalorder %v12209_v7, %v4499_v52  ;;  %v4554_v27 = vsel %vm9988_vm1, %v12283_v31, 0.0  ;;  %v10012_v17 = vpop.eup %5837  ;;  %v10019_v45 = vadd.f32 %v2988_v46, %v9382_v1  ;;  %v3977_v47 = vpop.permute.xlu1 %3976 }
 0x6f6   : > { %vm10014_vm5 = vmor %vm4459_vm3, %vm4523_vm4  ;;  %4580 = vadd.xlane.f32.xlu1 %v4554_v27  ;;  %v10022_v35 = vadd.f32 %v2990_v40, %v9394_v63  ;;  %5857 = vlog2.f32 %v3305_v34  ;;  %v3320_v20 = vand.u32 2147483647, %v9917_v13  ;;  %v10025_v12 = vpop.eup %5839  ;;  %vm10027_vm6 = vcmp.lt.f32.partialorder %v3302_v62, 0.0004427343 }
 0x6f7   : > { %12329 = vst [vmem:[#allocation30_spill] sm:$0xff] %v10019_v45  ;;  %v3318_v14 = vadd.f32 1.0, %v3317_v37  ;;  %v3327_v6 = vadd.f32 1.0, %v3326_v33  ;;  %5859 = vlog2.f32 %v3359_v58  ;;  %v10031_v39 = vpop.eup %5841  ;;  %v3308_v1 = vmul.f32 -0.5, %v9948_v57 }
 0x6f8   : > { %12330 = vst [vmem:[#allocation99_spill] sm:$0xff] %v10022_v35  ;;  %v3329_v48 = vand.u32 2147483647, %v9924_v8  ;;  %5861 = vlog2.f32 %v3332_v32  ;;  %v3344_v63 = vmul.f32 -0.5, %v9933_v59  ;;  %v4555_v16 = vsel %vm10014_vm5, %v12309_v5, 0.0 }
 0x6f9   : > { %v5844_v22 = vpop.eup %5843  ;;  %5863 = vpow2.f32 %v3292_v21  ;;  %v10040_v26 = vmul.f32 %v9886_v29, %v3300_v28  ;;  %v3350_v49 = vadd.f32 1.0, %v10004_v50  ;;  %vm4061_vm8 = vcmp.eq.s32.totalorder %v12209_v7, %v12333_v3 }
 0x6fa   : > { %vm3997_vm9 = vcmp.eq.s32.totalorder %v12209_v7, %v3977_v47  ;;  %4582 = vadd.xlane.f32.xlu1 %v4555_v16  ;;  %vm10046_vm7 = vcmp.lt.f32.partialorder %v3320_v20, 0.0004427343  ;;  %v3335_v43 = vmul.f32 -0.5, %v9978_v36  ;;  %v3362_v4 = vmul.f32 -0.5, %v9953_v0  ;;  %v10052_v5 = vpop.eup %5845  ;;  %v4438_v62 = vpop.permute.xlu1 %4437 }
 0x6fb   : > { %vm4077_vm2 = vmor %vm3997_vm9, %vm4061_vm8  ;;  %v10055_v29 = vmul.f32 %v9917_v13, %v3318_v14  ;;  %v10058_v41 = vmul.f32 %v9924_v8, %v3327_v6  ;;  %v3347_v19 = vand.u32 2147483647, %v9933_v59  ;;  %v3377_v46 = vadd.f32 1.0, %v9998_v44  ;;  %v12385_v6 = vld [vmem:[#allocation24_spill] sm:$0xff] }
 0x6fc   : > { %v5848_v54 = vpop.eup %5847  ;;  %v4093_v30 = vsel %vm4077_vm2, %v12336_v24, 0.0  ;;  %v10063_v23 = vmul.f32 0.6931472, %v5844_v22  ;;  %v3309_v15 = vadd.f32 1.0, %v3308_v1  ;;  %vm10065_vm0 = vcmp.lt.f32.partialorder %v3329_v48, 0.0004427343 }
 0x6fd   : > { %v3345_v40 = vadd.f32 1.0, %v3344_v63  ;;  %4122 = vadd.xlane.f32.xlu0 %v4093_v30  ;;  %v3311_v13 = vand.u32 2147483647, %v9948_v57  ;;  %5865 = vlog2.f32 %v3350_v49  ;;  %v3353_v8 = vmul.f32 -0.5, %v10004_v50 }
 0x6fe   : > { %v3368_v2 = vadd.f32 1.0, %v10025_v12  ;;  %v5850_v60 = vpop.eup %5849  ;;  %v3336_v34 = vadd.f32 1.0, %v3335_v43  ;;  %v3338_v37 = vand.u32 2147483647, %v9978_v36  ;;  %v3363_v33 = vadd.f32 1.0, %v3362_v4 }
 0x6ff   : > { %v3365_v58 = vand.u32 2147483647, %v9953_v0  ;;  %v10074_v52 = vpop.eup %5851  ;;  %v10076_v28 = vmul.f32 0.6931472, %v5848_v54  ;;  %v3371_v32 = vmul.f32 -0.5, %v10025_v12  ;;  %5867 = vlog2.f32 %v3377_v46  ;;  %v4502_v4 = vpop.permute.xlu1 %4501 }
 0x700   : > { %v3380_v21 = vmul.f32 -0.5, %v9998_v44  ;;  %v5854_v27 = vpop.eup %5853  ;;  %v10085_v20 = vmul.f32 %v9948_v57, %v3309_v15  ;;  %v10088_v14 = vmul.f32 %v9933_v59, %v3345_v40  ;;  %vm10090_vm10 = vcmp.lt.f32.partialorder %v3347_v19, 0.0004427343  ;;  %v12347_v15 = vld [vmem:[#allocation25_spill] sm:$0xff] }
 0x701   : > { %v10094_v1 = vpop.eup %5855  ;;  %vm10096_vm12 = vcmp.lt.f32.partialorder %v3311_v13, 0.0004427343  ;;  %v10100_v63 = vmul.f32 0.6931472, %v5850_v60  ;;  %v3354_v22 = vadd.f32 1.0, %v3353_v8  ;;  %5869 = vlog2.f32 %v3368_v2 }
 0x702   : > { %v3356_v47 = vand.u32 2147483647, %v10004_v50  ;;  %v10104_v57 = vmul.f32 %v9978_v36, %v3336_v34  ;;  %v10107_v59 = vmul.f32 %v9953_v0, %v3363_v33  ;;  %vm10109_vm13 = vcmp.lt.f32.partialorder %v3365_v58, 0.0004427343 }
 0x703   : > { %v3386_v49 = vadd.f32 1.0, %v10052_v5  ;;  %v3398_v3 = vmul.f32 -0.5, %v10012_v17  ;;  %v5858_v43 = vpop.eup %5857  ;;  %vm10119_vm14 = vcmp.lt.f32.partialorder %v3338_v37, 0.0004427343  ;;  %v10123_v0 = vmul.f32 0.6931472, %v5854_v27 }
 0x704   : > { %v3372_v46 = vadd.f32 1.0, %v3371_v32  ;;  %v3381_v54 = vadd.f32 1.0, %v3380_v21  ;;  %v5860_v30 = vpop.eup %5859  ;;  %v5199_v40 = vclamps-f32 %v12347_v15, 10.0  ;;  %vm4460_vm15 = vcmp.eq.s32.totalorder %v12209_v7, %v4438_v62  ;;  %v4044_v15 = vpop.permute.xlu1 %4043 }
 0x705   : > { %vm4524_vm11 = vcmp.eq.s32.totalorder %v12209_v7, %v4502_v4  ;;  %v3389_v13 = vmul.f32 -0.5, %v10052_v5  ;;  %v5862_v8 = vpop.eup %5861  ;;  %v10134_v60 = vmul.f32 %v10004_v50, %v3354_v22  ;;  %v3374_v34 = vand.u32 2147483647, %v10025_v12 }
 0x706   : > { %vm4540_vm1 = vmor %vm4460_vm15, %vm4524_vm11  ;;  %v3395_v37 = vadd.f32 1.0, %v10012_v17  ;;  %v10138_v33 = vpop.eup %5863  ;;  %v10141_v58 = vmul.f32 0.6931472, %v5858_v43  ;;  %5871 = vlog2.f32 %v3386_v49  ;;  %v3399_v32 = vadd.f32 1.0, %v3398_v3  ;;  %v12350_v3 = vld [vmem:[#allocation93_spill] sm:$0xff] }
 0x707   : > { %v4556_v62 = vsel %vm4540_vm1, %v12325_v42, 0.0  ;;  %v10143_v21 = vmul.f32 0.6931472, %v5860_v30  ;;  %v10146_v27 = vmul.f32 %v10025_v12, %v3372_v46  ;;  %v10149_v50 = vmul.f32 %v9998_v44, %v3381_v54  ;;  %v12351_v46 = vld [vmem:[#allocation22_spill] sm:$0xff] }
 0x708   : > { %4584 = vadd.xlane.f32.xlu1 %v4556_v62  ;;  %v3383_v22 = vand.u32 2147483647, %v9998_v44  ;;  %v3697_v4 = vsub.f32 0.0, %v5199_v40  ;;  %v10152_v2 = vmul.f32 0.6931472, %v5862_v8  ;;  %v3390_v12 = vadd.f32 1.0, %v3389_v13 }
 0x709   : > { %vm10158_vm3 = vcmp.lt.f32.partialorder %v3356_v47, 0.0004427343  ;;  %vm3998_vm4 = vcmp.eq.s32.totalorder %v12209_v7, %v12350_v3  ;;  %vm4062_vm5 = vcmp.eq.s32.totalorder %v12209_v7, %v4044_v15  ;;  %5873 = vlog2.f32 %v3395_v37  ;;  %v12352_v13 = vld [vmem:[#allocation29_spill] sm:$0xff]  ;;  %v4441_v47 = vpop.permute.xlu1 %4440 }
 0x70a   : > { %v3407_v44 = vmul.f32 -0.5, %v10094_v1  ;;  %v5866_v43 = vpop.eup %5865  ;;  %v5202_v54 = vclamps-f32 %v12351_v46, 10.0  ;;  %vm4078_vm8 = vmor %vm3998_vm4, %vm4062_vm5  ;;  %v3392_v30 = vand.u32 2147483647, %v10052_v5  ;;  %v10173_v40 = vmul.f32 %v10012_v17, %v3399_v32 }
 0x70b   : > { %v4094_v8 = vsel %vm4078_vm8, %v12352_v13, 0.0  ;;  %vm10180_vm9 = vcmp.lt.f32.partialorder %v3383_v22, 0.0004427343  ;;  %v3401_v15 = vand.u32 2147483647, %v10012_v17  ;;  %v3404_v3 = vadd.f32 1.0, %v10094_v1  ;;  %v4505_v17 = vpop.permute.xlu0 %4504 }
 0x70c   : > { %v5868_v46 = vpop.eup %5867  ;;  %v3713_v42 = vsub.f32 0.0, %v3697_v4  ;;  %4124 = vadd.xlane.f32.xlu0 %v4094_v8  ;;  %vm10190_vm2 = vcmp.lt.f32.partialorder %v3374_v34, 0.0004427343  ;;  %v10195_v22 = vmul.f32 %v10052_v5, %v3390_v12  ;;  %v3416_v37 = vmul.f32 -0.5, %v10031_v39  ;;  %v12357_v34 = vld [vmem:[#allocation54_spill] sm:$0xff]  ;;  %v12358_v5 = vld [vmem:[#allocation23_spill] sm:$0xff] }
 0x70d   : > { %v10198_v51 = vmul.f32 0.6931472, %v5866_v43  ;;  %v3408_v4 = vadd.f32 1.0, %v3407_v44  ;;  %v3413_v35 = vadd.f32 1.0, %v10031_v39  ;;  %v3700_v32 = vsub.f32 0.0, %v5202_v54  ;;  %v12359_v8 = vld [vmem:[#allocation11_spill] sm:$0xff] }
 0x70e   : > { %v5870_v45 = vpop.eup %5869  ;;  %v5204_v25 = vclamps-f32 %v12357_v34, 10.0  ;;  %vm4525_vm15 = vcmp.eq.s32.totalorder %v12209_v7, %v4505_v17  ;;  %vm4461_vm11 = vcmp.eq.s32.totalorder %v12209_v7, %v4441_v47  ;;  %v5206_v12 = vclamps-f32 %v12358_v5, 10.0 }
 0x70f   : > { %vm4541_vm1 = vmor %vm4461_vm11, %vm4525_vm15  ;;  %v10206_v9 = vmul.f32 0.6931472, %v5868_v46  ;;  %5875 = vlog2.f32 %v3404_v3  ;;  %v3730_v43 = vmul.f32 1.442695, %v3713_v42  ;;  %v5208_v10 = vclamps-f32 %v12359_v8, 10.0  ;;  %v4511_v36 = vpop.permute.xlu0 %4510 }
 0x710   : > { %v4557_v56 = vsel %vm4541_vm1, %v12336_v24, 0.0  ;;  %v3417_v54 = vadd.f32 1.0, %v3416_v37  ;;  %v10215_v17 = vmul.f32 0.6931472, %v5870_v45  ;;  %vm10217_vm4 = vcmp.lt.f32.partialorder %v3392_v30, 0.0004427343  ;;  %v3983_v24 = vpop.permute.xlu1 %3982 }
 0x711   : > { %4586 = vadd.xlane.f32.xlu1 %v4557_v56  ;;  %v3422_v3 = vadd.f32 1.0, %v10138_v33  ;;  %v3425_v42 = vmul.f32 -0.5, %v10138_v33  ;;  %v3716_v8 = vsub.f32 0.0, %v3700_v32  ;;  %v3702_v34 = vsub.f32 0.0, %v5204_v25  ;;  %v12363_v45 = vld [vmem:[#allocation60_spill] sm:$0xff] }
 0x712   : > { %v10224_v56 = vmul.f32 %v10094_v1, %v3408_v4  ;;  %v3431_v37 = vadd.f32 1.0, %v10074_v52  ;;  %v3704_v47 = vsub.f32 0.0, %v5206_v12  ;;  %v5210_v44 = vclamps-f32 %v12363_v45, 10.0 }
 0x713   : > { %v5872_v5 = vpop.eup %5871  ;;  %5877 = vlog2.f32 %v3413_v35  ;;  %v3434_v30 = vmul.f32 -0.5, %v10074_v52  ;;  %v3706_v55 = vsub.f32 0.0, %v5208_v10  ;;  %vm10233_vm5 = vcmp.lt.f32.partialorder %v3401_v15, 0.0004427343 }
 0x714   : > { %12362 = vst [vmem:[#allocation35_spill] sm:$0xff] %v10224_v56  ;;  %5879 = vpow2.f32 %v3730_v43  ;;  %v10238_v4 = vmul.f32 %v10031_v39, %v3417_v54  ;;  %v3376_v35 = vsel %vm10190_vm2, %v10146_v27, %v10215_v17  ;;  %v3426_v12 = vadd.f32 1.0, %v3425_v42 }
 0x715   : > { %5881 = vlog2.f32 %v3422_v3  ;;  %v3428_v10 = vand.u32 2147483647, %v10138_v33  ;;  %v3736_v45 = vmul.f32 1.442695, %v3716_v8  ;;  %v3718_v38 = vsub.f32 0.0, %v3702_v34  ;;  %v4047_v56 = vpop.permute.xlu1 %4046  ;;  %v12368_v8 = vld [vmem:[#allocation36_spill] sm:$0xff] }
 0x716   : > { %12366 = vst [vmem:[#allocation34_spill] sm:$0xff] %v10238_v4  ;;  %v5874_v43 = vpop.eup %5873  ;;  %v3388_v25 = vmul.f32 0.6931472, %v5872_v5  ;;  %5883 = vlog2.f32 %v3431_v37  ;;  %v3720_v15 = vsub.f32 0.0, %v3704_v47  ;;  %v3708_v53 = vsub.f32 0.0, %v5210_v44 }
 0x717   : > { %v3435_v61 = vadd.f32 1.0, %v3434_v30  ;;  %v3437_v54 = vand.u32 2147483647, %v10074_v52  ;;  %v3722_v4 = vsub.f32 0.0, %v3706_v55  ;;  %vm3999_vm8 = vcmp.eq.s32.totalorder %v12209_v7, %v3983_v24  ;;  %v12371_v30 = vld [vmem:[#allocation64_spill] sm:$0xff] }
 0x718   : > { %vm4063_vm15 = vcmp.eq.s32.totalorder %v12209_v7, %v4047_v56  ;;  %v12367_v3 = vsel %vm10027_vm6, %v10040_v26, %v10063_v23  ;;  %v5198_v34 = vclamps-f32 %v12368_v8, 10.0  ;;  %v3397_v47 = vmul.f32 0.6931472, %v5874_v43  ;;  %v12370_v56 = vld [vmem:[#allocation32_spill] sm:$0xff] }
 0x719   : > { %v3440_v42 = vsub.f32 0.0, %v12367_v3  ;;  %vm4079_vm11 = vmor %vm3999_vm8, %vm4063_vm15  ;;  %v10255_v44 = vmul.f32 %v10138_v33, %v3426_v12  ;;  %v12369_v55 = vsel %vm10096_vm12, %v10085_v20, %v10141_v58  ;;  %5885 = vpow2.f32 %v3736_v45  ;;  %v12372_v58 = vld [vmem:[#allocation61_spill] sm:$0xff] }
 0x71a   : > { %v10262_v24 = vsub.f32 0.0, %v12369_v55  ;;  %v3740_v31 = vmul.f32 1.442695, %v3718_v38  ;;  %v4095_v37 = vsel %vm4079_vm11, %v12370_v56, 0.0  ;;  %v3394_v26 = vsel %vm10217_vm4, %v10195_v22, %v3388_v25 }
 0x71b   : > { %v3744_v23 = vmul.f32 1.442695, %v3720_v15  ;;  %v3724_v5 = vsub.f32 0.0, %v3708_v53  ;;  %v5212_v33 = vclamps-f32 %v12371_v30, 10.0  ;;  %4126 = vadd.xlane.f32.xlu0 %v4095_v37  ;;  %v10270_v48 = vmul.f32 %v10074_v52, %v3435_v61  ;;  %v4508_v45 = vpop.permute.xlu1 %4507  ;;  %v12375_v61 = vld [vmem:[#allocation94_spill] sm:$0xff] }
 0x71c   : > { %v5876_v12 = vpop.eup %5875  ;;  %v3748_v20 = vmul.f32 1.442695, %v3722_v4  ;;  %v5200_v43 = vclamps-f32 %v12372_v58, 10.0  ;;  %v12373_v38 = vsel %vm10046_vm7, %v10055_v29, %v10076_v28  ;;  %v12374_v53 = vsel %vm10065_vm0, %v10058_v41, %v10100_v63  ;;  %v12401_v29 = vld [vmem:[#allocation8_spill] sm:$0xff] }
 0x71d   : > { %v3442_v46 = vsub.f32 0.0, %v12373_v38  ;;  %v3443_v22 = vsub.f32 0.0, %v12374_v53  ;;  %v3696_v25 = vsub.f32 0.0, %v5198_v34  ;;  %vm4462_vm6 = vcmp.eq.s32.totalorder %v12209_v7, %v12375_v61  ;;  %v12399_v61 = vld [vmem:[#allocation34_spill] sm:$0xff] }
 0x71e   : > { %vm4526_vm12 = vcmp.eq.s32.totalorder %v12209_v7, %v4508_v45  ;;  %v3403_v18 = vsel %vm10233_vm5, %v10173_v40, %v3397_v47  ;;  %v12376_v4 = vand.u32 2147483647, %v10094_v1  ;;  %5887 = vpow2.f32 %v3740_v31  ;;  %v12398_v45 = vld [vmem:[#allocation83_spill] sm:$0xff] }
 0x71f   : > { %vm4542_vm1 = vmor %vm4462_vm6, %vm4526_vm12  ;;  %v12379_v41 = vand.u32 2147483647, %v10031_v39  ;;  %v12382_v28 = vsel %vm10119_vm14, %v10104_v57, %v10152_v2  ;;  %v12383_v1 = vsel %vm10090_vm10, %v10088_v14, %v10123_v0  ;;  %v12384_v39 = vsel %vm10158_vm3, %v10134_v60, %v10198_v51 }
 0x720   : > { %vm10291_vm7 = vcmp.lt.f32.partialorder %v12376_v4, 0.0004427343  ;;  %v3444_v63 = vsub.f32 0.0, %v12382_v28  ;;  %v3445_v40 = vsub.f32 0.0, %v12383_v1  ;;  %v3446_v32 = vsub.f32 0.0, %v12384_v39  ;;  %v5878_v57 = vpop.eup %5877 }
 0x721   : > { %vm10297_vm0 = vcmp.lt.f32.partialorder %v12379_v41, 0.0004427343  ;;  %5889 = vpow2.f32 %v3744_v23  ;;  %v3752_v15 = vmul.f32 1.442695, %v3724_v5  ;;  %v3710_v3 = vsub.f32 0.0, %v5212_v33  ;;  %v10327_v60 = vpop.eup %5879  ;;  %v12393_v5 = vld [vmem:[#allocation70_spill] sm:$0xff] }
 0x722   : > { %v4558_v8 = vsel %vm4542_vm1, %v12352_v13, 0.0  ;;  %5891 = vpow2.f32 %v3748_v20  ;;  %v3698_v2 = vsub.f32 0.0, %v5200_v43  ;;  %v5201_v34 = vclamps-f32 %v12385_v6, 10.0  ;;  %v4447_v13 = vpop.permute.xlu1 %4446  ;;  %v5882_v31 = vpop.eup %5881  ;;  %v12396_v20 = vld [vmem:[#allocation97_spill] sm:$0xff] }
 0x723   : > { %4588 = vadd.xlane.f32.xlu1 %v4558_v8  ;;  %vm10318_vm10 = vcmp.lt.f32.partialorder %v3428_v10, 0.0004427343  ;;  %v12388_v51 = vsel %vm10109_vm13, %v10107_v59, %v10143_v21  ;;  %v3712_v49 = vsub.f32 0.0, %v3696_v25  ;;  %v3448_v47 = vsub.f32 0.0, %v3376_v35  ;;  %v5884_v37 = vpop.eup %5883  ;;  %v12397_v43 = vld [vmem:[#allocation73_spill] sm:$0xff] }
 0x724   : > { %v3447_v0 = vsub.f32 0.0, %v12388_v51  ;;  %v12389_v10 = vsel %vm10180_vm9, %v10149_v50, %v10206_v9  ;;  %v3450_v55 = vsub.f32 0.0, %v3394_v26  ;;  %vm4527_vm13 = vcmp.eq.s32.totalorder %v12209_v7, %v4511_v36  ;;  %v12392_v9 = vld [vmem:[#allocation72_spill] sm:$0xff]  ;;  %v12406_v51 = vld [vmem:[#allocation75_spill] sm:$0xff] }
 0x725   : > { %v3449_v16 = vsub.f32 0.0, %v12389_v10  ;;  %vm4463_vm14 = vcmp.eq.s32.totalorder %v12209_v7, %v4447_v13  ;;  %v3406_v59 = vmul.f32 0.6931472, %v5876_v12  ;;  %v3451_v21 = vsub.f32 0.0, %v3403_v18  ;;  %v12394_v12 = vld [vmem:[#allocation96_spill] sm:$0xff]  ;;  %v12400_v18 = vld [vmem:[#allocation74_spill] sm:$0xff] }
 0x726   : > { %5893 = vpow2.f32 %v3752_v15  ;;  %v3726_v19 = vsub.f32 0.0, %v3710_v3  ;;  %vm4543_vm3 = vmor %vm4463_vm14, %vm4527_vm13  ;;  %v3415_v27 = vmul.f32 0.6931472, %v5878_v57  ;;  %vm10343_vm2 = vcmp.lt.f32.partialorder %v3437_v54, 0.0004427343  ;;  %v12395_v54 = vld [vmem:[#allocation35_spill] sm:$0xff]  ;;  %v10369_v53 = vpop.eup %5885 }
 0x727   : > { %v10348_v50 = vadd.f32 %v3440_v42, %v12392_v9  ;;  %v3714_v17 = vsub.f32 0.0, %v3698_v2  ;;  %v3699_v35 = vsub.f32 0.0, %v5201_v34  ;;  %v4559_v7 = vsel %vm4543_vm3, %v12370_v56, 0.0  ;;  %v12402_v15 = vld [vmem:[#allocation6_spill] sm:$0xff]  ;;  %v12403_v3 = vld [vmem:[#allocation95_spill] sm:$0xff] }
 0x728   : > { %v3769_v26 = vadd.f32 1.0, %v10327_v60  ;;  %v3728_v23 = vmul.f32 1.442695, %v3712_v49  ;;  %v5203_v30 = vclamps-f32 %v12393_v5, 10.0  ;;  %4590 = vadd.xlane.f32.xlu0 %v4559_v7  ;;  %v3424_v33 = vmul.f32 0.6931472, %v5882_v31 }
 0x729   : > { %v10355_v52 = vadd.f32 %v10262_v24, %v12394_v12  ;;  %v3412_v42 = vsel %vm10291_vm7, %v12395_v54, %v3406_v59  ;;  %v10361_v58 = vadd.f32 %v3442_v46, %v12396_v20  ;;  %v10364_v56 = vadd.f32 %v3443_v22, %v12397_v43  ;;  %v12405_v2 = vld [vmem:[#allocation58_spill] sm:$0xff]  ;;  %v12407_v31 = vld [vmem:[#allocation37_spill] sm:$0xff] }
 0x72a   : > { %v10367_v38 = vadd.f32 %v3444_v63, %v12398_v45  ;;  %v3756_v25 = vmul.f32 1.442695, %v3726_v19  ;;  %v3421_v24 = vsel %vm10297_vm0, %v12399_v61, %v3415_v27  ;;  %v10375_v4 = vadd.f32 %v3445_v40, %v12400_v18  ;;  %v12404_v40 = vld [vmem:[#allocation98_spill] sm:$0xff] }
 0x72b   : > { %v10378_v41 = vadd.f32 %v3446_v32, %v12401_v29  ;;  %v3732_v46 = vmul.f32 1.442695, %v3714_v17  ;;  %v3715_v28 = vsub.f32 0.0, %v3699_v35  ;;  %v3433_v22 = vmul.f32 0.6931472, %v5884_v37  ;;  %v10391_v57 = vpop.eup %5887  ;;  %v12408_v37 = vld [vmem:[#allocation80_spill] sm:$0xff] }
 0x72c   : > { %5895 = vlog2.f32 %v3769_v26  ;;  %v3701_v63 = vsub.f32 0.0, %v5203_v30  ;;  %v3430_v1 = vsel %vm10318_vm10, %v10255_v44, %v3424_v33  ;;  %v3452_v39 = vsub.f32 0.0, %v3412_v42  ;;  %v12410_v17 = vld [vmem:[#allocation13_spill] sm:$0xff]  ;;  %v12413_v42 = vld [vmem:[#allocation76_spill] sm:$0xff] }
 0x72d   : > { %5897 = vpow2.f32 %v3728_v23  ;;  %v5205_v11 = vclamps-f32 %v12402_v15, 10.0  ;;  %v10385_v36 = vadd.f32 %v3447_v0, %v12403_v3  ;;  %v10388_v8 = vadd.f32 %v3448_v47, %v12404_v40  ;;  %v12411_v26 = vld [vmem:[#allocation81_spill] sm:$0xff] }
 0x72e   : > { %v3796_v32 = vadd.f32 1.0, %v10369_v53  ;;  %5899 = vpow2.f32 %v3756_v25  ;;  %v5207_v6 = vclamps-f32 %v12405_v2, 10.0  ;;  %v3453_v34 = vsub.f32 0.0, %v3421_v24  ;;  %v10397_v44 = vpop.eup %5889  ;;  %v4099_v24 = vpop.xlane.xlu0 %4098 }
 0x72f   : > { %v10395_v14 = vadd.f32 %v3449_v16, %v12406_v51  ;;  %5901 = vpow2.f32 %v3732_v46  ;;  %v3734_v49 = vmul.f32 1.442695, %v3715_v28  ;;  %v3439_v0 = vsel %vm10343_vm2, %v10270_v48, %v3433_v22  ;;  %v10402_v47 = vpop.eup %5891  ;;  %v12409_v16 = vld [vmem:[#allocation30_spill] sm:$0xff]  ;;  %v12414_v46 = vld [vmem:[#allocation59_spill] sm:$0xff] }
 0x730   : > { %v3454_v13 = vsub.f32 0.0, %v3430_v1  ;;  %v3717_v10 = vsub.f32 0.0, %v3701_v63  ;;  %v10405_v59 = vadd.f32 %v3450_v55, %v12407_v31  ;;  %v10408_v19 = vadd.f32 %v3451_v21, %v12408_v37  ;;  %v12412_v21 = vld [vmem:[#allocation99_spill] sm:$0xff]  ;;  %v12415_v63 = vld [vmem:[#allocation82_spill] sm:$0xff] }
 0x731   : > { %v10411_v27 = vadd.f32 %v3452_v39, %v12409_v16  ;;  %v3703_v9 = vsub.f32 0.0, %v5205_v11  ;;  %v5209_v35 = vclamps-f32 %v12410_v17, 10.0  ;;  %5903 = vlog2.f32 %v3796_v32 }
 0x732   : > { %v3814_v62 = vadd.f32 1.0, %v10391_v57  ;;  %v3705_v48 = vsub.f32 0.0, %v5207_v6  ;;  %v3455_v7 = vsub.f32 0.0, %v3439_v0  ;;  %v10416_v23 = vadd.f32 %v3453_v34, %v12411_v26 }
 0x733   : > { %v3832_v55 = vadd.f32 1.0, %v10397_v44  ;;  %v10419_v5 = vpop.eup %5893  ;;  %5905 = vpow2.f32 %v3734_v49  ;;  %v10422_v30 = vadd.f32 %v3454_v13, %v12412_v21  ;;  %v3772_v33 = vmul.f32 -0.5, %v10327_v60 }
 0x734   : > { %v3850_v12 = vadd.f32 1.0, %v10402_v47  ;;  %v3738_v54 = vmul.f32 1.442695, %v3717_v10  ;;  %v5211_v20 = vclamps-f32 %v12413_v42, 10.0  ;;  %v3775_v43 = vand.u32 2147483647, %v10327_v60 }
 0x735   : > { %v3799_v45 = vmul.f32 -0.5, %v10369_v53  ;;  %v3719_v25 = vsub.f32 0.0, %v3703_v9  ;;  %v3707_v61 = vsub.f32 0.0, %v5209_v35  ;;  %5907 = vlog2.f32 %v3814_v62 }
 0x736   : > { %v3817_v18 = vmul.f32 -0.5, %v10391_v57  ;;  %v3721_v29 = vsub.f32 0.0, %v3705_v48  ;;  %v5213_v28 = vclamps-f32 %v12414_v46, 10.0  ;;  %5909 = vlog2.f32 %v3832_v55 }
 0x737   : > { %v3868_v22 = vadd.f32 1.0, %v10419_v5  ;;  %v10433_v1 = vadd.f32 %v3455_v7, %v12415_v63  ;;  %v3773_v39 = vadd.f32 1.0, %v3772_v33  ;;  %v3835_v15 = vmul.f32 -0.5, %v10397_v44 }
 0x738   : > { %5911 = vlog2.f32 %v3850_v12  ;;  %v3709_v3 = vsub.f32 0.0, %v5211_v20  ;;  %v5215_v40 = vclamps-f32 %v4099_v24, 10.0  ;;  %v3802_v32 = vand.u32 2147483647, %v10369_v53 }
 0x739   : > { %v5896_v11 = vpop.eup %5895  ;;  %5913 = vpow2.f32 %v3738_v54  ;;  %v3742_v6 = vmul.f32 1.442695, %v3719_v25  ;;  %v3723_v34 = vsub.f32 0.0, %v3707_v61  ;;  %vm10439_vm9 = vcmp.lt.f32.partialorder %v3775_v43, 0.0004427343 }
 0x73a   : > { %v10437_v2 = vpop.eup %5897  ;;  %v3800_v49 = vadd.f32 1.0, %v3799_v45  ;;  %v3746_v0 = vmul.f32 1.442695, %v3721_v29  ;;  %v3711_v13 = vsub.f32 0.0, %v5213_v28  ;;  %v3818_v10 = vadd.f32 1.0, %v3817_v18 }
 0x73b   : > { %5915 = vlog2.f32 %v3868_v22  ;;  %v10443_v31 = vpop.eup %5899  ;;  %v3771_v37 = vmul.f32 0.6931472, %v5896_v11  ;;  %v3774_v16 = vmul.f32 %v10327_v60, %v3773_v39  ;;  %v3820_v9 = vand.u32 2147483647, %v10391_v57 }
 0x73c   : > { %v3836_v17 = vadd.f32 1.0, %v3835_v15  ;;  %v10447_v35 = vpop.eup %5901  ;;  %v3725_v62 = vsub.f32 0.0, %v3709_v3  ;;  %v4161_v48 = vsub.f32 0.0, %v5215_v40  ;;  %v3760_v7 = vadd.f32 1.0, %v10437_v2  ;;  %v10476_v46 = vpop.xlane.xlu0 %4560 }
 0x73d   : > { %vm10450_vm4 = vcmp.lt.f32.partialorder %v3802_v32, 0.0004427343  ;;  %v3853_v55 = vmul.f32 -0.5, %v10402_v47  ;;  %5917 = vpow2.f32 %v3742_v6  ;;  %v3750_v21 = vmul.f32 1.442695, %v3723_v34 }
 0x73e   : > { %v10456_v33 = vmul.f32 %v10369_v53, %v3800_v49  ;;  %v3838_v60 = vand.u32 2147483647, %v10397_v44  ;;  %v5904_v12 = vpop.eup %5903  ;;  %5919 = vpow2.f32 %v3746_v0  ;;  %v3727_v54 = vsub.f32 0.0, %v3711_v13 }
 0x73f   : > { %v10460_v42 = vmul.f32 %v10391_v57, %v3818_v10  ;;  %v3886_v20 = vadd.f32 1.0, %v10443_v31  ;;  %v3777_v43 = vsel %vm10439_vm9, %v3774_v16, %v3771_v37  ;;  %v3778_v45 = vadd.f32 1.0, %v10447_v35 }
 0x740   : > { %v10467_v25 = vmul.f32 %v10397_v44, %v3836_v17  ;;  %v3856_v53 = vand.u32 2147483647, %v10402_v47  ;;  %v10470_v61 = vpop.eup %5905  ;;  %v3754_v24 = vmul.f32 1.442695, %v3725_v62  ;;  %v4177_v18 = vsub.f32 0.0, %v4161_v48 }
 0x741   : > { %5921 = vlog2.f32 %v3760_v7  ;;  %vm10472_vm5 = vcmp.lt.f32.partialorder %v3820_v9, 0.0004427343  ;;  %v3854_v29 = vadd.f32 1.0, %v3853_v55  ;;  %v3763_v28 = vmul.f32 -0.5, %v10437_v2  ;;  %v4103_v37 = vpop.xlane.xlu0 %4102 }
 0x742   : > { %5923 = vpow2.f32 %v3750_v21  ;;  %v3798_v22 = vmul.f32 0.6931472, %v5904_v12  ;;  %vm10479_vm8 = vcmp.lt.f32.partialorder %v3838_v60, 0.0004427343  ;;  %v3871_v63 = vmul.f32 -0.5, %v10419_v5  ;;  %v5908_v39 = vpop.eup %5907 }
 0x743   : > { %v3758_v15 = vmul.f32 1.442695, %v3727_v54  ;;  %v3874_v11 = vand.u32 2147483647, %v10419_v5  ;;  %5925 = vlog2.f32 %v3886_v20  ;;  %v3889_v3 = vmul.f32 -0.5, %v10443_v31  ;;  %v5910_v40 = vpop.eup %5909 }
 0x744   : > { %5927 = vlog2.f32 %v3778_v45  ;;  %v3787_v32 = vadd.f32 1.0, %v10470_v61  ;;  %vm10487_vm15 = vcmp.lt.f32.partialorder %v3856_v53, 0.0004427343  ;;  %v3905_v34 = vsub.f32 0.0, %v3777_v43 }
 0x745   : > { %v5912_v51 = vpop.eup %5911  ;;  %5929 = vpow2.f32 %v3754_v24  ;;  %v4194_v49 = vmul.f32 1.442695, %v4177_v18  ;;  %v3781_v0 = vmul.f32 -0.5, %v10447_v35  ;;  %v3855_v13 = vmul.f32 %v10402_v47, %v3854_v29  ;;  %v10508_v20 = vpop.xlane.xlu0 %4104 }
 0x746   : > { %v10493_v10 = vpop.eup %5913  ;;  %v3764_v16 = vadd.f32 1.0, %v3763_v28  ;;  %v3804_v9 = vsel %vm10450_vm4, %v10456_v33, %v3798_v22  ;;  %v3816_v17 = vmul.f32 0.6931472, %v5908_v39  ;;  %v3872_v62 = vadd.f32 1.0, %v3871_v63 }
 0x747   : > { %5931 = vpow2.f32 %v3758_v15  ;;  %v3834_v48 = vmul.f32 0.6931472, %v5910_v40  ;;  %vm10498_vm11 = vcmp.lt.f32.partialorder %v3874_v11, 0.0004427343  ;;  %v3890_v55 = vadd.f32 1.0, %v3889_v3 }
 0x748   : > { %v5916_v21 = vpop.eup %5915  ;;  %v3766_v47 = vand.u32 2147483647, %v10437_v2  ;;  %5933 = vlog2.f32 %v3787_v32  ;;  %v3852_v60 = vmul.f32 0.6931472, %v5912_v51  ;;  %v10504_v12 = vadd.f32 %v3905_v34, %v10355_v52 }
 0x749   : > { %5935 = vpow2.f32 %v4194_v49  ;;  %v3782_v26 = vadd.f32 1.0, %v3781_v0  ;;  %v3790_v33 = vmul.f32 -0.5, %v10470_v61  ;;  %v3805_v54 = vadd.f32 1.0, %v10493_v10  ;;  %v10540_v3 = vpop.xlane.xlu0 %4106 }
 0x74a   : > { %v10511_v43 = vmul.f32 %v10437_v2, %v3764_v16  ;;  %v3784_v45 = vand.u32 2147483647, %v10447_v35  ;;  %v3822_v53 = vsel %vm10472_vm5, %v10460_v42, %v3816_v17  ;;  %v3873_v52 = vmul.f32 %v10419_v5, %v3872_v62  ;;  %v10518_v24 = vpop.eup %5917 }
 0x74b   : > { %v3840_v18 = vsel %vm10479_vm8, %v10467_v25, %v3834_v48  ;;  %v3870_v29 = vmul.f32 0.6931472, %v5916_v21  ;;  %v10524_v28 = vmul.f32 %v10443_v31, %v3890_v55  ;;  %v3892_v2 = vand.u32 2147483647, %v10443_v31  ;;  %v10527_v22 = vpop.eup %5919 }
 0x74c   : > { %v5230_v63 = vclamps-f32 %v10476_v46, 10.0  ;;  %vm10530_vm6 = vcmp.lt.f32.partialorder %v3766_v47, 0.0004427343  ;;  %v3808_v5 = vmul.f32 -0.5, %v10493_v10  ;;  %v3858_v57 = vsel %vm10487_vm15, %v3855_v13, %v3852_v60 }
 0x74d   : > { %v3908_v25 = vsub.f32 0.0, %v3804_v9  ;;  %v10538_v44 = vmul.f32 %v10447_v35, %v3782_v26  ;;  %v3791_v39 = vadd.f32 1.0, %v3790_v33  ;;  %5937 = vlog2.f32 %v3805_v54  ;;  %v10570_v26 = vpop.xlane.xlu0 %4108 }
 0x74e   : > { %v3910_v31 = vsub.f32 0.0, %v3822_v53  ;;  %v5922_v15 = vpop.eup %5921  ;;  %v5217_v11 = vclamps-f32 %v4103_v37, 10.0  ;;  %v3793_v46 = vand.u32 2147483647, %v10470_v61  ;;  %v3823_v40 = vadd.f32 1.0, %v10518_v24 }
 0x74f   : > { %v3912_v32 = vsub.f32 0.0, %v3840_v18  ;;  %v10544_v34 = vpop.eup %5923  ;;  %vm10546_vm12 = vcmp.lt.f32.partialorder %v3784_v45, 0.0004427343  ;;  %v3826_v35 = vmul.f32 -0.5, %v10518_v24  ;;  %v3841_v51 = vadd.f32 1.0, %v10527_v22 }
 0x750   : > { %v3876_v49 = vsel %vm10498_vm11, %v3873_v52, %v3870_v29  ;;  %v3914_v0 = vsub.f32 0.0, %v3858_v57  ;;  %v5926_v13 = vpop.eup %5925  ;;  %v4624_v37 = vsub.f32 0.0, %v5230_v63  ;;  %v3809_v16 = vadd.f32 1.0, %v3808_v5 }
 0x751   : > { %vm10554_vm7 = vcmp.lt.f32.partialorder %v3892_v2, 0.0004427343  ;;  %v10559_v17 = vadd.f32 %v3908_v25, %v10367_v38  ;;  %v5928_v62 = vpop.eup %5927  ;;  %v3762_v48 = vmul.f32 0.6931472, %v5922_v15  ;;  %v10562_v55 = vmul.f32 %v10470_v61, %v3791_v39 }
 0x752   : > { %v3811_v21 = vand.u32 2147483647, %v10493_v10  ;;  %v10566_v7 = vadd.f32 %v3910_v31, %v10378_v41  ;;  %v10568_v47 = vpop.eup %5929  ;;  %v4163_v60 = vsub.f32 0.0, %v5217_v11  ;;  %5939 = vlog2.f32 %v3823_v40  ;;  %v4111_v31 = vpop.xlane.xlu0 %4110 }
 0x753   : > { %v3916_v33 = vsub.f32 0.0, %v3876_v49  ;;  %v10573_v38 = vadd.f32 %v3912_v32, %v10388_v8  ;;  %v3827_v54 = vadd.f32 1.0, %v3826_v35  ;;  %5941 = vlog2.f32 %v3841_v51  ;;  %v4097_v11 = vpop.xlane.xlu1 %4096 }
 0x754   : > { %v3888_v45 = vmul.f32 0.6931472, %v5926_v13  ;;  %v10576_v61 = vadd.f32 %v3914_v0, %v10405_v59  ;;  %v10578_v53 = vpop.eup %5931  ;;  %v4640_v41 = vsub.f32 0.0, %v4624_v37  ;;  %v5218_v52 = vclamps-f32 %v10508_v20, 10.0 }
 0x755   : > { %v3780_v18 = vmul.f32 0.6931472, %v5928_v62  ;;  %vm10581_vm1 = vcmp.lt.f32.partialorder %v3793_v46, 0.0004427343  ;;  %v10586_v2 = vmul.f32 %v10493_v10, %v3809_v16  ;;  %v5934_v8 = vpop.eup %5933  ;;  %v3768_v63 = vsel %vm10530_vm6, %v10511_v43, %v3762_v48 }
 0x756   : > { %v3829_v59 = vand.u32 2147483647, %v10518_v24  ;;  %v3844_v5 = vmul.f32 -0.5, %v10527_v22  ;;  %v3859_v57 = vadd.f32 1.0, %v10544_v34  ;;  %v10594_v20 = vpop.eup %5935  ;;  %v4179_v25 = vsub.f32 0.0, %v4163_v60  ;;  %v4113_v6 = vpop.xlane.xlu0 %4112 }
 0x757   : > { %v5219_v39 = vclamps-f32 %v10540_v3, 10.0  ;;  %v3877_v10 = vadd.f32 1.0, %v10568_v47  ;;  %v10599_v15 = vadd.f32 %v3916_v33, %v10411_v27  ;;  %v10602_v43 = vmul.f32 %v10518_v24, %v3827_v54 }
 0x758   : > { %v3847_v42 = vand.u32 2147483647, %v10527_v22  ;;  %v3894_v46 = vsel %vm10554_vm7, %v10524_v28, %v3888_v45  ;;  %v3895_v40 = vadd.f32 1.0, %v10578_v53  ;;  %v4656_v32 = vmul.f32 1.442695, %v4640_v41 }
 0x759   : > { %12436 = vst [vmem:[#allocation16_spill] sm:$0xff] %v10599_v15  ;;  %v4164_v3 = vsub.f32 0.0, %v5218_v52  ;;  %v3786_v35 = vsel %vm10546_vm12, %v10538_v44, %v3780_v18  ;;  %vm10612_vm0 = vcmp.lt.f32.partialorder %v3811_v21, 0.0004427343  ;;  %v3904_v24 = vsub.f32 0.0, %v3768_v63  ;;  %v4101_v44 = vpop.xlane.xlu1 %4100 }
 0x75a   : > { %v3789_v51 = vmul.f32 0.6931472, %v5934_v8  ;;  %v3845_v49 = vadd.f32 1.0, %v3844_v5  ;;  %5943 = vlog2.f32 %v3859_v57  ;;  %v4233_v0 = vadd.f32 1.0, %v10594_v20  ;;  %v5938_v13 = vpop.eup %5937 }
 0x75b   : > { %v4198_v28 = vmul.f32 1.442695, %v4179_v25  ;;  %v4165_v37 = vsub.f32 0.0, %v5219_v39  ;;  %v3862_v16 = vmul.f32 -0.5, %v10544_v34  ;;  %5945 = vlog2.f32 %v3877_v10 }
 0x75c   : > { %v5220_v9 = vclamps-f32 %v10570_v26, 10.0  ;;  %v3865_v62 = vand.u32 2147483647, %v10544_v34  ;;  %5947 = vlog2.f32 %v3895_v40  ;;  %v3918_v48 = vsub.f32 0.0, %v3894_v46  ;;  %v4115_v40 = vpop.xlane.xlu0 %4114 }
 0x75d   : > { %5949 = vpow2.f32 %v4656_v32  ;;  %v4180_v21 = vsub.f32 0.0, %v4164_v3  ;;  %v5221_v60 = vclamps-f32 %v4111_v31, 10.0  ;;  %v3906_v33 = vsub.f32 0.0, %v3786_v35  ;;  %v10634_v29 = vpop.xlane.xlu1 %4562 }
 0x75e   : > { %v5214_v54 = vclamps-f32 %v4097_v11, 10.0  ;;  %v3795_v45 = vsel %vm10581_vm1, %v10562_v55, %v3789_v51  ;;  %v3807_v41 = vmul.f32 0.6931472, %v5938_v13  ;;  %vm10623_vm10 = vcmp.lt.f32.partialorder %v3829_v59, 0.0004427343 }
 0x75f   : > { %5951 = vlog2.f32 %v4233_v0  ;;  %v4181_v26 = vsub.f32 0.0, %v4165_v37  ;;  %v10628_v18 = vmul.f32 %v10527_v22, %v3845_v49  ;;  %vm10630_vm13 = vcmp.lt.f32.partialorder %v3847_v42, 0.0004427343  ;;  %v5940_v5 = vpop.eup %5939 }
 0x760   : > { %5953 = vpow2.f32 %v4198_v28  ;;  %v3863_v63 = vadd.f32 1.0, %v3862_v16  ;;  %v4166_v57 = vsub.f32 0.0, %v5220_v9  ;;  %v3880_v55 = vmul.f32 -0.5, %v10568_v47  ;;  %v5942_v39 = vpop.eup %5941 }
 0x761   : > { %v10638_v59 = vadd.f32 %v3904_v24, %v10348_v50  ;;  %v10641_v25 = vadd.f32 %v3918_v48, %v10422_v30  ;;  %v4200_v22 = vmul.f32 1.442695, %v4180_v21  ;;  %v4167_v31 = vsub.f32 0.0, %v5221_v60 }
 0x762   : > { %v3907_v10 = vsub.f32 0.0, %v3795_v45  ;;  %v10644_v11 = vadd.f32 %v3906_v33, %v10361_v58  ;;  %v4160_v42 = vsub.f32 0.0, %v5214_v54  ;;  %v5216_v46 = vclamps-f32 %v4101_v44, 10.0  ;;  %v10654_v58 = vpop.xlane.xlu1 %4564 }
 0x763   : > { %12443 = vst [vmem:[#allocation7_spill] sm:$0xff] %v10641_v25  ;;  %v3813_v32 = vsel %vm10612_vm0, %v10586_v2, %v3807_v41  ;;  %v3883_v50 = vand.u32 2147483647, %v10568_v47  ;;  %v4202_v3 = vmul.f32 1.442695, %v4181_v26  ;;  %v10651_v30 = vmul.f32 %v10544_v34, %v3863_v63 }
 0x764   : > { %v3825_v35 = vmul.f32 0.6931472, %v5940_v5  ;;  %v3898_v24 = vmul.f32 -0.5, %v10578_v53  ;;  %v4182_v51 = vsub.f32 0.0, %v4166_v57  ;;  %v5222_v49 = vclamps-f32 %v4113_v6, 10.0 }
 0x765   : > { %v3843_v0 = vmul.f32 0.6931472, %v5942_v39  ;;  %v3881_v13 = vadd.f32 1.0, %v3880_v55  ;;  %5955 = vpow2.f32 %v4200_v22  ;;  %v4183_v28 = vsub.f32 0.0, %v4167_v31  ;;  %v4117_v22 = vpop.xlane.xlu0 %4116 }
 0x766   : > { %v5223_v37 = vclamps-f32 %v4115_v40, 10.0  ;;  %v3909_v27 = vsub.f32 0.0, %v3813_v32  ;;  %v4176_v2 = vsub.f32 0.0, %v4160_v42  ;;  %v4162_v16 = vsub.f32 0.0, %v5216_v46  ;;  %v10671_v45 = vpop.xlane.xlu1 %4566 }
 0x767   : > { %vm10656_vm14 = vcmp.lt.f32.partialorder %v3865_v62, 0.0004427343  ;;  %v3901_v34 = vand.u32 2147483647, %v10578_v53  ;;  %v10662_v44 = vadd.f32 %v3907_v10, %v10364_v56  ;;  %v5944_v6 = vpop.eup %5943  ;;  %5957 = vpow2.f32 %v4202_v3 }
 0x768   : > { %v3831_v48 = vsel %vm10623_vm10, %v10602_v43, %v3825_v35  ;;  %vm10667_vm3 = vcmp.lt.f32.partialorder %v3883_v50, 0.0004427343  ;;  %v3899_v60 = vadd.f32 1.0, %v3898_v24  ;;  %v5946_v62 = vpop.eup %5945  ;;  %v4204_v33 = vmul.f32 1.442695, %v4182_v51 }
 0x769   : > { %v4168_v54 = vsub.f32 0.0, %v5222_v49  ;;  %v3849_v56 = vsel %vm10630_vm13, %v10628_v18, %v3843_v0  ;;  %v4236_v41 = vmul.f32 -0.5, %v10594_v20  ;;  %v5948_v26 = vpop.eup %5947  ;;  %v4206_v63 = vmul.f32 1.442695, %v4183_v28 }
 0x76a   : > { %v4169_v52 = vsub.f32 0.0, %v5223_v37  ;;  %v3882_v43 = vmul.f32 %v10568_v47, %v3881_v13  ;;  %v10679_v5 = vadd.f32 %v3909_v27, %v10375_v4  ;;  %v10681_v57 = vpop.eup %5949  ;;  %v4192_v55 = vmul.f32 1.442695, %v4176_v2  ;;  %v10690_v32 = vpop.xlane.xlu1 %4568 }
 0x76b   : > { %v4178_v39 = vsub.f32 0.0, %v4162_v16  ;;  %vm10683_vm2 = vcmp.lt.f32.partialorder %v3901_v34, 0.0004427343  ;;  %v3911_v18 = vsub.f32 0.0, %v3831_v48  ;;  %v3861_v10 = vmul.f32 0.6931472, %v5944_v6 }
 0x76c   : > { %v5952_v8 = vpop.eup %5951  ;;  %v3879_v42 = vmul.f32 0.6931472, %v5946_v62  ;;  %v3900_v46 = vmul.f32 %v10578_v53, %v3899_v60  ;;  %v3913_v40 = vsub.f32 0.0, %v3849_v56  ;;  %5959 = vpow2.f32 %v4204_v33  ;;  %v4119_v62 = vpop.xlane.xlu0 %4118 }
 0x76d   : > { %v10688_v47 = vpop.eup %5953  ;;  %v4184_v4 = vsub.f32 0.0, %v4168_v54  ;;  %v3897_v50 = vmul.f32 0.6931472, %v5948_v26  ;;  %v4237_v3 = vadd.f32 1.0, %v4236_v41  ;;  %5961 = vpow2.f32 %v4206_v63 }
 0x76e   : > { %v4185_v35 = vsub.f32 0.0, %v4169_v52  ;;  %v5224_v24 = vclamps-f32 %v4117_v22, 10.0  ;;  %v4688_v51 = vadd.f32 1.0, %v10681_v57  ;;  %5963 = vpow2.f32 %v4192_v55  ;;  %v10702_v16 = vpop.xlane.xlu1 %4570 }
 0x76f   : > { %v4196_v49 = vmul.f32 1.442695, %v4178_v39  ;;  %v5231_v0 = vclamps-f32 %v10634_v29, 10.0  ;;  %v4239_v53 = vand.u32 2147483647, %v10594_v20  ;;  %v3867_v13 = vsel %vm10656_vm14, %v10651_v30, %v3861_v10 }
 0x770   : > { %v10699_v28 = vadd.f32 %v3911_v18, %v10385_v36  ;;  %v4235_v37 = vmul.f32 0.6931472, %v5952_v8  ;;  %v4251_v27 = vadd.f32 1.0, %v10688_v47  ;;  %v4208_v2 = vmul.f32 1.442695, %v4184_v4 }
 0x771   : > { %v3885_v34 = vsel %vm10667_vm3, %v3882_v43, %v3879_v42  ;;  %v3903_v29 = vsel %vm10683_vm2, %v3900_v46, %v3897_v50  ;;  %v10709_v6 = vadd.f32 %v3913_v40, %v10395_v14  ;;  %v4210_v9 = vmul.f32 1.442695, %v4185_v35 }
 0x772   : > { %v4170_v30 = vsub.f32 0.0, %v5224_v24  ;;  %v4238_v36 = vmul.f32 %v10594_v20, %v4237_v3  ;;  %5965 = vlog2.f32 %v4688_v51  ;;  %v10712_v48 = vpop.eup %5955  ;;  %v4625_v60 = vsub.f32 0.0, %v5231_v0  ;;  %v10723_v20 = vpop.xlane.xlu1 %4572 }
 0x773   : > { %5967 = vpow2.f32 %v4196_v49  ;;  %v3915_v33 = vsub.f32 0.0, %v3867_v13  ;;  %vm10714_vm9 = vcmp.lt.f32.partialorder %v4239_v53, 0.0004427343  ;;  %v5225_v54 = vclamps-f32 %v4119_v62, 10.0 }
 0x774   : > { %v4241_v14 = vsel %vm10714_vm9, %v4238_v36, %v4235_v37  ;;  %5969 = vlog2.f32 %v4251_v27  ;;  %v4691_v56 = vmul.f32 -0.5, %v10681_v57  ;;  %v10721_v41 = vpop.eup %5957  ;;  %v3917_v26 = vsub.f32 0.0, %v3885_v34 }
 0x775   : > { %5971 = vpow2.f32 %v4208_v2  ;;  %v3919_v63 = vsub.f32 0.0, %v3903_v29  ;;  %v4254_v52 = vmul.f32 -0.5, %v10688_v47  ;;  %v4186_v43 = vsub.f32 0.0, %v4170_v30 }
 0x776   : > { %5973 = vpow2.f32 %v4210_v9  ;;  %v5232_v55 = vclamps-f32 %v10654_v58, 10.0  ;;  %v4260_v39 = vadd.f32 1.0, %v10712_v48  ;;  %v4641_v22 = vsub.f32 0.0, %v4625_v60  ;;  %v10743_v51 = vpop.xlane.xlu1 %4574 }
 0x777   : > { %v10729_v31 = vadd.f32 %v3915_v33, %v10408_v19  ;;  %v4263_v18 = vmul.f32 -0.5, %v10712_v48  ;;  %v4369_v8 = vsub.f32 0.0, %v4241_v14  ;;  %v5233_v10 = vclamps-f32 %v10671_v45, 10.0 }
 0x778   : > { %v4171_v42 = vsub.f32 0.0, %v5225_v54  ;;  %v4269_v46 = vadd.f32 1.0, %v10721_v41  ;;  %v4692_v40 = vadd.f32 1.0, %v4691_v56  ;;  %v10735_v4 = vadd.f32 %v3917_v26, %v10416_v23 }
 0x779   : > { %v10738_v58 = vadd.f32 %v3919_v63, %v10433_v1  ;;  %v4255_v50 = vadd.f32 1.0, %v4254_v52  ;;  %v10741_v19 = vpop.eup %5959  ;;  %v4212_v35 = vmul.f32 1.442695, %v4186_v43  ;;  %v4626_v24 = vsub.f32 0.0, %v5232_v55 }
 0x77a   : > { %12452 = vst [vmem:[#allocation26_spill] sm:$0xff] %v10735_v4  ;;  %5975 = vlog2.f32 %v4260_v39  ;;  %v4272_v45 = vmul.f32 -0.5, %v10721_v41  ;;  %v10746_v49 = vpop.eup %5961  ;;  %v4658_v0 = vmul.f32 1.442695, %v4641_v22  ;;  %v4257_v23 = vand.u32 2147483647, %v10688_v47  ;;  %v10772_v26 = vpop.xlane.xlu1 %4576 }
 0x77b   : > { %12453 = vst [vmem:[#allocation56_spill] sm:$0xff] %v10738_v58  ;;  %v4264_v53 = vadd.f32 1.0, %v4263_v18  ;;  %v10750_v1 = vadd.f32 %v4369_v8, %v10504_v12  ;;  %v10752_v13 = vpop.eup %5963  ;;  %v4627_v37 = vsub.f32 0.0, %v5233_v10  ;;  %v4187_v27 = vsub.f32 0.0, %v4171_v42 }
 0x77c   : > { %5977 = vlog2.f32 %v4269_v46  ;;  %v10755_v2 = vmul.f32 %v10681_v57, %v4692_v40  ;;  %v5234_v34 = vclamps-f32 %v10690_v32, 10.0  ;;  %v10759_v29 = vmul.f32 %v10688_v47, %v4255_v50  ;;  %v4121_v8 = vpop.xlane.xlu0 %4120 }
 0x77d   : > { %12454 = vst [vmem:[#allocation100_spill] sm:$0xff] %v10750_v1  ;;  %v4266_v9 = vand.u32 2147483647, %v10712_v48  ;;  %v4278_v30 = vadd.f32 1.0, %v10741_v19  ;;  %5979 = vpow2.f32 %v4212_v35  ;;  %v4642_v12 = vsub.f32 0.0, %v4626_v24 }
 0x77e   : > { %v4273_v36 = vadd.f32 1.0, %v4272_v45  ;;  %v4287_v60 = vadd.f32 1.0, %v10746_v49  ;;  %5981 = vpow2.f32 %v4658_v0  ;;  %v4224_v33 = vadd.f32 1.0, %v10752_v13 }
 0x77f   : > { %v5966_v62 = vpop.eup %5965  ;;  %v10766_v21 = vmul.f32 %v10712_v48, %v4264_v53  ;;  %v4275_v32 = vand.u32 2147483647, %v10721_v41  ;;  %v4643_v54 = vsub.f32 0.0, %v4627_v37  ;;  %v5235_v14 = vclamps-f32 %v10702_v16, 10.0 }
 0x780   : > { %v10769_v47 = vpop.eup %5967  ;;  %v4214_v56 = vmul.f32 1.442695, %v4187_v27  ;;  %v12455_v63 = vlaneseq  ;;  %v4628_v55 = vsub.f32 0.0, %v5234_v34  ;;  %v5236_v39 = vclamps-f32 %v10723_v20, 10.0  ;;  %v10800_v27 = vpop.xlane.xlu1 %4578 }
 0x781   : > { %v5970_v43 = vpop.eup %5969  ;;  %vm10778_vm4 = vcmp.lt.f32.partialorder %v4257_v23, 0.0004427343  ;;  %5983 = vlog2.f32 %v4278_v30  ;;  %v4281_v22 = vmul.f32 -0.5, %v10741_v19  ;;  %v4660_v16 = vmul.f32 1.442695, %v4642_v12 }
 0x782   : > { %v10775_v52 = vshrl.u32 %v12455_v63, 7  ;;  %v10783_v18 = vpop.eup %5971  ;;  %v10786_v10 = vmul.f32 %v10721_v41, %v4273_v36  ;;  %v4284_v42 = vand.u32 2147483647, %v10741_v19  ;;  %5985 = vlog2.f32 %v4287_v60 }
 0x783   : > { %v10789_v46 = vpop.eup %5973  ;;  %v5226_v20 = vclamps-f32 %v4121_v8, 10.0  ;;  %5987 = vlog2.f32 %v4224_v33  ;;  %v4242_v40 = vadd.f32 1.0, %v10769_v47  ;;  %v10792_v50 = vmul.f32 0.6931472, %v5966_v62 }
 0x784   : > { %12456 = vst [vmem:[#allocation101_spill] sm:$0xff] %v10775_v52  ;;  %v4662_v35 = vmul.f32 1.442695, %v4643_v54  ;;  %v4629_v24 = vsub.f32 0.0, %v5235_v14  ;;  %5989 = vpow2.f32 %v4214_v56  ;;  %v4227_v45 = vmul.f32 -0.5, %v10752_v13 }
 0x785   : > { %v4644_v0 = vsub.f32 0.0, %v4628_v55  ;;  %v4630_v23 = vsub.f32 0.0, %v5236_v39  ;;  %vm10795_vm5 = vcmp.lt.f32.partialorder %v4266_v9, 0.0004427343  ;;  %v4282_v53 = vadd.f32 1.0, %v4281_v22 }
 0x786   : > { %v4296_v37 = vadd.f32 1.0, %v10783_v18  ;;  %5991 = vpow2.f32 %v4660_v16  ;;  %v10802_v34 = vmul.f32 0.6931472, %v5970_v43  ;;  %v4290_v30 = vmul.f32 -0.5, %v10746_v49 }
 0x787   : > { %v4305_v12 = vadd.f32 1.0, %v10789_v46  ;;  %v5976_v36 = vpop.eup %5975  ;;  %v5237_v60 = vclamps-f32 %v10743_v51, 10.0  ;;  %v4172_v62 = vsub.f32 0.0, %v5226_v20  ;;  %5993 = vlog2.f32 %v4242_v40 }
 0x788   : > { %v4245_v9 = vmul.f32 -0.5, %v10769_v47  ;;  %vm10808_vm8 = vcmp.lt.f32.partialorder %v4275_v32, 0.0004427343  ;;  %5995 = vpow2.f32 %v4662_v35  ;;  %v4645_v54 = vsub.f32 0.0, %v4629_v24 }
 0x789   : > { %v4228_v14 = vadd.f32 1.0, %v4227_v45  ;;  %v4230_v56 = vand.u32 2147483647, %v10752_v13  ;;  %v5978_v63 = vpop.eup %5977  ;;  %v4664_v43 = vmul.f32 1.442695, %v4644_v0  ;;  %v4646_v55 = vsub.f32 0.0, %v4630_v23  ;;  %v4581_v0 = vpop.xlane.xlu1 %4580 }
 0x78a   : > { %v10814_v39 = vmul.f32 %v10741_v19, %v4282_v53  ;;  %5997 = vlog2.f32 %v4296_v37  ;;  %v10820_v32 = vmul.f32 0.6931472, %v5976_v36  ;;  %v4291_v22 = vadd.f32 1.0, %v4290_v30  ;;  %v10822_v16 = vpop.eup %5979  ;;  %v4123_v23 = vpop.xlane.xlu0 %4122 }
 0x78b   : > { %5999 = vlog2.f32 %v4305_v12  ;;  %v4631_v8 = vsub.f32 0.0, %v5237_v60  ;;  %v4188_v20 = vsub.f32 0.0, %v4172_v62  ;;  %v4246_v40 = vadd.f32 1.0, %v4245_v9  ;;  %v10825_v24 = vpop.eup %5981 }
 0x78c   : > { %v4248_v35 = vand.u32 2147483647, %v10769_v47  ;;  %v4666_v19 = vmul.f32 1.442695, %v4645_v54  ;;  %v5238_v45 = vclamps-f32 %v10772_v26, 10.0  ;;  %v10829_v53 = vmul.f32 %v10752_v13, %v4228_v14 }
 0x78d   : > { %v10831_v37 = vmul.f32 0.6931472, %v5978_v63  ;;  %6001 = vpow2.f32 %v4664_v43  ;;  %v4668_v30 = vmul.f32 1.442695, %v4646_v55  ;;  %v5227_v12 = vclamps-f32 %v4123_v23, 10.0 }
 0x78e   : > { %vm10833_vm15 = vcmp.lt.f32.partialorder %v4284_v42, 0.0004427343  ;;  %v4293_v60 = vand.u32 2147483647, %v10746_v49  ;;  %v5984_v62 = vpop.eup %5983  ;;  %v10843_v13 = vmul.f32 %v10746_v49, %v4291_v22  ;;  %v4299_v9 = vmul.f32 -0.5, %v10783_v18 }
 0x78f   : > { %v4314_v54 = vadd.f32 1.0, %v10822_v16  ;;  %v5986_v14 = vpop.eup %5985  ;;  %v4647_v42 = vsub.f32 0.0, %v4631_v8  ;;  %v4216_v63 = vmul.f32 1.442695, %v4188_v20  ;;  %v4173_v43 = vsub.f32 0.0, %v5227_v12 }
 0x790   : > { %vm10847_vm11 = vcmp.lt.f32.partialorder %v4230_v56, 0.0004427343  ;;  %v10852_v23 = vmul.f32 %v10769_v47, %v4246_v40  ;;  %v5988_v3 = vpop.eup %5987  ;;  %6003 = vpow2.f32 %v4666_v19  ;;  %v4632_v26 = vsub.f32 0.0, %v5238_v45  ;;  %v4583_v40 = vpop.xlane.xlu1 %4582 }
 0x791   : > { %v5239_v49 = vclamps-f32 %v10800_v27, 10.0  ;;  %v10859_v8 = vpop.eup %5989  ;;  %6005 = vpow2.f32 %v4668_v30  ;;  %v5240_v56 = vclamps-f32 %v4581_v0, 10.0  ;;  %vm10861_vm6 = vcmp.lt.f32.partialorder %v4293_v60, 0.0004427343 }
 0x792   : > { %v4302_v47 = vand.u32 2147483647, %v10783_v18  ;;  %vm10866_vm12 = vcmp.lt.f32.partialorder %v4248_v35, 0.0004427343  ;;  %v10870_v27 = vmul.f32 0.6931472, %v5984_v62  ;;  %6007 = vlog2.f32 %v4314_v54 }
 0x793   : > { %v4300_v45 = vadd.f32 1.0, %v4299_v9  ;;  %v4308_v12 = vmul.f32 -0.5, %v10789_v46  ;;  %v10873_v22 = vpop.eup %5991  ;;  %v4670_v0 = vmul.f32 1.442695, %v4647_v42  ;;  %6009 = vpow2.f32 %v4216_v63 }
 0x794   : > { %v4189_v30 = vsub.f32 0.0, %v4173_v43  ;;  %v10875_v60 = vmul.f32 0.6931472, %v5986_v14  ;;  %v5994_v51 = vpop.eup %5993  ;;  %v4648_v58 = vsub.f32 0.0, %v4632_v26  ;;  %v4633_v25 = vsub.f32 0.0, %v5239_v49 }
 0x795   : > { %v4226_v35 = vmul.f32 0.6931472, %v5988_v3  ;;  %v4323_v52 = vadd.f32 1.0, %v10859_v8  ;;  %v10878_v1 = vpop.eup %5995  ;;  %v4634_v62 = vsub.f32 0.0, %v5240_v56  ;;  %v5241_v9 = vclamps-f32 %v4583_v40, 10.0 }
 0x796   : > { %vm10880_vm7 = vcmp.lt.f32.partialorder %v4302_v47, 0.0004427343  ;;  %v4317_v54 = vmul.f32 -0.5, %v10822_v16  ;;  %v4286_v26 = vsel %vm10833_vm15, %v10814_v39, %v10870_v27  ;;  %v4301_v3 = vmul.f32 %v10783_v18, %v4300_v45 }
 0x797   : > { %v5998_v42 = vpop.eup %5997  ;;  %v4309_v14 = vadd.f32 1.0, %v4308_v12  ;;  %v4311_v63 = vand.u32 2147483647, %v10789_v46  ;;  %6011 = vpow2.f32 %v4670_v0  ;;  %v4218_v49 = vmul.f32 1.442695, %v4189_v30 }
 0x798   : > { %v6000_v43 = vpop.eup %5999  ;;  %v4244_v56 = vmul.f32 0.6931472, %v5994_v51  ;;  %v4295_v47 = vsel %vm10861_vm6, %v10843_v13, %v10875_v60  ;;  %v4672_v40 = vmul.f32 1.442695, %v4648_v58  ;;  %v4649_v15 = vsub.f32 0.0, %v4633_v25  ;;  %v4125_v58 = vpop.xlane.xlu0 %4124 }
 0x799   : > { %v4232_v39 = vsel %vm10847_vm11, %v10829_v53, %v4226_v35  ;;  %6013 = vlog2.f32 %v4323_v52  ;;  %v4650_v18 = vsub.f32 0.0, %v4634_v62  ;;  %v4635_v36 = vsub.f32 0.0, %v5241_v9 }
 0x79a   : > { %v4298_v27 = vmul.f32 0.6931472, %v5998_v42  ;;  %v4318_v45 = vadd.f32 1.0, %v4317_v54  ;;  %v10898_v12 = vpop.eup %6001  ;;  %v4307_v0 = vmul.f32 0.6931472, %v6000_v43  ;;  %v4310_v51 = vmul.f32 %v10789_v46, %v4309_v14 }
 0x79b   : > { %vm10901_vm1 = vcmp.lt.f32.partialorder %v4311_v63, 0.0004427343  ;;  %v4320_v25 = vand.u32 2147483647, %v10822_v16  ;;  %6015 = vpow2.f32 %v4218_v49  ;;  %v4250_v52 = vsel %vm10866_vm12, %v10852_v23, %v4244_v56 }
 0x79c   : > { %v4326_v53 = vmul.f32 -0.5, %v10859_v8  ;;  %v4368_v13 = vsub.f32 0.0, %v4232_v39  ;;  %6017 = vpow2.f32 %v4672_v40  ;;  %v4674_v55 = vmul.f32 1.442695, %v4649_v15 }
 0x79d   : > { %v5228_v20 = vclamps-f32 %v4125_v58, 10.0  ;;  %v12475_v46 = vsel %vm10778_vm4, %v10759_v29, %v10802_v34  ;;  %v10915_v35 = vpop.eup %6003  ;;  %v4676_v62 = vmul.f32 1.442695, %v4650_v18  ;;  %v4651_v9 = vsub.f32 0.0, %v4635_v36 }
 0x79e   : > { %v4371_v60 = vsub.f32 0.0, %v12475_v46  ;;  %v4304_v19 = vsel %vm10880_vm7, %v4301_v3, %v4298_v27  ;;  %v4319_v23 = vmul.f32 %v10822_v16, %v4318_v45  ;;  %v10920_v54 = vpop.eup %6005  ;;  %v4313_v15 = vsel %vm10901_vm1, %v4310_v51, %v4307_v0  ;;  %v4585_v3 = vpop.xlane.xlu1 %4584 }
 0x79f   : > { %v4174_v42 = vsub.f32 0.0, %v5228_v20  ;;  %vm10924_vm0 = vcmp.lt.f32.partialorder %v4320_v25, 0.0004427343  ;;  %v4370_v29 = vsub.f32 0.0, %v4250_v52  ;;  %v12478_v34 = vand.u32 2147483647, %v10681_v57  ;;  %v6008_v4 = vpop.eup %6007 }
 0x7a0   : > { %v4327_v16 = vadd.f32 1.0, %v4326_v53  ;;  %v4329_v63 = vand.u32 2147483647, %v10859_v8  ;;  %v12481_v43 = vsel %vm10795_vm5, %v10766_v21, %v10820_v32  ;;  %v12482_v57 = vsel %vm10808_vm8, %v10786_v10, %v10831_v37  ;;  %v10945_v40 = vpop.eup %6009 }
 0x7a1   : > { %vm10930_vm10 = vcmp.lt.f32.partialorder %v12478_v34, 0.0004427343  ;;  %v4372_v49 = vsub.f32 0.0, %v12481_v43  ;;  %v4373_v56 = vsub.f32 0.0, %v12482_v57  ;;  %6019 = vpow2.f32 %v4674_v55 }
 0x7a2   : > { %v4374_v39 = vsub.f32 0.0, %v4286_v26  ;;  %v4375_v18 = vsub.f32 0.0, %v4295_v47  ;;  %v4376_v36 = vsub.f32 0.0, %v4304_v19  ;;  %6021 = vpow2.f32 %v4676_v62  ;;  %v4587_v10 = vpop.xlane.xlu1 %4586 }
 0x7a3   : > { %v4678_v27 = vmul.f32 1.442695, %v4651_v9  ;;  %v4190_v45 = vsub.f32 0.0, %v4174_v42  ;;  %v4377_v41 = vsub.f32 0.0, %v4313_v15  ;;  %v5242_v0 = vclamps-f32 %v4585_v3, 10.0 }
 0x7a4   : > { %v4316_v51 = vmul.f32 0.6931472, %v6008_v4  ;;  %v10948_v21 = vadd.f32 %v4368_v13, %v10638_v59  ;;  %v10951_v33 = vadd.f32 %v4370_v29, %v10644_v11  ;;  %v4328_v32 = vmul.f32 %v10859_v8, %v4327_v16  ;;  %v10965_v59 = vpop.eup %6011  ;;  %v4127_v29 = vpop.xlane.xlu0 %4126 }
 0x7a5   : > { %vm10954_vm13 = vcmp.lt.f32.partialorder %v4329_v63, 0.0004427343  ;;  %v4332_v26 = vadd.f32 1.0, %v10945_v40  ;;  %v10960_v47 = vadd.f32 %v4371_v60, %v10662_v44  ;;  %v10963_v30 = vadd.f32 %v4372_v49, %v10559_v17 }
 0x7a6   : > { %v10968_v11 = vadd.f32 %v4373_v56, %v10679_v5  ;;  %v10971_v25 = vadd.f32 %v4374_v39, %v10566_v7  ;;  %v10974_v8 = vadd.f32 %v4375_v18, %v10699_v28  ;;  %v4697_v58 = vadd.f32 1.0, %v10825_v24  ;;  %v6014_v52 = vpop.eup %6013 }
 0x7a7   : > { %6023 = vpow2.f32 %v4678_v27  ;;  %v4220_v44 = vmul.f32 1.442695, %v4190_v45  ;;  %v10978_v53 = vadd.f32 %v4376_v36, %v10573_v38  ;;  %v10981_v17 = vadd.f32 %v4377_v41, %v10709_v6 }
 0x7a8   : > { %v4636_v13 = vsub.f32 0.0, %v5242_v0  ;;  %v5243_v5 = vclamps-f32 %v4587_v10, 10.0  ;;  %v4322_v7 = vsel %vm10924_vm0, %v4319_v23, %v4316_v51  ;;  %v4706_v55 = vadd.f32 1.0, %v10873_v22  ;;  %v10992_v46 = vpop.eup %6015 }
 0x7a9   : > { %12485 = vst [vmem:[#allocation102_spill] sm:$0xff] %v10981_v17  ;;  %6025 = vlog2.f32 %v4332_v26  ;;  %v4700_v20 = vmul.f32 -0.5, %v10825_v24  ;;  %v4715_v38 = vadd.f32 1.0, %v10878_v1  ;;  %v4325_v6 = vmul.f32 0.6931472, %v6014_v52  ;;  %v10996_v9 = vpop.eup %6017 }
 0x7aa   : > { %6027 = vlog2.f32 %v4697_v58  ;;  %v4709_v60 = vmul.f32 -0.5, %v10873_v22  ;;  %v4724_v62 = vadd.f32 1.0, %v10898_v12  ;;  %v4335_v19 = vmul.f32 -0.5, %v10945_v40 }
 0x7ab   : > { %6029 = vpow2.f32 %v4220_v44  ;;  %v4378_v23 = vsub.f32 0.0, %v4322_v7  ;;  %v4718_v42 = vmul.f32 -0.5, %v10878_v1  ;;  %v4652_v15 = vsub.f32 0.0, %v4636_v13 }
 0x7ac   : > { %v4637_v48 = vsub.f32 0.0, %v5243_v5  ;;  %v4703_v34 = vand.u32 2147483647, %v10825_v24  ;;  %6031 = vlog2.f32 %v4706_v55  ;;  %v5229_v4 = vclamps-f32 %v4127_v29, 10.0 }
 0x7ad   : > { %v4341_v3 = vadd.f32 1.0, %v10992_v46  ;;  %v4701_v16 = vadd.f32 1.0, %v4700_v20  ;;  %6033 = vlog2.f32 %v4715_v38  ;;  %v4331_v63 = vsel %vm10954_vm13, %v4328_v32, %v4325_v6  ;;  %v4589_v32 = vpop.xlane.xlu1 %4588 }
 0x7ae   : > { %v4710_v43 = vadd.f32 1.0, %v4709_v60  ;;  %6035 = vlog2.f32 %v4724_v62  ;;  %v4727_v49 = vmul.f32 -0.5, %v10898_v12  ;;  %v11005_v57 = vpop.eup %6019  ;;  %v4336_v56 = vadd.f32 1.0, %v4335_v19 }
 0x7af   : > { %v4712_v39 = vand.u32 2147483647, %v10873_v22  ;;  %v4719_v18 = vadd.f32 1.0, %v4718_v42  ;;  %v4736_v36 = vmul.f32 -0.5, %v10915_v35  ;;  %v11009_v27 = vpop.eup %6021  ;;  %v4680_v45 = vmul.f32 1.442695, %v4652_v15 }
 0x7b0   : > { %v4653_v41 = vsub.f32 0.0, %v4637_v48  ;;  %v4338_v0 = vand.u32 2147483647, %v10945_v40  ;;  %v11013_v51 = vadd.f32 %v4378_v23, %v10576_v61  ;;  %v4175_v10 = vsub.f32 0.0, %v5229_v4 }
 0x7b1   : > { %6037 = vlog2.f32 %v4341_v3  ;;  %v4379_v37 = vsub.f32 0.0, %v4331_v63  ;;  %v4733_v26 = vadd.f32 1.0, %v10915_v35  ;;  %v11017_v58 = vmul.f32 %v10825_v24, %v4701_v16  ;;  %v4591_v23 = vpop.xlane.xlu0 %4590 }
 0x7b2   : > { %12486 = vst [vmem:[#allocation17_spill] sm:$0xff] %v11013_v51  ;;  %v11020_v52 = vmul.f32 %v10873_v22, %v4710_v43  ;;  %v4721_v44 = vand.u32 2147483647, %v10878_v1  ;;  %v4728_v13 = vadd.f32 1.0, %v4727_v49  ;;  %v11024_v5 = vmul.f32 %v10945_v40, %v4336_v56 }
 0x7b3   : > { %v11027_v61 = vmul.f32 %v10878_v1, %v4719_v18  ;;  %v4737_v7 = vadd.f32 1.0, %v4736_v36  ;;  %v4742_v55 = vadd.f32 1.0, %v10920_v54  ;;  %6039 = vpow2.f32 %v4680_v45 }
 0x7b4   : > { %v11030_v20 = vpop.eup %6023  ;;  %v4682_v24 = vmul.f32 1.442695, %v4653_v41  ;;  %v5244_v38 = vclamps-f32 %v4589_v32, 10.0  ;;  %vm11032_vm14 = vcmp.lt.f32.partialorder %v4338_v0, 0.0004427343  ;;  %v4191_v60 = vsub.f32 0.0, %v4175_v10 }
 0x7b5   : > { %v4730_v6 = vand.u32 2147483647, %v10898_v12  ;;  %v11038_v40 = vadd.f32 %v4379_v37, %v10729_v31  ;;  %vm11040_vm3 = vcmp.lt.f32.partialorder %v4703_v34, 0.0004427343  ;;  %6041 = vlog2.f32 %v4733_v26 }
 0x7b6   : > { %v4751_v62 = vadd.f32 1.0, %v10965_v59  ;;  %v6026_v19 = vpop.eup %6025  ;;  %v4344_v42 = vmul.f32 -0.5, %v10992_v46  ;;  %v11047_v15 = vmul.f32 %v10898_v12, %v4728_v13  ;;  %v4739_v48 = vand.u32 2147483647, %v10915_v35 }
 0x7b7   : > { %12489 = vst [vmem:[#allocation103_spill] sm:$0xff] %v11038_v40  ;;  %v4760_v29 = vadd.f32 1.0, %v10996_v9  ;;  %v6028_v31 = vpop.eup %6027  ;;  %v5245_v4 = vclamps-f32 %v4591_v23, 10.0  ;;  %v11052_v34 = vmul.f32 %v10915_v35, %v4737_v7  ;;  %6043 = vlog2.f32 %v4742_v55 }
 0x7b8   : > { %v4769_v3 = vadd.f32 1.0, %v11005_v57  ;;  %v11055_v16 = vpop.eup %6029  ;;  %6045 = vpow2.f32 %v4682_v24  ;;  %v4638_v63 = vsub.f32 0.0, %v5244_v38  ;;  %vm11057_vm2 = vcmp.lt.f32.partialorder %v4712_v39, 0.0004427343 }
 0x7b9   : > { %vm11061_vm9 = vcmp.lt.f32.partialorder %v4721_v44, 0.0004427343  ;;  %v4745_v49 = vmul.f32 -0.5, %v10920_v54  ;;  %v4778_v35 = vadd.f32 1.0, %v11009_v27  ;;  %v6032_v56 = vpop.eup %6031  ;;  %v4222_v18 = vmul.f32 1.442695, %v4191_v60 }
 0x7ba   : > { %v4334_v36 = vmul.f32 0.6931472, %v6026_v19  ;;  %v4347_v45 = vand.u32 2147483647, %v10992_v46  ;;  %vm11068_vm4 = vcmp.lt.f32.partialorder %v4730_v6, 0.0004427343  ;;  %6047 = vlog2.f32 %v4751_v62  ;;  %v6034_v39 = vpop.eup %6033 }
 0x7bb   : > { %v4345_v0 = vadd.f32 1.0, %v4344_v42  ;;  %v11072_v10 = vmul.f32 0.6931472, %v6028_v31  ;;  %v4754_v32 = vmul.f32 -0.5, %v10965_v59  ;;  %6049 = vlog2.f32 %v4760_v29  ;;  %v6036_v37 = vpop.eup %6035 }
 0x7bc   : > { %v4639_v26 = vsub.f32 0.0, %v5245_v4  ;;  %v4350_v44 = vadd.f32 1.0, %v11055_v16  ;;  %v4763_v13 = vmul.f32 -0.5, %v10996_v9  ;;  %6051 = vlog2.f32 %v4769_v3 }
 0x7bd   : > { %v4654_v7 = vsub.f32 0.0, %v4638_v63  ;;  %v4746_v55 = vadd.f32 1.0, %v4745_v49  ;;  %v4748_v24 = vand.u32 2147483647, %v10920_v54  ;;  %6053 = vlog2.f32 %v4778_v35 }
 0x7be   : > { %6055 = vpow2.f32 %v4222_v18  ;;  %v4340_v38 = vsel %vm11032_vm14, %v11024_v5, %v4334_v36  ;;  %v11081_v6 = vmul.f32 0.6931472, %v6032_v56  ;;  %v11083_v60 = vmul.f32 0.6931472, %v6034_v39  ;;  %v6038_v62 = vpop.eup %6037 }
 0x7bf   : > { %vm11085_vm5 = vcmp.lt.f32.partialorder %v4347_v45, 0.0004427343  ;;  %v11093_v42 = vmul.f32 0.6931472, %v6036_v37  ;;  %v4755_v29 = vadd.f32 1.0, %v4754_v32  ;;  %v4655_v31 = vsub.f32 0.0, %v4639_v26 }
 0x7c0   : > { %v4346_v5 = vmul.f32 %v10992_v46, %v4345_v0  ;;  %6057 = vlog2.f32 %v4350_v44  ;;  %v4764_v22 = vadd.f32 1.0, %v4763_v13  ;;  %v4684_v4 = vmul.f32 1.442695, %v4654_v7  ;;  %v11104_v56 = vpop.eup %6039 }
 0x7c1   : > { %v4380_v3 = vsub.f32 0.0, %v4340_v38  ;;  %vm11096_vm8 = vcmp.lt.f32.partialorder %v4739_v48, 0.0004427343  ;;  %v11101_v49 = vmul.f32 %v10920_v54, %v4746_v55  ;;  %v4757_v35 = vand.u32 2147483647, %v10965_v59 }
 0x7c2   : > { %v4343_v18 = vmul.f32 0.6931472, %v6038_v62  ;;  %v4772_v36 = vmul.f32 -0.5, %v11005_v57  ;;  %v6042_v45 = vpop.eup %6041  ;;  %vm11119_vm15 = vcmp.lt.f32.partialorder %v4748_v24, 0.0004427343  ;;  %v11124_v0 = vmul.f32 %v10965_v59, %v4755_v29  ;;  %v12504_v24 = vld [vmem:[#allocation16_spill] sm:$0xff] }
 0x7c3   : > { %v4781_v32 = vmul.f32 -0.5, %v11009_v27  ;;  %v4787_v37 = vadd.f32 1.0, %v11030_v20  ;;  %v4686_v26 = vmul.f32 1.442695, %v4655_v31  ;;  %v4353_v44 = vmul.f32 -0.5, %v11055_v16 }
 0x7c4   : > { %v11130_v13 = vmul.f32 %v10996_v9, %v4764_v22  ;;  %v4766_v7 = vand.u32 2147483647, %v10996_v9  ;;  %v6044_v55 = vpop.eup %6043  ;;  %6059 = vpow2.f32 %v4684_v4  ;;  %v11134_v38 = vadd.f32 %v4380_v3, %v12504_v24 }
 0x7c5   : > { %vm11136_vm11 = vcmp.lt.f32.partialorder %v4757_v35, 0.0004427343  ;;  %v4775_v62 = vand.u32 2147483647, %v11005_v57  ;;  %v4796_v29 = vadd.f32 1.0, %v11104_v56  ;;  %v11142_v31 = vpop.eup %6045  ;;  %v4349_v22 = vsel %vm11085_vm5, %v4346_v5, %v4343_v18 }
 0x7c6   : > { %12505 = vst [vmem:[#allocation104_spill] sm:$0xff] %v11134_v38  ;;  %v4735_v54 = vmul.f32 0.6931472, %v6042_v45  ;;  %v4773_v9 = vadd.f32 1.0, %v4772_v36  ;;  %v4784_v4 = vand.u32 2147483647, %v11009_v27  ;;  %6061 = vlog2.f32 %v4787_v37 }
 0x7c7   : > { %v6048_v48 = vpop.eup %6047  ;;  %v4356_v3 = vand.u32 2147483647, %v11055_v16  ;;  %v4782_v35 = vadd.f32 1.0, %v4781_v32  ;;  %v4790_v24 = vmul.f32 -0.5, %v11030_v20  ;;  %6063 = vpow2.f32 %v4686_v26 }
 0x7c8   : > { %v6050_v46 = vpop.eup %6049  ;;  %v4354_v23 = vadd.f32 1.0, %v4353_v44  ;;  %v4744_v28 = vmul.f32 0.6931472, %v6044_v55  ;;  %v4799_v38 = vmul.f32 -0.5, %v11104_v56  ;;  %v4381_v19 = vsub.f32 0.0, %v4349_v22 }
 0x7c9   : > { %v6052_v40 = vpop.eup %6051  ;;  %vm11150_vm6 = vcmp.lt.f32.partialorder %v4766_v7, 0.0004427343  ;;  %vm11154_vm12 = vcmp.lt.f32.partialorder %v4775_v62, 0.0004427343  ;;  %6065 = vlog2.f32 %v4796_v29  ;;  %v4741_v45 = vsel %vm11096_vm8, %v11052_v34, %v4735_v54 }
 0x7ca   : > { %v6054_v36 = vpop.eup %6053  ;;  %v4753_v32 = vmul.f32 0.6931472, %v6048_v48  ;;  %vm11161_vm7 = vcmp.lt.f32.partialorder %v4784_v4, 0.0004427343  ;;  %v4808_v26 = vmul.f32 -0.5, %v11142_v31  ;;  %v4774_v62 = vmul.f32 %v11005_v57, %v4773_v9  ;;  %v12516_v4 = vld [vmem:[#allocation26_spill] sm:$0xff] }
 0x7cb   : > { %v11166_v44 = vpop.eup %6055  ;;  %vm11168_vm1 = vcmp.lt.f32.partialorder %v4356_v3, 0.0004427343  ;;  %v4762_v55 = vmul.f32 0.6931472, %v6050_v46  ;;  %v4791_v29 = vadd.f32 1.0, %v4790_v24  ;;  %v4355_v63 = vmul.f32 %v11055_v16, %v4354_v23 }
 0x7cc   : > { %v4750_v34 = vsel %vm11119_vm15, %v11101_v49, %v4744_v28  ;;  %v4783_v48 = vmul.f32 %v11009_v27, %v4782_v35  ;;  %v4800_v54 = vadd.f32 1.0, %v4799_v38  ;;  %v11179_v51 = vadd.f32 %v4381_v19, %v12516_v4 }
 0x7cd   : > { %v6058_v22 = vpop.eup %6057  ;;  %v4771_v3 = vmul.f32 0.6931472, %v6052_v40  ;;  %v4793_v17 = vand.u32 2147483647, %v11030_v20  ;;  %v4805_v46 = vadd.f32 1.0, %v11142_v31  ;;  %v4362_v57 = vmul.f32 -0.5, %v11166_v44 }
 0x7ce   : > { %v4759_v16 = vsel %vm11136_vm11, %v11124_v0, %v4753_v32  ;;  %v4780_v23 = vmul.f32 0.6931472, %v6054_v36  ;;  %v4809_v28 = vadd.f32 1.0, %v4808_v26  ;;  %v4768_v27 = vsel %vm11150_vm6, %v11130_v13, %v4762_v55 }
 0x7cf   : > { %v11191_v49 = vmul.f32 %v11030_v20, %v4791_v29  ;;  %v4802_v40 = vand.u32 2147483647, %v11104_v56  ;;  %v4811_v39 = vand.u32 2147483647, %v11142_v31  ;;  %v4352_v38 = vmul.f32 0.6931472, %v6058_v22 }
 0x7d0   : > { %v4359_v9 = vadd.f32 1.0, %v11166_v44  ;;  %v11197_v35 = vmul.f32 %v11104_v56, %v4800_v54  ;;  %v12517_v0 = vsel %vm10930_vm10, %v10755_v2, %v10792_v50  ;;  %v4777_v20 = vsel %vm11154_vm12, %v4774_v62, %v4771_v3  ;;  %v12526_v62 = vld [vmem:[#allocation100_spill] sm:$0xff] }
 0x7d1   : > { %v4832_v59 = vsub.f32 0.0, %v12517_v0  ;;  %6067 = vlog2.f32 %v4805_v46  ;;  %v12518_v13 = vsel %vm11040_vm3, %v11017_v58, %v11072_v10  ;;  %v12519_v56 = vsel %vm11057_vm2, %v11020_v52, %v11081_v6  ;;  %v11216_v19 = vpop.eup %6059 }
 0x7d2   : > { %v4833_v24 = vsub.f32 0.0, %v12518_v13  ;;  %v4834_v14 = vsub.f32 0.0, %v12519_v56  ;;  %v4363_v2 = vadd.f32 1.0, %v4362_v57  ;;  %v4786_v50 = vsel %vm11161_vm7, %v4783_v48, %v4780_v23 }
 0x7d3   : > { %vm11220_vm0 = vcmp.lt.f32.partialorder %v4793_v17, 0.0004427343  ;;  %v11225_v58 = vmul.f32 %v11142_v31, %v4809_v28  ;;  %v12522_v52 = vsel %vm11061_vm9, %v11027_v61, %v11083_v60  ;;  %v4365_v43 = vand.u32 2147483647, %v11166_v44  ;;  %v6062_v36 = vpop.eup %6061 }
 0x7d4   : > { %v4835_v1 = vsub.f32 0.0, %v12522_v52  ;;  %v12523_v10 = vsel %vm11068_vm4, %v11047_v15, %v11093_v42  ;;  %v4837_v6 = vsub.f32 0.0, %v4741_v45  ;;  %v4838_v18 = vsub.f32 0.0, %v4750_v34  ;;  %v11245_v41 = vpop.eup %6063 }
 0x7d5   : > { %v4836_v17 = vsub.f32 0.0, %v12523_v10  ;;  %v4358_v32 = vsel %vm11168_vm1, %v4355_v63, %v4352_v38  ;;  %6069 = vlog2.f32 %v4359_v9  ;;  %vm11240_vm10 = vcmp.lt.f32.partialorder %v4802_v40, 0.0004427343  ;;  %v12527_v63 = vld [vmem:[#allocation101_spill] sm:$0xff] }
 0x7d6   : > { %v4839_v61 = vsub.f32 0.0, %v4759_v16  ;;  %v4840_v60 = vsub.f32 0.0, %v4768_v27  ;;  %v4817_v15 = vmul.f32 -0.5, %v11216_v19  ;;  %v4841_v42 = vsub.f32 0.0, %v4777_v20  ;;  %v6066_v26 = vpop.eup %6065 }
 0x7d7   : > { %v4842_v45 = vsub.f32 0.0, %v4786_v50  ;;  %v4848_v37 = vadd.f32 %v4832_v59, %v10948_v21  ;;  %v11250_v7 = vmul.f32 %v11166_v44, %v4363_v2  ;;  %v4814_v55 = vadd.f32 1.0, %v11216_v19  ;;  %v12531_v50 = vld [vmem:[#allocation17_spill] sm:$0xff] }
 0x7d8   : > { %v4849_v29 = vadd.f32 %v4833_v24, %v12526_v62  ;;  %v4867_v34 = vadd.s32 8, %v12527_v63  ;;  %v11255_v48 = vsub.f32 0.0, %v4358_v32  ;;  %v4789_v54 = vmul.f32 0.6931472, %v6062_v36 }
 0x7d9   : > { %v4868_v22 = vadd.s32 16, %v12527_v63  ;;  %v11260_v4 = vstv %s5246_s28  ;;  %v4823_v21 = vadd.f32 1.0, %v11245_v41  ;;  %v4850_v3 = vadd.f32 %v4834_v14, %v10951_v33 }
 0x7da   : > { %v4851_v46 = vadd.f32 %v4835_v1, %v10960_v47  ;;  %v4869_v57 = vadd.s32 24, %v12527_v63  ;;  %v4798_v16 = vmul.f32 0.6931472, %v6066_v26  ;;  %v4818_v23 = vadd.f32 1.0, %v4817_v15 }
 0x7db   : > { %v4820_v28 = vand.u32 2147483647, %v11216_v19  ;;  %v4852_v27 = vadd.f32 %v4836_v17, %v10963_v30  ;;  %6071 = vlog2.f32 %v4814_v55  ;;  %v4870_v40 = vadd.s32 32, %v12527_v63 }
 0x7dc   : > { %v4883_v38 = vadd.s32 %v11260_v4, %v12527_v63  ;;  %v4884_v9 = vadd.s32 %v11260_v4, %v4867_v34  ;;  %v4795_v33 = vsel %vm11220_vm0, %v11191_v49, %v4789_v54  ;;  %v4853_v47 = vadd.f32 %v4837_v6, %v10968_v11 }
 0x7dd   : > { %v11277_v0 = vadd.f32 %v4838_v18, %v10971_v25  ;;  %v4885_v59 = vadd.s32 %v11260_v4, %v4868_v22  ;;  %6073 = vlog2.f32 %v4823_v21  ;;  %v11281_v30 = vadd.f32 %v4839_v61, %v10974_v8  ;;  %v12528_v25 = vld [vmem:[#allocation102_spill] sm:$0xff]  ;;  %v12532_v61 = vld [vmem:[#allocation103_spill] sm:$0xff] }
 0x7de   : > { %v4871_v20 = vadd.s32 40, %v12527_v63  ;;  %v4886_v13 = vadd.s32 %v11260_v4, %v4869_v57  ;;  %v4804_v24 = vsel %vm11240_vm10, %v11197_v35, %v4798_v16  ;;  %v11289_v49 = vmul.f32 %v11216_v19, %v4818_v23  ;;  %v6068_v14 = vpop.eup %6067  ;;  %v12539_v16 = vld [vmem:[#allocation104_spill] sm:$0xff] }
 0x7df   : > { %v11292_v11 = vadd.f32 %v4840_v60, %v10978_v53  ;;  %v11295_v56 = vadd.f32 %v4841_v42, %v12528_v25  ;;  %vm11299_vm13 = vcmp.lt.f32.partialorder %v4811_v39, 0.0004427343  ;;  %v4872_v2 = vadd.s32 48, %v12527_v63 }
 0x7e0   : > { %v4887_v35 = vadd.s32 %v11260_v4, %v4870_v40  ;;  %vm4899_vm14 = vcmp.lt.s32.totalorder %v4883_v38, 256  ;;  %vm4900_vm3 = vcmp.lt.s32.totalorder %v4884_v9, 256  ;;  %v4826_v19 = vmul.f32 -0.5, %v11245_v41 }
 0x7e1   : > { %v4843_v53 = vsub.f32 0.0, %v4795_v33  ;;  %v11307_v5 = vadd.f32 %v4842_v45, %v12531_v50  ;;  %vm4901_vm2 = vcmp.lt.s32.totalorder %v4885_v59, 256  ;;  %v4829_v52 = vand.u32 2147483647, %v11245_v41 }
 0x7e2   : > { %v4873_v31 = vadd.s32 56, %v12527_v63  ;;  %v4888_v39 = vadd.s32 %v11260_v4, %v4871_v20  ;;  %vm4902_vm9 = vcmp.lt.s32.totalorder %v4886_v13, 256  ;;  %v6070_v1 = vpop.eup %6069  ;;  %v4844_v10 = vsub.f32 0.0, %v4804_v24 }
 0x7e3   : > { %v4915_v17 = vsel %vm4899_vm14, %v4848_v37, 0.0  ;;  %v4916_v6 = vsel %vm4900_vm3, %v4849_v29, 0.0  ;;  %vm4931_vm4 = vcmask 7168   ;;  %v4874_v18 = vadd.s32 64, %v12527_v63 }
 0x7e4   : > { %v4889_v36 = vadd.s32 %v11260_v4, %v4872_v2  ;;  %vm4903_vm5 = vcmp.lt.s32.totalorder %v4887_v35, 256  ;;  %v4917_v32 = vsel %vm4901_vm2, %v4850_v3, 0.0  ;;  %v4807_v12 = vmul.f32 0.6931472, %v6068_v14 }
 0x7e5   : > { %v11315_v60 = vadd.f32 %v4843_v53, %v12532_v61  ;;  %v4875_v15 = vadd.s32 72, %v12527_v63  ;;  %v4918_v42 = vsel %vm4902_vm9, %v4851_v46, 0.0  ;;  %vm11320_vm8 = vcmp.lt.f32.partialorder %v4365_v43, 0.0004427343 }
 0x7e6   : > { %v4890_v37 = vadd.s32 %v11260_v4, %v4873_v31  ;;  %vm4904_vm15 = vcmp.lt.s32.totalorder %v4888_v39, 256  ;;  %v4932_v26 = vsel %vm4931_vm4, %v4915_v17, 0.0  ;;  %v4933_v55 = vsel %vm4931_vm4, %v4916_v6, 0.0 }
 0x7e7   : > { %vm11327_vm11 = vcmp.lt.f32.partialorder %v4820_v28, 0.0004427343  ;;  %v4827_v29 = vadd.f32 1.0, %v4826_v19  ;;  %v4919_v34 = vsel %vm4903_vm5, %v4852_v27, 0.0  ;;  %v4934_v54 = vadd.f32 %v4933_v55, %v4932_v26 }
 0x7e8   : > { %v4935_v44 = vsel %vm4931_vm4, %v4917_v32, 0.0  ;;  %v4876_v43 = vadd.s32 80, %v12527_v63  ;;  %v4891_v22 = vadd.s32 %v11260_v4, %v4874_v18  ;;  %vm4905_vm6 = vcmp.lt.s32.totalorder %v4889_v36, 256  ;;  %v6072_v3 = vpop.eup %6071 }
 0x7e9   : > { %v4937_v21 = vsel %vm4931_vm4, %v4918_v42, 0.0  ;;  %v4813_v46 = vsel %vm11299_vm13, %v11225_v58, %v4807_v12  ;;  %vm11338_vm12 = vcmp.lt.f32.partialorder %v4829_v52, 0.0004427343  ;;  %v4860_v23 = vadd.f32 %v4844_v10, %v12539_v16 }
 0x7ea   : > { %v4920_v28 = vsel %vm4904_vm15, %v4853_v47, 0.0  ;;  %v4936_v27 = vadd.f32 %v4935_v44, %v4934_v54  ;;  %v4877_v40 = vadd.s32 88, %v12527_v63  ;;  %v4892_v38 = vadd.s32 %v11260_v4, %v4875_v15  ;;  %v6074_v33 = vpop.eup %6073  ;;  %v12540_v15 = vld [vmem:[#allocation7_spill] sm:$0xff] }
 0x7eb   : > { %vm4906_vm7 = vcmp.lt.s32.totalorder %v4890_v37, 256  ;;  %v4939_v9 = vsel %vm4931_vm4, %v4919_v34, 0.0  ;;  %v4361_v59 = vmul.f32 0.6931472, %v6070_v1  ;;  %v4878_v58 = vadd.s32 96, %v12527_v63 }
 0x7ec   : > { %v4921_v20 = vsel %vm4905_vm6, %v11277_v0, 0.0  ;;  %v4938_v13 = vadd.f32 %v4937_v21, %v4936_v27  ;;  %v4816_v24 = vmul.f32 0.6931472, %v6072_v3  ;;  %v4893_v25 = vadd.s32 %v11260_v4, %v4876_v43 }
 0x7ed   : > { %vm4907_vm1 = vcmp.lt.s32.totalorder %v4891_v22, 256  ;;  %v4941_v47 = vsel %vm4931_vm4, %v4920_v28, 0.0  ;;  %v4828_v14 = vmul.f32 %v11245_v41, %v4827_v29  ;;  %v4879_v8 = vadd.s32 104, %v12527_v63  ;;  %v12541_v29 = vld [vmem:[#allocation56_spill] sm:$0xff] }
 0x7ee   : > { %v4922_v2 = vsel %vm4906_vm7, %v11281_v30, 0.0  ;;  %v4940_v35 = vadd.f32 %v4939_v9, %v4938_v13  ;;  %v4825_v19 = vmul.f32 0.6931472, %v6074_v33  ;;  %v4894_v53 = vadd.s32 %v11260_v4, %v4877_v40 }
 0x7ef   : > { %vm4908_vm0 = vcmp.lt.s32.totalorder %v4892_v38, 256  ;;  %v4943_v0 = vsel %vm4931_vm4, %v4921_v20, 0.0  ;;  %v4367_v50 = vsel %vm11320_vm8, %v11250_v7, %v4361_v59  ;;  %v4880_v52 = vadd.s32 112, %v12527_v63 }
 0x7f0   : > { %v4923_v31 = vsel %vm4907_vm1, %v11292_v11, 0.0  ;;  %v4942_v41 = vadd.f32 %v4941_v47, %v4940_v35  ;;  %v4822_v30 = vsel %vm11327_vm11, %v11289_v49, %v4816_v24  ;;  %v4895_v39 = vadd.s32 %v11260_v4, %v4878_v58 }
 0x7f1   : > { %vm4909_vm10 = vcmp.lt.s32.totalorder %v4893_v25, 256  ;;  %v4945_v1 = vsel %vm4931_vm4, %v4922_v2, 0.0  ;;  %v4845_v10 = vsub.f32 0.0, %v4813_v46  ;;  %v4881_v17 = vadd.s32 120, %v12527_v63 }
 0x7f2   : > { %v4924_v6 = vsel %vm4908_vm0, %v11295_v56, 0.0  ;;  %v4944_v7 = vadd.f32 %v4943_v0, %v4942_v41  ;;  %v4831_v18 = vsel %vm11338_vm12, %v4828_v14, %v4825_v19  ;;  %v4896_v11 = vadd.s32 %v11260_v4, %v4879_v8 }
 0x7f3   : > { %vm4910_vm13 = vcmp.lt.s32.totalorder %v4894_v53, 256  ;;  %v4947_v36 = vsel %vm4931_vm4, %v4923_v31, 0.0  ;;  %v4383_v49 = vsub.f32 0.0, %v4367_v50  ;;  %v4846_v32 = vsub.f32 0.0, %v4822_v30 }
 0x7f4   : > { %v4925_v12 = vsel %vm4909_vm10, %v11307_v5, 0.0  ;;  %v4946_v61 = vadd.f32 %v4945_v1, %v4944_v7  ;;  %v4398_v42 = vadd.f32 %v11255_v48, %v12540_v15  ;;  %v4897_v63 = vadd.s32 %v11260_v4, %v4880_v52 }
 0x7f5   : > { %vm4911_vm14 = vcmp.lt.s32.totalorder %v4895_v39, 256  ;;  %v4949_v56 = vsel %vm4931_vm4, %v4924_v6, 0.0  ;;  %v4847_v45 = vsub.f32 0.0, %v4831_v18  ;;  %v4861_v37 = vadd.f32 %v4845_v10, %v11179_v51 }
 0x7f6   : > { %v4926_v26 = vsel %vm4910_vm13, %v11315_v60, 0.0  ;;  %v4948_v55 = vadd.f32 %v4947_v36, %v4946_v61  ;;  %v4898_v62 = vadd.s32 %v11260_v4, %v4881_v17  ;;  %vm4912_vm3 = vcmp.lt.s32.totalorder %v4896_v11, 256 }
 0x7f7   : > { %v4951_v5 = vsel %vm4931_vm4, %v4925_v12, 0.0  ;;  %v4399_v34 = vadd.f32 %v4383_v49, %v12541_v29  ;;  %v4862_v54 = vadd.f32 %v4846_v32, %v4398_v42  ;;  %v4927_v48 = vsel %vm4911_vm14, %v4860_v23, 0.0 }
 0x7f8   : > { %v4950_v44 = vadd.f32 %v4949_v56, %v4948_v55  ;;  %vm4913_vm2 = vcmp.lt.s32.totalorder %v4897_v63, 256  ;;  %v4953_v43 = vsel %vm4931_vm4, %v4926_v26, 0.0  ;;  %v4928_v21 = vsel %vm4912_vm3, %v4861_v37, 0.0 }
 0x7f9   : > { %v4863_v22 = vadd.f32 %v4847_v45, %v4399_v34  ;;  %vm4914_vm9 = vcmp.lt.s32.totalorder %v4898_v62, 256  ;;  %v4955_v51 = vsel %vm4931_vm4, %v4927_v48, 0.0  ;;  %v4929_v60 = vsel %vm4913_vm2, %v4862_v54, 0.0 }
 0x7fa   : > { %v4952_v3 = vadd.f32 %v4951_v5, %v4950_v44  ;;  %v4957_v4 = vsel %vm4931_vm4, %v4928_v21, 0.0  ;;  %v4959_v28 = vsel %vm4931_vm4, %v4929_v60, 0.0 }
 0x7fb   : > { %v4930_v57 = vsel %vm4914_vm9, %v4863_v22, 0.0 }
 0x7fc   : > { %v4954_v46 = vadd.f32 %v4953_v43, %v4952_v3  ;;  %v4961_v27 = vsel %vm4931_vm4, %v4930_v57, 0.0 }
 0x7fe   : > { %v4956_v16 = vadd.f32 %v4955_v51, %v4954_v46 }
 0x800   : > { %v4958_v23 = vadd.f32 %v4957_v4, %v4956_v16 }
 0x802   : > { %v4960_v40 = vadd.f32 %v4959_v28, %v4958_v23 }
 0x804   : > { %v4962_v38 = vadd.f32 %v4961_v27, %v4960_v40 }
 0x806   : > { %4963 = vadd.xlane.f32.xlu1 %v4962_v38 }
 0x88f   : > { %v4964_v9 = vpop.xlane.xlu1 %4963 }
 0x890   : > { %v4965_v33 = vrot.slane %v4964_v9, 4 }
 0x892   : > { %v4966_v59 = vadd.f32 %v4965_v33, %v4964_v9 }
 0x894   : > { %v4967_v58 = vrot.slane %v4966_v59, 2 }
 0x896   : > { %v4968_v20 = vadd.f32 %v4967_v58, %v4966_v59 }
 0x898   : > { %v4969_v13 = vrot.slane %v4968_v20, 1 }
 0x89a   : > { %v4970_v24 = vadd.f32 %v4969_v13, %v4968_v20 }
 0x89c   : > { %5347 = vpush %v4970_v24 }
 0x8cd   : > { %s5348_s4 = spop %5347 }
 0x8ce   : > { %v4972_v25 = vstv %s5348_s4 }
 0x8cf   : > { %4973 = vst [vmem:[%s164_s29] sm:$0xff] %v4972_v25 }
 0x8d0   : > { %6120 = shalt.err (!%p6117_p3)
}
 0x8d1   : > { %s6121_s16 = scalar_lea.hbm %s4986_s7, 128  ;;  %s6125_s24 = scalar_lea.hbm %s11431_s3, 256 }
 0x8d2   : > { %p6122_p4 = scmp.ne.s32.totalorder %s4986_s7, %s6121_s16  ;;  %p6126_p9 = scmp.lt.s32.totalorder %s4986_s7, %s11431_s3 }
 0x8d3   : > { %p6127_p10 = scmp.lt.s32.totalorder %s6125_s24, %s6121_s16 }
 0x8d4   : > { %p6123_p7 = pnand %p6122_p4, %p6249_p5 }
 0x8d5   : > { %p6128_p11 = por %p6127_p10, %p6126_p9 }
 0x8d6   : > { %p6124_p8 = pneg %p6123_p7 }
 0x8d8   : > { %p6129_p12 = pnand %p6128_p11, %p6124_p8 }
 0x8da   : > { %6132 = shalt.err (!%p6129_p12)
}
 0x8db   : > { %5349 = dma.vmem_to_hbm [thread:$0]  (%p6249_p5), %s11388_s30, 128, %s4986_s7, %s4975_s8  }
 0x8dc PF: > { %p5355_p13 = scmp.ge.s32.totalorder %s6167_s15, 2  ;;  %s5000_s26 = sand.u32 1, %s6155_s12  }
 0x8dd   : > { %s5001_s27 = scalar_lea.sflag [#allocation3], %s5000_s26 }
 0x8de   : > { %p5352_p0 = pnand %p5355_p13, %p6253_p6 }
 0x8e0   : > { %p5353_p1 = pneg %p5352_p0 }
 0x8e2   : > { %6150 = dma.done.wait (%p5353_p1), %s5001_s27, 128  }
 0x8e3   : > { %6152 = vsyncadd (%p5353_p1), %s5001_s27, 4294967168  ;;  %p13_p2 = scmp.ge.s32.totalorder %s6236_s18, 4   ;;  %s12542_s12 = smov %s6159_s13 }
 0x8e4   : > { %s12543_s13 = smov %s6163_s14  ;;  %s12544_s14 = smov %s6247_s21 }
 0x8e5   : > { %s12545_s15 = smov %s6236_s18  ;;  %15 = sbr.rel (!%p13_p2) target bundleno = 3 (0x3), region = 67 }
 0x8ea   :  { %5006 = vsyncpa [#allocation3], 1 }
 0x8eb   :  { %5008 = vsyncpa [#allocation3 + $0x1], 1 }

</bundles_post_ra>
